<compile_context>
chip_gen: v7x
topology: tpu7x:2x2x1
jax: 0.10.0
libtpu: 0.0.40
codegen_flags: <defaults>
</compile_context>

<pallas_src>
import functools

import jax
import jax.numpy as jnp
from jax.experimental import pallas as pl
from jax.experimental.pallas import tpu as pltpu


# ----------------------------- helpers -------------------------------------

def _round_up(x, m):
    return ((x + m - 1) // m) * m


def _pick_tile(m, block_m):
    """Tile size (multiple of 128, <= block_m) and padded M."""
    tm = _round_up(min(block_m, _round_up(m, 128)), 128)
    mp = _round_up(m, tm)
    return mp, tm


# ----------------------------- Pallas kernels ------------------------------

def _conv_relu_kernel(w_ref, p_ref, b_ref, o_ref):
    # out[Cout, tm] = relu(W[Cout, K] @ P[K, tm] + b[Cout, 1])
    y = jnp.dot(w_ref[...], p_ref[...], preferred_element_type=jnp.float32)
    o_ref[...] = jnp.maximum(y + b_ref[...], 0.0)


def pallas_conv_relu(wmat, bias, patches, *, block_m):
    """relu(wmat[Cout,K] @ patches[K,M] + bias).  K % 128 == 0, M % block_m == 0."""
    Cout, K = wmat.shape
    K2, M = patches.shape
    assert K == K2 and K % 128 == 0
    assert block_m % 128 == 0 and M % block_m == 0
    grid = (M // block_m,)
    b2 = bias.reshape(Cout, 1).astype(jnp.float32)
    return pl.pallas_call(
        _conv_relu_kernel,
        out_shape=jax.ShapeDtypeStruct((Cout, M), jnp.float32),
        grid=grid,
        in_specs=[
            pl.BlockSpec((Cout, K), lambda i: (0, 0)),      # weights (constant)
            pl.BlockSpec((K, block_m), lambda i: (0, i)),   # patch tile (lane-dense)
            pl.BlockSpec((Cout, 1), lambda i: (0, 0)),      # bias
        ],
        out_specs=pl.BlockSpec((Cout, block_m), lambda i: (0, i)),
        compiler_params=pltpu.CompilerParams(
            dimension_semantics=("parallel",)),
    )(wmat, patches, b2)


def _mlp_head_kernel(x_ref, w1_ref, b1_ref, w2_ref, b2_ref, o_ref, *, sigmoid):
    # fused fc1 -> fc2 (-> sigmoid); the (B,256) intermediate never leaves VMEM.
    h = jnp.dot(x_ref[...], w1_ref[...], preferred_element_type=jnp.float32)
    h = h + b1_ref[...]
    y = jnp.sum(h * w2_ref[...], axis=1, keepdims=True) + b2_ref[...]
    if sigmoid:
        y = jax.nn.sigmoid(y)
    o_ref[...] = y


def pallas_mlp_head(x, fc1_w, fc1_b, fc2_w, fc2_b, *, sigmoid):
    B, F = x.shape                       # (N, 1920)
    H = fc1_w.shape[0]                   # 256  (PyTorch (out, in) convention)
    w1 = fc1_w.T.astype(jnp.bfloat16)    # (1920, 256)
    b1 = fc1_b.reshape(1, H).astype(jnp.float32)
    w2 = fc2_w.reshape(1, H).astype(jnp.float32)
    b2 = fc2_b.reshape(1, 1).astype(jnp.float32)
    xb = x.astype(jnp.bfloat16)
    return pl.pallas_call(
        functools.partial(_mlp_head_kernel, sigmoid=sigmoid),
        out_shape=jax.ShapeDtypeStruct((B, 1), jnp.float32),
        grid=(1,),
        in_specs=[
            pl.BlockSpec((B, F), lambda i: (0, 0)),
            pl.BlockSpec((F, H), lambda i: (0, 0)),
            pl.BlockSpec((1, H), lambda i: (0, 0)),
            pl.BlockSpec((1, H), lambda i: (0, 0)),
            pl.BlockSpec((1, 1), lambda i: (0, 0)),
        ],
        out_specs=pl.BlockSpec((B, 1), lambda i: (0, 0)),
        compiler_params=pltpu.CompilerParams(
            dimension_semantics=("arbitrary",)),
    )(xb, w1, b1, w2, b2)


# ------------------------------- glue (XLA) --------------------------------
# Activations live in a channels-outermost layout (C, N, D, H, W) between
# layers, so strided-slice patch extraction stacks directly into (K, M)
# row-major without any big transpose.

def conv3d_relu_cnf(a, w, b, *, stride, block_m):
    """PyTorch-semantics Conv3d (padding=0, dilation=1, bias) + ReLU.

    a: (Cin, N, D, H, W);  w: (Cout, Cin, k, k, k);  returns (Cout, N, Do, Ho, Wo).
    """
    Cin, N, D, H, W = a.shape
    Cout, Cin2, k, _, _ = w.shape
    assert Cin == Cin2
    s = stride
    Do = (D - k) // s + 1
    Ho = (H - k) // s + 1
    Wo = (W - k) // s + 1

    ab = a.astype(jnp.bfloat16)
    slices = []
    for dz in range(k):
        for dy in range(k):
            for dx in range(k):
                slices.append(
                    ab[:, :,
                       dz:dz + s * (Do - 1) + 1:s,
                       dy:dy + s * (Ho - 1) + 1:s,
                       dx:dx + s * (Wo - 1) + 1:s])   # (Cin, N, Do, Ho, Wo)

    M = N * Do * Ho * Wo
    K = (k ** 3) * Cin
    # (k^3, Cin, N, Do, Ho, Wo) -> (K, M); K ordered (kd, kh, kw, ci), M=(n,do,ho,wo)
    pats = jnp.stack(slices, axis=0).reshape(K, M)

    Kp = _round_up(K, 128)
    Mp, tm = _pick_tile(M, block_m)
    pats = jnp.pad(pats, ((0, Kp - K), (0, Mp - M)))

    wmat = jnp.transpose(w, (0, 2, 3, 4, 1)).reshape(Cout, K).astype(jnp.bfloat16)
    wmat = jnp.pad(wmat, ((0, 0), (0, Kp - K)))

    out = pallas_conv_relu(wmat, b, pats, block_m=tm)          # (Cout, Mp) f32
    return out[:, :M].reshape(Cout, N, Do, Ho, Wo)


def maxpool3d_2_cnf(a):
    """PyTorch-semantics MaxPool3d(kernel=2, stride=2, ceil_mode=False) on (C,N,D,H,W)."""
    C, N, D, H, W = a.shape
    a = a[:, :, :(D // 2) * 2, :(H // 2) * 2, :(W // 2) * 2]
    a = jnp.maximum(a[..., 0::2], a[..., 1::2])
    a = jnp.maximum(a[..., 0::2, :], a[..., 1::2, :])
    a = jnp.maximum(a[..., 0::2, :, :], a[..., 1::2, :, :])
    return a


# ----------------------------- model definition ----------------------------

def init_params(key):
    k = jax.random.split(key, 8)

    def fan_in_init(kk, shape, fan_in):
        return jax.random.normal(kk, shape, jnp.float32) / jnp.sqrt(float(fan_in))

    return {
        "conv1_w": fan_in_init(k[0], (32, 1, 5, 5, 5), 1 * 5 * 5 * 5),
        "conv1_b": fan_in_init(k[1], (32,), 1 * 5 * 5 * 5),
        "conv2_w": fan_in_init(k[2], (32, 32, 3, 3, 3), 32 * 3 * 3 * 3),
        "conv2_b": fan_in_init(k[3], (32,), 32 * 3 * 3 * 3),
        "fc1_w":   fan_in_init(k[4], (256, 1920), 1920),   # PyTorch (out, in)
        "fc1_b":   fan_in_init(k[5], (256,), 1920),
        "fc2_w":   fan_in_init(k[6], (1, 256), 256),
        "fc2_b":   fan_in_init(k[7], (1,), 256),
    }


def cnn_age_forward(params, x, regression=False):
    # x: (N, 1, D, H, W)  ->  channels-outermost (1, N, D, H, W) (size-1 axis move, free)
    a = jnp.transpose(x, (1, 0, 2, 3, 4))
    a = conv3d_relu_cnf(a, params["conv1_w"], params["conv1_b"],
                        stride=2, block_m=3840)               # (32, N, 16, 20, 24)
    a = maxpool3d_2_cnf(a)                                     # (32, N, 8, 10, 12)
    a = conv3d_relu_cnf(a, params["conv2_w"], params["conv2_b"],
                        stride=1, block_m=512)                 # (32, N, 6, 8, 10)
    a = maxpool3d_2_cnf(a)                                     # (32, N, 3, 4, 5)
    # PyTorch output.view(-1, 1920): per-sample flatten in (c, d, h, w) order.
    feat = jnp.transpose(a, (1, 0, 2, 3, 4)).reshape(-1, 1920)
    return pallas_mlp_head(feat, params["fc1_w"], params["fc1_b"],
                           params["fc2_w"], params["fc2_b"],
                           sigmoid=not regression)


if __name__ == "__main__":
    key = jax.random.PRNGKey(0)
    kx, kp = jax.random.split(key)
    # Smallest input whose CNN3d output flattens to exactly 1920 features:
    #   (36,44,52) -conv1(k5,s2)-> (16,20,24) -pool-> (8,10,12)
    #              -conv2(k3,s1)-> (6,8,10)   -pool-> (3,4,5);  32*3*4*5 = 1920
    x = jax.random.normal(kx, (2, 1, 36, 44, 52), jnp.float32)
    params = init_params(kp)

    y = jax.jit(cnn_age_forward)(params, x)
    y = jax.block_until_ready(y)

    assert y.shape == (2, 1), y.shape
    assert bool(jnp.all(jnp.isfinite(y)))
    assert bool(jnp.all((y > 0.0) & (y < 1.0)))   # sigmoid output range
    print("KERNEL_OK")
</pallas_src>

<mosaic_0001>
module attributes {stable_mosaic.version = 11 : i64} {
  func.func @_conv_relu_kernel(%arg0: i32, %arg1: memref<32x128xbf16, #tpu.memory_space<vmem>>, %arg2: memref<128x3840xbf16, #tpu.memory_space<vmem>>, %arg3: memref<32x1xf32, #tpu.memory_space<vmem>>, %arg4: memref<32x3840xf32, #tpu.memory_space<vmem>>) attributes {dimension_semantics = [#tpu.dimension_semantics<parallel>], iteration_bounds = array<i64: 4>, scalar_prefetch = 0 : i64, scratch_operands = 0 : i64, tpu.core_type = #tpu.core_type<tc>, window_params = [{pipeline_mode = #tpu.pipeline_mode<synchronous>, transform_indices = @transform_0, window_bounds = array<i64: 32, 128>}, {transform_indices = @transform_1, window_bounds = array<i64: 128, 3840>}, {pipeline_mode = #tpu.pipeline_mode<synchronous>, transform_indices = @transform_2, window_bounds = array<i64: 32, 1>}, {transform_indices = @transform_3, window_bounds = array<i64: 32, 3840>}]} {
    %c0 = arith.constant 0 : index
    %c0_0 = arith.constant 0 : index
    %0 = vector.load %arg1[%c0, %c0_0] : memref<32x128xbf16, #tpu.memory_space<vmem>>, vector<32x128xbf16>
    %c0_1 = arith.constant 0 : index
    %c0_2 = arith.constant 0 : index
    %1 = vector.load %arg2[%c0_1, %c0_2] : memref<128x3840xbf16, #tpu.memory_space<vmem>>, vector<128x3840xbf16>
    %cst = arith.constant dense<0.000000e+00> : vector<32x3840xf32>
    %2 = tpu.matmul %0, %1, %cst {dimension_numbers = #tpu.dot_dimension_numbers<[1], [0], [0], [1], [0, 0, 1, 1], [], []>} : vector<32x128xbf16>, vector<128x3840xbf16>, vector<32x3840xf32> -> vector<32x3840xf32>
    %c0_3 = arith.constant 0 : index
    %c0_4 = arith.constant 0 : index
    %3 = vector.load %arg3[%c0_3, %c0_4] : memref<32x1xf32, #tpu.memory_space<vmem>>, vector<32x1xf32>
    %4 = vector.broadcast %3 : vector<32x1xf32> to vector<32x3840xf32>
    %5 = arith.addf %2, %4 : vector<32x3840xf32>
    %cst_5 = arith.constant 0.000000e+00 : f32
    %6 = vector.broadcast %cst_5 : f32 to vector<32x3840xf32>
    %7 = arith.maximumf %5, %6 : vector<32x3840xf32>
    %c0_6 = arith.constant 0 : index
    %c0_7 = arith.constant 0 : index
    %8 = vector.load %arg4[%c0_6, %c0_7] : memref<32x3840xf32, #tpu.memory_space<vmem>>, vector<32x3840xf32>
    tpu.vector_store %arg4[%c0_6, %c0_7], %7 {strides = array<i32>} : memref<32x3840xf32, #tpu.memory_space<vmem>>, vector<32x3840xf32>,
    return
  }
  func.func @transform_0(%arg0: i32) -> (i32, i32) {
    %c0_i32 = arith.constant 0 : i32
    %c0_i32_0 = arith.constant 0 : i32
    %c0_i32_1 = arith.constant 0 : i32
    return %c0_i32, %c0_i32_0 : i32, i32
  }
  func.func @transform_1(%arg0: i32) -> (i32, i32) {
    %c0_i32 = arith.constant 0 : i32
    %c0_i32_0 = arith.constant 0 : i32
    return %c0_i32, %arg0 : i32, i32
  }
  func.func @transform_2(%arg0: i32) -> (i32, i32) {
    %c0_i32 = arith.constant 0 : i32
    %c0_i32_0 = arith.constant 0 : i32
    %c0_i32_1 = arith.constant 0 : i32
    return %c0_i32, %c0_i32_0 : i32, i32
  }
  func.func @transform_3(%arg0: i32) -> (i32, i32) {
    %c0_i32 = arith.constant 0 : i32
    %c0_i32_0 = arith.constant 0 : i32
    return %c0_i32, %arg0 : i32, i32
  }
}

module attributes {stable_mosaic.version = 11 : i64} {
  func.func @_conv_relu_kernel(%arg0: i32, %arg1: memref<32x896xbf16, #tpu.memory_space<vmem>>, %arg2: memref<896x512xbf16, #tpu.memory_space<vmem>>, %arg3: memref<32x1xf32, #tpu.memory_space<vmem>>, %arg4: memref<32x512xf32, #tpu.memory_space<vmem>>) attributes {dimension_semantics = [#tpu.dimension_semantics<parallel>], iteration_bounds = array<i64: 2>, scalar_prefetch = 0 : i64, scratch_operands = 0 : i64, tpu.core_type = #tpu.core_type<tc>, window_params = [{pipeline_mode = #tpu.pipeline_mode<synchronous>, transform_indices = @transform_0, window_bounds = array<i64: 32, 896>}, {transform_indices = @transform_1, window_bounds = array<i64: 896, 512>}, {pipeline_mode = #tpu.pipeline_mode<synchronous>, transform_indices = @transform_2, window_bounds = array<i64: 32, 1>}, {transform_indices = @transform_3, window_bounds = array<i64: 32, 512>}]} {
    %c0 = arith.constant 0 : index
    %c0_0 = arith.constant 0 : index
    %0 = vector.load %arg1[%c0, %c0_0] : memref<32x896xbf16, #tpu.memory_space<vmem>>, vector<32x896xbf16>
    %c0_1 = arith.constant 0 : index
    %c0_2 = arith.constant 0 : index
    %1 = vector.load %arg2[%c0_1, %c0_2] : memref<896x512xbf16, #tpu.memory_space<vmem>>, vector<896x512xbf16>
    %cst = arith.constant dense<0.000000e+00> : vector<32x512xf32>
    %2 = tpu.matmul %0, %1, %cst {dimension_numbers = #tpu.dot_dimension_numbers<[1], [0], [0], [1], [0, 0, 1, 1], [], []>} : vector<32x896xbf16>, vector<896x512xbf16>, vector<32x512xf32> -> vector<32x512xf32>
    %c0_3 = arith.constant 0 : index
    %c0_4 = arith.constant 0 : index
    %3 = vector.load %arg3[%c0_3, %c0_4] : memref<32x1xf32, #tpu.memory_space<vmem>>, vector<32x1xf32>
    %4 = vector.broadcast %3 : vector<32x1xf32> to vector<32x512xf32>
    %5 = arith.addf %2, %4 : vector<32x512xf32>
    %cst_5 = arith.constant 0.000000e+00 : f32
    %6 = vector.broadcast %cst_5 : f32 to vector<32x512xf32>
    %7 = arith.maximumf %5, %6 : vector<32x512xf32>
    %c0_6 = arith.constant 0 : index
    %c0_7 = arith.constant 0 : index
    %8 = vector.load %arg4[%c0_6, %c0_7] : memref<32x512xf32, #tpu.memory_space<vmem>>, vector<32x512xf32>
    tpu.vector_store %arg4[%c0_6, %c0_7], %7 {strides = array<i32>} : memref<32x512xf32, #tpu.memory_space<vmem>>, vector<32x512xf32>,
    return
  }
  func.func @transform_0(%arg0: i32) -> (i32, i32) {
    %c0_i32 = arith.constant 0 : i32
    %c0_i32_0 = arith.constant 0 : i32
    %c0_i32_1 = arith.constant 0 : i32
    return %c0_i32, %c0_i32_0 : i32, i32
  }
  func.func @transform_1(%arg0: i32) -> (i32, i32) {
    %c0_i32 = arith.constant 0 : i32
    %c0_i32_0 = arith.constant 0 : i32
    return %c0_i32, %arg0 : i32, i32
  }
  func.func @transform_2(%arg0: i32) -> (i32, i32) {
    %c0_i32 = arith.constant 0 : i32
    %c0_i32_0 = arith.constant 0 : i32
    %c0_i32_1 = arith.constant 0 : i32
    return %c0_i32, %c0_i32_0 : i32, i32
  }
  func.func @transform_3(%arg0: i32) -> (i32, i32) {
    %c0_i32 = arith.constant 0 : i32
    %c0_i32_0 = arith.constant 0 : i32
    return %c0_i32, %arg0 : i32, i32
  }
}

module attributes {stable_mosaic.version = 11 : i64} {
  func.func @_mlp_head_kernel(%arg0: i32, %arg1: memref<2x1920xbf16, #tpu.memory_space<vmem>>, %arg2: memref<1920x256xbf16, #tpu.memory_space<vmem>>, %arg3: memref<1x256xf32, #tpu.memory_space<vmem>>, %arg4: memref<1x256xf32, #tpu.memory_space<vmem>>, %arg5: memref<1x1xf32, #tpu.memory_space<vmem>>, %arg6: memref<2x1xf32, #tpu.memory_space<vmem>>) attributes {dimension_semantics = [#tpu.dimension_semantics<arbitrary>], iteration_bounds = array<i64: 1>, scalar_prefetch = 0 : i64, scratch_operands = 0 : i64, tpu.core_type = #tpu.core_type<tc>, window_params = [{pipeline_mode = #tpu.pipeline_mode<synchronous>, transform_indices = @transform_0, window_bounds = array<i64: 2, 1920>}, {pipeline_mode = #tpu.pipeline_mode<synchronous>, transform_indices = @transform_1, window_bounds = array<i64: 1920, 256>}, {pipeline_mode = #tpu.pipeline_mode<synchronous>, transform_indices = @transform_2, window_bounds = array<i64: 1, 256>}, {pipeline_mode = #tpu.pipeline_mode<synchronous>, transform_indices = @transform_3, window_bounds = array<i64: 1, 256>}, {pipeline_mode = #tpu.pipeline_mode<synchronous>, transform_indices = @transform_4, window_bounds = array<i64: 1, 1>}, {pipeline_mode = #tpu.pipeline_mode<synchronous>, transform_indices = @transform_5, window_bounds = array<i64: 2, 1>}]} {
    %c0 = arith.constant 0 : index
    %c0_0 = arith.constant 0 : index
    %0 = vector.load %arg1[%c0, %c0_0] : memref<2x1920xbf16, #tpu.memory_space<vmem>>, vector<2x1920xbf16>
    %c0_1 = arith.constant 0 : index
    %c0_2 = arith.constant 0 : index
    %1 = vector.load %arg2[%c0_1, %c0_2] : memref<1920x256xbf16, #tpu.memory_space<vmem>>, vector<1920x256xbf16>
    %cst = arith.constant dense<0.000000e+00> : vector<2x256xf32>
    %2 = tpu.matmul %0, %1, %cst {dimension_numbers = #tpu.dot_dimension_numbers<[1], [0], [0], [1], [0, 0, 1, 1], [], []>} : vector<2x1920xbf16>, vector<1920x256xbf16>, vector<2x256xf32> -> vector<2x256xf32>
    %c0_3 = arith.constant 0 : index
    %c0_4 = arith.constant 0 : index
    %3 = vector.load %arg3[%c0_3, %c0_4] : memref<1x256xf32, #tpu.memory_space<vmem>>, vector<1x256xf32>
    %4 = vector.broadcast %3 : vector<1x256xf32> to vector<2x256xf32>
    %5 = arith.addf %2, %4 : vector<2x256xf32>
    %c0_5 = arith.constant 0 : index
    %c0_6 = arith.constant 0 : index
    %6 = vector.load %arg4[%c0_5, %c0_6] : memref<1x256xf32, #tpu.memory_space<vmem>>, vector<1x256xf32>
    %7 = vector.broadcast %6 : vector<1x256xf32> to vector<2x256xf32>
    %8 = arith.mulf %5, %7 : vector<2x256xf32>
    %cst_7 = arith.constant dense<0.000000e+00> : vector<2xf32>
    %9 = vector.multi_reduction <add>, %8, %cst_7 [1] : vector<2x256xf32> to vector<2xf32>
    %10 = vector.shape_cast %9 : vector<2xf32> to vector<2x1xf32>
    %c0_8 = arith.constant 0 : index
    %c0_9 = arith.constant 0 : index
    %11 = vector.load %arg5[%c0_8, %c0_9] : memref<1x1xf32, #tpu.memory_space<vmem>>, vector<1x1xf32>
    %12 = vector.broadcast %11 : vector<1x1xf32> to vector<2x1xf32>
    %13 = arith.addf %10, %12 : vector<2x1xf32>
    %14 = arith.negf %13 : vector<2x1xf32>
    %15 = math.exp %14 : vector<2x1xf32>
    %cst_10 = arith.constant 1.000000e+00 : f32
    %16 = vector.broadcast %cst_10 : f32 to vector<2x1xf32>
    %17 = arith.addf %16, %15 : vector<2x1xf32>
    %18 = arith.divf %16, %17 : vector<2x1xf32>
    %c0_11 = arith.constant 0 : index
    %c0_12 = arith.constant 0 : index
    %19 = vector.load %arg6[%c0_11, %c0_12] : memref<2x1xf32, #tpu.memory_space<vmem>>, vector<2x1xf32>
    tpu.vector_store %arg6[%c0_11, %c0_12], %18 {strides = array<i32>} : memref<2x1xf32, #tpu.memory_space<vmem>>, vector<2x1xf32>,
    return
  }
  func.func @transform_0(%arg0: i32) -> (i32, i32) {
    %c0_i32 = arith.constant 0 : i32
    %c0_i32_0 = arith.constant 0 : i32
    %c0_i32_1 = arith.constant 0 : i32
    return %c0_i32, %c0_i32_0 : i32, i32
  }
  func.func @transform_1(%arg0: i32) -> (i32, i32) {
    %c0_i32 = arith.constant 0 : i32
    %c0_i32_0 = arith.constant 0 : i32
    %c0_i32_1 = arith.constant 0 : i32
    return %c0_i32, %c0_i32_0 : i32, i32
  }
  func.func @transform_2(%arg0: i32) -> (i32, i32) {
    %c0_i32 = arith.constant 0 : i32
    %c0_i32_0 = arith.constant 0 : i32
    %c0_i32_1 = arith.constant 0 : i32
    return %c0_i32, %c0_i32_0 : i32, i32
  }
  func.func @transform_3(%arg0: i32) -> (i32, i32) {
    %c0_i32 = arith.constant 0 : i32
    %c0_i32_0 = arith.constant 0 : i32
    %c0_i32_1 = arith.constant 0 : i32
    return %c0_i32, %c0_i32_0 : i32, i32
  }
  func.func @transform_4(%arg0: i32) -> (i32, i32) {
    %c0_i32 = arith.constant 0 : i32
    %c0_i32_0 = arith.constant 0 : i32
    %c0_i32_1 = arith.constant 0 : i32
    return %c0_i32, %c0_i32_0 : i32, i32
  }
  func.func @transform_5(%arg0: i32) -> (i32, i32) {
    %c0_i32 = arith.constant 0 : i32
    %c0_i32_0 = arith.constant 0 : i32
    %c0_i32_1 = arith.constant 0 : i32
    return %c0_i32, %c0_i32_0 : i32, i32
  }
}

</mosaic_0001>

<bundles_post_ra>
// kernel: cnn_age_forward.3
= control target key start
LH: loop header
LB: loop body
LE: loop exit
PB: predicated region body
PF: predicated region fallthrough
CT: control target
= control target key end

     0   :  { %s4210_s12 = smov 0   ;;  %s4212_s13 = smov 0   ;;  %s5589_s0 = inlined_call_operand.vmem [shape: bf16[32,128], index: 0, kind: input, shape index: {}]   ;;  %s5590_s1 = inlined_call_operand.vmem [shape: bf16[128,15360], index: 1, kind: input, shape index: {}]   ;;  %s5591_s2 = inlined_call_operand.vmem [shape: f32[32,1], index: 2, kind: input, shape index: {}]   ;;  %s5592_s3 = inlined_call_operand.vmem [shape: f32[32,15360], index: 3, kind: output, shape index: {}]  }
   0x1   :  { %s4214_s14 = smov 0  }
   0x2 LB: > { %s3502_s15 = sadd.s32 4294967295, %s4187_s14   ;;  %s4227_s16 = sadd.s32 1, %s4187_s14   ;;  %s4187_s14 = sphi %s4214_s14, %s5596_s14   ;;  %s4183_s13 = sphi %s4212_s13, %s5595_s13   ;;  %s4179_s12 = sphi %s4210_s12, %s5594_s12  }
   0x3   : > { %s38_s17 = ssub.s32 %s4187_s14, %s4227_s16  ;;  %s41_s18 = sadd.s32 1, %s4183_s13 }
   0x4   : > { %p39_p0 = scmp.eq.s32.totalorder %s38_s17, 0  ;;  %p48_p1 = scmp.ne.s32.totalorder %s4183_s13, %s4179_s12 }
   0x5   : > { %p49_p2 = scmp.eq.s32.totalorder %s4187_s14, 0  ;;  %p99_p3 = scmp.eq.s32.totalorder %s3502_s15, 3 }
   0x6   : > { %s4238_s19 = scalar_select %p39_p0, %s4183_s13, %s41_s18  }
   0x7   : > { %p50_p4 = por %p49_p2, %p48_p1  ;;  %p4240_p5 = por %p99_p3, %p48_p1 }
   0x8   : > { %p3505_p6 = scmp.ge.s32.totalorder %s4187_s14, 4 }
   0xa   : > { %127 = sbr.rel (%p3505_p6) target bundleno = 142 (0x8e), region = 24 }
  0x11   : > { %130 = sbr.rel (!%p50_p4) target bundleno = 142 (0x8e), region = 28  ;;  %s132_s21 = sand.u32 (%p50_p4), 1, %s4183_s13  }
  0x12   : > { %s3753_s22 = smul.u32 (%p50_p4), 120, %s4187_s14 }
  0x13   : > { %s3771_s23 = smul.u32 (%p50_p4), 1920, %s132_s21 }
  0x14   : > { %s4250_s26 = scalar_lea.vmem (%p50_p4), %s5590_s1, %s3753_s22 }
  0x15   : > { %v150_v0 = vld [vmem:[%s4250_s26] sm:$0xff] (%p50_p4)  ;;  %v152_v1 = vld [vmem:[%s4250_s26 + $0x8] sm:$0xff] (%p50_p4)  ;;  %v154_v2 = vld [vmem:[%s4250_s26 + $0x10] sm:$0xff] (%p50_p4)  ;;  %s4255_s27 = scalar_lea.vmem (%p50_p4), [#allocation2], %s3771_s23 }
  0x16   : > { %151 = vst [vmem:[%s4255_s27] sm:$0xff] (%p50_p4), %v150_v0  ;;  %153 = vst [vmem:[%s4255_s27 + $0x8] sm:$0xff] (%p50_p4), %v152_v1  ;;  %v156_v3 = vld [vmem:[%s4250_s26 + $0x18] sm:$0xff] (%p50_p4)  ;;  %v158_v4 = vld [vmem:[%s4250_s26 + $0x20] sm:$0xff] (%p50_p4) }
  0x17   : > { %155 = vst [vmem:[%s4255_s27 + $0x10] sm:$0xff] (%p50_p4), %v154_v2  ;;  %v160_v5 = vld [vmem:[%s4250_s26 + $0x28] sm:$0xff] (%p50_p4)  ;;  %157 = vst [vmem:[%s4255_s27 + $0x18] sm:$0xff] (%p50_p4), %v156_v3  ;;  %v162_v6 = vld [vmem:[%s4250_s26 + $0x30] sm:$0xff] (%p50_p4) }
  0x18   : > { %159 = vst [vmem:[%s4255_s27 + $0x20] sm:$0xff] %v158_v4  ;;  %161 = vst [vmem:[%s4255_s27 + $0x28] sm:$0xff] %v160_v5  ;;  %v164_v7 = vld [vmem:[%s4250_s26 + $0x38] sm:$0xff]  ;;  %v166_v8 = vld [vmem:[%s4250_s26 + $0x40] sm:$0xff] }
  0x19   : > { %163 = vst [vmem:[%s4255_s27 + $0x30] sm:$0xff] %v162_v6  ;;  %165 = vst [vmem:[%s4255_s27 + $0x38] sm:$0xff] %v164_v7  ;;  %v168_v9 = vld [vmem:[%s4250_s26 + $0x48] sm:$0xff]  ;;  %v170_v10 = vld [vmem:[%s4250_s26 + $0x50] sm:$0xff] }
  0x1a   : > { %167 = vst [vmem:[%s4255_s27 + $0x40] sm:$0xff] %v166_v8  ;;  %v172_v11 = vld [vmem:[%s4250_s26 + $0x58] sm:$0xff]  ;;  %169 = vst [vmem:[%s4255_s27 + $0x48] sm:$0xff] %v168_v9  ;;  %v174_v12 = vld [vmem:[%s4250_s26 + $0x60] sm:$0xff] }
  0x1b   : > { %171 = vst [vmem:[%s4255_s27 + $0x50] sm:$0xff] %v170_v10  ;;  %173 = vst [vmem:[%s4255_s27 + $0x58] sm:$0xff] %v172_v11  ;;  %v176_v13 = vld [vmem:[%s4250_s26 + $0x68] sm:$0xff]  ;;  %v178_v14 = vld [vmem:[%s4250_s26 + $0x70] sm:$0xff] }
  0x1c   : > { %175 = vst [vmem:[%s4255_s27 + $0x60] sm:$0xff] %v174_v12  ;;  %177 = vst [vmem:[%s4255_s27 + $0x68] sm:$0xff] %v176_v13  ;;  %v180_v15 = vld [vmem:[%s4250_s26 + $0x1e0] sm:$0xff]  ;;  %v182_v16 = vld [vmem:[%s4250_s26 + $0x1e8] sm:$0xff] }
  0x1d   : > { %179 = vst [vmem:[%s4255_s27 + $0x70] sm:$0xff] %v178_v14  ;;  %v184_v17 = vld [vmem:[%s4250_s26 + $0x1f0] sm:$0xff]  ;;  %181 = vst [vmem:[%s4255_s27 + $0x78] sm:$0xff] %v180_v15  ;;  %v186_v18 = vld [vmem:[%s4250_s26 + $0x1f8] sm:$0xff] }
  0x1e   : > { %183 = vst [vmem:[%s4255_s27 + $0x80] sm:$0xff] %v182_v16  ;;  %185 = vst [vmem:[%s4255_s27 + $0x88] sm:$0xff] %v184_v17  ;;  %v188_v19 = vld [vmem:[%s4250_s26 + $0x200] sm:$0xff]  ;;  %v190_v20 = vld [vmem:[%s4250_s26 + $0x208] sm:$0xff] }
  0x1f   : > { %187 = vst [vmem:[%s4255_s27 + $0x90] sm:$0xff] %v186_v18  ;;  %189 = vst [vmem:[%s4255_s27 + $0x98] sm:$0xff] %v188_v19  ;;  %v192_v21 = vld [vmem:[%s4250_s26 + $0x210] sm:$0xff]  ;;  %v194_v22 = vld [vmem:[%s4250_s26 + $0x218] sm:$0xff] }
  0x20   : > { %191 = vst [vmem:[%s4255_s27 + $0xa0] sm:$0xff] %v190_v20  ;;  %v196_v23 = vld [vmem:[%s4250_s26 + $0x220] sm:$0xff]  ;;  %193 = vst [vmem:[%s4255_s27 + $0xa8] sm:$0xff] %v192_v21  ;;  %v198_v24 = vld [vmem:[%s4250_s26 + $0x228] sm:$0xff] }
  0x21   : > { %195 = vst [vmem:[%s4255_s27 + $0xb0] sm:$0xff] %v194_v22  ;;  %197 = vst [vmem:[%s4255_s27 + $0xb8] sm:$0xff] %v196_v23  ;;  %v200_v25 = vld [vmem:[%s4250_s26 + $0x230] sm:$0xff]  ;;  %v202_v26 = vld [vmem:[%s4250_s26 + $0x238] sm:$0xff] }
  0x22   : > { %199 = vst [vmem:[%s4255_s27 + $0xc0] sm:$0xff] %v198_v24  ;;  %201 = vst [vmem:[%s4255_s27 + $0xc8] sm:$0xff] %v200_v25  ;;  %v204_v27 = vld [vmem:[%s4250_s26 + $0x240] sm:$0xff]  ;;  %v206_v28 = vld [vmem:[%s4250_s26 + $0x248] sm:$0xff] }
  0x23   : > { %203 = vst [vmem:[%s4255_s27 + $0xd0] sm:$0xff] %v202_v26  ;;  %v208_v29 = vld [vmem:[%s4250_s26 + $0x250] sm:$0xff]  ;;  %205 = vst [vmem:[%s4255_s27 + $0xd8] sm:$0xff] %v204_v27  ;;  %v210_v30 = vld [vmem:[%s4250_s26 + $0x3c0] sm:$0xff] }
  0x24   : > { %207 = vst [vmem:[%s4255_s27 + $0xe0] sm:$0xff] %v206_v28  ;;  %209 = vst [vmem:[%s4255_s27 + $0xe8] sm:$0xff] %v208_v29  ;;  %v212_v31 = vld [vmem:[%s4250_s26 + $0x3c8] sm:$0xff]  ;;  %v214_v32 = vld [vmem:[%s4250_s26 + $0x3d0] sm:$0xff] }
  0x25   : > { %211 = vst [vmem:[%s4255_s27 + $0xf0] sm:$0xff] %v210_v30  ;;  %213 = vst [vmem:[%s4255_s27 + $0xf8] sm:$0xff] %v212_v31  ;;  %v216_v33 = vld [vmem:[%s4250_s26 + $0x3d8] sm:$0xff]  ;;  %v218_v34 = vld [vmem:[%s4250_s26 + $0x3e0] sm:$0xff] }
  0x26   : > { %215 = vst [vmem:[%s4255_s27 + $0x100] sm:$0xff] %v214_v32  ;;  %v220_v35 = vld [vmem:[%s4250_s26 + $0x3e8] sm:$0xff]  ;;  %217 = vst [vmem:[%s4255_s27 + $0x108] sm:$0xff] %v216_v33  ;;  %v222_v36 = vld [vmem:[%s4250_s26 + $0x3f0] sm:$0xff] }
  0x27   : > { %219 = vst [vmem:[%s4255_s27 + $0x110] sm:$0xff] %v218_v34  ;;  %221 = vst [vmem:[%s4255_s27 + $0x118] sm:$0xff] %v220_v35  ;;  %v224_v37 = vld [vmem:[%s4250_s26 + $0x3f8] sm:$0xff]  ;;  %v226_v38 = vld [vmem:[%s4250_s26 + $0x400] sm:$0xff] }
  0x28   : > { %223 = vst [vmem:[%s4255_s27 + $0x120] sm:$0xff] %v222_v36  ;;  %225 = vst [vmem:[%s4255_s27 + $0x128] sm:$0xff] %v224_v37  ;;  %v228_v39 = vld [vmem:[%s4250_s26 + $0x408] sm:$0xff]  ;;  %v230_v40 = vld [vmem:[%s4250_s26 + $0x410] sm:$0xff] }
  0x29   : > { %227 = vst [vmem:[%s4255_s27 + $0x130] sm:$0xff] %v226_v38  ;;  %v232_v41 = vld [vmem:[%s4250_s26 + $0x418] sm:$0xff]  ;;  %229 = vst [vmem:[%s4255_s27 + $0x138] sm:$0xff] %v228_v39  ;;  %v234_v42 = vld [vmem:[%s4250_s26 + $0x420] sm:$0xff] }
  0x2a   : > { %231 = vst [vmem:[%s4255_s27 + $0x140] sm:$0xff] %v230_v40  ;;  %233 = vst [vmem:[%s4255_s27 + $0x148] sm:$0xff] %v232_v41  ;;  %v236_v43 = vld [vmem:[%s4250_s26 + $0x428] sm:$0xff]  ;;  %v238_v44 = vld [vmem:[%s4250_s26 + $0x430] sm:$0xff] }
  0x2b   : > { %235 = vst [vmem:[%s4255_s27 + $0x150] sm:$0xff] %v234_v42  ;;  %237 = vst [vmem:[%s4255_s27 + $0x158] sm:$0xff] %v236_v43  ;;  %v240_v45 = vld [vmem:[%s4250_s26 + $0x5a0] sm:$0xff]  ;;  %v242_v46 = vld [vmem:[%s4250_s26 + $0x5a8] sm:$0xff] }
  0x2c   : > { %239 = vst [vmem:[%s4255_s27 + $0x160] sm:$0xff] %v238_v44  ;;  %v244_v47 = vld [vmem:[%s4250_s26 + $0x5b0] sm:$0xff]  ;;  %241 = vst [vmem:[%s4255_s27 + $0x168] sm:$0xff] %v240_v45  ;;  %v246_v48 = vld [vmem:[%s4250_s26 + $0x5b8] sm:$0xff] }
  0x2d   : > { %243 = vst [vmem:[%s4255_s27 + $0x170] sm:$0xff] %v242_v46  ;;  %245 = vst [vmem:[%s4255_s27 + $0x178] sm:$0xff] %v244_v47  ;;  %v248_v49 = vld [vmem:[%s4250_s26 + $0x5c0] sm:$0xff]  ;;  %v250_v50 = vld [vmem:[%s4250_s26 + $0x5c8] sm:$0xff] }
  0x2e   : > { %247 = vst [vmem:[%s4255_s27 + $0x180] sm:$0xff] %v246_v48  ;;  %249 = vst [vmem:[%s4255_s27 + $0x188] sm:$0xff] %v248_v49  ;;  %v252_v51 = vld [vmem:[%s4250_s26 + $0x5d0] sm:$0xff]  ;;  %v254_v52 = vld [vmem:[%s4250_s26 + $0x5d8] sm:$0xff] }
  0x2f   : > { %251 = vst [vmem:[%s4255_s27 + $0x190] sm:$0xff] %v250_v50  ;;  %v256_v53 = vld [vmem:[%s4250_s26 + $0x5e0] sm:$0xff]  ;;  %253 = vst [vmem:[%s4255_s27 + $0x198] sm:$0xff] %v252_v51  ;;  %v258_v54 = vld [vmem:[%s4250_s26 + $0x5e8] sm:$0xff] }
  0x30   : > { %255 = vst [vmem:[%s4255_s27 + $0x1a0] sm:$0xff] %v254_v52  ;;  %257 = vst [vmem:[%s4255_s27 + $0x1a8] sm:$0xff] %v256_v53  ;;  %v260_v55 = vld [vmem:[%s4250_s26 + $0x5f0] sm:$0xff]  ;;  %v262_v56 = vld [vmem:[%s4250_s26 + $0x5f8] sm:$0xff] }
  0x31   : > { %259 = vst [vmem:[%s4255_s27 + $0x1b0] sm:$0xff] %v258_v54  ;;  %261 = vst [vmem:[%s4255_s27 + $0x1b8] sm:$0xff] %v260_v55  ;;  %v264_v57 = vld [vmem:[%s4250_s26 + $0x600] sm:$0xff]  ;;  %v266_v58 = vld [vmem:[%s4250_s26 + $0x608] sm:$0xff] }
  0x32   : > { %263 = vst [vmem:[%s4255_s27 + $0x1c0] sm:$0xff] %v262_v56  ;;  %v268_v59 = vld [vmem:[%s4250_s26 + $0x610] sm:$0xff]  ;;  %265 = vst [vmem:[%s4255_s27 + $0x1c8] sm:$0xff] %v264_v57  ;;  %v270_v60 = vld [vmem:[%s4250_s26 + $0x780] sm:$0xff] }
  0x33   : > { %267 = vst [vmem:[%s4255_s27 + $0x1d0] sm:$0xff] %v266_v58  ;;  %269 = vst [vmem:[%s4255_s27 + $0x1d8] sm:$0xff] %v268_v59  ;;  %v272_v61 = vld [vmem:[%s4250_s26 + $0x788] sm:$0xff]  ;;  %v274_v62 = vld [vmem:[%s4250_s26 + $0x790] sm:$0xff] }
  0x34   : > { %271 = vst [vmem:[%s4255_s27 + $0x1e0] sm:$0xff] %v270_v60  ;;  %273 = vst [vmem:[%s4255_s27 + $0x1e8] sm:$0xff] %v272_v61  ;;  %v276_v63 = vld [vmem:[%s4250_s26 + $0x798] sm:$0xff]  ;;  %v278_v0 = vld [vmem:[%s4250_s26 + $0x7a0] sm:$0xff] }
  0x35   : > { %275 = vst [vmem:[%s4255_s27 + $0x1f0] sm:$0xff] %v274_v62  ;;  %v280_v1 = vld [vmem:[%s4250_s26 + $0x7a8] sm:$0xff]  ;;  %277 = vst [vmem:[%s4255_s27 + $0x1f8] sm:$0xff] %v276_v63  ;;  %v282_v2 = vld [vmem:[%s4250_s26 + $0x7b0] sm:$0xff] }
  0x36   : > { %279 = vst [vmem:[%s4255_s27 + $0x200] sm:$0xff] %v278_v0  ;;  %281 = vst [vmem:[%s4255_s27 + $0x208] sm:$0xff] %v280_v1  ;;  %v284_v3 = vld [vmem:[%s4250_s26 + $0x7b8] sm:$0xff]  ;;  %v286_v4 = vld [vmem:[%s4250_s26 + $0x7c0] sm:$0xff] }
  0x37   : > { %283 = vst [vmem:[%s4255_s27 + $0x210] sm:$0xff] %v282_v2  ;;  %285 = vst [vmem:[%s4255_s27 + $0x218] sm:$0xff] %v284_v3  ;;  %v288_v5 = vld [vmem:[%s4250_s26 + $0x7c8] sm:$0xff]  ;;  %v290_v6 = vld [vmem:[%s4250_s26 + $0x7d0] sm:$0xff] }
  0x38   : > { %287 = vst [vmem:[%s4255_s27 + $0x220] sm:$0xff] %v286_v4  ;;  %v292_v7 = vld [vmem:[%s4250_s26 + $0x7d8] sm:$0xff]  ;;  %289 = vst [vmem:[%s4255_s27 + $0x228] sm:$0xff] %v288_v5  ;;  %v294_v8 = vld [vmem:[%s4250_s26 + $0x7e0] sm:$0xff] }
  0x39   : > { %291 = vst [vmem:[%s4255_s27 + $0x230] sm:$0xff] %v290_v6  ;;  %293 = vst [vmem:[%s4255_s27 + $0x238] sm:$0xff] %v292_v7  ;;  %v296_v9 = vld [vmem:[%s4250_s26 + $0x7e8] sm:$0xff]  ;;  %v298_v10 = vld [vmem:[%s4250_s26 + $0x7f0] sm:$0xff] }
  0x3a   : > { %295 = vst [vmem:[%s4255_s27 + $0x240] sm:$0xff] %v294_v8  ;;  %297 = vst [vmem:[%s4255_s27 + $0x248] sm:$0xff] %v296_v9  ;;  %v300_v11 = vld [vmem:[%s4250_s26 + $0x960] sm:$0xff]  ;;  %v302_v12 = vld [vmem:[%s4250_s26 + $0x968] sm:$0xff] }
  0x3b   : > { %299 = vst [vmem:[%s4255_s27 + $0x250] sm:$0xff] %v298_v10  ;;  %v304_v13 = vld [vmem:[%s4250_s26 + $0x970] sm:$0xff]  ;;  %301 = vst [vmem:[%s4255_s27 + $0x258] sm:$0xff] %v300_v11  ;;  %v306_v14 = vld [vmem:[%s4250_s26 + $0x978] sm:$0xff] }
  0x3c   : > { %303 = vst [vmem:[%s4255_s27 + $0x260] sm:$0xff] %v302_v12  ;;  %305 = vst [vmem:[%s4255_s27 + $0x268] sm:$0xff] %v304_v13  ;;  %v308_v15 = vld [vmem:[%s4250_s26 + $0x980] sm:$0xff]  ;;  %v310_v16 = vld [vmem:[%s4250_s26 + $0x988] sm:$0xff] }
  0x3d   : > { %307 = vst [vmem:[%s4255_s27 + $0x270] sm:$0xff] %v306_v14  ;;  %309 = vst [vmem:[%s4255_s27 + $0x278] sm:$0xff] %v308_v15  ;;  %v312_v17 = vld [vmem:[%s4250_s26 + $0x990] sm:$0xff]  ;;  %v314_v18 = vld [vmem:[%s4250_s26 + $0x998] sm:$0xff] }
  0x3e   : > { %311 = vst [vmem:[%s4255_s27 + $0x280] sm:$0xff] %v310_v16  ;;  %v316_v19 = vld [vmem:[%s4250_s26 + $0x9a0] sm:$0xff]  ;;  %313 = vst [vmem:[%s4255_s27 + $0x288] sm:$0xff] %v312_v17  ;;  %v318_v20 = vld [vmem:[%s4250_s26 + $0x9a8] sm:$0xff] }
  0x3f   : > { %315 = vst [vmem:[%s4255_s27 + $0x290] sm:$0xff] %v314_v18  ;;  %317 = vst [vmem:[%s4255_s27 + $0x298] sm:$0xff] %v316_v19  ;;  %v320_v21 = vld [vmem:[%s4250_s26 + $0x9b0] sm:$0xff]  ;;  %v322_v22 = vld [vmem:[%s4250_s26 + $0x9b8] sm:$0xff] }
  0x40   : > { %319 = vst [vmem:[%s4255_s27 + $0x2a0] sm:$0xff] %v318_v20  ;;  %321 = vst [vmem:[%s4255_s27 + $0x2a8] sm:$0xff] %v320_v21  ;;  %v324_v23 = vld [vmem:[%s4250_s26 + $0x9c0] sm:$0xff]  ;;  %v326_v24 = vld [vmem:[%s4250_s26 + $0x9c8] sm:$0xff] }
  0x41   : > { %323 = vst [vmem:[%s4255_s27 + $0x2b0] sm:$0xff] %v322_v22  ;;  %v328_v25 = vld [vmem:[%s4250_s26 + $0x9d0] sm:$0xff]  ;;  %325 = vst [vmem:[%s4255_s27 + $0x2b8] sm:$0xff] %v324_v23  ;;  %v330_v26 = vld [vmem:[%s4250_s26 + $0xb40] sm:$0xff] }
  0x42   : > { %327 = vst [vmem:[%s4255_s27 + $0x2c0] sm:$0xff] %v326_v24  ;;  %329 = vst [vmem:[%s4255_s27 + $0x2c8] sm:$0xff] %v328_v25  ;;  %v332_v27 = vld [vmem:[%s4250_s26 + $0xb48] sm:$0xff]  ;;  %v334_v28 = vld [vmem:[%s4250_s26 + $0xb50] sm:$0xff] }
  0x43   : > { %331 = vst [vmem:[%s4255_s27 + $0x2d0] sm:$0xff] %v330_v26  ;;  %333 = vst [vmem:[%s4255_s27 + $0x2d8] sm:$0xff] %v332_v27  ;;  %v336_v29 = vld [vmem:[%s4250_s26 + $0xb58] sm:$0xff]  ;;  %v338_v30 = vld [vmem:[%s4250_s26 + $0xb60] sm:$0xff] }
  0x44   : > { %335 = vst [vmem:[%s4255_s27 + $0x2e0] sm:$0xff] %v334_v28  ;;  %v340_v31 = vld [vmem:[%s4250_s26 + $0xb68] sm:$0xff]  ;;  %337 = vst [vmem:[%s4255_s27 + $0x2e8] sm:$0xff] %v336_v29  ;;  %v342_v32 = vld [vmem:[%s4250_s26 + $0xb70] sm:$0xff] }
  0x45   : > { %339 = vst [vmem:[%s4255_s27 + $0x2f0] sm:$0xff] %v338_v30  ;;  %341 = vst [vmem:[%s4255_s27 + $0x2f8] sm:$0xff] %v340_v31  ;;  %v344_v33 = vld [vmem:[%s4250_s26 + $0xb78] sm:$0xff]  ;;  %v346_v34 = vld [vmem:[%s4250_s26 + $0xb80] sm:$0xff] }
  0x46   : > { %343 = vst [vmem:[%s4255_s27 + $0x300] sm:$0xff] %v342_v32  ;;  %345 = vst [vmem:[%s4255_s27 + $0x308] sm:$0xff] %v344_v33  ;;  %v348_v35 = vld [vmem:[%s4250_s26 + $0xb88] sm:$0xff]  ;;  %v350_v36 = vld [vmem:[%s4250_s26 + $0xb90] sm:$0xff] }
  0x47   : > { %347 = vst [vmem:[%s4255_s27 + $0x310] sm:$0xff] %v346_v34  ;;  %v352_v37 = vld [vmem:[%s4250_s26 + $0xb98] sm:$0xff]  ;;  %349 = vst [vmem:[%s4255_s27 + $0x318] sm:$0xff] %v348_v35  ;;  %v354_v38 = vld [vmem:[%s4250_s26 + $0xba0] sm:$0xff] }
  0x48   : > { %351 = vst [vmem:[%s4255_s27 + $0x320] sm:$0xff] %v350_v36  ;;  %353 = vst [vmem:[%s4255_s27 + $0x328] sm:$0xff] %v352_v37  ;;  %v356_v39 = vld [vmem:[%s4250_s26 + $0xba8] sm:$0xff]  ;;  %v358_v40 = vld [vmem:[%s4250_s26 + $0xbb0] sm:$0xff] }
  0x49   : > { %355 = vst [vmem:[%s4255_s27 + $0x330] sm:$0xff] %v354_v38  ;;  %357 = vst [vmem:[%s4255_s27 + $0x338] sm:$0xff] %v356_v39  ;;  %v360_v41 = vld [vmem:[%s4250_s26 + $0xd20] sm:$0xff]  ;;  %v362_v42 = vld [vmem:[%s4250_s26 + $0xd28] sm:$0xff] }
  0x4a   : > { %359 = vst [vmem:[%s4255_s27 + $0x340] sm:$0xff] %v358_v40  ;;  %v364_v43 = vld [vmem:[%s4250_s26 + $0xd30] sm:$0xff]  ;;  %361 = vst [vmem:[%s4255_s27 + $0x348] sm:$0xff] %v360_v41  ;;  %v366_v44 = vld [vmem:[%s4250_s26 + $0xd38] sm:$0xff] }
  0x4b   : > { %363 = vst [vmem:[%s4255_s27 + $0x350] sm:$0xff] %v362_v42  ;;  %365 = vst [vmem:[%s4255_s27 + $0x358] sm:$0xff] %v364_v43  ;;  %v368_v45 = vld [vmem:[%s4250_s26 + $0xd40] sm:$0xff]  ;;  %v370_v46 = vld [vmem:[%s4250_s26 + $0xd48] sm:$0xff] }
  0x4c   : > { %367 = vst [vmem:[%s4255_s27 + $0x360] sm:$0xff] %v366_v44  ;;  %369 = vst [vmem:[%s4255_s27 + $0x368] sm:$0xff] %v368_v45  ;;  %v372_v47 = vld [vmem:[%s4250_s26 + $0xd50] sm:$0xff]  ;;  %v374_v48 = vld [vmem:[%s4250_s26 + $0xd58] sm:$0xff] }
  0x4d   : > { %371 = vst [vmem:[%s4255_s27 + $0x370] sm:$0xff] %v370_v46  ;;  %v376_v49 = vld [vmem:[%s4250_s26 + $0xd60] sm:$0xff]  ;;  %373 = vst [vmem:[%s4255_s27 + $0x378] sm:$0xff] %v372_v47  ;;  %v378_v50 = vld [vmem:[%s4250_s26 + $0xd68] sm:$0xff] }
  0x4e   : > { %375 = vst [vmem:[%s4255_s27 + $0x380] sm:$0xff] %v374_v48  ;;  %377 = vst [vmem:[%s4255_s27 + $0x388] sm:$0xff] %v376_v49  ;;  %v380_v51 = vld [vmem:[%s4250_s26 + $0xd70] sm:$0xff]  ;;  %v382_v52 = vld [vmem:[%s4250_s26 + $0xd78] sm:$0xff] }
  0x4f   : > { %379 = vst [vmem:[%s4255_s27 + $0x390] sm:$0xff] %v378_v50  ;;  %381 = vst [vmem:[%s4255_s27 + $0x398] sm:$0xff] %v380_v51  ;;  %v384_v53 = vld [vmem:[%s4250_s26 + $0xd80] sm:$0xff]  ;;  %v386_v54 = vld [vmem:[%s4250_s26 + $0xd88] sm:$0xff] }
  0x50   : > { %383 = vst [vmem:[%s4255_s27 + $0x3a0] sm:$0xff] %v382_v52  ;;  %v388_v55 = vld [vmem:[%s4250_s26 + $0xd90] sm:$0xff]  ;;  %385 = vst [vmem:[%s4255_s27 + $0x3a8] sm:$0xff] %v384_v53  ;;  %v390_v56 = vld [vmem:[%s4250_s26 + $0xf00] sm:$0xff] }
  0x51   : > { %387 = vst [vmem:[%s4255_s27 + $0x3b0] sm:$0xff] %v386_v54  ;;  %389 = vst [vmem:[%s4255_s27 + $0x3b8] sm:$0xff] %v388_v55  ;;  %v392_v57 = vld [vmem:[%s4250_s26 + $0xf08] sm:$0xff]  ;;  %v394_v58 = vld [vmem:[%s4250_s26 + $0xf10] sm:$0xff] }
  0x52   : > { %391 = vst [vmem:[%s4255_s27 + $0x3c0] sm:$0xff] %v390_v56  ;;  %393 = vst [vmem:[%s4255_s27 + $0x3c8] sm:$0xff] %v392_v57  ;;  %v396_v59 = vld [vmem:[%s4250_s26 + $0xf18] sm:$0xff]  ;;  %v398_v60 = vld [vmem:[%s4250_s26 + $0xf20] sm:$0xff] }
  0x53   : > { %395 = vst [vmem:[%s4255_s27 + $0x3d0] sm:$0xff] %v394_v58  ;;  %v400_v61 = vld [vmem:[%s4250_s26 + $0xf28] sm:$0xff]  ;;  %397 = vst [vmem:[%s4255_s27 + $0x3d8] sm:$0xff] %v396_v59  ;;  %v402_v62 = vld [vmem:[%s4250_s26 + $0xf30] sm:$0xff] }
  0x54   : > { %399 = vst [vmem:[%s4255_s27 + $0x3e0] sm:$0xff] %v398_v60  ;;  %401 = vst [vmem:[%s4255_s27 + $0x3e8] sm:$0xff] %v400_v61  ;;  %v404_v63 = vld [vmem:[%s4250_s26 + $0xf38] sm:$0xff]  ;;  %v406_v0 = vld [vmem:[%s4250_s26 + $0xf40] sm:$0xff] }
  0x55   : > { %403 = vst [vmem:[%s4255_s27 + $0x3f0] sm:$0xff] %v402_v62  ;;  %405 = vst [vmem:[%s4255_s27 + $0x3f8] sm:$0xff] %v404_v63  ;;  %v408_v1 = vld [vmem:[%s4250_s26 + $0xf48] sm:$0xff]  ;;  %v410_v2 = vld [vmem:[%s4250_s26 + $0xf50] sm:$0xff] }
  0x56   : > { %407 = vst [vmem:[%s4255_s27 + $0x400] sm:$0xff] %v406_v0  ;;  %v412_v3 = vld [vmem:[%s4250_s26 + $0xf58] sm:$0xff]  ;;  %409 = vst [vmem:[%s4255_s27 + $0x408] sm:$0xff] %v408_v1  ;;  %v414_v4 = vld [vmem:[%s4250_s26 + $0xf60] sm:$0xff] }
  0x57   : > { %411 = vst [vmem:[%s4255_s27 + $0x410] sm:$0xff] %v410_v2  ;;  %413 = vst [vmem:[%s4255_s27 + $0x418] sm:$0xff] %v412_v3  ;;  %v416_v5 = vld [vmem:[%s4250_s26 + $0xf68] sm:$0xff]  ;;  %v418_v6 = vld [vmem:[%s4250_s26 + $0xf70] sm:$0xff] }
  0x58   : > { %415 = vst [vmem:[%s4255_s27 + $0x420] sm:$0xff] %v414_v4  ;;  %417 = vst [vmem:[%s4255_s27 + $0x428] sm:$0xff] %v416_v5  ;;  %v420_v7 = vld [vmem:[%s4250_s26 + $0x10e0] sm:$0xff]  ;;  %v422_v8 = vld [vmem:[%s4250_s26 + $0x10e8] sm:$0xff] }
  0x59   : > { %419 = vst [vmem:[%s4255_s27 + $0x430] sm:$0xff] %v418_v6  ;;  %v424_v9 = vld [vmem:[%s4250_s26 + $0x10f0] sm:$0xff]  ;;  %421 = vst [vmem:[%s4255_s27 + $0x438] sm:$0xff] %v420_v7  ;;  %v426_v10 = vld [vmem:[%s4250_s26 + $0x10f8] sm:$0xff] }
  0x5a   : > { %423 = vst [vmem:[%s4255_s27 + $0x440] sm:$0xff] %v422_v8  ;;  %425 = vst [vmem:[%s4255_s27 + $0x448] sm:$0xff] %v424_v9  ;;  %v428_v11 = vld [vmem:[%s4250_s26 + $0x1100] sm:$0xff]  ;;  %v430_v12 = vld [vmem:[%s4250_s26 + $0x1108] sm:$0xff] }
  0x5b   : > { %427 = vst [vmem:[%s4255_s27 + $0x450] sm:$0xff] %v426_v10  ;;  %429 = vst [vmem:[%s4255_s27 + $0x458] sm:$0xff] %v428_v11  ;;  %v432_v13 = vld [vmem:[%s4250_s26 + $0x1110] sm:$0xff]  ;;  %v434_v14 = vld [vmem:[%s4250_s26 + $0x1118] sm:$0xff] }
  0x5c   : > { %431 = vst [vmem:[%s4255_s27 + $0x460] sm:$0xff] %v430_v12  ;;  %v436_v15 = vld [vmem:[%s4250_s26 + $0x1120] sm:$0xff]  ;;  %433 = vst [vmem:[%s4255_s27 + $0x468] sm:$0xff] %v432_v13  ;;  %v438_v16 = vld [vmem:[%s4250_s26 + $0x1128] sm:$0xff] }
  0x5d   : > { %435 = vst [vmem:[%s4255_s27 + $0x470] sm:$0xff] %v434_v14  ;;  %437 = vst [vmem:[%s4255_s27 + $0x478] sm:$0xff] %v436_v15  ;;  %v440_v17 = vld [vmem:[%s4250_s26 + $0x1130] sm:$0xff]  ;;  %v442_v18 = vld [vmem:[%s4250_s26 + $0x1138] sm:$0xff] }
  0x5e   : > { %439 = vst [vmem:[%s4255_s27 + $0x480] sm:$0xff] %v438_v16  ;;  %441 = vst [vmem:[%s4255_s27 + $0x488] sm:$0xff] %v440_v17  ;;  %v444_v19 = vld [vmem:[%s4250_s26 + $0x1140] sm:$0xff]  ;;  %v446_v20 = vld [vmem:[%s4250_s26 + $0x1148] sm:$0xff] }
  0x5f   : > { %443 = vst [vmem:[%s4255_s27 + $0x490] sm:$0xff] %v442_v18  ;;  %v448_v21 = vld [vmem:[%s4250_s26 + $0x1150] sm:$0xff]  ;;  %445 = vst [vmem:[%s4255_s27 + $0x498] sm:$0xff] %v444_v19  ;;  %v450_v22 = vld [vmem:[%s4250_s26 + $0x12c0] sm:$0xff] }
  0x60   : > { %447 = vst [vmem:[%s4255_s27 + $0x4a0] sm:$0xff] %v446_v20  ;;  %449 = vst [vmem:[%s4255_s27 + $0x4a8] sm:$0xff] %v448_v21  ;;  %v452_v23 = vld [vmem:[%s4250_s26 + $0x12c8] sm:$0xff]  ;;  %v454_v24 = vld [vmem:[%s4250_s26 + $0x12d0] sm:$0xff] }
  0x61   : > { %451 = vst [vmem:[%s4255_s27 + $0x4b0] sm:$0xff] %v450_v22  ;;  %453 = vst [vmem:[%s4255_s27 + $0x4b8] sm:$0xff] %v452_v23  ;;  %v456_v25 = vld [vmem:[%s4250_s26 + $0x12d8] sm:$0xff]  ;;  %v458_v26 = vld [vmem:[%s4250_s26 + $0x12e0] sm:$0xff] }
  0x62   : > { %455 = vst [vmem:[%s4255_s27 + $0x4c0] sm:$0xff] %v454_v24  ;;  %v460_v27 = vld [vmem:[%s4250_s26 + $0x12e8] sm:$0xff]  ;;  %457 = vst [vmem:[%s4255_s27 + $0x4c8] sm:$0xff] %v456_v25  ;;  %v462_v28 = vld [vmem:[%s4250_s26 + $0x12f0] sm:$0xff] }
  0x63   : > { %459 = vst [vmem:[%s4255_s27 + $0x4d0] sm:$0xff] %v458_v26  ;;  %461 = vst [vmem:[%s4255_s27 + $0x4d8] sm:$0xff] %v460_v27  ;;  %v464_v29 = vld [vmem:[%s4250_s26 + $0x12f8] sm:$0xff]  ;;  %v466_v30 = vld [vmem:[%s4250_s26 + $0x1300] sm:$0xff] }
  0x64   : > { %463 = vst [vmem:[%s4255_s27 + $0x4e0] sm:$0xff] %v462_v28  ;;  %465 = vst [vmem:[%s4255_s27 + $0x4e8] sm:$0xff] %v464_v29  ;;  %v468_v31 = vld [vmem:[%s4250_s26 + $0x1308] sm:$0xff]  ;;  %v470_v32 = vld [vmem:[%s4250_s26 + $0x1310] sm:$0xff] }
  0x65   : > { %467 = vst [vmem:[%s4255_s27 + $0x4f0] sm:$0xff] %v466_v30  ;;  %v472_v33 = vld [vmem:[%s4250_s26 + $0x1318] sm:$0xff]  ;;  %469 = vst [vmem:[%s4255_s27 + $0x4f8] sm:$0xff] %v468_v31  ;;  %v474_v34 = vld [vmem:[%s4250_s26 + $0x1320] sm:$0xff] }
  0x66   : > { %471 = vst [vmem:[%s4255_s27 + $0x500] sm:$0xff] %v470_v32  ;;  %473 = vst [vmem:[%s4255_s27 + $0x508] sm:$0xff] %v472_v33  ;;  %v476_v35 = vld [vmem:[%s4250_s26 + $0x1328] sm:$0xff]  ;;  %v478_v36 = vld [vmem:[%s4250_s26 + $0x1330] sm:$0xff] }
  0x67   : > { %475 = vst [vmem:[%s4255_s27 + $0x510] sm:$0xff] %v474_v34  ;;  %477 = vst [vmem:[%s4255_s27 + $0x518] sm:$0xff] %v476_v35  ;;  %v480_v37 = vld [vmem:[%s4250_s26 + $0x14a0] sm:$0xff]  ;;  %v482_v38 = vld [vmem:[%s4250_s26 + $0x14a8] sm:$0xff] }
  0x68   : > { %479 = vst [vmem:[%s4255_s27 + $0x520] sm:$0xff] %v478_v36  ;;  %v484_v39 = vld [vmem:[%s4250_s26 + $0x14b0] sm:$0xff]  ;;  %481 = vst [vmem:[%s4255_s27 + $0x528] sm:$0xff] %v480_v37  ;;  %v486_v40 = vld [vmem:[%s4250_s26 + $0x14b8] sm:$0xff] }
  0x69   : > { %483 = vst [vmem:[%s4255_s27 + $0x530] sm:$0xff] %v482_v38  ;;  %485 = vst [vmem:[%s4255_s27 + $0x538] sm:$0xff] %v484_v39  ;;  %v488_v41 = vld [vmem:[%s4250_s26 + $0x14c0] sm:$0xff]  ;;  %v490_v42 = vld [vmem:[%s4250_s26 + $0x14c8] sm:$0xff] }
  0x6a   : > { %487 = vst [vmem:[%s4255_s27 + $0x540] sm:$0xff] %v486_v40  ;;  %489 = vst [vmem:[%s4255_s27 + $0x548] sm:$0xff] %v488_v41  ;;  %v492_v43 = vld [vmem:[%s4250_s26 + $0x14d0] sm:$0xff]  ;;  %v494_v44 = vld [vmem:[%s4250_s26 + $0x14d8] sm:$0xff] }
  0x6b   : > { %491 = vst [vmem:[%s4255_s27 + $0x550] sm:$0xff] %v490_v42  ;;  %v496_v45 = vld [vmem:[%s4250_s26 + $0x14e0] sm:$0xff]  ;;  %493 = vst [vmem:[%s4255_s27 + $0x558] sm:$0xff] %v492_v43  ;;  %v498_v46 = vld [vmem:[%s4250_s26 + $0x14e8] sm:$0xff] }
  0x6c   : > { %495 = vst [vmem:[%s4255_s27 + $0x560] sm:$0xff] %v494_v44  ;;  %497 = vst [vmem:[%s4255_s27 + $0x568] sm:$0xff] %v496_v45  ;;  %v500_v47 = vld [vmem:[%s4250_s26 + $0x14f0] sm:$0xff]  ;;  %v502_v48 = vld [vmem:[%s4250_s26 + $0x14f8] sm:$0xff] }
  0x6d   : > { %499 = vst [vmem:[%s4255_s27 + $0x570] sm:$0xff] %v498_v46  ;;  %501 = vst [vmem:[%s4255_s27 + $0x578] sm:$0xff] %v500_v47  ;;  %v504_v49 = vld [vmem:[%s4250_s26 + $0x1500] sm:$0xff]  ;;  %v506_v50 = vld [vmem:[%s4250_s26 + $0x1508] sm:$0xff] }
  0x6e   : > { %503 = vst [vmem:[%s4255_s27 + $0x580] sm:$0xff] %v502_v48  ;;  %v508_v51 = vld [vmem:[%s4250_s26 + $0x1510] sm:$0xff]  ;;  %505 = vst [vmem:[%s4255_s27 + $0x588] sm:$0xff] %v504_v49  ;;  %v510_v52 = vld [vmem:[%s4250_s26 + $0x1680] sm:$0xff] }
  0x6f   : > { %507 = vst [vmem:[%s4255_s27 + $0x590] sm:$0xff] %v506_v50  ;;  %509 = vst [vmem:[%s4255_s27 + $0x598] sm:$0xff] %v508_v51  ;;  %v512_v53 = vld [vmem:[%s4250_s26 + $0x1688] sm:$0xff]  ;;  %v514_v54 = vld [vmem:[%s4250_s26 + $0x1690] sm:$0xff] }
  0x70   : > { %511 = vst [vmem:[%s4255_s27 + $0x5a0] sm:$0xff] %v510_v52  ;;  %513 = vst [vmem:[%s4255_s27 + $0x5a8] sm:$0xff] %v512_v53  ;;  %v516_v55 = vld [vmem:[%s4250_s26 + $0x1698] sm:$0xff]  ;;  %v518_v56 = vld [vmem:[%s4250_s26 + $0x16a0] sm:$0xff] }
  0x71   : > { %515 = vst [vmem:[%s4255_s27 + $0x5b0] sm:$0xff] %v514_v54  ;;  %v520_v57 = vld [vmem:[%s4250_s26 + $0x16a8] sm:$0xff]  ;;  %517 = vst [vmem:[%s4255_s27 + $0x5b8] sm:$0xff] %v516_v55  ;;  %v522_v58 = vld [vmem:[%s4250_s26 + $0x16b0] sm:$0xff] }
  0x72   : > { %519 = vst [vmem:[%s4255_s27 + $0x5c0] sm:$0xff] %v518_v56  ;;  %521 = vst [vmem:[%s4255_s27 + $0x5c8] sm:$0xff] %v520_v57  ;;  %v524_v59 = vld [vmem:[%s4250_s26 + $0x16b8] sm:$0xff]  ;;  %v526_v60 = vld [vmem:[%s4250_s26 + $0x16c0] sm:$0xff] }
  0x73   : > { %523 = vst [vmem:[%s4255_s27 + $0x5d0] sm:$0xff] %v522_v58  ;;  %525 = vst [vmem:[%s4255_s27 + $0x5d8] sm:$0xff] %v524_v59  ;;  %v528_v61 = vld [vmem:[%s4250_s26 + $0x16c8] sm:$0xff]  ;;  %v530_v62 = vld [vmem:[%s4250_s26 + $0x16d0] sm:$0xff] }
  0x74   : > { %527 = vst [vmem:[%s4255_s27 + $0x5e0] sm:$0xff] %v526_v60  ;;  %v532_v63 = vld [vmem:[%s4250_s26 + $0x16d8] sm:$0xff]  ;;  %529 = vst [vmem:[%s4255_s27 + $0x5e8] sm:$0xff] %v528_v61  ;;  %v534_v0 = vld [vmem:[%s4250_s26 + $0x16e0] sm:$0xff] }
  0x75   : > { %531 = vst [vmem:[%s4255_s27 + $0x5f0] sm:$0xff] %v530_v62  ;;  %533 = vst [vmem:[%s4255_s27 + $0x5f8] sm:$0xff] %v532_v63  ;;  %v536_v1 = vld [vmem:[%s4250_s26 + $0x16e8] sm:$0xff]  ;;  %v538_v2 = vld [vmem:[%s4250_s26 + $0x16f0] sm:$0xff] }
  0x76   : > { %535 = vst [vmem:[%s4255_s27 + $0x600] sm:$0xff] %v534_v0  ;;  %537 = vst [vmem:[%s4255_s27 + $0x608] sm:$0xff] %v536_v1  ;;  %v540_v3 = vld [vmem:[%s4250_s26 + $0x1860] sm:$0xff]  ;;  %v542_v4 = vld [vmem:[%s4250_s26 + $0x1868] sm:$0xff] }
  0x77   : > { %539 = vst [vmem:[%s4255_s27 + $0x610] sm:$0xff] %v538_v2  ;;  %v544_v5 = vld [vmem:[%s4250_s26 + $0x1870] sm:$0xff]  ;;  %541 = vst [vmem:[%s4255_s27 + $0x618] sm:$0xff] %v540_v3  ;;  %v546_v6 = vld [vmem:[%s4250_s26 + $0x1878] sm:$0xff] }
  0x78   : > { %543 = vst [vmem:[%s4255_s27 + $0x620] sm:$0xff] %v542_v4  ;;  %545 = vst [vmem:[%s4255_s27 + $0x628] sm:$0xff] %v544_v5  ;;  %v548_v7 = vld [vmem:[%s4250_s26 + $0x1880] sm:$0xff]  ;;  %v550_v8 = vld [vmem:[%s4250_s26 + $0x1888] sm:$0xff] }
  0x79   : > { %547 = vst [vmem:[%s4255_s27 + $0x630] sm:$0xff] %v546_v6  ;;  %549 = vst [vmem:[%s4255_s27 + $0x638] sm:$0xff] %v548_v7  ;;  %v552_v9 = vld [vmem:[%s4250_s26 + $0x1890] sm:$0xff]  ;;  %v554_v10 = vld [vmem:[%s4250_s26 + $0x1898] sm:$0xff] }
  0x7a   : > { %551 = vst [vmem:[%s4255_s27 + $0x640] sm:$0xff] %v550_v8  ;;  %v556_v11 = vld [vmem:[%s4250_s26 + $0x18a0] sm:$0xff]  ;;  %553 = vst [vmem:[%s4255_s27 + $0x648] sm:$0xff] %v552_v9  ;;  %v558_v12 = vld [vmem:[%s4250_s26 + $0x18a8] sm:$0xff] }
  0x7b   : > { %555 = vst [vmem:[%s4255_s27 + $0x650] sm:$0xff] %v554_v10  ;;  %557 = vst [vmem:[%s4255_s27 + $0x658] sm:$0xff] %v556_v11  ;;  %v560_v13 = vld [vmem:[%s4250_s26 + $0x18b0] sm:$0xff]  ;;  %v562_v14 = vld [vmem:[%s4250_s26 + $0x18b8] sm:$0xff] }
  0x7c   : > { %559 = vst [vmem:[%s4255_s27 + $0x660] sm:$0xff] %v558_v12  ;;  %561 = vst [vmem:[%s4255_s27 + $0x668] sm:$0xff] %v560_v13  ;;  %v564_v15 = vld [vmem:[%s4250_s26 + $0x18c0] sm:$0xff]  ;;  %v566_v16 = vld [vmem:[%s4250_s26 + $0x18c8] sm:$0xff] }
  0x7d   : > { %563 = vst [vmem:[%s4255_s27 + $0x670] sm:$0xff] %v562_v14  ;;  %v568_v17 = vld [vmem:[%s4250_s26 + $0x18d0] sm:$0xff]  ;;  %565 = vst [vmem:[%s4255_s27 + $0x678] sm:$0xff] %v564_v15  ;;  %v570_v18 = vld [vmem:[%s4250_s26 + $0x1a40] sm:$0xff] }
  0x7e   : > { %567 = vst [vmem:[%s4255_s27 + $0x680] sm:$0xff] %v566_v16  ;;  %569 = vst [vmem:[%s4255_s27 + $0x688] sm:$0xff] %v568_v17  ;;  %v572_v19 = vld [vmem:[%s4250_s26 + $0x1a48] sm:$0xff]  ;;  %v574_v20 = vld [vmem:[%s4250_s26 + $0x1a50] sm:$0xff] }
  0x7f   : > { %571 = vst [vmem:[%s4255_s27 + $0x690] sm:$0xff] %v570_v18  ;;  %573 = vst [vmem:[%s4255_s27 + $0x698] sm:$0xff] %v572_v19  ;;  %v576_v21 = vld [vmem:[%s4250_s26 + $0x1a58] sm:$0xff]  ;;  %v578_v22 = vld [vmem:[%s4250_s26 + $0x1a60] sm:$0xff] }
  0x80   : > { %575 = vst [vmem:[%s4255_s27 + $0x6a0] sm:$0xff] %v574_v20  ;;  %v580_v23 = vld [vmem:[%s4250_s26 + $0x1a68] sm:$0xff]  ;;  %577 = vst [vmem:[%s4255_s27 + $0x6a8] sm:$0xff] %v576_v21  ;;  %v582_v24 = vld [vmem:[%s4250_s26 + $0x1a70] sm:$0xff] }
  0x81   : > { %579 = vst [vmem:[%s4255_s27 + $0x6b0] sm:$0xff] %v578_v22  ;;  %581 = vst [vmem:[%s4255_s27 + $0x6b8] sm:$0xff] %v580_v23  ;;  %v584_v25 = vld [vmem:[%s4250_s26 + $0x1a78] sm:$0xff]  ;;  %v586_v26 = vld [vmem:[%s4250_s26 + $0x1a80] sm:$0xff] }
  0x82   : > { %583 = vst [vmem:[%s4255_s27 + $0x6c0] sm:$0xff] %v582_v24  ;;  %585 = vst [vmem:[%s4255_s27 + $0x6c8] sm:$0xff] %v584_v25  ;;  %v588_v27 = vld [vmem:[%s4250_s26 + $0x1a88] sm:$0xff]  ;;  %v590_v28 = vld [vmem:[%s4250_s26 + $0x1a90] sm:$0xff] }
  0x83   : > { %587 = vst [vmem:[%s4255_s27 + $0x6d0] sm:$0xff] %v586_v26  ;;  %v592_v29 = vld [vmem:[%s4250_s26 + $0x1a98] sm:$0xff]  ;;  %589 = vst [vmem:[%s4255_s27 + $0x6d8] sm:$0xff] %v588_v27  ;;  %v594_v30 = vld [vmem:[%s4250_s26 + $0x1aa0] sm:$0xff] }
  0x84   : > { %591 = vst [vmem:[%s4255_s27 + $0x6e0] sm:$0xff] %v590_v28  ;;  %593 = vst [vmem:[%s4255_s27 + $0x6e8] sm:$0xff] %v592_v29  ;;  %v596_v31 = vld [vmem:[%s4250_s26 + $0x1aa8] sm:$0xff]  ;;  %v598_v32 = vld [vmem:[%s4250_s26 + $0x1ab0] sm:$0xff] }
  0x85   : > { %595 = vst [vmem:[%s4255_s27 + $0x6f0] sm:$0xff] %v594_v30  ;;  %597 = vst [vmem:[%s4255_s27 + $0x6f8] sm:$0xff] %v596_v31  ;;  %v600_v33 = vld [vmem:[%s4250_s26 + $0x1c20] sm:$0xff]  ;;  %v602_v34 = vld [vmem:[%s4250_s26 + $0x1c28] sm:$0xff] }
  0x86   : > { %599 = vst [vmem:[%s4255_s27 + $0x700] sm:$0xff] %v598_v32  ;;  %v604_v35 = vld [vmem:[%s4250_s26 + $0x1c30] sm:$0xff]  ;;  %601 = vst [vmem:[%s4255_s27 + $0x708] sm:$0xff] %v600_v33  ;;  %v606_v36 = vld [vmem:[%s4250_s26 + $0x1c38] sm:$0xff] }
  0x87   : > { %603 = vst [vmem:[%s4255_s27 + $0x710] sm:$0xff] %v602_v34  ;;  %605 = vst [vmem:[%s4255_s27 + $0x718] sm:$0xff] %v604_v35  ;;  %v608_v37 = vld [vmem:[%s4250_s26 + $0x1c40] sm:$0xff]  ;;  %v610_v38 = vld [vmem:[%s4250_s26 + $0x1c48] sm:$0xff] }
  0x88   : > { %607 = vst [vmem:[%s4255_s27 + $0x720] sm:$0xff] %v606_v36  ;;  %609 = vst [vmem:[%s4255_s27 + $0x728] sm:$0xff] %v608_v37  ;;  %v612_v39 = vld [vmem:[%s4250_s26 + $0x1c50] sm:$0xff]  ;;  %v614_v40 = vld [vmem:[%s4250_s26 + $0x1c58] sm:$0xff] }
  0x89   : > { %611 = vst [vmem:[%s4255_s27 + $0x730] sm:$0xff] %v610_v38  ;;  %v616_v41 = vld [vmem:[%s4250_s26 + $0x1c60] sm:$0xff]  ;;  %613 = vst [vmem:[%s4255_s27 + $0x738] sm:$0xff] %v612_v39  ;;  %v618_v42 = vld [vmem:[%s4250_s26 + $0x1c68] sm:$0xff] }
  0x8a   : > { %615 = vst [vmem:[%s4255_s27 + $0x740] sm:$0xff] %v614_v40  ;;  %617 = vst [vmem:[%s4255_s27 + $0x748] sm:$0xff] %v616_v41  ;;  %v620_v43 = vld [vmem:[%s4250_s26 + $0x1c70] sm:$0xff]  ;;  %v622_v44 = vld [vmem:[%s4250_s26 + $0x1c78] sm:$0xff] }
  0x8b   : > { %619 = vst [vmem:[%s4255_s27 + $0x750] sm:$0xff] %v618_v42  ;;  %621 = vst [vmem:[%s4255_s27 + $0x758] sm:$0xff] %v620_v43  ;;  %v624_v45 = vld [vmem:[%s4250_s26 + $0x1c80] sm:$0xff]  ;;  %v626_v46 = vld [vmem:[%s4250_s26 + $0x1c88] sm:$0xff] }
  0x8c   : > { %623 = vst [vmem:[%s4255_s27 + $0x760] sm:$0xff] %v622_v44  ;;  %v628_v47 = vld [vmem:[%s4250_s26 + $0x1c90] sm:$0xff]  ;;  %625 = vst [vmem:[%s4255_s27 + $0x768] sm:$0xff] %v624_v45 }
  0x8d   : > { %627 = vst [vmem:[%s4255_s27 + $0x770] sm:$0xff] %v626_v46  ;;  %629 = vst [vmem:[%s4255_s27 + $0x778] sm:$0xff] %v628_v47 }
  0x8e PF: > { %p3507_p7 = scmp.ge.s32.totalorder %s4187_s14, 1  ;;  %p634_p8 = scmp.lt.s32.totalorder %s4187_s14, 5 }
  0x90   : > { %p635_p9 = pnand %p3507_p7, %p634_p8 }
  0x91   : > { %s641_s28 = sand.u32 (!%p635_p9), 1, %s4179_s12   ;;  %v4189_v48 = vmov (!%p635_p9), 0   ;;  %v910_v49 = vld [vmem:[%s5591_s2] sm:$0xff] (!%p635_p9)  ;;  %v911_v50 = vld [vmem:[%s5591_s2 + $0x8] sm:$0xff] (!%p635_p9) }
  0x92   : > { %638 = sbr.rel (%p635_p9) target bundleno = 665 (0x299), region = 51  ;;  %2178 = vmatprep.mubr.bf16.mxu0 (!%p635_p9), %v4189_v48  ;;  %2231 = vmatprep.mubr.bf16.mxu1 (!%p635_p9), %v4189_v48  ;;  %v4788_v21 = vld [vmem:[%s5589_s0] sm:$0xff] (!%p635_p9)   ;;  %v4805_v30 = vld [vmem:[%s5589_s0 + $0x8] sm:$0xff] (!%p635_p9)  }
  0x93   : > { %s3772_s29 = smul.u32 (!%p635_p9), 1920, %s641_s28  ;;  %3799 = vset.pattern.permute.xlu0 (!%p635_p9), %v4189_v48  ;;  %3800 = vset.pattern.permute.xlu1 (!%p635_p9), %v4189_v48 }
  0x94   : > { %916 = vperm.xlu0 (!%p635_p9), %3799, %v910_v49   ;;  %s5072_s27 = smul.u32 (!%p635_p9), 960, %s641_s28 }
  0x95   : > { %s4749_s7 = scalar_lea.vmem (!%p635_p9), [#allocation2], %s3772_s29 }
  0x96   : > { %v3801_v51 = vld [vmem:[%s4749_s7 + $0x4] ss:$120 sps:$4 sm:$0xff] (!%p635_p9)   ;;  %v3805_v53 = vld [vmem:[%s4749_s7] ss:$120 sps:$4 sm:$0xff] (!%p635_p9)   ;;  %v3807_v55 = vld [vmem:[%s4749_s7 + $0xf4] ss:$120 sps:$4 sm:$0xff] (!%p635_p9)  }
  0x97   : > { %v3803_v52 = vld [vmem:[%s4749_s7 + $0xc] ss:$120 sps:$4 sm:$0xff] (!%p635_p9)   ;;  %2146 = vmatprep.subr.bf16.mxu0 (!%p635_p9), %v3801_v51  ;;  %v3806_v54 = vld [vmem:[%s4749_s7 + $0x8] ss:$120 sps:$4 sm:$0xff] (!%p635_p9)   ;;  %v3809_v56 = vld [vmem:[%s4749_s7 + $0xfc] ss:$120 sps:$4 sm:$0xff] (!%p635_p9)  }
  0x98   : > { %2199 = vmatprep.subr.bf16.mxu1 (!%p635_p9), %v3803_v52  ;;  %921 = vperm.xlu0 (!%p635_p9), %3799, %v911_v50   ;;  %v3811_v57 = vld [vmem:[%s4749_s7 + $0xf0] ss:$120 sps:$4 sm:$0xff] (!%p635_p9)   ;;  %v3813_v59 = vld [vmem:[%s4749_s7 + $0x1e4] ss:$120 sps:$4 sm:$0xff] (!%p635_p9)   ;;  %v3817_v61 = vld [vmem:[%s4749_s7 + $0x1e0] ss:$120 sps:$4 sm:$0xff] (!%p635_p9)  }
  0x99   : > { %2147 = vmatpush1.bf16.msra.mxu0 %v3805_v53  ;;  %2200 = vmatpush1.bf16.msra.mxu1 %v3806_v54  ;;  %v3812_v58 = vld [vmem:[%s4749_s7 + $0xf8] ss:$120 sps:$4 sm:$0xff]   ;;  %v3815_v60 = vld [vmem:[%s4749_s7 + $0x1ec] ss:$120 sps:$4 sm:$0xff]   ;;  %v3818_v62 = vld [vmem:[%s4749_s7 + $0x1e8] ss:$120 sps:$4 sm:$0xff]  }
  0x9a   : > { %2148 = vmatprep.subr.bf16.mxu0 %v3807_v55  ;;  %2201 = vmatprep.subr.bf16.mxu1 %v3809_v56  ;;  %v3819_v63 = vld [vmem:[%s4749_s7 + $0x2d4] ss:$120 sps:$4 sm:$0xff]   ;;  %v3823_v1 = vld [vmem:[%s4749_s7 + $0x2d0] ss:$120 sps:$4 sm:$0xff]   ;;  %v3825_v3 = vld [vmem:[%s4749_s7 + $0x3c4] ss:$120 sps:$4 sm:$0xff]  }
  0x9b   : > { %v3821_v0 = vld [vmem:[%s4749_s7 + $0x2dc] ss:$120 sps:$4 sm:$0xff]   ;;  %v3824_v2 = vld [vmem:[%s4749_s7 + $0x2d8] ss:$120 sps:$4 sm:$0xff]   ;;  %v3827_v4 = vld [vmem:[%s4749_s7 + $0x3cc] ss:$120 sps:$4 sm:$0xff]  }
  0x9c   : > { %v3829_v5 = vld [vmem:[%s4749_s7 + $0x3c0] ss:$120 sps:$4 sm:$0xff]   ;;  %v3831_v7 = vld [vmem:[%s4749_s7 + $0x4b4] ss:$120 sps:$4 sm:$0xff]   ;;  %v3835_v9 = vld [vmem:[%s4749_s7 + $0x4b0] ss:$120 sps:$4 sm:$0xff]  }
  0x9d   : > { %2149 = vmatpush1.bf16.msra.mxu0 %v3811_v57  ;;  %2202 = vmatpush1.bf16.msra.mxu1 %v3812_v58  ;;  %v3830_v6 = vld [vmem:[%s4749_s7 + $0x3c8] ss:$120 sps:$4 sm:$0xff]   ;;  %v3833_v8 = vld [vmem:[%s4749_s7 + $0x4bc] ss:$120 sps:$4 sm:$0xff]   ;;  %v3836_v10 = vld [vmem:[%s4749_s7 + $0x4b8] ss:$120 sps:$4 sm:$0xff]  }
  0x9e   : > { %2150 = vmatprep.subr.bf16.mxu0 %v3813_v59  ;;  %2203 = vmatprep.subr.bf16.mxu1 %v3815_v60  ;;  %v3837_v11 = vld [vmem:[%s4749_s7 + $0x5a4] ss:$120 sps:$4 sm:$0xff]   ;;  %v3841_v13 = vld [vmem:[%s4749_s7 + $0x5a0] ss:$120 sps:$4 sm:$0xff]   ;;  %v3843_v15 = vld [vmem:[%s4749_s7 + $0x694] ss:$120 sps:$4 sm:$0xff]  }
  0x9f   : > { %v3839_v12 = vld [vmem:[%s4749_s7 + $0x5ac] ss:$120 sps:$4 sm:$0xff]   ;;  %v3842_v14 = vld [vmem:[%s4749_s7 + $0x5a8] ss:$120 sps:$4 sm:$0xff]   ;;  %v3845_v16 = vld [vmem:[%s4749_s7 + $0x69c] ss:$120 sps:$4 sm:$0xff]  }
  0xa0   : > { %v3847_v17 = vld [vmem:[%s4749_s7 + $0x690] ss:$120 sps:$4 sm:$0xff]   ;;  %v3852_v19 = vld [vmem:[%s4749_s7 + $0x14] ss:$120 sps:$4 sm:$0xff]   ;;  %v3858_v24 = vld [vmem:[%s4749_s7 + $0x104] ss:$120 sps:$4 sm:$0xff]  }
  0xa1   : > { %2151 = vmatpush1.bf16.msra.mxu0 %v3817_v61  ;;  %2204 = vmatpush1.bf16.msra.mxu1 %v3818_v62  ;;  %v3848_v18 = vld [vmem:[%s4749_s7 + $0x698] ss:$120 sps:$4 sm:$0xff]   ;;  %v3855_v20 = vld [vmem:[%s4749_s7 + $0x1c] ss:$120 sps:$4 sm:$0xff]   ;;  %v3861_v25 = vld [vmem:[%s4749_s7 + $0x10c] ss:$120 sps:$4 sm:$0xff]  }
  0xa2   : > { %2152 = vmatprep.subr.bf16.mxu0 %v3819_v63  ;;  %2205 = vmatprep.subr.bf16.mxu1 %v3821_v0  ;;  %v3850_v22 = vld [vmem:[%s4749_s7 + $0x10] ss:$120 sps:$4 sm:$0xff]   ;;  %v3856_v26 = vld [vmem:[%s4749_s7 + $0x100] ss:$120 sps:$4 sm:$0xff]   ;;  %v3864_v28 = vld [vmem:[%s4749_s7 + $0x1f4] ss:$120 sps:$4 sm:$0xff]  }
  0xa3   : > { %v3853_v23 = vld [vmem:[%s4749_s7 + $0x18] ss:$120 sps:$4 sm:$0xff]   ;;  %v3859_v27 = vld [vmem:[%s4749_s7 + $0x108] ss:$120 sps:$4 sm:$0xff]   ;;  %v3867_v29 = vld [vmem:[%s4749_s7 + $0x1fc] ss:$120 sps:$4 sm:$0xff]  }
  0xa4   : > { %v3862_v31 = vld [vmem:[%s4749_s7 + $0x1f0] ss:$120 sps:$4 sm:$0xff]   ;;  %v3870_v33 = vld [vmem:[%s4749_s7 + $0x2e4] ss:$120 sps:$4 sm:$0xff]   ;;  %v3868_v35 = vld [vmem:[%s4749_s7 + $0x2e0] ss:$120 sps:$4 sm:$0xff]  }
  0xa5   : > { %2153 = vmatpush1.bf16.msra.mxu0 %v3823_v1  ;;  %2206 = vmatpush1.bf16.msra.mxu1 %v3824_v2  ;;  %v3865_v32 = vld [vmem:[%s4749_s7 + $0x1f8] ss:$120 sps:$4 sm:$0xff]   ;;  %v3873_v34 = vld [vmem:[%s4749_s7 + $0x2ec] ss:$120 sps:$4 sm:$0xff]   ;;  %v3871_v36 = vld [vmem:[%s4749_s7 + $0x2e8] ss:$120 sps:$4 sm:$0xff]  }
  0xa6   : > { %2154 = vmatprep.subr.bf16.mxu0 %v3825_v3  ;;  %2207 = vmatprep.subr.bf16.mxu1 %v3827_v4  ;;  %v3876_v37 = vld [vmem:[%s4749_s7 + $0x3d4] ss:$120 sps:$4 sm:$0xff]   ;;  %v3874_v39 = vld [vmem:[%s4749_s7 + $0x3d0] ss:$120 sps:$4 sm:$0xff]   ;;  %v3882_v41 = vld [vmem:[%s4749_s7 + $0x4c4] ss:$120 sps:$4 sm:$0xff]  }
  0xa7   : > { %v3879_v38 = vld [vmem:[%s4749_s7 + $0x3dc] ss:$120 sps:$4 sm:$0xff]   ;;  %v3877_v40 = vld [vmem:[%s4749_s7 + $0x3d8] ss:$120 sps:$4 sm:$0xff]   ;;  %v3885_v42 = vld [vmem:[%s4749_s7 + $0x4cc] ss:$120 sps:$4 sm:$0xff]  }
  0xa8   : > { %v3880_v43 = vld [vmem:[%s4749_s7 + $0x4c0] ss:$120 sps:$4 sm:$0xff]   ;;  %v3889_v45 = vld [vmem:[%s4749_s7 + $0x5b4] ss:$120 sps:$4 sm:$0xff]   ;;  %v3887_v47 = vld [vmem:[%s4749_s7 + $0x5b0] ss:$120 sps:$4 sm:$0xff]  }
  0xa9   : > { %2155 = vmatpush1.bf16.msra.mxu0 %v3829_v5  ;;  %2208 = vmatpush1.bf16.msra.mxu1 %v3830_v6  ;;  %v3883_v44 = vld [vmem:[%s4749_s7 + $0x4c8] ss:$120 sps:$4 sm:$0xff]   ;;  %v3892_v46 = vld [vmem:[%s4749_s7 + $0x5bc] ss:$120 sps:$4 sm:$0xff]   ;;  %v3890_v49 = vld [vmem:[%s4749_s7 + $0x5b8] ss:$120 sps:$4 sm:$0xff]  }
  0xaa   : > { %2156 = vmatprep.subr.bf16.mxu0 %v3831_v7  ;;  %2209 = vmatprep.subr.bf16.mxu1 %v3833_v8  ;;  %v3895_v50 = vld [vmem:[%s4749_s7 + $0x6a4] ss:$120 sps:$4 sm:$0xff]   ;;  %v3893_v52 = vld [vmem:[%s4749_s7 + $0x6a0] ss:$120 sps:$4 sm:$0xff]   ;;  %v3907_v58 = vld [vmem:[%s4749_s7 + $0x114] ss:$120 sps:$4 sm:$0xff]  }
  0xab   : > { %v3898_v51 = vld [vmem:[%s4749_s7 + $0x6ac] ss:$120 sps:$4 sm:$0xff]   ;;  %v3896_v53 = vld [vmem:[%s4749_s7 + $0x6a8] ss:$120 sps:$4 sm:$0xff]   ;;  %v3910_v59 = vld [vmem:[%s4749_s7 + $0x11c] ss:$120 sps:$4 sm:$0xff]  }
  0xac   : > { %v3901_v54 = vld [vmem:[%s4749_s7 + $0x24] ss:$120 sps:$4 sm:$0xff]   ;;  %v3899_v56 = vld [vmem:[%s4749_s7 + $0x20] ss:$120 sps:$4 sm:$0xff]   ;;  %v3905_v60 = vld [vmem:[%s4749_s7 + $0x110] ss:$120 sps:$4 sm:$0xff]  }
  0xad   : > { %2157 = vmatpush1.bf16.msra.mxu0 %v3835_v9  ;;  %2210 = vmatpush1.bf16.msra.mxu1 %v3836_v10  ;;  %v3904_v55 = vld [vmem:[%s4749_s7 + $0x2c] ss:$120 sps:$4 sm:$0xff]   ;;  %v3902_v57 = vld [vmem:[%s4749_s7 + $0x28] ss:$120 sps:$4 sm:$0xff]   ;;  %v3908_v61 = vld [vmem:[%s4749_s7 + $0x118] ss:$120 sps:$4 sm:$0xff]  }
  0xae   : > { %2158 = vmatprep.subr.bf16.mxu0 %v3837_v11  ;;  %2211 = vmatprep.subr.bf16.mxu1 %v3839_v12  ;;  %v3913_v62 = vld [vmem:[%s4749_s7 + $0x204] ss:$120 sps:$4 sm:$0xff]   ;;  %v3911_v0 = vld [vmem:[%s4749_s7 + $0x200] ss:$120 sps:$4 sm:$0xff]   ;;  %v3919_v2 = vld [vmem:[%s4749_s7 + $0x2f4] ss:$120 sps:$4 sm:$0xff]  }
  0xaf   : > { %v3916_v63 = vld [vmem:[%s4749_s7 + $0x20c] ss:$120 sps:$4 sm:$0xff]   ;;  %v3914_v1 = vld [vmem:[%s4749_s7 + $0x208] ss:$120 sps:$4 sm:$0xff]   ;;  %v3922_v3 = vld [vmem:[%s4749_s7 + $0x2fc] ss:$120 sps:$4 sm:$0xff]  }
  0xb0   : > { %v3917_v4 = vld [vmem:[%s4749_s7 + $0x2f0] ss:$120 sps:$4 sm:$0xff]   ;;  %v3925_v6 = vld [vmem:[%s4749_s7 + $0x3e4] ss:$120 sps:$4 sm:$0xff]   ;;  %v3923_v8 = vld [vmem:[%s4749_s7 + $0x3e0] ss:$120 sps:$4 sm:$0xff]  }
  0xb1   : > { %2159 = vmatpush1.bf16.msra.mxu0 %v3841_v13  ;;  %2212 = vmatpush1.bf16.msra.mxu1 %v3842_v14  ;;  %v3920_v5 = vld [vmem:[%s4749_s7 + $0x2f8] ss:$120 sps:$4 sm:$0xff]   ;;  %v3928_v7 = vld [vmem:[%s4749_s7 + $0x3ec] ss:$120 sps:$4 sm:$0xff]   ;;  %v3926_v9 = vld [vmem:[%s4749_s7 + $0x3e8] ss:$120 sps:$4 sm:$0xff]  }
  0xb2   : > { %2160 = vmatprep.subr.bf16.mxu0 %v3843_v15  ;;  %2213 = vmatprep.subr.bf16.mxu1 %v3845_v16  ;;  %v3931_v10 = vld [vmem:[%s4749_s7 + $0x4d4] ss:$120 sps:$4 sm:$0xff]   ;;  %v3929_v12 = vld [vmem:[%s4749_s7 + $0x4d0] ss:$120 sps:$4 sm:$0xff]   ;;  %v3937_v14 = vld [vmem:[%s4749_s7 + $0x5c4] ss:$120 sps:$4 sm:$0xff]  }
  0xb3   : > { %v3934_v11 = vld [vmem:[%s4749_s7 + $0x4dc] ss:$120 sps:$4 sm:$0xff]   ;;  %v3932_v13 = vld [vmem:[%s4749_s7 + $0x4d8] ss:$120 sps:$4 sm:$0xff]   ;;  %v3940_v15 = vld [vmem:[%s4749_s7 + $0x5cc] ss:$120 sps:$4 sm:$0xff]  }
  0xb4   : > { %v3935_v16 = vld [vmem:[%s4749_s7 + $0x5c0] ss:$120 sps:$4 sm:$0xff]   ;;  %s5091_s12 = scalar_lea.vmem [#allocation3], %s5072_s27  ;;  %s3754_s28 = smul.u32 (%p4240_p5), 240, %s3502_s15 }
  0xb5   : > { %2161 = vmatpush1.bf16.msra.mxu0 %v3847_v17  ;;  %2214 = vmatpush1.bf16.msra.mxu1 %v3848_v18  ;;  %v3938_v17 = vld [vmem:[%s4749_s7 + $0x5c8] ss:$120 sps:$4 sm:$0xff]   ;;  %v3943_v18 = vld [vmem:[%s4749_s7 + $0x6b4] ss:$120 sps:$4 sm:$0xff]  }
  0xb6   : > { %2252 = vmatprep.subr.bf16.mxu0 %v3852_v19  ;;  %2305 = vmatprep.subr.bf16.mxu1 %v3855_v20  ;;  %v3946_v19 = vld [vmem:[%s4749_s7 + $0x6bc] ss:$120 sps:$4 sm:$0xff]   ;;  %v3941_v20 = vld [vmem:[%s4749_s7 + $0x6b0] ss:$120 sps:$4 sm:$0xff]   ;;  %s5343_s29 = scalar_lea.vmem (%p4240_p5), %s5592_s3, %s3754_s28 }
  0xb8   : > { %2179 = vmatmul.mubr.bf16.vlgmr.msra.gmra.mrb[0].mxu0 %v4788_v21  ;;  %2232 = vmatmul.mubr.bf16.vlgmr.msra.gmra.mrb[0].mxu1 %v4788_v21 }
  0xb9   : > { %2253 = vmatpush1.bf16.msra.mxu0 %v3850_v22  ;;  %2306 = vmatpush1.bf16.msra.mxu1 %v3853_v23  ;;  %v3944_v22 = vld [vmem:[%s4749_s7 + $0x6b8] ss:$120 sps:$4 sm:$0xff]   ;;  %v3949_v23 = vld [vmem:[%s4749_s7 + $0x34] ss:$120 sps:$4 sm:$0xff]  }
  0xba   : > { %2254 = vmatprep.subr.bf16.mxu0 %v3858_v24  ;;  %2307 = vmatprep.subr.bf16.mxu1 %v3861_v25  ;;  %v3952_v24 = vld [vmem:[%s4749_s7 + $0x3c] ss:$120 sps:$4 sm:$0xff]  }
  0xbb   : > { %2188 = vmatprep.mubr.bf16.mxu0 %v4189_v48  ;;  %2241 = vmatprep.mubr.bf16.mxu1 %v4189_v48  ;;  %v912_v25 = vld [vmem:[%s5591_s2 + $0x10] sm:$0xff] }
  0xbc   : > { %926 = vperm.xlu1 %3800, %v912_v25   ;;  %v4042_v25 = vld [vmem:[%s4749_s7 + $0x6dc] ss:$120 sps:$4 sm:$0xff]  }
  0xbd   : > { %2255 = vmatpush1.bf16.msra.mxu0 %v3856_v26  ;;  %2308 = vmatpush1.bf16.msra.mxu1 %v3859_v27  ;;  %v3947_v26 = vld [vmem:[%s4749_s7 + $0x30] ss:$120 sps:$4 sm:$0xff]  }
  0xbe   : > { %2256 = vmatprep.subr.bf16.mxu0 %v3864_v28  ;;  %2309 = vmatprep.subr.bf16.mxu1 %v3867_v29  ;;  %v3950_v27 = vld [vmem:[%s4749_s7 + $0x38] ss:$120 sps:$4 sm:$0xff]   ;;  %v3955_v29 = vld [vmem:[%s4749_s7 + $0x124] ss:$120 sps:$4 sm:$0xff]  }
  0xbf   : > { %v913_v28 = vld [vmem:[%s5591_s2 + $0x18] sm:$0xff] }
  0xc0   : > { %2189 = vmatmul.mubr.bf16.gmra.mrb[4].mxu0 %v4805_v30  ;;  %2242 = vmatmul.mubr.bf16.gmra.mrb[4].mxu1 %v4805_v30 }
  0xc1   : > { %2257 = vmatpush1.bf16.msra.mxu0 %v3862_v31  ;;  %2310 = vmatpush1.bf16.msra.mxu1 %v3865_v32  ;;  %v3958_v31 = vld [vmem:[%s4749_s7 + $0x12c] ss:$120 sps:$4 sm:$0xff]   ;;  %v3953_v32 = vld [vmem:[%s4749_s7 + $0x120] ss:$120 sps:$4 sm:$0xff]  }
  0xc2   : > { %2258 = vmatprep.subr.bf16.mxu0 %v3870_v33  ;;  %2311 = vmatprep.subr.bf16.mxu1 %v3873_v34  ;;  %v3956_v33 = vld [vmem:[%s4749_s7 + $0x128] ss:$120 sps:$4 sm:$0xff]   ;;  %v3961_v34 = vld [vmem:[%s4749_s7 + $0x214] ss:$120 sps:$4 sm:$0xff]  }
  0xc3   : > { %2284 = vmatprep.mubr.bf16.mxu0 %v4189_v48  ;;  %2337 = vmatprep.mubr.bf16.mxu1 %v4189_v48 }
  0xc4   : > { %931 = vperm.xlu1 %3800, %v913_v28   ;;  %v4045_v28 = vld [vmem:[%s4749_s7 + $0x54] ss:$120 sps:$4 sm:$0xff]  }
  0xc5   : > { %2259 = vmatpush1.bf16.msra.mxu0 %v3868_v35  ;;  %2312 = vmatpush1.bf16.msra.mxu1 %v3871_v36  ;;  %v3964_v35 = vld [vmem:[%s4749_s7 + $0x21c] ss:$120 sps:$4 sm:$0xff]   ;;  %v3959_v36 = vld [vmem:[%s4749_s7 + $0x210] ss:$120 sps:$4 sm:$0xff]  }
  0xc6   : > { %2260 = vmatprep.subr.bf16.mxu0 %v3876_v37  ;;  %2313 = vmatprep.subr.bf16.mxu1 %v3879_v38  ;;  %v3962_v37 = vld [vmem:[%s4749_s7 + $0x218] ss:$120 sps:$4 sm:$0xff]   ;;  %v3967_v38 = vld [vmem:[%s4749_s7 + $0x304] ss:$120 sps:$4 sm:$0xff]  }
  0xc9   : > { %2261 = vmatpush1.bf16.msra.mxu0 %v3874_v39  ;;  %2314 = vmatpush1.bf16.msra.mxu1 %v3877_v40  ;;  %v3970_v39 = vld [vmem:[%s4749_s7 + $0x30c] ss:$120 sps:$4 sm:$0xff]   ;;  %v3965_v40 = vld [vmem:[%s4749_s7 + $0x300] ss:$120 sps:$4 sm:$0xff]  }
  0xca   : > { %2262 = vmatprep.subr.bf16.mxu0 %v3882_v41  ;;  %2315 = vmatprep.subr.bf16.mxu1 %v3885_v42  ;;  %v3968_v41 = vld [vmem:[%s4749_s7 + $0x308] ss:$120 sps:$4 sm:$0xff]   ;;  %v3973_v42 = vld [vmem:[%s4749_s7 + $0x3f4] ss:$120 sps:$4 sm:$0xff]  }
  0xcd   : > { %2263 = vmatpush1.bf16.msra.mxu0 %v3880_v43  ;;  %2316 = vmatpush1.bf16.msra.mxu1 %v3883_v44  ;;  %v3976_v43 = vld [vmem:[%s4749_s7 + $0x3fc] ss:$120 sps:$4 sm:$0xff]   ;;  %v3971_v44 = vld [vmem:[%s4749_s7 + $0x3f0] ss:$120 sps:$4 sm:$0xff]  }
  0xce   : > { %2264 = vmatprep.subr.bf16.mxu0 %v3889_v45  ;;  %2317 = vmatprep.subr.bf16.mxu1 %v3892_v46  ;;  %v3974_v45 = vld [vmem:[%s4749_s7 + $0x3f8] ss:$120 sps:$4 sm:$0xff]   ;;  %v3979_v46 = vld [vmem:[%s4749_s7 + $0x4e4] ss:$120 sps:$4 sm:$0xff]  }
  0xd1   : > { %2265 = vmatpush1.bf16.msra.mxu0 %v3887_v47  ;;  %2318 = vmatpush1.bf16.msra.mxu1 %v3890_v49  ;;  %v3982_v47 = vld [vmem:[%s4749_s7 + $0x4ec] ss:$120 sps:$4 sm:$0xff]   ;;  %v3977_v49 = vld [vmem:[%s4749_s7 + $0x4e0] ss:$120 sps:$4 sm:$0xff]  }
  0xd2   : > { %2266 = vmatprep.subr.bf16.mxu0 %v3895_v50  ;;  %2319 = vmatprep.subr.bf16.mxu1 %v3898_v51  ;;  %v3980_v50 = vld [vmem:[%s4749_s7 + $0x4e8] ss:$120 sps:$4 sm:$0xff]   ;;  %v3985_v51 = vld [vmem:[%s4749_s7 + $0x5d4] ss:$120 sps:$4 sm:$0xff]  }
  0xd5   : > { %2267 = vmatpush1.bf16.msra.mxu0 %v3893_v52  ;;  %2320 = vmatpush1.bf16.msra.mxu1 %v3896_v53  ;;  %v3988_v52 = vld [vmem:[%s4749_s7 + $0x5dc] ss:$120 sps:$4 sm:$0xff]   ;;  %v3983_v53 = vld [vmem:[%s4749_s7 + $0x5d0] ss:$120 sps:$4 sm:$0xff]  }
  0xd6   : > { %2358 = vmatprep.subr.bf16.mxu0 %v3901_v54  ;;  %2411 = vmatprep.subr.bf16.mxu1 %v3904_v55  ;;  %v3986_v54 = vld [vmem:[%s4749_s7 + $0x5d8] ss:$120 sps:$4 sm:$0xff]   ;;  %v3991_v55 = vld [vmem:[%s4749_s7 + $0x6c4] ss:$120 sps:$4 sm:$0xff]  }
  0xd8   : > { %2285 = vmatmul.mubr.bf16.vlgmr.msra.gmra.mrb[8].mxu0 %v4788_v21  ;;  %2338 = vmatmul.mubr.bf16.vlgmr.msra.gmra.mrb[8].mxu1 %v4788_v21 }
  0xd9   : > { %2359 = vmatpush1.bf16.msra.mxu0 %v3899_v56  ;;  %2412 = vmatpush1.bf16.msra.mxu1 %v3902_v57  ;;  %v3994_v56 = vld [vmem:[%s4749_s7 + $0x6cc] ss:$120 sps:$4 sm:$0xff]   ;;  %v3989_v57 = vld [vmem:[%s4749_s7 + $0x6c0] ss:$120 sps:$4 sm:$0xff]  }
  0xda   : > { %2360 = vmatprep.subr.bf16.mxu0 %v3907_v58  ;;  %2413 = vmatprep.subr.bf16.mxu1 %v3910_v59  ;;  %v3992_v58 = vld [vmem:[%s4749_s7 + $0x6c8] ss:$120 sps:$4 sm:$0xff]   ;;  %v3997_v59 = vld [vmem:[%s4749_s7 + $0x44] ss:$120 sps:$4 sm:$0xff]  }
  0xdb   : > { %2294 = vmatprep.mubr.bf16.mxu0 %v4189_v48  ;;  %2347 = vmatprep.mubr.bf16.mxu1 %v4189_v48 }
  0xdd   : > { %2361 = vmatpush1.bf16.msra.mxu0 %v3905_v60  ;;  %2414 = vmatpush1.bf16.msra.mxu1 %v3908_v61  ;;  %v4000_v60 = vld [vmem:[%s4749_s7 + $0x4c] ss:$120 sps:$4 sm:$0xff]   ;;  %v3995_v61 = vld [vmem:[%s4749_s7 + $0x40] ss:$120 sps:$4 sm:$0xff]  }
  0xde   : > { %2362 = vmatprep.subr.bf16.mxu0 %v3913_v62  ;;  %2415 = vmatprep.subr.bf16.mxu1 %v3916_v63  ;;  %v3998_v62 = vld [vmem:[%s4749_s7 + $0x48] ss:$120 sps:$4 sm:$0xff]   ;;  %v4003_v63 = vld [vmem:[%s4749_s7 + $0x134] ss:$120 sps:$4 sm:$0xff]  }
  0xe0   : > { %2295 = vmatmul.mubr.bf16.gmra.mrb[12].mxu0 %v4805_v30  ;;  %2348 = vmatmul.mubr.bf16.gmra.mrb[12].mxu1 %v4805_v30 }
  0xe1   : > { %2363 = vmatpush1.bf16.msra.mxu0 %v3911_v0  ;;  %2416 = vmatpush1.bf16.msra.mxu1 %v3914_v1  ;;  %v4006_v0 = vld [vmem:[%s4749_s7 + $0x13c] ss:$120 sps:$4 sm:$0xff]   ;;  %v4001_v1 = vld [vmem:[%s4749_s7 + $0x130] ss:$120 sps:$4 sm:$0xff]  }
  0xe2   : > { %2364 = vmatprep.subr.bf16.mxu0 %v3919_v2  ;;  %2417 = vmatprep.subr.bf16.mxu1 %v3922_v3  ;;  %v4004_v2 = vld [vmem:[%s4749_s7 + $0x138] ss:$120 sps:$4 sm:$0xff]   ;;  %v4009_v3 = vld [vmem:[%s4749_s7 + $0x224] ss:$120 sps:$4 sm:$0xff]  }
  0xe3   : > { %2390 = vmatprep.mubr.bf16.mxu0 %v4189_v48  ;;  %2443 = vmatprep.mubr.bf16.mxu1 %v4189_v48 }
  0xe5   : > { %2365 = vmatpush1.bf16.msra.mxu0 %v3917_v4  ;;  %2418 = vmatpush1.bf16.msra.mxu1 %v3920_v5  ;;  %v4012_v4 = vld [vmem:[%s4749_s7 + $0x22c] ss:$120 sps:$4 sm:$0xff]   ;;  %v4007_v5 = vld [vmem:[%s4749_s7 + $0x220] ss:$120 sps:$4 sm:$0xff]  }
  0xe6   : > { %2366 = vmatprep.subr.bf16.mxu0 %v3925_v6  ;;  %2419 = vmatprep.subr.bf16.mxu1 %v3928_v7  ;;  %v4010_v6 = vld [vmem:[%s4749_s7 + $0x228] ss:$120 sps:$4 sm:$0xff]   ;;  %v4015_v7 = vld [vmem:[%s4749_s7 + $0x314] ss:$120 sps:$4 sm:$0xff]  }
  0xe9   : > { %2367 = vmatpush1.bf16.msra.mxu0 %v3923_v8  ;;  %2420 = vmatpush1.bf16.msra.mxu1 %v3926_v9  ;;  %v4018_v8 = vld [vmem:[%s4749_s7 + $0x31c] ss:$120 sps:$4 sm:$0xff]   ;;  %v4013_v9 = vld [vmem:[%s4749_s7 + $0x310] ss:$120 sps:$4 sm:$0xff]  }
  0xea   : > { %2368 = vmatprep.subr.bf16.mxu0 %v3931_v10  ;;  %2421 = vmatprep.subr.bf16.mxu1 %v3934_v11  ;;  %v4016_v10 = vld [vmem:[%s4749_s7 + $0x318] ss:$120 sps:$4 sm:$0xff]   ;;  %v4021_v11 = vld [vmem:[%s4749_s7 + $0x404] ss:$120 sps:$4 sm:$0xff]  }
  0xed   : > { %2369 = vmatpush1.bf16.msra.mxu0 %v3929_v12  ;;  %2422 = vmatpush1.bf16.msra.mxu1 %v3932_v13  ;;  %v4024_v12 = vld [vmem:[%s4749_s7 + $0x40c] ss:$120 sps:$4 sm:$0xff]   ;;  %v4019_v13 = vld [vmem:[%s4749_s7 + $0x400] ss:$120 sps:$4 sm:$0xff]  }
  0xee   : > { %2370 = vmatprep.subr.bf16.mxu0 %v3937_v14  ;;  %2423 = vmatprep.subr.bf16.mxu1 %v3940_v15  ;;  %v4022_v14 = vld [vmem:[%s4749_s7 + $0x408] ss:$120 sps:$4 sm:$0xff]   ;;  %v4027_v15 = vld [vmem:[%s4749_s7 + $0x4f4] ss:$120 sps:$4 sm:$0xff]  }
  0xf1   : > { %2371 = vmatpush1.bf16.msra.mxu0 %v3935_v16  ;;  %2424 = vmatpush1.bf16.msra.mxu1 %v3938_v17  ;;  %v4030_v16 = vld [vmem:[%s4749_s7 + $0x4fc] ss:$120 sps:$4 sm:$0xff]   ;;  %v4025_v17 = vld [vmem:[%s4749_s7 + $0x4f0] ss:$120 sps:$4 sm:$0xff]  }
  0xf2   : > { %2372 = vmatprep.subr.bf16.mxu0 %v3943_v18  ;;  %2425 = vmatprep.subr.bf16.mxu1 %v3946_v19  ;;  %v4028_v18 = vld [vmem:[%s4749_s7 + $0x4f8] ss:$120 sps:$4 sm:$0xff]   ;;  %v4033_v19 = vld [vmem:[%s4749_s7 + $0x5e4] ss:$120 sps:$4 sm:$0xff]  }
  0xf5   : > { %2373 = vmatpush1.bf16.msra.mxu0 %v3941_v20  ;;  %2426 = vmatpush1.bf16.msra.mxu1 %v3944_v22  ;;  %v4036_v20 = vld [vmem:[%s4749_s7 + $0x5ec] ss:$120 sps:$4 sm:$0xff]   ;;  %v4031_v22 = vld [vmem:[%s4749_s7 + $0x5e0] ss:$120 sps:$4 sm:$0xff]  }
  0xf6   : > { %2464 = vmatprep.subr.bf16.mxu0 %v3949_v23  ;;  %2517 = vmatprep.subr.bf16.mxu1 %v3952_v24  ;;  %v4034_v23 = vld [vmem:[%s4749_s7 + $0x5e8] ss:$120 sps:$4 sm:$0xff]   ;;  %v4039_v24 = vld [vmem:[%s4749_s7 + $0x6d4] ss:$120 sps:$4 sm:$0xff]  }
  0xf8   : > { %2391 = vmatmul.mubr.bf16.vlgmr.msra.gmra.mrb[16].mxu0 %v4788_v21  ;;  %2444 = vmatmul.mubr.bf16.vlgmr.msra.gmra.mrb[16].mxu1 %v4788_v21 }
  0xf9   : > { %2465 = vmatpush1.bf16.msra.mxu0 %v3947_v26  ;;  %2518 = vmatpush1.bf16.msra.mxu1 %v3950_v27  ;;  %v4037_v26 = vld [vmem:[%s4749_s7 + $0x6d0] ss:$120 sps:$4 sm:$0xff]  }
  0xfa   : > { %2466 = vmatprep.subr.bf16.mxu0 %v3955_v29  ;;  %2519 = vmatprep.subr.bf16.mxu1 %v3958_v31  ;;  %v4040_v27 = vld [vmem:[%s4749_s7 + $0x6d8] ss:$120 sps:$4 sm:$0xff]   ;;  %v4048_v29 = vld [vmem:[%s4749_s7 + $0x5c] ss:$120 sps:$4 sm:$0xff]  }
  0xfb   : > { %2400 = vmatprep.mubr.bf16.mxu0 %v4189_v48  ;;  %2453 = vmatprep.mubr.bf16.mxu1 %v4189_v48  ;;  %v4043_v31 = vld [vmem:[%s4749_s7 + $0x50] ss:$120 sps:$4 sm:$0xff]  }
  0xfd   : > { %2467 = vmatpush1.bf16.msra.mxu0 %v3953_v32  ;;  %2520 = vmatpush1.bf16.msra.mxu1 %v3956_v33  ;;  %v4046_v32 = vld [vmem:[%s4749_s7 + $0x58] ss:$120 sps:$4 sm:$0xff]   ;;  %v4051_v33 = vld [vmem:[%s4749_s7 + $0x144] ss:$120 sps:$4 sm:$0xff]  }
  0xfe   : > { %2468 = vmatprep.subr.bf16.mxu0 %v3961_v34  ;;  %2521 = vmatprep.subr.bf16.mxu1 %v3964_v35  ;;  %v4054_v34 = vld [vmem:[%s4749_s7 + $0x14c] ss:$120 sps:$4 sm:$0xff]   ;;  %v4049_v35 = vld [vmem:[%s4749_s7 + $0x140] ss:$120 sps:$4 sm:$0xff]  }
 0x100   : > { %2401 = vmatmul.mubr.bf16.gmra.mrb[20].mxu0 %v4805_v30  ;;  %2454 = vmatmul.mubr.bf16.gmra.mrb[20].mxu1 %v4805_v30 }
 0x101   : > { %2469 = vmatpush1.bf16.msra.mxu0 %v3959_v36  ;;  %2522 = vmatpush1.bf16.msra.mxu1 %v3962_v37  ;;  %v4052_v36 = vld [vmem:[%s4749_s7 + $0x148] ss:$120 sps:$4 sm:$0xff]   ;;  %v4057_v37 = vld [vmem:[%s4749_s7 + $0x234] ss:$120 sps:$4 sm:$0xff]  }
 0x102   : > { %2470 = vmatprep.subr.bf16.mxu0 %v3967_v38  ;;  %2523 = vmatprep.subr.bf16.mxu1 %v3970_v39  ;;  %v4060_v38 = vld [vmem:[%s4749_s7 + $0x23c] ss:$120 sps:$4 sm:$0xff]   ;;  %v4058_v39 = vld [vmem:[%s4749_s7 + $0x238] ss:$120 sps:$4 sm:$0xff]  }
 0x103   : > { %2496 = vmatprep.mubr.bf16.mxu0 %v4189_v48  ;;  %2549 = vmatprep.mubr.bf16.mxu1 %v4189_v48 }
 0x105   : > { %2471 = vmatpush1.bf16.msra.mxu0 %v3965_v40  ;;  %2524 = vmatpush1.bf16.msra.mxu1 %v3968_v41  ;;  %v4063_v40 = vld [vmem:[%s4749_s7 + $0x324] ss:$120 sps:$4 sm:$0xff]  }
 0x106   : > { %2472 = vmatprep.subr.bf16.mxu0 %v3973_v42  ;;  %2525 = vmatprep.subr.bf16.mxu1 %v3976_v43  ;;  %v4066_v41 = vld [vmem:[%s4749_s7 + $0x32c] ss:$120 sps:$4 sm:$0xff]   ;;  %v4061_v42 = vld [vmem:[%s4749_s7 + $0x320] ss:$120 sps:$4 sm:$0xff]  }
 0x107   : > { %v4064_v43 = vld [vmem:[%s4749_s7 + $0x328] ss:$120 sps:$4 sm:$0xff]  }
 0x109   : > { %2473 = vmatpush1.bf16.msra.mxu0 %v3971_v44  ;;  %2526 = vmatpush1.bf16.msra.mxu1 %v3974_v45  ;;  %v4069_v44 = vld [vmem:[%s4749_s7 + $0x414] ss:$120 sps:$4 sm:$0xff]  }
 0x10a   : > { %2474 = vmatprep.subr.bf16.mxu0 %v3979_v46  ;;  %2527 = vmatprep.subr.bf16.mxu1 %v3982_v47  ;;  %v4072_v45 = vld [vmem:[%s4749_s7 + $0x41c] ss:$120 sps:$4 sm:$0xff]   ;;  %v4070_v46 = vld [vmem:[%s4749_s7 + $0x418] ss:$120 sps:$4 sm:$0xff]  }
 0x10b   : > { %v4075_v47 = vld [vmem:[%s4749_s7 + $0x504] ss:$120 sps:$4 sm:$0xff]  }
 0x10d   : > { %2475 = vmatpush1.bf16.msra.mxu0 %v3977_v49  ;;  %2528 = vmatpush1.bf16.msra.mxu1 %v3980_v50  ;;  %v4078_v49 = vld [vmem:[%s4749_s7 + $0x50c] ss:$120 sps:$4 sm:$0xff]   ;;  %v4073_v50 = vld [vmem:[%s4749_s7 + $0x500] ss:$120 sps:$4 sm:$0xff]  }
 0x10e   : > { %2476 = vmatprep.subr.bf16.mxu0 %v3985_v51  ;;  %2529 = vmatprep.subr.bf16.mxu1 %v3988_v52  ;;  %v4076_v51 = vld [vmem:[%s4749_s7 + $0x508] ss:$120 sps:$4 sm:$0xff]   ;;  %v4081_v52 = vld [vmem:[%s4749_s7 + $0x5f4] ss:$120 sps:$4 sm:$0xff]  }
 0x111   : > { %2477 = vmatpush1.bf16.msra.mxu0 %v3983_v53  ;;  %2530 = vmatpush1.bf16.msra.mxu1 %v3986_v54  ;;  %v4084_v53 = vld [vmem:[%s4749_s7 + $0x5fc] ss:$120 sps:$4 sm:$0xff]   ;;  %v4079_v54 = vld [vmem:[%s4749_s7 + $0x5f0] ss:$120 sps:$4 sm:$0xff]  }
 0x112   : > { %2478 = vmatprep.subr.bf16.mxu0 %v3991_v55  ;;  %2531 = vmatprep.subr.bf16.mxu1 %v3994_v56  ;;  %v4082_v55 = vld [vmem:[%s4749_s7 + $0x5f8] ss:$120 sps:$4 sm:$0xff]   ;;  %v4087_v56 = vld [vmem:[%s4749_s7 + $0x6e4] ss:$120 sps:$4 sm:$0xff]  }
 0x115   : > { %2479 = vmatpush1.bf16.msra.mxu0 %v3989_v57  ;;  %2532 = vmatpush1.bf16.msra.mxu1 %v3992_v58  ;;  %v4090_v57 = vld [vmem:[%s4749_s7 + $0x6ec] ss:$120 sps:$4 sm:$0xff]   ;;  %v4085_v58 = vld [vmem:[%s4749_s7 + $0x6e0] ss:$120 sps:$4 sm:$0xff]  }
 0x116   : > { %2570 = vmatprep.subr.bf16.mxu0 %v3997_v59  ;;  %2623 = vmatprep.subr.bf16.mxu1 %v4000_v60  ;;  %v4088_v59 = vld [vmem:[%s4749_s7 + $0x6e8] ss:$120 sps:$4 sm:$0xff]   ;;  %v4093_v60 = vld [vmem:[%s4749_s7 + $0x64] ss:$120 sps:$4 sm:$0xff]  }
 0x118   : > { %2497 = vmatmul.mubr.bf16.vlgmr.msra.gmra.mrb[24].mxu0 %v4788_v21  ;;  %2550 = vmatmul.mubr.bf16.vlgmr.msra.gmra.mrb[24].mxu1 %v4788_v21 }
 0x119   : > { %2571 = vmatpush1.bf16.msra.mxu0 %v3995_v61  ;;  %2624 = vmatpush1.bf16.msra.mxu1 %v3998_v62  ;;  %v4096_v61 = vld [vmem:[%s4749_s7 + $0x6c] ss:$120 sps:$4 sm:$0xff]   ;;  %v4091_v62 = vld [vmem:[%s4749_s7 + $0x60] ss:$120 sps:$4 sm:$0xff]  }
 0x11a   : > { %2572 = vmatprep.subr.bf16.mxu0 %v4003_v63  ;;  %2625 = vmatprep.subr.bf16.mxu1 %v4006_v0  ;;  %v4094_v63 = vld [vmem:[%s4749_s7 + $0x68] ss:$120 sps:$4 sm:$0xff]   ;;  %v4099_v0 = vld [vmem:[%s4749_s7 + $0x154] ss:$120 sps:$4 sm:$0xff]  }
 0x11b   : > { %2506 = vmatprep.mubr.bf16.mxu0 %v4189_v48  ;;  %2559 = vmatprep.mubr.bf16.mxu1 %v4189_v48 }
 0x11d   : > { %2573 = vmatpush1.bf16.msra.mxu0 %v4001_v1  ;;  %2626 = vmatpush1.bf16.msra.mxu1 %v4004_v2  ;;  %v4102_v1 = vld [vmem:[%s4749_s7 + $0x15c] ss:$120 sps:$4 sm:$0xff]   ;;  %v5008_v2 = vld [vmem:[%s5589_s0] sm:$0xff]  }
 0x11e   : > { %2574 = vmatprep.subr.bf16.mxu0 %v4009_v3  ;;  %2627 = vmatprep.subr.bf16.mxu1 %v4012_v4  ;;  %v4097_v3 = vld [vmem:[%s4749_s7 + $0x150] ss:$120 sps:$4 sm:$0xff]  }
 0x11f   : > { %v4100_v4 = vld [vmem:[%s4749_s7 + $0x158] ss:$120 sps:$4 sm:$0xff]  }
 0x120   : > { %2507 = vmatmul.mubr.bf16.gmra.mrb[28].mxu0 %v4805_v30  ;;  %2560 = vmatmul.mubr.bf16.gmra.mrb[28].mxu1 %v4805_v30 }
 0x121   : > { %2575 = vmatpush1.bf16.msra.mxu0 %v4007_v5  ;;  %2628 = vmatpush1.bf16.msra.mxu1 %v4010_v6  ;;  %v4105_v5 = vld [vmem:[%s4749_s7 + $0x244] ss:$120 sps:$4 sm:$0xff]  }
 0x122   : > { %2576 = vmatprep.subr.bf16.mxu0 %v4015_v7  ;;  %2629 = vmatprep.subr.bf16.mxu1 %v4018_v8  ;;  %v4108_v6 = vld [vmem:[%s4749_s7 + $0x24c] ss:$120 sps:$4 sm:$0xff]   ;;  %v4103_v7 = vld [vmem:[%s4749_s7 + $0x240] ss:$120 sps:$4 sm:$0xff]  }
 0x123   : > { %2602 = vmatprep.mubr.bf16.mxu0 %v4189_v48  ;;  %2655 = vmatprep.mubr.bf16.mxu1 %v4189_v48  ;;  %v4106_v8 = vld [vmem:[%s4749_s7 + $0x248] ss:$120 sps:$4 sm:$0xff]  }
 0x125   : > { %2577 = vmatpush1.bf16.msra.mxu0 %v4013_v9  ;;  %2630 = vmatpush1.bf16.msra.mxu1 %v4016_v10  ;;  %v4111_v9 = vld [vmem:[%s4749_s7 + $0x334] ss:$120 sps:$4 sm:$0xff]  }
 0x126   : > { %2578 = vmatprep.subr.bf16.mxu0 %v4021_v11  ;;  %2631 = vmatprep.subr.bf16.mxu1 %v4024_v12  ;;  %v4114_v10 = vld [vmem:[%s4749_s7 + $0x33c] ss:$120 sps:$4 sm:$0xff]   ;;  %v5025_v11 = vld [vmem:[%s5589_s0 + $0x8] sm:$0xff]  }
 0x127   : > { %v4109_v12 = vld [vmem:[%s4749_s7 + $0x330] ss:$120 sps:$4 sm:$0xff]  }
 0x129   : > { %2579 = vmatpush1.bf16.msra.mxu0 %v4019_v13  ;;  %2632 = vmatpush1.bf16.msra.mxu1 %v4022_v14  ;;  %v4112_v13 = vld [vmem:[%s4749_s7 + $0x338] ss:$120 sps:$4 sm:$0xff]   ;;  %v4117_v14 = vld [vmem:[%s4749_s7 + $0x424] ss:$120 sps:$4 sm:$0xff]  }
 0x12a   : > { %2580 = vmatprep.subr.bf16.mxu0 %v4027_v15  ;;  %2633 = vmatprep.subr.bf16.mxu1 %v4030_v16  ;;  %v4120_v15 = vld [vmem:[%s4749_s7 + $0x42c] ss:$120 sps:$4 sm:$0xff]   ;;  %v4115_v16 = vld [vmem:[%s4749_s7 + $0x420] ss:$120 sps:$4 sm:$0xff]  }
 0x12d   : > { %2581 = vmatpush1.bf16.msra.mxu0 %v4025_v17  ;;  %2634 = vmatpush1.bf16.msra.mxu1 %v4028_v18  ;;  %v4118_v17 = vld [vmem:[%s4749_s7 + $0x428] ss:$120 sps:$4 sm:$0xff]   ;;  %v4123_v18 = vld [vmem:[%s4749_s7 + $0x514] ss:$120 sps:$4 sm:$0xff]  }
 0x12e   : > { %2582 = vmatprep.subr.bf16.mxu0 %v4033_v19  ;;  %2635 = vmatprep.subr.bf16.mxu1 %v4036_v20  ;;  %v4126_v19 = vld [vmem:[%s4749_s7 + $0x51c] ss:$120 sps:$4 sm:$0xff]   ;;  %v4121_v20 = vld [vmem:[%s4749_s7 + $0x510] ss:$120 sps:$4 sm:$0xff]  }
 0x131   : > { %2583 = vmatpush1.bf16.msra.mxu0 %v4031_v22  ;;  %2636 = vmatpush1.bf16.msra.mxu1 %v4034_v23  ;;  %v4124_v22 = vld [vmem:[%s4749_s7 + $0x518] ss:$120 sps:$4 sm:$0xff]   ;;  %v4129_v23 = vld [vmem:[%s4749_s7 + $0x604] ss:$120 sps:$4 sm:$0xff]  }
 0x132   : > { %2584 = vmatprep.subr.bf16.mxu0 %v4039_v24  ;;  %2637 = vmatprep.subr.bf16.mxu1 %v4042_v25  ;;  %v4132_v24 = vld [vmem:[%s4749_s7 + $0x60c] ss:$120 sps:$4 sm:$0xff]   ;;  %v4127_v25 = vld [vmem:[%s4749_s7 + $0x600] ss:$120 sps:$4 sm:$0xff]  }
 0x135   : > { %2585 = vmatpush1.bf16.msra.mxu0 %v4037_v26  ;;  %2638 = vmatpush1.bf16.msra.mxu1 %v4040_v27  ;;  %v4130_v26 = vld [vmem:[%s4749_s7 + $0x608] ss:$120 sps:$4 sm:$0xff]   ;;  %v4135_v27 = vld [vmem:[%s4749_s7 + $0x6f4] ss:$120 sps:$4 sm:$0xff]  }
 0x136   : > { %2676 = vmatprep.subr.bf16.mxu0 %v4045_v28  ;;  %2729 = vmatprep.subr.bf16.mxu1 %v4048_v29  ;;  %v4138_v28 = vld [vmem:[%s4749_s7 + $0x6fc] ss:$120 sps:$4 sm:$0xff]   ;;  %v4133_v29 = vld [vmem:[%s4749_s7 + $0x6f0] ss:$120 sps:$4 sm:$0xff]  }
 0x138   : > { %2603 = vmatmul.mubr.bf16.vlgmr.msra.gmra.mrb[32].mxu0 %v4788_v21  ;;  %2656 = vmatmul.mubr.bf16.vlgmr.msra.gmra.mrb[32].mxu1 %v4788_v21  ;;  %v4055_v21 = vld [vmem:[%s4749_s7 + $0x230] ss:$120 sps:$4 sm:$0xff]  }
 0x139   : > { %2677 = vmatpush1.bf16.msra.mxu0 %v4043_v31  ;;  %2730 = vmatpush1.bf16.msra.mxu1 %v4046_v32  ;;  %v4136_v31 = vld [vmem:[%s4749_s7 + $0x6f8] ss:$120 sps:$4 sm:$0xff]   ;;  %v4141_v32 = vld [vmem:[%s4749_s7 + $0x74] ss:$120 sps:$4 sm:$0xff]  }
 0x13a   : > { %2678 = vmatprep.subr.bf16.mxu0 %v4051_v33  ;;  %2731 = vmatprep.subr.bf16.mxu1 %v4054_v34  ;;  %v4139_v33 = vld [vmem:[%s4749_s7 + $0x70] ss:$120 sps:$4 sm:$0xff]   ;;  %v4144_v34 = vld [vmem:[%s4749_s7 + $0x164] ss:$120 sps:$4 sm:$0xff]  }
 0x13b   : > { %2612 = vmatprep.mubr.bf16.mxu0 %v4189_v48  ;;  %2665 = vmatprep.mubr.bf16.mxu1 %v4189_v48 }
 0x13d   : > { %2679 = vmatpush1.bf16.msra.mxu0 %v4049_v35  ;;  %2732 = vmatpush1.bf16.msra.mxu1 %v4052_v36  ;;  %v4142_v35 = vld [vmem:[%s4749_s7 + $0x160] ss:$120 sps:$4 sm:$0xff]   ;;  %v4147_v36 = vld [vmem:[%s4749_s7 + $0x254] ss:$120 sps:$4 sm:$0xff]  }
 0x13e   : > { %2680 = vmatprep.subr.bf16.mxu0 %v4057_v37  ;;  %2733 = vmatprep.subr.bf16.mxu1 %v4060_v38  ;;  %v4145_v37 = vld [vmem:[%s4749_s7 + $0x250] ss:$120 sps:$4 sm:$0xff]   ;;  %v4150_v38 = vld [vmem:[%s4749_s7 + $0x344] ss:$120 sps:$4 sm:$0xff]  }
 0x140   : > { %2613 = vmatmul.mubr.bf16.gmra.mrb[36].mxu0 %v4805_v30  ;;  %2666 = vmatmul.mubr.bf16.gmra.mrb[36].mxu1 %v4805_v30  ;;  %v4067_v30 = vld [vmem:[%s4749_s7 + $0x410] ss:$120 sps:$4 sm:$0xff]  }
 0x141   : > { %2681 = vmatpush1.bf16.msra.mxu0 %v4055_v21  ;;  %2734 = vmatpush1.bf16.msra.mxu1 %v4058_v39  ;;  %v4148_v21 = vld [vmem:[%s4749_s7 + $0x340] ss:$120 sps:$4 sm:$0xff]   ;;  %v4153_v39 = vld [vmem:[%s4749_s7 + $0x434] ss:$120 sps:$4 sm:$0xff]  }
 0x142   : > { %2682 = vmatprep.subr.bf16.mxu0 %v4063_v40  ;;  %2735 = vmatprep.subr.bf16.mxu1 %v4066_v41  ;;  %v5066_v40 = vpop.permute.xlu0 %916  ;;  %v4151_v41 = vld [vmem:[%s4749_s7 + $0x430] ss:$120 sps:$4 sm:$0xff]  }
 0x143   : > { %2708 = vmatprep.mubr.bf16.mxu0 %v4189_v48  ;;  %2761 = vmatprep.mubr.bf16.mxu1 %v4189_v48 }
 0x145   : > { %2683 = vmatpush1.bf16.msra.mxu0 %v4061_v42  ;;  %2736 = vmatpush1.bf16.msra.mxu1 %v4064_v43  ;;  %v4156_v42 = vld [vmem:[%s4749_s7 + $0x524] ss:$120 sps:$4 sm:$0xff]   ;;  %v4154_v43 = vld [vmem:[%s4749_s7 + $0x520] ss:$120 sps:$4 sm:$0xff]  }
 0x146   : > { %2684 = vmatprep.subr.bf16.mxu0 %v4069_v44  ;;  %2737 = vmatprep.subr.bf16.mxu1 %v4072_v45  ;;  %v5075_v44 = vpop.permute.xlu0 %921  ;;  %v5078_v45 = vpop.permute.xlu1 %926 }
 0x149   : > { %2685 = vmatpush1.bf16.msra.mxu0 %v4067_v30  ;;  %2738 = vmatpush1.bf16.msra.mxu1 %v4070_v46 }
 0x14a   : > { %2686 = vmatprep.subr.bf16.mxu0 %v4075_v47  ;;  %2739 = vmatprep.subr.bf16.mxu1 %v4078_v49 }
 0x14d   : > { %2687 = vmatpush1.bf16.msra.mxu0 %v4073_v50  ;;  %2740 = vmatpush1.bf16.msra.mxu1 %v4076_v51 }
 0x14e   : > { %2688 = vmatprep.subr.bf16.mxu0 %v4081_v52  ;;  %2741 = vmatprep.subr.bf16.mxu1 %v4084_v53 }
 0x151   : > { %2689 = vmatpush1.bf16.msra.mxu0 %v4079_v54  ;;  %2742 = vmatpush1.bf16.msra.mxu1 %v4082_v55 }
 0x152   : > { %2690 = vmatprep.subr.bf16.mxu0 %v4087_v56  ;;  %2743 = vmatprep.subr.bf16.mxu1 %v4090_v57  ;;  %v4157_v56 = vld [vmem:[%s4749_s7 + $0x610] ss:$120 sps:$4 sm:$0xff]  }
 0x155   : > { %2691 = vmatpush1.bf16.msra.mxu0 %v4085_v58  ;;  %2744 = vmatpush1.bf16.msra.mxu1 %v4088_v59 }
 0x156   : > { %2782 = vmatprep.subr.bf16.mxu0 %v4093_v60  ;;  %2835 = vmatprep.subr.bf16.mxu1 %v4096_v61 }
 0x158   : > { %2709 = vmatmul.mubr.bf16.vlgmr.msra.gmra.mrb[40].mxu0 %v5008_v2  ;;  %2762 = vmatmul.mubr.bf16.vlgmr.msra.gmra.mrb[40].mxu1 %v5008_v2 }
 0x159   : > { %2783 = vmatpush1.bf16.msra.mxu0 %v4091_v62  ;;  %2836 = vmatpush1.bf16.msra.mxu1 %v4094_v63  ;;  %v4162_v63 = vld [vmem:[%s4749_s7 + $0x704] ss:$120 sps:$4 sm:$0xff]  }
 0x15a   : > { %2784 = vmatprep.subr.bf16.mxu0 %v4099_v0  ;;  %2837 = vmatprep.subr.bf16.mxu1 %v4102_v1 }
 0x15b   : > { %2718 = vmatprep.mubr.bf16.mxu0 %v4189_v48  ;;  %2771 = vmatprep.mubr.bf16.mxu1 %v4189_v48 }
 0x15d   : > { %2785 = vmatpush1.bf16.msra.mxu0 %v4097_v3  ;;  %2838 = vmatpush1.bf16.msra.mxu1 %v4100_v4 }
 0x15e   : > { %2786 = vmatprep.subr.bf16.mxu0 %v4105_v5  ;;  %2839 = vmatprep.subr.bf16.mxu1 %v4108_v6 }
 0x160   : > { %2719 = vmatmul.mubr.bf16.gmra.mrb[44].mxu0 %v5025_v11  ;;  %2772 = vmatmul.mubr.bf16.gmra.mrb[44].mxu1 %v5025_v11 }
 0x161   : > { %2787 = vmatpush1.bf16.msra.mxu0 %v4103_v7  ;;  %2840 = vmatpush1.bf16.msra.mxu1 %v4106_v8 }
 0x162   : > { %2788 = vmatprep.subr.bf16.mxu0 %v4111_v9  ;;  %2841 = vmatprep.subr.bf16.mxu1 %v4114_v10  ;;  %v4160_v9 = vld [vmem:[%s4749_s7 + $0x700] ss:$120 sps:$4 sm:$0xff]   ;;  %v5100_v10 = vpop.permute.xlu1 %931 }
 0x163   : > { %2814 = vmatprep.mubr.bf16.mxu0 %v4189_v48  ;;  %2867 = vmatprep.mubr.bf16.mxu1 %v4189_v48 }
 0x165   : > { %2789 = vmatpush1.bf16.msra.mxu0 %v4109_v12  ;;  %2842 = vmatpush1.bf16.msra.mxu1 %v4112_v13 }
 0x166   : > { %2790 = vmatprep.subr.bf16.mxu0 %v4117_v14  ;;  %2843 = vmatprep.subr.bf16.mxu1 %v4120_v15 }
 0x169   : > { %2791 = vmatpush1.bf16.msra.mxu0 %v4115_v16  ;;  %2844 = vmatpush1.bf16.msra.mxu1 %v4118_v17 }
 0x16a   : > { %2792 = vmatprep.subr.bf16.mxu0 %v4123_v18  ;;  %2845 = vmatprep.subr.bf16.mxu1 %v4126_v19 }
 0x16d   : > { %2793 = vmatpush1.bf16.msra.mxu0 %v4121_v20  ;;  %2846 = vmatpush1.bf16.msra.mxu1 %v4124_v22 }
 0x16e   : > { %2794 = vmatprep.subr.bf16.mxu0 %v4129_v23  ;;  %2847 = vmatprep.subr.bf16.mxu1 %v4132_v24 }
 0x171   : > { %2795 = vmatpush1.bf16.msra.mxu0 %v4127_v25  ;;  %2848 = vmatpush1.bf16.msra.mxu1 %v4130_v26 }
 0x172   : > { %2796 = vmatprep.subr.bf16.mxu0 %v4135_v27  ;;  %2849 = vmatprep.subr.bf16.mxu1 %v4138_v28 }
 0x175   : > { %2797 = vmatpush1.bf16.msra.mxu0 %v4133_v29  ;;  %2850 = vmatpush1.bf16.msra.mxu1 %v4136_v31 }
 0x176   : > { %2888 = vmatprep.subr.bf16.mxu0 %v4141_v32  ;;  %3755 = vmatprep.subr.bf16.mxu1 %v4141_v32 }
 0x178   : > { %2815 = vmatmul.mubr.bf16.vlgmr.msra.gmra.mrb[48].mxu0 %v5008_v2  ;;  %2868 = vmatmul.mubr.bf16.vlgmr.msra.gmra.mrb[48].mxu1 %v5008_v2 }
 0x179   : > { %2889 = vmatpush1.bf16.msra.mxu0 %v4139_v33  ;;  %3763 = vmatpush1.bf16.msra.mxu1 %v4139_v33 }
 0x17a   : > { %2890 = vmatprep.subr.bf16.mxu0 %v4144_v34  ;;  %3756 = vmatprep.subr.bf16.mxu1 %v4144_v34 }
 0x17b   : > { %2824 = vmatprep.mubr.bf16.mxu0 %v4189_v48  ;;  %2877 = vmatprep.mubr.bf16.mxu1 %v4189_v48 }
 0x17d   : > { %2891 = vmatpush1.bf16.msra.mxu0 %v4142_v35  ;;  %3764 = vmatpush1.bf16.msra.mxu1 %v4142_v35 }
 0x17e   : > { %2892 = vmatprep.subr.bf16.mxu0 %v4147_v36  ;;  %3757 = vmatprep.subr.bf16.mxu1 %v4147_v36 }
 0x180   : > { %2825 = vmatmul.mubr.bf16.gmra.mrb[52].mxu0 %v5025_v11  ;;  %2878 = vmatmul.mubr.bf16.gmra.mrb[52].mxu1 %v5025_v11 }
 0x181   : > { %2893 = vmatpush1.bf16.msra.mxu0 %v4145_v37  ;;  %3765 = vmatpush1.bf16.msra.mxu1 %v4145_v37 }
 0x182   : > { %2894 = vmatprep.subr.bf16.mxu0 %v4150_v38  ;;  %3758 = vmatprep.subr.bf16.mxu1 %v4150_v38 }
 0x183   : > { %2920 = vmatprep.mubr.bf16.mxu0 %v4189_v48  ;;  %2930 = vmatprep.mubr.bf16.mxu1 %v4189_v48  ;;  %v4159_v48 = vld [vmem:[%s4749_s7 + $0x614] ss:$120 sps:$4 sm:$0xff]  }
 0x185   : > { %2895 = vmatpush1.bf16.msra.mxu0 %v4148_v21  ;;  %3766 = vmatpush1.bf16.msra.mxu1 %v4148_v21 }
 0x186   : > { %2896 = vmatprep.subr.bf16.mxu0 %v4153_v39  ;;  %3759 = vmatprep.subr.bf16.mxu1 %v4153_v39 }
 0x189   : > { %2897 = vmatpush1.bf16.msra.mxu0 %v4151_v41  ;;  %3767 = vmatpush1.bf16.msra.mxu1 %v4151_v41 }
 0x18a   : > { %2898 = vmatprep.subr.bf16.mxu0 %v4156_v42  ;;  %3760 = vmatprep.subr.bf16.mxu1 %v4156_v42 }
 0x18b   : > { %v2180_v30 = vpop.f32.mrb[0].mxu0  ;;  %v2233_v46 = vpop.f32.mrb[0].mxu1 }
 0x18c   : > { %v2181_v47 = vadd.f32 %v2180_v30, %v5066_v40  ;;  %v2234_v49 = vadd.f32 %v2233_v46, %v5066_v40  ;;  %v2182_v50 = vpop.f32.mrb[1].mxu0  ;;  %v2235_v51 = vpop.f32.mrb[1].mxu1 }
 0x18d   : > { %v2183_v52 = vadd.f32 %v2182_v50, %v5066_v40  ;;  %v2236_v53 = vadd.f32 %v2235_v51, %v5066_v40  ;;  %v2184_v54 = vpop.f32.mrb[2].mxu0  ;;  %v2237_v55 = vpop.f32.mrb[2].mxu1  ;;  %2899 = vmatpush1.bf16.msra.mxu0 %v4154_v43  ;;  %3768 = vmatpush1.bf16.msra.mxu1 %v4154_v43 }
 0x18e   : > { %v2941_v57 = vmax.f32 %v2181_v47, 0.0  ;;  %v2943_v58 = vmax.f32 %v2234_v49, 0.0  ;;  %v2185_v59 = vadd.f32 %v2184_v54, %v5075_v44  ;;  %v2238_v60 = vadd.f32 %v2237_v55, %v5075_v44  ;;  %v2186_v61 = vpop.f32.mrb[3].mxu0  ;;  %v2239_v62 = vpop.f32.mrb[3].mxu1  ;;  %2900 = vmatprep.subr.bf16.mxu0 %v4159_v48  ;;  %3761 = vmatprep.subr.bf16.mxu1 %v4159_v48 }
 0x18f   : > { %v2942_v0 = vmax.f32 %v2183_v52, 0.0  ;;  %v2944_v1 = vmax.f32 %v2236_v53, 0.0  ;;  %v2187_v3 = vadd.f32 %v2186_v61, %v5075_v44  ;;  %v2240_v4 = vadd.f32 %v2239_v62, %v5075_v44 }
 0x190   : > { %3061 = vst [vmem:[%s5091_s12] sm:$0xff] %v2941_v57  ;;  %3063 = vst [vmem:[%s5091_s12 + $0x10] sm:$0xff] %v2943_v58  ;;  %v2971_v5 = vmax.f32 %v2185_v59, 0.0  ;;  %v2973_v6 = vmax.f32 %v2238_v60, 0.0 }
 0x191   : > { %3062 = vst [vmem:[%s5091_s12 + $0x8] sm:$0xff] %v2942_v0  ;;  %3064 = vst [vmem:[%s5091_s12 + $0x18] sm:$0xff] %v2944_v1  ;;  %v2972_v7 = vmax.f32 %v2187_v3, 0.0  ;;  %v2974_v8 = vmax.f32 %v2240_v4, 0.0  ;;  %2901 = vmatpush1.bf16.msra.mxu0 %v4157_v56  ;;  %3769 = vmatpush1.bf16.msra.mxu1 %v4157_v56 }
 0x192   : > { %3091 = vst [vmem:[%s5091_s12 + $0xf0] sm:$0xff] %v2971_v5  ;;  %3093 = vst [vmem:[%s5091_s12 + $0x100] sm:$0xff] %v2973_v6  ;;  %2902 = vmatprep.subr.bf16.mxu0 %v4162_v63  ;;  %3762 = vmatprep.subr.bf16.mxu1 %v4162_v63 }
 0x193   : > { %3092 = vst [vmem:[%s5091_s12 + $0xf8] sm:$0xff] %v2972_v7  ;;  %3094 = vst [vmem:[%s5091_s12 + $0x108] sm:$0xff] %v2974_v8  ;;  %v2190_v12 = vpop.f32.mrb[4].mxu0  ;;  %v2243_v13 = vpop.f32.mrb[4].mxu1 }
 0x194   : > { %v2191_v14 = vadd.f32 %v2190_v12, %v5078_v45  ;;  %v2244_v15 = vadd.f32 %v2243_v13, %v5078_v45  ;;  %v2192_v16 = vpop.f32.mrb[5].mxu0  ;;  %v2245_v17 = vpop.f32.mrb[5].mxu1 }
 0x195   : > { %2903 = vmatpush1.bf16.msra.mxu0 %v4160_v9  ;;  %3770 = vmatpush1.bf16.msra.mxu1 %v4160_v9  ;;  %v2193_v18 = vadd.f32 %v2192_v16, %v5078_v45  ;;  %v2246_v19 = vadd.f32 %v2245_v17, %v5078_v45  ;;  %v2194_v20 = vpop.f32.mrb[6].mxu0  ;;  %v2247_v22 = vpop.f32.mrb[6].mxu1 }
 0x196   : > { %v3001_v23 = vmax.f32 %v2191_v14, 0.0  ;;  %v3003_v24 = vmax.f32 %v2244_v15, 0.0  ;;  %v2195_v25 = vadd.f32 %v2194_v20, %v5100_v10  ;;  %v2248_v26 = vadd.f32 %v2247_v22, %v5100_v10  ;;  %v2196_v27 = vpop.f32.mrb[7].mxu0  ;;  %v2249_v28 = vpop.f32.mrb[7].mxu1 }
 0x197   : > { %v3002_v29 = vmax.f32 %v2193_v18, 0.0  ;;  %v3004_v31 = vmax.f32 %v2246_v19, 0.0  ;;  %v2197_v32 = vadd.f32 %v2196_v27, %v5100_v10  ;;  %v2250_v33 = vadd.f32 %v2249_v28, %v5100_v10 }
 0x198   : > { %2921 = vmatmul.mubr.bf16.vlgmr.msra.gmra.mrb[56].mxu0 %v5008_v2  ;;  %2931 = vmatmul.mubr.bf16.vlgmr.msra.gmra.mrb[56].mxu1 %v5025_v11  ;;  %3121 = vst [vmem:[%s5091_s12 + $0x1e0] sm:$0xff] %v3001_v23  ;;  %3123 = vst [vmem:[%s5091_s12 + $0x1f0] sm:$0xff] %v3003_v24  ;;  %v3031_v34 = vmax.f32 %v2195_v25, 0.0  ;;  %v3033_v35 = vmax.f32 %v2248_v26, 0.0 }
 0x199   : > { %3122 = vst [vmem:[%s5091_s12 + $0x1e8] sm:$0xff] %v3002_v29  ;;  %3124 = vst [vmem:[%s5091_s12 + $0x1f8] sm:$0xff] %v3004_v31  ;;  %v3032_v36 = vmax.f32 %v2197_v32, 0.0  ;;  %v3034_v37 = vmax.f32 %v2250_v33, 0.0 }
 0x19a   : > { %3151 = vst [vmem:[%s5091_s12 + $0x2d0] sm:$0xff] %v3031_v34  ;;  %3153 = vst [vmem:[%s5091_s12 + $0x2e0] sm:$0xff] %v3033_v35 }
 0x19b   : > { %3152 = vst [vmem:[%s5091_s12 + $0x2d8] sm:$0xff] %v3032_v36  ;;  %3154 = vst [vmem:[%s5091_s12 + $0x2e8] sm:$0xff] %v3034_v37 }
 0x1ab   : > { %v2286_v38 = vpop.f32.mrb[8].mxu0  ;;  %v2339_v21 = vpop.f32.mrb[8].mxu1 }
 0x1ac   : > { %v2287_v39 = vadd.f32 %v2286_v38, %v5066_v40  ;;  %v2340_v2 = vadd.f32 %v2339_v21, %v5066_v40  ;;  %v2288_v41 = vpop.f32.mrb[9].mxu0  ;;  %v2341_v11 = vpop.f32.mrb[9].mxu1 }
 0x1ad   : > { %v2289_v42 = vadd.f32 %v2288_v41, %v5066_v40  ;;  %v2342_v43 = vadd.f32 %v2341_v11, %v5066_v40  ;;  %v2290_v48 = vpop.f32.mrb[10].mxu0  ;;  %v2343_v30 = vpop.f32.mrb[10].mxu1 }
 0x1ae   : > { %v2945_v46 = vmax.f32 %v2287_v39, 0.0  ;;  %v2947_v47 = vmax.f32 %v2340_v2, 0.0  ;;  %v2291_v49 = vadd.f32 %v2290_v48, %v5075_v44  ;;  %v2344_v50 = vadd.f32 %v2343_v30, %v5075_v44  ;;  %v2292_v51 = vpop.f32.mrb[11].mxu0  ;;  %v2345_v52 = vpop.f32.mrb[11].mxu1 }
 0x1af   : > { %v2946_v53 = vmax.f32 %v2289_v42, 0.0  ;;  %v2948_v54 = vmax.f32 %v2342_v43, 0.0  ;;  %v2293_v55 = vadd.f32 %v2292_v51, %v5075_v44  ;;  %v2346_v56 = vadd.f32 %v2345_v52, %v5075_v44 }
 0x1b0   : > { %3065 = vst [vmem:[%s5091_s12 + $0x20] sm:$0xff] %v2945_v46  ;;  %3067 = vst [vmem:[%s5091_s12 + $0x30] sm:$0xff] %v2947_v47  ;;  %v2975_v57 = vmax.f32 %v2291_v49, 0.0  ;;  %v2977_v58 = vmax.f32 %v2344_v50, 0.0 }
 0x1b1   : > { %3066 = vst [vmem:[%s5091_s12 + $0x28] sm:$0xff] %v2946_v53  ;;  %3068 = vst [vmem:[%s5091_s12 + $0x38] sm:$0xff] %v2948_v54  ;;  %v2976_v59 = vmax.f32 %v2293_v55, 0.0  ;;  %v2978_v60 = vmax.f32 %v2346_v56, 0.0 }
 0x1b2   : > { %3095 = vst [vmem:[%s5091_s12 + $0x110] sm:$0xff] %v2975_v57  ;;  %3097 = vst [vmem:[%s5091_s12 + $0x120] sm:$0xff] %v2977_v58 }
 0x1b3   : > { %3096 = vst [vmem:[%s5091_s12 + $0x118] sm:$0xff] %v2976_v59  ;;  %3098 = vst [vmem:[%s5091_s12 + $0x128] sm:$0xff] %v2978_v60  ;;  %v2296_v61 = vpop.f32.mrb[12].mxu0  ;;  %v2349_v62 = vpop.f32.mrb[12].mxu1 }
 0x1b4   : > { %v2297_v63 = vadd.f32 %v2296_v61, %v5078_v45  ;;  %v2350_v0 = vadd.f32 %v2349_v62, %v5078_v45  ;;  %v2298_v1 = vpop.f32.mrb[13].mxu0  ;;  %v2351_v3 = vpop.f32.mrb[13].mxu1 }
 0x1b5   : > { %v2299_v4 = vadd.f32 %v2298_v1, %v5078_v45  ;;  %v2352_v5 = vadd.f32 %v2351_v3, %v5078_v45  ;;  %v2300_v6 = vpop.f32.mrb[14].mxu0  ;;  %v2353_v7 = vpop.f32.mrb[14].mxu1 }
 0x1b6   : > { %v3005_v8 = vmax.f32 %v2297_v63, 0.0  ;;  %v3007_v9 = vmax.f32 %v2350_v0, 0.0  ;;  %v2301_v12 = vadd.f32 %v2300_v6, %v5100_v10  ;;  %v2354_v13 = vadd.f32 %v2353_v7, %v5100_v10  ;;  %v2302_v14 = vpop.f32.mrb[15].mxu0  ;;  %v2355_v15 = vpop.f32.mrb[15].mxu1 }
 0x1b7   : > { %v3006_v16 = vmax.f32 %v2299_v4, 0.0  ;;  %v3008_v17 = vmax.f32 %v2352_v5, 0.0  ;;  %v2303_v18 = vadd.f32 %v2302_v14, %v5100_v10  ;;  %v2356_v19 = vadd.f32 %v2355_v15, %v5100_v10 }
 0x1b8   : > { %3125 = vst [vmem:[%s5091_s12 + $0x200] sm:$0xff] %v3005_v8  ;;  %3127 = vst [vmem:[%s5091_s12 + $0x210] sm:$0xff] %v3007_v9  ;;  %v3035_v20 = vmax.f32 %v2301_v12, 0.0  ;;  %v3037_v22 = vmax.f32 %v2354_v13, 0.0 }
 0x1b9   : > { %3126 = vst [vmem:[%s5091_s12 + $0x208] sm:$0xff] %v3006_v16  ;;  %3128 = vst [vmem:[%s5091_s12 + $0x218] sm:$0xff] %v3008_v17  ;;  %v3036_v23 = vmax.f32 %v2303_v18, 0.0  ;;  %v3038_v24 = vmax.f32 %v2356_v19, 0.0 }
 0x1ba   : > { %3155 = vst [vmem:[%s5091_s12 + $0x2f0] sm:$0xff] %v3035_v20  ;;  %3157 = vst [vmem:[%s5091_s12 + $0x300] sm:$0xff] %v3037_v22 }
 0x1bb   : > { %3156 = vst [vmem:[%s5091_s12 + $0x2f8] sm:$0xff] %v3036_v23  ;;  %3158 = vst [vmem:[%s5091_s12 + $0x308] sm:$0xff] %v3038_v24 }
 0x1cb   : > { %v2392_v25 = vpop.f32.mrb[16].mxu0  ;;  %v2445_v26 = vpop.f32.mrb[16].mxu1 }
 0x1cc   : > { %v2393_v27 = vadd.f32 %v2392_v25, %v5066_v40  ;;  %v2446_v28 = vadd.f32 %v2445_v26, %v5066_v40  ;;  %v2394_v29 = vpop.f32.mrb[17].mxu0  ;;  %v2447_v31 = vpop.f32.mrb[17].mxu1 }
 0x1cd   : > { %v2395_v32 = vadd.f32 %v2394_v29, %v5066_v40  ;;  %v2448_v33 = vadd.f32 %v2447_v31, %v5066_v40  ;;  %v2396_v34 = vpop.f32.mrb[18].mxu0  ;;  %v2449_v35 = vpop.f32.mrb[18].mxu1 }
 0x1ce   : > { %v2949_v36 = vmax.f32 %v2393_v27, 0.0  ;;  %v2951_v37 = vmax.f32 %v2446_v28, 0.0  ;;  %v2397_v38 = vadd.f32 %v2396_v34, %v5075_v44  ;;  %v2450_v21 = vadd.f32 %v2449_v35, %v5075_v44  ;;  %v2398_v39 = vpop.f32.mrb[19].mxu0  ;;  %v2451_v2 = vpop.f32.mrb[19].mxu1 }
 0x1cf   : > { %v2950_v41 = vmax.f32 %v2395_v32, 0.0  ;;  %v2952_v11 = vmax.f32 %v2448_v33, 0.0  ;;  %v2399_v42 = vadd.f32 %v2398_v39, %v5075_v44  ;;  %v2452_v43 = vadd.f32 %v2451_v2, %v5075_v44 }
 0x1d0   : > { %3069 = vst [vmem:[%s5091_s12 + $0x40] sm:$0xff] %v2949_v36  ;;  %3071 = vst [vmem:[%s5091_s12 + $0x50] sm:$0xff] %v2951_v37  ;;  %v2979_v48 = vmax.f32 %v2397_v38, 0.0  ;;  %v2981_v30 = vmax.f32 %v2450_v21, 0.0 }
 0x1d1   : > { %3070 = vst [vmem:[%s5091_s12 + $0x48] sm:$0xff] %v2950_v41  ;;  %3072 = vst [vmem:[%s5091_s12 + $0x58] sm:$0xff] %v2952_v11  ;;  %v2980_v46 = vmax.f32 %v2399_v42, 0.0  ;;  %v2982_v47 = vmax.f32 %v2452_v43, 0.0 }
 0x1d2   : > { %3099 = vst [vmem:[%s5091_s12 + $0x130] sm:$0xff] %v2979_v48  ;;  %3101 = vst [vmem:[%s5091_s12 + $0x140] sm:$0xff] %v2981_v30 }
 0x1d3   : > { %3100 = vst [vmem:[%s5091_s12 + $0x138] sm:$0xff] %v2980_v46  ;;  %3102 = vst [vmem:[%s5091_s12 + $0x148] sm:$0xff] %v2982_v47  ;;  %v2402_v49 = vpop.f32.mrb[20].mxu0  ;;  %v2455_v50 = vpop.f32.mrb[20].mxu1 }
 0x1d4   : > { %v2403_v51 = vadd.f32 %v2402_v49, %v5078_v45  ;;  %v2456_v52 = vadd.f32 %v2455_v50, %v5078_v45  ;;  %v2404_v53 = vpop.f32.mrb[21].mxu0  ;;  %v2457_v54 = vpop.f32.mrb[21].mxu1 }
 0x1d5   : > { %v2405_v55 = vadd.f32 %v2404_v53, %v5078_v45  ;;  %v2458_v56 = vadd.f32 %v2457_v54, %v5078_v45  ;;  %v2406_v57 = vpop.f32.mrb[22].mxu0  ;;  %v2459_v58 = vpop.f32.mrb[22].mxu1 }
 0x1d6   : > { %v3009_v59 = vmax.f32 %v2403_v51, 0.0  ;;  %v3011_v60 = vmax.f32 %v2456_v52, 0.0  ;;  %v2407_v61 = vadd.f32 %v2406_v57, %v5100_v10  ;;  %v2460_v62 = vadd.f32 %v2459_v58, %v5100_v10  ;;  %v2408_v63 = vpop.f32.mrb[23].mxu0  ;;  %v2461_v0 = vpop.f32.mrb[23].mxu1 }
 0x1d7   : > { %v3010_v1 = vmax.f32 %v2405_v55, 0.0  ;;  %v3012_v3 = vmax.f32 %v2458_v56, 0.0  ;;  %v2409_v4 = vadd.f32 %v2408_v63, %v5100_v10  ;;  %v2462_v5 = vadd.f32 %v2461_v0, %v5100_v10 }
 0x1d8   : > { %3129 = vst [vmem:[%s5091_s12 + $0x220] sm:$0xff] %v3009_v59  ;;  %3131 = vst [vmem:[%s5091_s12 + $0x230] sm:$0xff] %v3011_v60  ;;  %v3039_v6 = vmax.f32 %v2407_v61, 0.0  ;;  %v3041_v7 = vmax.f32 %v2460_v62, 0.0 }
 0x1d9   : > { %3130 = vst [vmem:[%s5091_s12 + $0x228] sm:$0xff] %v3010_v1  ;;  %3132 = vst [vmem:[%s5091_s12 + $0x238] sm:$0xff] %v3012_v3  ;;  %v3040_v8 = vmax.f32 %v2409_v4, 0.0  ;;  %v3042_v9 = vmax.f32 %v2462_v5, 0.0 }
 0x1da   : > { %3159 = vst [vmem:[%s5091_s12 + $0x310] sm:$0xff] %v3039_v6  ;;  %3161 = vst [vmem:[%s5091_s12 + $0x320] sm:$0xff] %v3041_v7 }
 0x1db   : > { %3160 = vst [vmem:[%s5091_s12 + $0x318] sm:$0xff] %v3040_v8  ;;  %3162 = vst [vmem:[%s5091_s12 + $0x328] sm:$0xff] %v3042_v9 }
 0x1eb   : > { %v2498_v12 = vpop.f32.mrb[24].mxu0  ;;  %v2551_v13 = vpop.f32.mrb[24].mxu1 }
 0x1ec   : > { %v2499_v14 = vadd.f32 %v2498_v12, %v5066_v40  ;;  %v2552_v15 = vadd.f32 %v2551_v13, %v5066_v40  ;;  %v2500_v16 = vpop.f32.mrb[25].mxu0  ;;  %v2553_v17 = vpop.f32.mrb[25].mxu1 }
 0x1ed   : > { %v2501_v18 = vadd.f32 %v2500_v16, %v5066_v40  ;;  %v2554_v19 = vadd.f32 %v2553_v17, %v5066_v40  ;;  %v2502_v20 = vpop.f32.mrb[26].mxu0  ;;  %v2555_v22 = vpop.f32.mrb[26].mxu1 }
 0x1ee   : > { %v2953_v23 = vmax.f32 %v2499_v14, 0.0  ;;  %v2955_v24 = vmax.f32 %v2552_v15, 0.0  ;;  %v2503_v25 = vadd.f32 %v2502_v20, %v5075_v44  ;;  %v2556_v26 = vadd.f32 %v2555_v22, %v5075_v44  ;;  %v2504_v27 = vpop.f32.mrb[27].mxu0  ;;  %v2557_v28 = vpop.f32.mrb[27].mxu1 }
 0x1ef   : > { %v2954_v29 = vmax.f32 %v2501_v18, 0.0  ;;  %v2956_v31 = vmax.f32 %v2554_v19, 0.0  ;;  %v2505_v32 = vadd.f32 %v2504_v27, %v5075_v44  ;;  %v2558_v33 = vadd.f32 %v2557_v28, %v5075_v44 }
 0x1f0   : > { %3073 = vst [vmem:[%s5091_s12 + $0x60] sm:$0xff] %v2953_v23  ;;  %3075 = vst [vmem:[%s5091_s12 + $0x70] sm:$0xff] %v2955_v24  ;;  %v2983_v34 = vmax.f32 %v2503_v25, 0.0  ;;  %v2985_v35 = vmax.f32 %v2556_v26, 0.0 }
 0x1f1   : > { %3074 = vst [vmem:[%s5091_s12 + $0x68] sm:$0xff] %v2954_v29  ;;  %3076 = vst [vmem:[%s5091_s12 + $0x78] sm:$0xff] %v2956_v31  ;;  %v2984_v36 = vmax.f32 %v2505_v32, 0.0  ;;  %v2986_v37 = vmax.f32 %v2558_v33, 0.0 }
 0x1f2   : > { %3103 = vst [vmem:[%s5091_s12 + $0x150] sm:$0xff] %v2983_v34  ;;  %3105 = vst [vmem:[%s5091_s12 + $0x160] sm:$0xff] %v2985_v35 }
 0x1f3   : > { %3104 = vst [vmem:[%s5091_s12 + $0x158] sm:$0xff] %v2984_v36  ;;  %3106 = vst [vmem:[%s5091_s12 + $0x168] sm:$0xff] %v2986_v37  ;;  %v2508_v38 = vpop.f32.mrb[28].mxu0  ;;  %v2561_v21 = vpop.f32.mrb[28].mxu1 }
 0x1f4   : > { %v2509_v39 = vadd.f32 %v2508_v38, %v5078_v45  ;;  %v2562_v2 = vadd.f32 %v2561_v21, %v5078_v45  ;;  %v2510_v41 = vpop.f32.mrb[29].mxu0  ;;  %v2563_v11 = vpop.f32.mrb[29].mxu1 }
 0x1f5   : > { %v2511_v42 = vadd.f32 %v2510_v41, %v5078_v45  ;;  %v2564_v43 = vadd.f32 %v2563_v11, %v5078_v45  ;;  %v2512_v48 = vpop.f32.mrb[30].mxu0  ;;  %v2565_v30 = vpop.f32.mrb[30].mxu1 }
 0x1f6   : > { %v3013_v46 = vmax.f32 %v2509_v39, 0.0  ;;  %v3015_v47 = vmax.f32 %v2562_v2, 0.0  ;;  %v2513_v49 = vadd.f32 %v2512_v48, %v5100_v10  ;;  %v2566_v50 = vadd.f32 %v2565_v30, %v5100_v10  ;;  %v2514_v51 = vpop.f32.mrb[31].mxu0  ;;  %v2567_v52 = vpop.f32.mrb[31].mxu1 }
 0x1f7   : > { %v3014_v53 = vmax.f32 %v2511_v42, 0.0  ;;  %v3016_v54 = vmax.f32 %v2564_v43, 0.0  ;;  %v2515_v55 = vadd.f32 %v2514_v51, %v5100_v10  ;;  %v2568_v56 = vadd.f32 %v2567_v52, %v5100_v10 }
 0x1f8   : > { %3133 = vst [vmem:[%s5091_s12 + $0x240] sm:$0xff] %v3013_v46  ;;  %3135 = vst [vmem:[%s5091_s12 + $0x250] sm:$0xff] %v3015_v47  ;;  %v3043_v57 = vmax.f32 %v2513_v49, 0.0  ;;  %v3045_v58 = vmax.f32 %v2566_v50, 0.0 }
 0x1f9   : > { %3134 = vst [vmem:[%s5091_s12 + $0x248] sm:$0xff] %v3014_v53  ;;  %3136 = vst [vmem:[%s5091_s12 + $0x258] sm:$0xff] %v3016_v54  ;;  %v3044_v59 = vmax.f32 %v2515_v55, 0.0  ;;  %v3046_v60 = vmax.f32 %v2568_v56, 0.0 }
 0x1fa   : > { %3163 = vst [vmem:[%s5091_s12 + $0x330] sm:$0xff] %v3043_v57  ;;  %3165 = vst [vmem:[%s5091_s12 + $0x340] sm:$0xff] %v3045_v58 }
 0x1fb   : > { %3164 = vst [vmem:[%s5091_s12 + $0x338] sm:$0xff] %v3044_v59  ;;  %3166 = vst [vmem:[%s5091_s12 + $0x348] sm:$0xff] %v3046_v60 }
 0x20b   : > { %v2604_v61 = vpop.f32.mrb[32].mxu0  ;;  %v2657_v62 = vpop.f32.mrb[32].mxu1 }
 0x20c   : > { %v2605_v63 = vadd.f32 %v2604_v61, %v5066_v40  ;;  %v2658_v0 = vadd.f32 %v2657_v62, %v5066_v40  ;;  %v2606_v1 = vpop.f32.mrb[33].mxu0  ;;  %v2659_v3 = vpop.f32.mrb[33].mxu1 }
 0x20d   : > { %v2607_v4 = vadd.f32 %v2606_v1, %v5066_v40  ;;  %v2660_v5 = vadd.f32 %v2659_v3, %v5066_v40  ;;  %v2608_v6 = vpop.f32.mrb[34].mxu0  ;;  %v2661_v7 = vpop.f32.mrb[34].mxu1 }
 0x20e   : > { %v2957_v8 = vmax.f32 %v2605_v63, 0.0  ;;  %v2959_v9 = vmax.f32 %v2658_v0, 0.0  ;;  %v2609_v12 = vadd.f32 %v2608_v6, %v5075_v44  ;;  %v2662_v13 = vadd.f32 %v2661_v7, %v5075_v44  ;;  %v2610_v14 = vpop.f32.mrb[35].mxu0  ;;  %v2663_v15 = vpop.f32.mrb[35].mxu1 }
 0x20f   : > { %v2958_v16 = vmax.f32 %v2607_v4, 0.0  ;;  %v2960_v17 = vmax.f32 %v2660_v5, 0.0  ;;  %v2611_v18 = vadd.f32 %v2610_v14, %v5075_v44  ;;  %v2664_v19 = vadd.f32 %v2663_v15, %v5075_v44 }
 0x210   : > { %3077 = vst [vmem:[%s5091_s12 + $0x80] sm:$0xff] %v2957_v8  ;;  %3079 = vst [vmem:[%s5091_s12 + $0x90] sm:$0xff] %v2959_v9  ;;  %v2987_v20 = vmax.f32 %v2609_v12, 0.0  ;;  %v2989_v22 = vmax.f32 %v2662_v13, 0.0 }
 0x211   : > { %3078 = vst [vmem:[%s5091_s12 + $0x88] sm:$0xff] %v2958_v16  ;;  %3080 = vst [vmem:[%s5091_s12 + $0x98] sm:$0xff] %v2960_v17  ;;  %v2988_v23 = vmax.f32 %v2611_v18, 0.0  ;;  %v2990_v24 = vmax.f32 %v2664_v19, 0.0 }
 0x212   : > { %3107 = vst [vmem:[%s5091_s12 + $0x170] sm:$0xff] %v2987_v20  ;;  %3109 = vst [vmem:[%s5091_s12 + $0x180] sm:$0xff] %v2989_v22 }
 0x213   : > { %3108 = vst [vmem:[%s5091_s12 + $0x178] sm:$0xff] %v2988_v23  ;;  %3110 = vst [vmem:[%s5091_s12 + $0x188] sm:$0xff] %v2990_v24  ;;  %v2614_v25 = vpop.f32.mrb[36].mxu0  ;;  %v2667_v26 = vpop.f32.mrb[36].mxu1 }
 0x214   : > { %v2615_v27 = vadd.f32 %v2614_v25, %v5078_v45  ;;  %v2668_v28 = vadd.f32 %v2667_v26, %v5078_v45  ;;  %v2616_v29 = vpop.f32.mrb[37].mxu0  ;;  %v2669_v31 = vpop.f32.mrb[37].mxu1 }
 0x215   : > { %v2617_v32 = vadd.f32 %v2616_v29, %v5078_v45  ;;  %v2670_v33 = vadd.f32 %v2669_v31, %v5078_v45  ;;  %v2618_v34 = vpop.f32.mrb[38].mxu0  ;;  %v2671_v35 = vpop.f32.mrb[38].mxu1 }
 0x216   : > { %v3017_v36 = vmax.f32 %v2615_v27, 0.0  ;;  %v3019_v37 = vmax.f32 %v2668_v28, 0.0  ;;  %v2619_v38 = vadd.f32 %v2618_v34, %v5100_v10  ;;  %v2672_v21 = vadd.f32 %v2671_v35, %v5100_v10  ;;  %v2620_v39 = vpop.f32.mrb[39].mxu0  ;;  %v2673_v2 = vpop.f32.mrb[39].mxu1 }
 0x217   : > { %v3018_v41 = vmax.f32 %v2617_v32, 0.0  ;;  %v3020_v11 = vmax.f32 %v2670_v33, 0.0  ;;  %v2621_v42 = vadd.f32 %v2620_v39, %v5100_v10  ;;  %v2674_v43 = vadd.f32 %v2673_v2, %v5100_v10 }
 0x218   : > { %3137 = vst [vmem:[%s5091_s12 + $0x260] sm:$0xff] %v3017_v36  ;;  %3139 = vst [vmem:[%s5091_s12 + $0x270] sm:$0xff] %v3019_v37  ;;  %v3047_v48 = vmax.f32 %v2619_v38, 0.0  ;;  %v3049_v30 = vmax.f32 %v2672_v21, 0.0 }
 0x219   : > { %3138 = vst [vmem:[%s5091_s12 + $0x268] sm:$0xff] %v3018_v41  ;;  %3140 = vst [vmem:[%s5091_s12 + $0x278] sm:$0xff] %v3020_v11  ;;  %v3048_v46 = vmax.f32 %v2621_v42, 0.0  ;;  %v3050_v47 = vmax.f32 %v2674_v43, 0.0 }
 0x21a   : > { %3167 = vst [vmem:[%s5091_s12 + $0x350] sm:$0xff] %v3047_v48  ;;  %3169 = vst [vmem:[%s5091_s12 + $0x360] sm:$0xff] %v3049_v30 }
 0x21b   : > { %3168 = vst [vmem:[%s5091_s12 + $0x358] sm:$0xff] %v3048_v46  ;;  %3170 = vst [vmem:[%s5091_s12 + $0x368] sm:$0xff] %v3050_v47 }
 0x22b   : > { %v2710_v49 = vpop.f32.mrb[40].mxu0  ;;  %v2763_v50 = vpop.f32.mrb[40].mxu1 }
 0x22c   : > { %v2711_v51 = vadd.f32 %v2710_v49, %v5066_v40  ;;  %v2764_v52 = vadd.f32 %v2763_v50, %v5066_v40  ;;  %v2712_v53 = vpop.f32.mrb[41].mxu0  ;;  %v2765_v54 = vpop.f32.mrb[41].mxu1 }
 0x22d   : > { %v2713_v55 = vadd.f32 %v2712_v53, %v5066_v40  ;;  %v2766_v56 = vadd.f32 %v2765_v54, %v5066_v40  ;;  %v2714_v57 = vpop.f32.mrb[42].mxu0  ;;  %v2767_v58 = vpop.f32.mrb[42].mxu1 }
 0x22e   : > { %v2961_v59 = vmax.f32 %v2711_v51, 0.0  ;;  %v2963_v60 = vmax.f32 %v2764_v52, 0.0  ;;  %v2715_v61 = vadd.f32 %v2714_v57, %v5075_v44  ;;  %v2768_v62 = vadd.f32 %v2767_v58, %v5075_v44  ;;  %v2716_v63 = vpop.f32.mrb[43].mxu0  ;;  %v2769_v0 = vpop.f32.mrb[43].mxu1 }
 0x22f   : > { %v2962_v1 = vmax.f32 %v2713_v55, 0.0  ;;  %v2964_v3 = vmax.f32 %v2766_v56, 0.0  ;;  %v2717_v4 = vadd.f32 %v2716_v63, %v5075_v44  ;;  %v2770_v5 = vadd.f32 %v2769_v0, %v5075_v44 }
 0x230   : > { %3081 = vst [vmem:[%s5091_s12 + $0xa0] sm:$0xff] %v2961_v59  ;;  %3083 = vst [vmem:[%s5091_s12 + $0xb0] sm:$0xff] %v2963_v60  ;;  %v2991_v6 = vmax.f32 %v2715_v61, 0.0  ;;  %v2993_v7 = vmax.f32 %v2768_v62, 0.0 }
 0x231   : > { %3082 = vst [vmem:[%s5091_s12 + $0xa8] sm:$0xff] %v2962_v1  ;;  %3084 = vst [vmem:[%s5091_s12 + $0xb8] sm:$0xff] %v2964_v3  ;;  %v2992_v8 = vmax.f32 %v2717_v4, 0.0  ;;  %v2994_v9 = vmax.f32 %v2770_v5, 0.0 }
 0x232   : > { %3111 = vst [vmem:[%s5091_s12 + $0x190] sm:$0xff] %v2991_v6  ;;  %3113 = vst [vmem:[%s5091_s12 + $0x1a0] sm:$0xff] %v2993_v7 }
 0x233   : > { %3112 = vst [vmem:[%s5091_s12 + $0x198] sm:$0xff] %v2992_v8  ;;  %3114 = vst [vmem:[%s5091_s12 + $0x1a8] sm:$0xff] %v2994_v9  ;;  %v2720_v12 = vpop.f32.mrb[44].mxu0  ;;  %v2773_v13 = vpop.f32.mrb[44].mxu1 }
 0x234   : > { %v2721_v14 = vadd.f32 %v2720_v12, %v5078_v45  ;;  %v2774_v15 = vadd.f32 %v2773_v13, %v5078_v45  ;;  %v2722_v16 = vpop.f32.mrb[45].mxu0  ;;  %v2775_v17 = vpop.f32.mrb[45].mxu1 }
 0x235   : > { %v2723_v18 = vadd.f32 %v2722_v16, %v5078_v45  ;;  %v2776_v19 = vadd.f32 %v2775_v17, %v5078_v45  ;;  %v2724_v20 = vpop.f32.mrb[46].mxu0  ;;  %v2777_v22 = vpop.f32.mrb[46].mxu1 }
 0x236   : > { %v3021_v23 = vmax.f32 %v2721_v14, 0.0  ;;  %v3023_v24 = vmax.f32 %v2774_v15, 0.0  ;;  %v2725_v25 = vadd.f32 %v2724_v20, %v5100_v10  ;;  %v2778_v26 = vadd.f32 %v2777_v22, %v5100_v10  ;;  %v2726_v27 = vpop.f32.mrb[47].mxu0  ;;  %v2779_v28 = vpop.f32.mrb[47].mxu1 }
 0x237   : > { %v3022_v29 = vmax.f32 %v2723_v18, 0.0  ;;  %v3024_v31 = vmax.f32 %v2776_v19, 0.0  ;;  %v2727_v32 = vadd.f32 %v2726_v27, %v5100_v10  ;;  %v2780_v33 = vadd.f32 %v2779_v28, %v5100_v10 }
 0x238   : > { %3141 = vst [vmem:[%s5091_s12 + $0x280] sm:$0xff] %v3021_v23  ;;  %3143 = vst [vmem:[%s5091_s12 + $0x290] sm:$0xff] %v3023_v24  ;;  %v3051_v34 = vmax.f32 %v2725_v25, 0.0  ;;  %v3053_v35 = vmax.f32 %v2778_v26, 0.0 }
 0x239   : > { %3142 = vst [vmem:[%s5091_s12 + $0x288] sm:$0xff] %v3022_v29  ;;  %3144 = vst [vmem:[%s5091_s12 + $0x298] sm:$0xff] %v3024_v31  ;;  %v3052_v36 = vmax.f32 %v2727_v32, 0.0  ;;  %v3054_v37 = vmax.f32 %v2780_v33, 0.0 }
 0x23a   : > { %3171 = vst [vmem:[%s5091_s12 + $0x370] sm:$0xff] %v3051_v34  ;;  %3173 = vst [vmem:[%s5091_s12 + $0x380] sm:$0xff] %v3053_v35 }
 0x23b   : > { %3172 = vst [vmem:[%s5091_s12 + $0x378] sm:$0xff] %v3052_v36  ;;  %3174 = vst [vmem:[%s5091_s12 + $0x388] sm:$0xff] %v3054_v37 }
 0x24b   : > { %v2816_v38 = vpop.f32.mrb[48].mxu0  ;;  %v2869_v21 = vpop.f32.mrb[48].mxu1 }
 0x24c   : > { %v2817_v39 = vadd.f32 %v2816_v38, %v5066_v40  ;;  %v2870_v2 = vadd.f32 %v2869_v21, %v5066_v40  ;;  %v2818_v41 = vpop.f32.mrb[49].mxu0  ;;  %v2871_v11 = vpop.f32.mrb[49].mxu1 }
 0x24d   : > { %v2819_v42 = vadd.f32 %v2818_v41, %v5066_v40  ;;  %v2872_v43 = vadd.f32 %v2871_v11, %v5066_v40  ;;  %v2820_v48 = vpop.f32.mrb[50].mxu0  ;;  %v2873_v30 = vpop.f32.mrb[50].mxu1 }
 0x24e   : > { %v2965_v46 = vmax.f32 %v2817_v39, 0.0  ;;  %v2967_v47 = vmax.f32 %v2870_v2, 0.0  ;;  %v2821_v49 = vadd.f32 %v2820_v48, %v5075_v44  ;;  %v2874_v50 = vadd.f32 %v2873_v30, %v5075_v44  ;;  %v2822_v51 = vpop.f32.mrb[51].mxu0  ;;  %v2875_v52 = vpop.f32.mrb[51].mxu1 }
 0x24f   : > { %v2966_v53 = vmax.f32 %v2819_v42, 0.0  ;;  %v2968_v54 = vmax.f32 %v2872_v43, 0.0  ;;  %v2823_v55 = vadd.f32 %v2822_v51, %v5075_v44  ;;  %v2876_v56 = vadd.f32 %v2875_v52, %v5075_v44  ;;  %v3215_v51 = vld [vmem:[%s5091_s12 + $0x30] sm:$0xff] (%p4240_p5)  ;;  %v3217_v52 = vld [vmem:[%s5091_s12 + $0x38] sm:$0xff] (%p4240_p5) }
 0x250   : > { %3085 = vst [vmem:[%s5091_s12 + $0xc0] sm:$0xff] %v2965_v46  ;;  %3087 = vst [vmem:[%s5091_s12 + $0xd0] sm:$0xff] %v2967_v47  ;;  %v2995_v57 = vmax.f32 %v2821_v49, 0.0  ;;  %v2997_v58 = vmax.f32 %v2874_v50, 0.0  ;;  %v3207_v46 = vld [vmem:[%s5091_s12 + $0x10] sm:$0xff] (%p4240_p5)  ;;  %v3209_v47 = vld [vmem:[%s5091_s12 + $0x18] sm:$0xff] (%p4240_p5) }
 0x251   : > { %3086 = vst [vmem:[%s5091_s12 + $0xc8] sm:$0xff] %v2966_v53  ;;  %3088 = vst [vmem:[%s5091_s12 + $0xd8] sm:$0xff] %v2968_v54  ;;  %v2996_v59 = vmax.f32 %v2823_v55, 0.0  ;;  %v2998_v60 = vmax.f32 %v2876_v56, 0.0  ;;  %v3211_v49 = vld [vmem:[%s5091_s12 + $0x20] sm:$0xff] (%p4240_p5)  ;;  %v3213_v50 = vld [vmem:[%s5091_s12 + $0x28] sm:$0xff] (%p4240_p5) }
 0x252   : > { %3115 = vst [vmem:[%s5091_s12 + $0x1b0] sm:$0xff] %v2995_v57  ;;  %3117 = vst [vmem:[%s5091_s12 + $0x1c0] sm:$0xff] %v2997_v58  ;;  %v3219_v53 = vld [vmem:[%s5091_s12 + $0x40] sm:$0xff] (%p4240_p5)  ;;  %v3221_v54 = vld [vmem:[%s5091_s12 + $0x48] sm:$0xff] (%p4240_p5) }
 0x253   : > { %3116 = vst [vmem:[%s5091_s12 + $0x1b8] sm:$0xff] %v2996_v59  ;;  %3118 = vst [vmem:[%s5091_s12 + $0x1c8] sm:$0xff] %v2998_v60  ;;  %v2826_v61 = vpop.f32.mrb[52].mxu0  ;;  %v2879_v62 = vpop.f32.mrb[52].mxu1  ;;  %v3223_v55 = vld [vmem:[%s5091_s12 + $0x50] sm:$0xff] (%p4240_p5)  ;;  %v3225_v56 = vld [vmem:[%s5091_s12 + $0x58] sm:$0xff] (%p4240_p5) }
 0x254   : > { %v2827_v63 = vadd.f32 %v2826_v61, %v5078_v45  ;;  %v2880_v0 = vadd.f32 %v2879_v62, %v5078_v45  ;;  %v2828_v1 = vpop.f32.mrb[53].mxu0  ;;  %v2881_v3 = vpop.f32.mrb[53].mxu1  ;;  %3208 = vst [vmem:[%s5343_s29 + $0x10] sm:$0xff] (%p4240_p5), %v3207_v46  ;;  %3210 = vst [vmem:[%s5343_s29 + $0x18] sm:$0xff] (%p4240_p5), %v3209_v47  ;;  %v3227_v57 = vld [vmem:[%s5091_s12 + $0x60] sm:$0xff] (%p4240_p5)  ;;  %v3229_v58 = vld [vmem:[%s5091_s12 + $0x68] sm:$0xff] (%p4240_p5) }
 0x255   : > { %v2829_v4 = vadd.f32 %v2828_v1, %v5078_v45  ;;  %v2882_v5 = vadd.f32 %v2881_v3, %v5078_v45  ;;  %v2830_v6 = vpop.f32.mrb[54].mxu0  ;;  %v2883_v7 = vpop.f32.mrb[54].mxu1  ;;  %3212 = vst [vmem:[%s5343_s29 + $0x20] sm:$0xff] (%p4240_p5), %v3211_v49  ;;  %3214 = vst [vmem:[%s5343_s29 + $0x28] sm:$0xff] (%p4240_p5), %v3213_v50  ;;  %v3231_v59 = vld [vmem:[%s5091_s12 + $0x70] sm:$0xff] (%p4240_p5)  ;;  %v3233_v60 = vld [vmem:[%s5091_s12 + $0x78] sm:$0xff] (%p4240_p5) }
 0x256   : > { %v3025_v8 = vmax.f32 %v2827_v63, 0.0  ;;  %v3027_v9 = vmax.f32 %v2880_v0, 0.0  ;;  %v2831_v12 = vadd.f32 %v2830_v6, %v5100_v10  ;;  %v2884_v13 = vadd.f32 %v2883_v7, %v5100_v10  ;;  %v2832_v14 = vpop.f32.mrb[55].mxu0  ;;  %v2885_v15 = vpop.f32.mrb[55].mxu1  ;;  %3216 = vst [vmem:[%s5343_s29 + $0x30] sm:$0xff] (%p4240_p5), %v3215_v51  ;;  %3218 = vst [vmem:[%s5343_s29 + $0x38] sm:$0xff] (%p4240_p5), %v3217_v52 }
 0x257   : > { %v3026_v16 = vmax.f32 %v2829_v4, 0.0  ;;  %v3028_v17 = vmax.f32 %v2882_v5, 0.0  ;;  %v2833_v18 = vadd.f32 %v2832_v14, %v5100_v10  ;;  %v2886_v19 = vadd.f32 %v2885_v15, %v5100_v10  ;;  %3220 = vst [vmem:[%s5343_s29 + $0x40] sm:$0xff] (%p4240_p5), %v3219_v53  ;;  %3222 = vst [vmem:[%s5343_s29 + $0x48] sm:$0xff] (%p4240_p5), %v3221_v54  ;;  %v3235_v61 = vld [vmem:[%s5091_s12 + $0x80] sm:$0xff] (%p4240_p5)  ;;  %v3237_v62 = vld [vmem:[%s5091_s12 + $0x88] sm:$0xff] (%p4240_p5) }
 0x258   : > { %3145 = vst [vmem:[%s5091_s12 + $0x2a0] sm:$0xff] %v3025_v8  ;;  %3147 = vst [vmem:[%s5091_s12 + $0x2b0] sm:$0xff] %v3027_v9  ;;  %v3055_v20 = vmax.f32 %v2831_v12, 0.0  ;;  %v3057_v22 = vmax.f32 %v2884_v13, 0.0  ;;  %v3239_v63 = vld [vmem:[%s5091_s12 + $0x90] sm:$0xff] (%p4240_p5)  ;;  %v3241_v0 = vld [vmem:[%s5091_s12 + $0x98] sm:$0xff] (%p4240_p5) }
 0x259   : > { %3146 = vst [vmem:[%s5091_s12 + $0x2a8] sm:$0xff] %v3026_v16  ;;  %3148 = vst [vmem:[%s5091_s12 + $0x2b8] sm:$0xff] %v3028_v17  ;;  %v3056_v23 = vmax.f32 %v2833_v18, 0.0  ;;  %v3058_v24 = vmax.f32 %v2886_v19, 0.0  ;;  %v3243_v1 = vld [vmem:[%s5091_s12 + $0xa0] sm:$0xff] (%p4240_p5)  ;;  %v3245_v3 = vld [vmem:[%s5091_s12 + $0xa8] sm:$0xff] (%p4240_p5) }
 0x25a   : > { %3175 = vst [vmem:[%s5091_s12 + $0x390] sm:$0xff] %v3055_v20  ;;  %3177 = vst [vmem:[%s5091_s12 + $0x3a0] sm:$0xff] %v3057_v22  ;;  %v3247_v4 = vld [vmem:[%s5091_s12 + $0xb0] sm:$0xff] (%p4240_p5)  ;;  %v3249_v5 = vld [vmem:[%s5091_s12 + $0xb8] sm:$0xff] (%p4240_p5) }
 0x25b   : > { %3176 = vst [vmem:[%s5091_s12 + $0x398] sm:$0xff] %v3056_v23  ;;  %3178 = vst [vmem:[%s5091_s12 + $0x3a8] sm:$0xff] %v3058_v24  ;;  %v3251_v6 = vld [vmem:[%s5091_s12 + $0xc0] sm:$0xff] (%p4240_p5)  ;;  %v3253_v7 = vld [vmem:[%s5091_s12 + $0xc8] sm:$0xff] (%p4240_p5) }
 0x25c   : > { %3224 = vst [vmem:[%s5343_s29 + $0x50] sm:$0xff] (%p4240_p5), %v3223_v55  ;;  %3226 = vst [vmem:[%s5343_s29 + $0x58] sm:$0xff] (%p4240_p5), %v3225_v56  ;;  %v3255_v8 = vld [vmem:[%s5091_s12 + $0xd0] sm:$0xff] (%p4240_p5)  ;;  %v3257_v9 = vld [vmem:[%s5091_s12 + $0xd8] sm:$0xff] (%p4240_p5) }
 0x25d   : > { %3228 = vst [vmem:[%s5343_s29 + $0x60] sm:$0xff] (%p4240_p5), %v3227_v57  ;;  %3230 = vst [vmem:[%s5343_s29 + $0x68] sm:$0xff] (%p4240_p5), %v3229_v58  ;;  %v3263_v14 = vld [vmem:[%s5091_s12 + $0xf0] sm:$0xff] (%p4240_p5)  ;;  %v3265_v15 = vld [vmem:[%s5091_s12 + $0xf8] sm:$0xff] (%p4240_p5) }
 0x25e   : > { %3232 = vst [vmem:[%s5343_s29 + $0x70] sm:$0xff] (%p4240_p5), %v3231_v59  ;;  %3234 = vst [vmem:[%s5343_s29 + $0x78] sm:$0xff] (%p4240_p5), %v3233_v60  ;;  %v3267_v16 = vld [vmem:[%s5091_s12 + $0x100] sm:$0xff] (%p4240_p5)  ;;  %v3269_v17 = vld [vmem:[%s5091_s12 + $0x108] sm:$0xff] (%p4240_p5) }
 0x25f   : > { %3236 = vst [vmem:[%s5343_s29 + $0x80] sm:$0xff] (%p4240_p5), %v3235_v61  ;;  %3238 = vst [vmem:[%s5343_s29 + $0x88] sm:$0xff] (%p4240_p5), %v3237_v62  ;;  %v3271_v18 = vld [vmem:[%s5091_s12 + $0x110] sm:$0xff] (%p4240_p5)  ;;  %v3273_v19 = vld [vmem:[%s5091_s12 + $0x118] sm:$0xff] (%p4240_p5) }
 0x260   : > { %3240 = vst [vmem:[%s5343_s29 + $0x90] sm:$0xff] (%p4240_p5), %v3239_v63  ;;  %3242 = vst [vmem:[%s5343_s29 + $0x98] sm:$0xff] (%p4240_p5), %v3241_v0  ;;  %v3275_v20 = vld [vmem:[%s5091_s12 + $0x120] sm:$0xff] (%p4240_p5)  ;;  %v3277_v22 = vld [vmem:[%s5091_s12 + $0x128] sm:$0xff] (%p4240_p5) }
 0x261   : > { %3244 = vst [vmem:[%s5343_s29 + $0xa0] sm:$0xff] (%p4240_p5), %v3243_v1  ;;  %3246 = vst [vmem:[%s5343_s29 + $0xa8] sm:$0xff] (%p4240_p5), %v3245_v3  ;;  %v3279_v23 = vld [vmem:[%s5091_s12 + $0x130] sm:$0xff] (%p4240_p5)  ;;  %v3281_v24 = vld [vmem:[%s5091_s12 + $0x138] sm:$0xff] (%p4240_p5) }
 0x262   : > { %3248 = vst [vmem:[%s5343_s29 + $0xb0] sm:$0xff] (%p4240_p5), %v3247_v4  ;;  %3250 = vst [vmem:[%s5343_s29 + $0xb8] sm:$0xff] (%p4240_p5), %v3249_v5  ;;  %v3335_v46 = vld [vmem:[%s5091_s12 + $0x210] sm:$0xff] (%p4240_p5)  ;;  %v3337_v47 = vld [vmem:[%s5091_s12 + $0x218] sm:$0xff] (%p4240_p5) }
 0x263   : > { %3252 = vst [vmem:[%s5343_s29 + $0xc0] sm:$0xff] (%p4240_p5), %v3251_v6  ;;  %3254 = vst [vmem:[%s5343_s29 + $0xc8] sm:$0xff] (%p4240_p5), %v3253_v7  ;;  %v3339_v49 = vld [vmem:[%s5091_s12 + $0x220] sm:$0xff] (%p4240_p5)  ;;  %v3341_v50 = vld [vmem:[%s5091_s12 + $0x228] sm:$0xff] (%p4240_p5) }
 0x264   : > { %3256 = vst [vmem:[%s5343_s29 + $0xd0] sm:$0xff] (%p4240_p5), %v3255_v8  ;;  %3258 = vst [vmem:[%s5343_s29 + $0xd8] sm:$0xff] (%p4240_p5), %v3257_v9  ;;  %v3343_v51 = vld [vmem:[%s5091_s12 + $0x230] sm:$0xff] (%p4240_p5)  ;;  %v3345_v52 = vld [vmem:[%s5091_s12 + $0x238] sm:$0xff] (%p4240_p5) }
 0x265   : > { %3264 = vst [vmem:[%s5343_s29 + $0x3c0] sm:$0xff] (%p4240_p5), %v3263_v14  ;;  %3266 = vst [vmem:[%s5343_s29 + $0x3c8] sm:$0xff] (%p4240_p5), %v3265_v15  ;;  %v3347_v53 = vld [vmem:[%s5091_s12 + $0x240] sm:$0xff] (%p4240_p5)  ;;  %v3349_v54 = vld [vmem:[%s5091_s12 + $0x248] sm:$0xff] (%p4240_p5) }
 0x266   : > { %3268 = vst [vmem:[%s5343_s29 + $0x3d0] sm:$0xff] (%p4240_p5), %v3267_v16  ;;  %3270 = vst [vmem:[%s5343_s29 + $0x3d8] sm:$0xff] (%p4240_p5), %v3269_v17  ;;  %v3351_v55 = vld [vmem:[%s5091_s12 + $0x250] sm:$0xff] (%p4240_p5)  ;;  %v3353_v56 = vld [vmem:[%s5091_s12 + $0x258] sm:$0xff] (%p4240_p5) }
 0x267   : > { %3272 = vst [vmem:[%s5343_s29 + $0x3e0] sm:$0xff] (%p4240_p5), %v3271_v18  ;;  %3274 = vst [vmem:[%s5343_s29 + $0x3e8] sm:$0xff] (%p4240_p5), %v3273_v19  ;;  %v3355_v57 = vld [vmem:[%s5091_s12 + $0x260] sm:$0xff] (%p4240_p5)  ;;  %v3357_v58 = vld [vmem:[%s5091_s12 + $0x268] sm:$0xff] (%p4240_p5) }
 0x268   : > { %3276 = vst [vmem:[%s5343_s29 + $0x3f0] sm:$0xff] (%p4240_p5), %v3275_v20  ;;  %3278 = vst [vmem:[%s5343_s29 + $0x3f8] sm:$0xff] (%p4240_p5), %v3277_v22  ;;  %v3359_v59 = vld [vmem:[%s5091_s12 + $0x270] sm:$0xff] (%p4240_p5)  ;;  %v3361_v60 = vld [vmem:[%s5091_s12 + $0x278] sm:$0xff] (%p4240_p5) }
 0x269   : > { %3280 = vst [vmem:[%s5343_s29 + $0x400] sm:$0xff] (%p4240_p5), %v3279_v23  ;;  %3282 = vst [vmem:[%s5343_s29 + $0x408] sm:$0xff] (%p4240_p5), %v3281_v24  ;;  %v3363_v61 = vld [vmem:[%s5091_s12 + $0x280] sm:$0xff] (%p4240_p5)  ;;  %v3365_v62 = vld [vmem:[%s5091_s12 + $0x288] sm:$0xff] (%p4240_p5) }
 0x26a   : > { %3336 = vst [vmem:[%s5343_s29 + $0x7b0] sm:$0xff] (%p4240_p5), %v3335_v46  ;;  %3338 = vst [vmem:[%s5343_s29 + $0x7b8] sm:$0xff] (%p4240_p5), %v3337_v47  ;;  %v3367_v63 = vld [vmem:[%s5091_s12 + $0x290] sm:$0xff] (%p4240_p5)  ;;  %v3369_v0 = vld [vmem:[%s5091_s12 + $0x298] sm:$0xff] (%p4240_p5) }
 0x26b   : > { %v2922_v25 = vpop.f32.mrb[56].mxu0  ;;  %v2932_v26 = vpop.f32.mrb[56].mxu1  ;;  %3340 = vst [vmem:[%s5343_s29 + $0x7c0] sm:$0xff] (%p4240_p5), %v3339_v49  ;;  %3342 = vst [vmem:[%s5343_s29 + $0x7c8] sm:$0xff] (%p4240_p5), %v3341_v50  ;;  %v3371_v1 = vld [vmem:[%s5091_s12 + $0x2a0] sm:$0xff] (%p4240_p5)  ;;  %v3373_v3 = vld [vmem:[%s5091_s12 + $0x2a8] sm:$0xff] (%p4240_p5) }
 0x26c   : > { %v2923_v27 = vadd.f32 %v2922_v25, %v5066_v40  ;;  %v2933_v28 = vadd.f32 %v2932_v26, %v5078_v45  ;;  %v2924_v29 = vpop.f32.mrb[57].mxu0  ;;  %v2934_v31 = vpop.f32.mrb[57].mxu1  ;;  %v3283_v25 = vld [vmem:[%s5091_s12 + $0x140] sm:$0xff] (%p4240_p5)  ;;  %v3285_v26 = vld [vmem:[%s5091_s12 + $0x148] sm:$0xff] (%p4240_p5)  ;;  %3344 = vst [vmem:[%s5343_s29 + $0x7d0] sm:$0xff] (%p4240_p5), %v3343_v51  ;;  %3346 = vst [vmem:[%s5343_s29 + $0x7d8] sm:$0xff] (%p4240_p5), %v3345_v52 }
 0x26d   : > { %v2925_v32 = vadd.f32 %v2924_v29, %v5066_v40  ;;  %v2935_v33 = vadd.f32 %v2934_v31, %v5078_v45  ;;  %v2926_v34 = vpop.f32.mrb[58].mxu0  ;;  %v2936_v35 = vpop.f32.mrb[58].mxu1  ;;  %3187 = sbr.rel (!%p4240_p5) target bundleno = 665 (0x299), region = 59  ;;  %3284 = vst [vmem:[%s5343_s29 + $0x410] sm:$0xff] (%p4240_p5), %v3283_v25  ;;  %3286 = vst [vmem:[%s5343_s29 + $0x418] sm:$0xff] (%p4240_p5), %v3285_v26  ;;  %v3291_v29 = vld [vmem:[%s5091_s12 + $0x160] sm:$0xff] (%p4240_p5) }
 0x26e   : > { %v2969_v36 = vmax.f32 %v2923_v27, 0.0  ;;  %v3029_v37 = vmax.f32 %v2933_v28, 0.0  ;;  %v2927_v38 = vadd.f32 %v2926_v34, %v5075_v44  ;;  %v2937_v21 = vadd.f32 %v2936_v35, %v5100_v10  ;;  %v2928_v39 = vpop.f32.mrb[59].mxu0  ;;  %v2938_v2 = vpop.f32.mrb[59].mxu1  ;;  %v3287_v27 = vld [vmem:[%s5091_s12 + $0x150] sm:$0xff] (%p4240_p5)  ;;  %v3289_v28 = vld [vmem:[%s5091_s12 + $0x158] sm:$0xff] (%p4240_p5) }
 0x26f   : > { %v2970_v41 = vmax.f32 %v2925_v32, 0.0  ;;  %v3030_v40 = vmax.f32 %v2935_v33, 0.0  ;;  %v2929_v45 = vadd.f32 %v2928_v39, %v5075_v44  ;;  %v2939_v11 = vadd.f32 %v2938_v2, %v5100_v10  ;;  %v3203_v44 = vld [vmem:[%s5091_s12] sm:$0xff] (%p4240_p5)  ;;  %v3205_v10 = vld [vmem:[%s5091_s12 + $0x8] sm:$0xff] (%p4240_p5)  ;;  %3288 = vst [vmem:[%s5343_s29 + $0x420] sm:$0xff] (%p4240_p5), %v3287_v27  ;;  %3290 = vst [vmem:[%s5343_s29 + $0x428] sm:$0xff] (%p4240_p5), %v3289_v28 }
 0x270   : > { %3089 = vst [vmem:[%s5091_s12 + $0xe0] sm:$0xff] %v2969_v36  ;;  %3149 = vst [vmem:[%s5091_s12 + $0x2c0] sm:$0xff] %v3029_v37  ;;  %v2999_v42 = vmax.f32 %v2927_v38, 0.0  ;;  %v3059_v43 = vmax.f32 %v2937_v21, 0.0  ;;  %v3293_v31 = vld [vmem:[%s5091_s12 + $0x168] sm:$0xff] (%p4240_p5)  ;;  %v3295_v32 = vld [vmem:[%s5091_s12 + $0x170] sm:$0xff] (%p4240_p5) }
 0x271   : > { %3090 = vst [vmem:[%s5091_s12 + $0xe8] sm:$0xff] %v2970_v41  ;;  %3150 = vst [vmem:[%s5091_s12 + $0x2c8] sm:$0xff] %v3030_v40  ;;  %v3000_v48 = vmax.f32 %v2929_v45, 0.0  ;;  %v3060_v30 = vmax.f32 %v2939_v11, 0.0  ;;  %v3297_v33 = vld [vmem:[%s5091_s12 + $0x178] sm:$0xff] (%p4240_p5)  ;;  %v3299_v34 = vld [vmem:[%s5091_s12 + $0x180] sm:$0xff] (%p4240_p5) }
 0x272   : > { %3119 = vst [vmem:[%s5091_s12 + $0x1d0] sm:$0xff] %v2999_v42  ;;  %3179 = vst [vmem:[%s5091_s12 + $0x3b0] sm:$0xff] %v3059_v43  ;;  %v3301_v35 = vld [vmem:[%s5091_s12 + $0x188] sm:$0xff] (%p4240_p5)  ;;  %v3303_v36 = vld [vmem:[%s5091_s12 + $0x190] sm:$0xff] (%p4240_p5) }
 0x273   : > { %3120 = vst [vmem:[%s5091_s12 + $0x1d8] sm:$0xff] %v3000_v48  ;;  %3180 = vst [vmem:[%s5091_s12 + $0x3b8] sm:$0xff] %v3060_v30  ;;  %v3305_v37 = vld [vmem:[%s5091_s12 + $0x198] sm:$0xff] (%p4240_p5)  ;;  %v3307_v38 = vld [vmem:[%s5091_s12 + $0x1a0] sm:$0xff] (%p4240_p5) }
 0x274   : > { %3204 = vst [vmem:[%s5343_s29] sm:$0xff] %v3203_v44  ;;  %3206 = vst [vmem:[%s5343_s29 + $0x8] sm:$0xff] %v3205_v10  ;;  %v3309_v21 = vld [vmem:[%s5091_s12 + $0x1a8] sm:$0xff]  ;;  %v3311_v39 = vld [vmem:[%s5091_s12 + $0x1b0] sm:$0xff] }
 0x275   : > { %3292 = vst [vmem:[%s5343_s29 + $0x430] sm:$0xff] %v3291_v29  ;;  %3294 = vst [vmem:[%s5343_s29 + $0x438] sm:$0xff] %v3293_v31  ;;  %v3313_v2 = vld [vmem:[%s5091_s12 + $0x1b8] sm:$0xff]  ;;  %v3315_v41 = vld [vmem:[%s5091_s12 + $0x1c0] sm:$0xff] }
 0x276   : > { %3296 = vst [vmem:[%s5343_s29 + $0x440] sm:$0xff] %v3295_v32  ;;  %3298 = vst [vmem:[%s5343_s29 + $0x448] sm:$0xff] %v3297_v33  ;;  %v3317_v40 = vld [vmem:[%s5091_s12 + $0x1c8] sm:$0xff]  ;;  %v3323_v42 = vld [vmem:[%s5091_s12 + $0x1e0] sm:$0xff] }
 0x277   : > { %v3259_v12 = vld [vmem:[%s5091_s12 + $0xe0] sm:$0xff]  ;;  %3300 = vst [vmem:[%s5343_s29 + $0x450] sm:$0xff] %v3299_v34  ;;  %3302 = vst [vmem:[%s5343_s29 + $0x458] sm:$0xff] %v3301_v35  ;;  %v3325_v43 = vld [vmem:[%s5091_s12 + $0x1e8] sm:$0xff] }
 0x278   : > { %v3261_v13 = vld [vmem:[%s5091_s12 + $0xe8] sm:$0xff]  ;;  %3260 = vst [vmem:[%s5343_s29 + $0xe0] sm:$0xff] %v3259_v12  ;;  %3304 = vst [vmem:[%s5343_s29 + $0x460] sm:$0xff] %v3303_v36  ;;  %v3327_v48 = vld [vmem:[%s5091_s12 + $0x1f0] sm:$0xff] }
 0x279   : > { %3262 = vst [vmem:[%s5343_s29 + $0xe8] sm:$0xff] %v3261_v13  ;;  %3306 = vst [vmem:[%s5343_s29 + $0x468] sm:$0xff] %v3305_v37  ;;  %v3319_v45 = vld [vmem:[%s5091_s12 + $0x1d0] sm:$0xff]  ;;  %v3329_v30 = vld [vmem:[%s5091_s12 + $0x1f8] sm:$0xff] }
 0x27a   : > { %3308 = vst [vmem:[%s5343_s29 + $0x470] sm:$0xff] %v3307_v38  ;;  %3310 = vst [vmem:[%s5343_s29 + $0x478] sm:$0xff] %v3309_v21  ;;  %v3321_v11 = vld [vmem:[%s5091_s12 + $0x1d8] sm:$0xff]  ;;  %v3331_v44 = vld [vmem:[%s5091_s12 + $0x200] sm:$0xff] }
 0x27b   : > { %3312 = vst [vmem:[%s5343_s29 + $0x480] sm:$0xff] %v3311_v39  ;;  %3314 = vst [vmem:[%s5343_s29 + $0x488] sm:$0xff] %v3313_v2  ;;  %v3333_v10 = vld [vmem:[%s5091_s12 + $0x208] sm:$0xff]  ;;  %v3375_v4 = vld [vmem:[%s5091_s12 + $0x2b0] sm:$0xff] }
 0x27c   : > { %3316 = vst [vmem:[%s5343_s29 + $0x490] sm:$0xff] %v3315_v41  ;;  %3318 = vst [vmem:[%s5343_s29 + $0x498] sm:$0xff] %v3317_v40  ;;  %v3377_v5 = vld [vmem:[%s5091_s12 + $0x2b8] sm:$0xff]  ;;  %v3379_v6 = vld [vmem:[%s5091_s12 + $0x2c0] sm:$0xff] }
 0x27d   : > { %3320 = vst [vmem:[%s5343_s29 + $0x4a0] sm:$0xff] %v3319_v45  ;;  %3322 = vst [vmem:[%s5343_s29 + $0x4a8] sm:$0xff] %v3321_v11  ;;  %v3381_v7 = vld [vmem:[%s5091_s12 + $0x2c8] sm:$0xff]  ;;  %v3383_v8 = vld [vmem:[%s5091_s12 + $0x2d0] sm:$0xff] }
 0x27e   : > { %3324 = vst [vmem:[%s5343_s29 + $0x780] sm:$0xff] %v3323_v42  ;;  %3326 = vst [vmem:[%s5343_s29 + $0x788] sm:$0xff] %v3325_v43  ;;  %v3385_v9 = vld [vmem:[%s5091_s12 + $0x2d8] sm:$0xff]  ;;  %v3387_v12 = vld [vmem:[%s5091_s12 + $0x2e0] sm:$0xff] }
 0x27f   : > { %3328 = vst [vmem:[%s5343_s29 + $0x790] sm:$0xff] %v3327_v48  ;;  %3330 = vst [vmem:[%s5343_s29 + $0x798] sm:$0xff] %v3329_v30  ;;  %v3389_v13 = vld [vmem:[%s5091_s12 + $0x2e8] sm:$0xff]  ;;  %v3391_v14 = vld [vmem:[%s5091_s12 + $0x2f0] sm:$0xff] }
 0x280   : > { %3332 = vst [vmem:[%s5343_s29 + $0x7a0] sm:$0xff] %v3331_v44  ;;  %3334 = vst [vmem:[%s5343_s29 + $0x7a8] sm:$0xff] %v3333_v10  ;;  %v3393_v15 = vld [vmem:[%s5091_s12 + $0x2f8] sm:$0xff]  ;;  %v3395_v16 = vld [vmem:[%s5091_s12 + $0x300] sm:$0xff] }
 0x281   : > { %3348 = vst [vmem:[%s5343_s29 + $0x7e0] sm:$0xff] %v3347_v53  ;;  %3350 = vst [vmem:[%s5343_s29 + $0x7e8] sm:$0xff] %v3349_v54  ;;  %v3397_v17 = vld [vmem:[%s5091_s12 + $0x308] sm:$0xff]  ;;  %v3399_v18 = vld [vmem:[%s5091_s12 + $0x310] sm:$0xff] }
 0x282   : > { %3352 = vst [vmem:[%s5343_s29 + $0x7f0] sm:$0xff] %v3351_v55  ;;  %3354 = vst [vmem:[%s5343_s29 + $0x7f8] sm:$0xff] %v3353_v56  ;;  %v3401_v19 = vld [vmem:[%s5091_s12 + $0x318] sm:$0xff]  ;;  %v3403_v20 = vld [vmem:[%s5091_s12 + $0x320] sm:$0xff] }
 0x283   : > { %3356 = vst [vmem:[%s5343_s29 + $0x800] sm:$0xff] %v3355_v57  ;;  %3358 = vst [vmem:[%s5343_s29 + $0x808] sm:$0xff] %v3357_v58  ;;  %v3405_v22 = vld [vmem:[%s5091_s12 + $0x328] sm:$0xff]  ;;  %v3407_v23 = vld [vmem:[%s5091_s12 + $0x330] sm:$0xff] }
 0x284   : > { %3360 = vst [vmem:[%s5343_s29 + $0x810] sm:$0xff] %v3359_v59  ;;  %3362 = vst [vmem:[%s5343_s29 + $0x818] sm:$0xff] %v3361_v60  ;;  %v3409_v24 = vld [vmem:[%s5091_s12 + $0x338] sm:$0xff]  ;;  %v3411_v25 = vld [vmem:[%s5091_s12 + $0x340] sm:$0xff] }
 0x285   : > { %3364 = vst [vmem:[%s5343_s29 + $0x820] sm:$0xff] %v3363_v61  ;;  %3366 = vst [vmem:[%s5343_s29 + $0x828] sm:$0xff] %v3365_v62  ;;  %v3413_v26 = vld [vmem:[%s5091_s12 + $0x348] sm:$0xff]  ;;  %v3415_v27 = vld [vmem:[%s5091_s12 + $0x350] sm:$0xff] }
 0x286   : > { %3368 = vst [vmem:[%s5343_s29 + $0x830] sm:$0xff] %v3367_v63  ;;  %3370 = vst [vmem:[%s5343_s29 + $0x838] sm:$0xff] %v3369_v0  ;;  %v3417_v28 = vld [vmem:[%s5091_s12 + $0x358] sm:$0xff]  ;;  %v3419_v29 = vld [vmem:[%s5091_s12 + $0x360] sm:$0xff] }
 0x287   : > { %3372 = vst [vmem:[%s5343_s29 + $0x840] sm:$0xff] %v3371_v1  ;;  %3374 = vst [vmem:[%s5343_s29 + $0x848] sm:$0xff] %v3373_v3  ;;  %v3421_v31 = vld [vmem:[%s5091_s12 + $0x368] sm:$0xff]  ;;  %v3423_v32 = vld [vmem:[%s5091_s12 + $0x370] sm:$0xff] }
 0x288   : > { %3376 = vst [vmem:[%s5343_s29 + $0x850] sm:$0xff] %v3375_v4  ;;  %3378 = vst [vmem:[%s5343_s29 + $0x858] sm:$0xff] %v3377_v5  ;;  %v3425_v33 = vld [vmem:[%s5091_s12 + $0x378] sm:$0xff]  ;;  %v3427_v34 = vld [vmem:[%s5091_s12 + $0x380] sm:$0xff] }
 0x289   : > { %3380 = vst [vmem:[%s5343_s29 + $0x860] sm:$0xff] %v3379_v6  ;;  %3382 = vst [vmem:[%s5343_s29 + $0x868] sm:$0xff] %v3381_v7  ;;  %v3429_v35 = vld [vmem:[%s5091_s12 + $0x388] sm:$0xff]  ;;  %v3431_v36 = vld [vmem:[%s5091_s12 + $0x390] sm:$0xff] }
 0x28a   : > { %3384 = vst [vmem:[%s5343_s29 + $0xb40] sm:$0xff] %v3383_v8  ;;  %3386 = vst [vmem:[%s5343_s29 + $0xb48] sm:$0xff] %v3385_v9  ;;  %v3433_v37 = vld [vmem:[%s5091_s12 + $0x398] sm:$0xff]  ;;  %v3435_v38 = vld [vmem:[%s5091_s12 + $0x3a0] sm:$0xff] }
 0x28b   : > { %3388 = vst [vmem:[%s5343_s29 + $0xb50] sm:$0xff] %v3387_v12  ;;  %3390 = vst [vmem:[%s5343_s29 + $0xb58] sm:$0xff] %v3389_v13  ;;  %v3437_v21 = vld [vmem:[%s5091_s12 + $0x3a8] sm:$0xff]  ;;  %v3439_v39 = vld [vmem:[%s5091_s12 + $0x3b0] sm:$0xff] }
 0x28c   : > { %3392 = vst [vmem:[%s5343_s29 + $0xb60] sm:$0xff] %v3391_v14  ;;  %3394 = vst [vmem:[%s5343_s29 + $0xb68] sm:$0xff] %v3393_v15  ;;  %v3441_v2 = vld [vmem:[%s5091_s12 + $0x3b8] sm:$0xff] }
 0x28d   : > { %3396 = vst [vmem:[%s5343_s29 + $0xb70] sm:$0xff] %v3395_v16  ;;  %3398 = vst [vmem:[%s5343_s29 + $0xb78] sm:$0xff] %v3397_v17 }
 0x28e   : > { %3400 = vst [vmem:[%s5343_s29 + $0xb80] sm:$0xff] %v3399_v18  ;;  %3402 = vst [vmem:[%s5343_s29 + $0xb88] sm:$0xff] %v3401_v19 }
 0x28f   : > { %3404 = vst [vmem:[%s5343_s29 + $0xb90] sm:$0xff] %v3403_v20  ;;  %3406 = vst [vmem:[%s5343_s29 + $0xb98] sm:$0xff] %v3405_v22 }
 0x290   : > { %3408 = vst [vmem:[%s5343_s29 + $0xba0] sm:$0xff] %v3407_v23  ;;  %3410 = vst [vmem:[%s5343_s29 + $0xba8] sm:$0xff] %v3409_v24 }
 0x291   : > { %3412 = vst [vmem:[%s5343_s29 + $0xbb0] sm:$0xff] %v3411_v25  ;;  %3414 = vst [vmem:[%s5343_s29 + $0xbb8] sm:$0xff] %v3413_v26 }
 0x292   : > { %3416 = vst [vmem:[%s5343_s29 + $0xbc0] sm:$0xff] %v3415_v27  ;;  %3418 = vst [vmem:[%s5343_s29 + $0xbc8] sm:$0xff] %v3417_v28 }
 0x293   : > { %3420 = vst [vmem:[%s5343_s29 + $0xbd0] sm:$0xff] %v3419_v29  ;;  %3422 = vst [vmem:[%s5343_s29 + $0xbd8] sm:$0xff] %v3421_v31 }
 0x294   : > { %3424 = vst [vmem:[%s5343_s29 + $0xbe0] sm:$0xff] %v3423_v32  ;;  %3426 = vst [vmem:[%s5343_s29 + $0xbe8] sm:$0xff] %v3425_v33 }
 0x295   : > { %3428 = vst [vmem:[%s5343_s29 + $0xbf0] sm:$0xff] %v3427_v34  ;;  %3430 = vst [vmem:[%s5343_s29 + $0xbf8] sm:$0xff] %v3429_v35 }
 0x296   : > { %3432 = vst [vmem:[%s5343_s29 + $0xc00] sm:$0xff] %v3431_v36  ;;  %3434 = vst [vmem:[%s5343_s29 + $0xc08] sm:$0xff] %v3433_v37 }
 0x297   : > { %3436 = vst [vmem:[%s5343_s29 + $0xc10] sm:$0xff] %v3435_v38  ;;  %3438 = vst [vmem:[%s5343_s29 + $0xc18] sm:$0xff] %v3437_v21 }
 0x298   : > { %3440 = vst [vmem:[%s5343_s29 + $0xc20] sm:$0xff] %v3439_v39  ;;  %3442 = vst [vmem:[%s5343_s29 + $0xc28] sm:$0xff] %v3441_v2 }
 0x299 PF: > { %p10_p10 = scmp.ge.s32.totalorder %s4227_s16, 6   ;;  %s5594_s12 = smov %s4183_s13 }
 0x29a   : > { %s5595_s13 = smov %s4238_s19  ;;  %s5596_s14 = smov %s4227_s16 }
 0x29b   :  { %12 = sbr.rel (!%p10_p10) target bundleno = 2 (0x2), region = 113 }

// kernel: cnn_age_forward.4
= control target key start
LH: loop header
LB: loop body
LE: loop exit
PB: predicated region body
PF: predicated region fallthrough
CT: control target
= control target key end

     0   :  { %s3406_s12 = smov 0   ;;  %s3408_s13 = smov 0   ;;  %s4242_s0 = inlined_call_operand.vmem [shape: bf16[32,896], index: 0, kind: input, shape index: {}]   ;;  %s4243_s1 = inlined_call_operand.vmem [shape: bf16[896,1024], index: 1, kind: input, shape index: {}]   ;;  %s4244_s2 = inlined_call_operand.vmem [shape: f32[32,1], index: 2, kind: input, shape index: {}]   ;;  %s4245_s3 = inlined_call_operand.vmem [shape: f32[32,1024], index: 3, kind: output, shape index: {}]  }
   0x1   :  { %s3410_s14 = smov 0  }
   0x2 LB: > { %s2659_s15 = sadd.s32 4294967295, %s3383_s14   ;;  %s3423_s16 = sadd.s32 1, %s3383_s14   ;;  %s3383_s14 = sphi %s3410_s14, %s4249_s14   ;;  %s3379_s13 = sphi %s3408_s13, %s4248_s13   ;;  %s3375_s12 = sphi %s3406_s12, %s4247_s12  }
   0x3   : > { %s38_s17 = ssub.s32 %s3383_s14, %s3423_s16  ;;  %s41_s18 = sadd.s32 1, %s3379_s13 }
   0x4   : > { %p39_p0 = scmp.eq.s32.totalorder %s38_s17, 0  ;;  %p48_p1 = scmp.ne.s32.totalorder %s3379_s13, %s3375_s12 }
   0x5   : > { %p49_p2 = scmp.eq.s32.totalorder %s3383_s14, 0  ;;  %p99_p3 = scmp.eq.s32.totalorder %s2659_s15, 1 }
   0x6   : > { %s3434_s19 = scalar_select %p39_p0, %s3379_s13, %s41_s18  }
   0x7   : > { %p50_p4 = por %p49_p2, %p48_p1  ;;  %p3436_p5 = por %p99_p3, %p48_p1 }
   0x8   : > { %p2662_p6 = scmp.ge.s32.totalorder %s3383_s14, 2 }
   0xa   : > { %127 = sbr.rel (%p2662_p6) target bundleno = 133 (0x85), region = 24 }
  0x11   : > { %130 = sbr.rel (!%p50_p4) target bundleno = 133 (0x85), region = 28  ;;  %s132_s21 = sand.u32 (%p50_p4), 1, %s3379_s13  }
  0x12   : > { %s2910_s22 = sshll.u32 (%p50_p4), %s3383_s14, 4  ;;  %s2976_s23 = smul.u32 (%p50_p4), 1792, %s132_s21 }
  0x13   : > { %s3446_s26 = scalar_lea.vmem (%p50_p4), %s4243_s1, %s2910_s22 }
  0x14   : > { %v150_v0 = vld [vmem:[%s3446_s26] sm:$0xff] (%p50_p4)  ;;  %v152_v1 = vld [vmem:[%s3446_s26 + $0x8] sm:$0xff] (%p50_p4)  ;;  %s3454_s27 = scalar_lea.vmem (%p50_p4), [#allocation2], %s2976_s23 }
  0x15   : > { %v154_v2 = vld [vmem:[%s3446_s26 + $0x20] sm:$0xff] (%p50_p4)  ;;  %v156_v3 = vld [vmem:[%s3446_s26 + $0x28] sm:$0xff] (%p50_p4)  ;;  %151 = vst [vmem:[%s3454_s27] sm:$0xff] (%p50_p4), %v150_v0  ;;  %153 = vst [vmem:[%s3454_s27 + $0x8] sm:$0xff] (%p50_p4), %v152_v1 }
  0x16   : > { %v158_v4 = vld [vmem:[%s3446_s26 + $0x40] sm:$0xff] (%p50_p4)  ;;  %v160_v5 = vld [vmem:[%s3446_s26 + $0x48] sm:$0xff] (%p50_p4)  ;;  %155 = vst [vmem:[%s3454_s27 + $0x10] sm:$0xff] (%p50_p4), %v154_v2  ;;  %157 = vst [vmem:[%s3454_s27 + $0x18] sm:$0xff] (%p50_p4), %v156_v3 }
  0x17   : > { %159 = vst [vmem:[%s3454_s27 + $0x20] sm:$0xff] (%p50_p4), %v158_v4  ;;  %161 = vst [vmem:[%s3454_s27 + $0x28] sm:$0xff] (%p50_p4), %v160_v5  ;;  %v162_v6 = vld [vmem:[%s3446_s26 + $0x60] sm:$0xff] (%p50_p4)  ;;  %v164_v7 = vld [vmem:[%s3446_s26 + $0x68] sm:$0xff] (%p50_p4) }
  0x18   : > { %v166_v8 = vld [vmem:[%s3446_s26 + $0x80] sm:$0xff]  ;;  %163 = vst [vmem:[%s3454_s27 + $0x30] sm:$0xff] %v162_v6  ;;  %165 = vst [vmem:[%s3454_s27 + $0x38] sm:$0xff] %v164_v7  ;;  %v168_v9 = vld [vmem:[%s3446_s26 + $0x88] sm:$0xff] }
  0x19   : > { %167 = vst [vmem:[%s3454_s27 + $0x40] sm:$0xff] %v166_v8  ;;  %v170_v10 = vld [vmem:[%s3446_s26 + $0xa0] sm:$0xff]  ;;  %v172_v11 = vld [vmem:[%s3446_s26 + $0xa8] sm:$0xff]  ;;  %169 = vst [vmem:[%s3454_s27 + $0x48] sm:$0xff] %v168_v9 }
  0x1a   : > { %171 = vst [vmem:[%s3454_s27 + $0x50] sm:$0xff] %v170_v10  ;;  %173 = vst [vmem:[%s3454_s27 + $0x58] sm:$0xff] %v172_v11  ;;  %v174_v12 = vld [vmem:[%s3446_s26 + $0xc0] sm:$0xff]  ;;  %v176_v13 = vld [vmem:[%s3446_s26 + $0xc8] sm:$0xff] }
  0x1b   : > { %v178_v14 = vld [vmem:[%s3446_s26 + $0xe0] sm:$0xff]  ;;  %175 = vst [vmem:[%s3454_s27 + $0x60] sm:$0xff] %v174_v12  ;;  %177 = vst [vmem:[%s3454_s27 + $0x68] sm:$0xff] %v176_v13  ;;  %v180_v15 = vld [vmem:[%s3446_s26 + $0xe8] sm:$0xff] }
  0x1c   : > { %179 = vst [vmem:[%s3454_s27 + $0x70] sm:$0xff] %v178_v14  ;;  %v182_v16 = vld [vmem:[%s3446_s26 + $0x100] sm:$0xff]  ;;  %v184_v17 = vld [vmem:[%s3446_s26 + $0x108] sm:$0xff]  ;;  %181 = vst [vmem:[%s3454_s27 + $0x78] sm:$0xff] %v180_v15 }
  0x1d   : > { %183 = vst [vmem:[%s3454_s27 + $0x80] sm:$0xff] %v182_v16  ;;  %185 = vst [vmem:[%s3454_s27 + $0x88] sm:$0xff] %v184_v17  ;;  %v186_v18 = vld [vmem:[%s3446_s26 + $0x120] sm:$0xff]  ;;  %v188_v19 = vld [vmem:[%s3446_s26 + $0x128] sm:$0xff] }
  0x1e   : > { %v190_v20 = vld [vmem:[%s3446_s26 + $0x140] sm:$0xff]  ;;  %187 = vst [vmem:[%s3454_s27 + $0x90] sm:$0xff] %v186_v18  ;;  %189 = vst [vmem:[%s3454_s27 + $0x98] sm:$0xff] %v188_v19  ;;  %v192_v21 = vld [vmem:[%s3446_s26 + $0x148] sm:$0xff] }
  0x1f   : > { %191 = vst [vmem:[%s3454_s27 + $0xa0] sm:$0xff] %v190_v20  ;;  %v194_v22 = vld [vmem:[%s3446_s26 + $0x160] sm:$0xff]  ;;  %v196_v23 = vld [vmem:[%s3446_s26 + $0x168] sm:$0xff]  ;;  %193 = vst [vmem:[%s3454_s27 + $0xa8] sm:$0xff] %v192_v21 }
  0x20   : > { %195 = vst [vmem:[%s3454_s27 + $0xb0] sm:$0xff] %v194_v22  ;;  %197 = vst [vmem:[%s3454_s27 + $0xb8] sm:$0xff] %v196_v23  ;;  %v198_v24 = vld [vmem:[%s3446_s26 + $0x180] sm:$0xff]  ;;  %v200_v25 = vld [vmem:[%s3446_s26 + $0x188] sm:$0xff] }
  0x21   : > { %v202_v26 = vld [vmem:[%s3446_s26 + $0x1a0] sm:$0xff]  ;;  %199 = vst [vmem:[%s3454_s27 + $0xc0] sm:$0xff] %v198_v24  ;;  %201 = vst [vmem:[%s3454_s27 + $0xc8] sm:$0xff] %v200_v25  ;;  %v204_v27 = vld [vmem:[%s3446_s26 + $0x1a8] sm:$0xff] }
  0x22   : > { %203 = vst [vmem:[%s3454_s27 + $0xd0] sm:$0xff] %v202_v26  ;;  %v206_v28 = vld [vmem:[%s3446_s26 + $0x1c0] sm:$0xff]  ;;  %v208_v29 = vld [vmem:[%s3446_s26 + $0x1c8] sm:$0xff]  ;;  %205 = vst [vmem:[%s3454_s27 + $0xd8] sm:$0xff] %v204_v27 }
  0x23   : > { %207 = vst [vmem:[%s3454_s27 + $0xe0] sm:$0xff] %v206_v28  ;;  %209 = vst [vmem:[%s3454_s27 + $0xe8] sm:$0xff] %v208_v29  ;;  %v210_v30 = vld [vmem:[%s3446_s26 + $0x1e0] sm:$0xff]  ;;  %v212_v31 = vld [vmem:[%s3446_s26 + $0x1e8] sm:$0xff] }
  0x24   : > { %v214_v32 = vld [vmem:[%s3446_s26 + $0x200] sm:$0xff]  ;;  %211 = vst [vmem:[%s3454_s27 + $0xf0] sm:$0xff] %v210_v30  ;;  %213 = vst [vmem:[%s3454_s27 + $0xf8] sm:$0xff] %v212_v31  ;;  %v216_v33 = vld [vmem:[%s3446_s26 + $0x208] sm:$0xff] }
  0x25   : > { %215 = vst [vmem:[%s3454_s27 + $0x100] sm:$0xff] %v214_v32  ;;  %v218_v34 = vld [vmem:[%s3446_s26 + $0x220] sm:$0xff]  ;;  %v220_v35 = vld [vmem:[%s3446_s26 + $0x228] sm:$0xff]  ;;  %217 = vst [vmem:[%s3454_s27 + $0x108] sm:$0xff] %v216_v33 }
  0x26   : > { %219 = vst [vmem:[%s3454_s27 + $0x110] sm:$0xff] %v218_v34  ;;  %221 = vst [vmem:[%s3454_s27 + $0x118] sm:$0xff] %v220_v35  ;;  %v222_v36 = vld [vmem:[%s3446_s26 + $0x240] sm:$0xff]  ;;  %v224_v37 = vld [vmem:[%s3446_s26 + $0x248] sm:$0xff] }
  0x27   : > { %v226_v38 = vld [vmem:[%s3446_s26 + $0x260] sm:$0xff]  ;;  %223 = vst [vmem:[%s3454_s27 + $0x120] sm:$0xff] %v222_v36  ;;  %225 = vst [vmem:[%s3454_s27 + $0x128] sm:$0xff] %v224_v37  ;;  %v228_v39 = vld [vmem:[%s3446_s26 + $0x268] sm:$0xff] }
  0x28   : > { %227 = vst [vmem:[%s3454_s27 + $0x130] sm:$0xff] %v226_v38  ;;  %v230_v40 = vld [vmem:[%s3446_s26 + $0x280] sm:$0xff]  ;;  %v232_v41 = vld [vmem:[%s3446_s26 + $0x288] sm:$0xff]  ;;  %229 = vst [vmem:[%s3454_s27 + $0x138] sm:$0xff] %v228_v39 }
  0x29   : > { %231 = vst [vmem:[%s3454_s27 + $0x140] sm:$0xff] %v230_v40  ;;  %233 = vst [vmem:[%s3454_s27 + $0x148] sm:$0xff] %v232_v41  ;;  %v234_v42 = vld [vmem:[%s3446_s26 + $0x2a0] sm:$0xff]  ;;  %v236_v43 = vld [vmem:[%s3446_s26 + $0x2a8] sm:$0xff] }
  0x2a   : > { %v238_v44 = vld [vmem:[%s3446_s26 + $0x2c0] sm:$0xff]  ;;  %235 = vst [vmem:[%s3454_s27 + $0x150] sm:$0xff] %v234_v42  ;;  %237 = vst [vmem:[%s3454_s27 + $0x158] sm:$0xff] %v236_v43  ;;  %v240_v45 = vld [vmem:[%s3446_s26 + $0x2c8] sm:$0xff] }
  0x2b   : > { %239 = vst [vmem:[%s3454_s27 + $0x160] sm:$0xff] %v238_v44  ;;  %v242_v46 = vld [vmem:[%s3446_s26 + $0x2e0] sm:$0xff]  ;;  %v244_v47 = vld [vmem:[%s3446_s26 + $0x2e8] sm:$0xff]  ;;  %241 = vst [vmem:[%s3454_s27 + $0x168] sm:$0xff] %v240_v45 }
  0x2c   : > { %243 = vst [vmem:[%s3454_s27 + $0x170] sm:$0xff] %v242_v46  ;;  %245 = vst [vmem:[%s3454_s27 + $0x178] sm:$0xff] %v244_v47  ;;  %v246_v48 = vld [vmem:[%s3446_s26 + $0x300] sm:$0xff]  ;;  %v248_v49 = vld [vmem:[%s3446_s26 + $0x308] sm:$0xff] }
  0x2d   : > { %v250_v50 = vld [vmem:[%s3446_s26 + $0x320] sm:$0xff]  ;;  %247 = vst [vmem:[%s3454_s27 + $0x180] sm:$0xff] %v246_v48  ;;  %249 = vst [vmem:[%s3454_s27 + $0x188] sm:$0xff] %v248_v49  ;;  %v252_v51 = vld [vmem:[%s3446_s26 + $0x328] sm:$0xff] }
  0x2e   : > { %251 = vst [vmem:[%s3454_s27 + $0x190] sm:$0xff] %v250_v50  ;;  %v254_v52 = vld [vmem:[%s3446_s26 + $0x340] sm:$0xff]  ;;  %v256_v53 = vld [vmem:[%s3446_s26 + $0x348] sm:$0xff]  ;;  %253 = vst [vmem:[%s3454_s27 + $0x198] sm:$0xff] %v252_v51 }
  0x2f   : > { %255 = vst [vmem:[%s3454_s27 + $0x1a0] sm:$0xff] %v254_v52  ;;  %257 = vst [vmem:[%s3454_s27 + $0x1a8] sm:$0xff] %v256_v53  ;;  %v258_v54 = vld [vmem:[%s3446_s26 + $0x360] sm:$0xff]  ;;  %v260_v55 = vld [vmem:[%s3446_s26 + $0x368] sm:$0xff] }
  0x30   : > { %v262_v56 = vld [vmem:[%s3446_s26 + $0x380] sm:$0xff]  ;;  %259 = vst [vmem:[%s3454_s27 + $0x1b0] sm:$0xff] %v258_v54  ;;  %261 = vst [vmem:[%s3454_s27 + $0x1b8] sm:$0xff] %v260_v55  ;;  %v264_v57 = vld [vmem:[%s3446_s26 + $0x388] sm:$0xff] }
  0x31   : > { %263 = vst [vmem:[%s3454_s27 + $0x1c0] sm:$0xff] %v262_v56  ;;  %v266_v58 = vld [vmem:[%s3446_s26 + $0x3a0] sm:$0xff]  ;;  %v268_v59 = vld [vmem:[%s3446_s26 + $0x3a8] sm:$0xff]  ;;  %265 = vst [vmem:[%s3454_s27 + $0x1c8] sm:$0xff] %v264_v57 }
  0x32   : > { %267 = vst [vmem:[%s3454_s27 + $0x1d0] sm:$0xff] %v266_v58  ;;  %269 = vst [vmem:[%s3454_s27 + $0x1d8] sm:$0xff] %v268_v59  ;;  %v270_v60 = vld [vmem:[%s3446_s26 + $0x3c0] sm:$0xff]  ;;  %v272_v61 = vld [vmem:[%s3446_s26 + $0x3c8] sm:$0xff] }
  0x33   : > { %v274_v62 = vld [vmem:[%s3446_s26 + $0x3e0] sm:$0xff]  ;;  %271 = vst [vmem:[%s3454_s27 + $0x1e0] sm:$0xff] %v270_v60  ;;  %273 = vst [vmem:[%s3454_s27 + $0x1e8] sm:$0xff] %v272_v61  ;;  %v276_v63 = vld [vmem:[%s3446_s26 + $0x3e8] sm:$0xff] }
  0x34   : > { %275 = vst [vmem:[%s3454_s27 + $0x1f0] sm:$0xff] %v274_v62  ;;  %v278_v0 = vld [vmem:[%s3446_s26 + $0x400] sm:$0xff]  ;;  %v280_v1 = vld [vmem:[%s3446_s26 + $0x408] sm:$0xff]  ;;  %277 = vst [vmem:[%s3454_s27 + $0x1f8] sm:$0xff] %v276_v63 }
  0x35   : > { %279 = vst [vmem:[%s3454_s27 + $0x200] sm:$0xff] %v278_v0  ;;  %281 = vst [vmem:[%s3454_s27 + $0x208] sm:$0xff] %v280_v1  ;;  %v282_v2 = vld [vmem:[%s3446_s26 + $0x420] sm:$0xff]  ;;  %v284_v3 = vld [vmem:[%s3446_s26 + $0x428] sm:$0xff] }
  0x36   : > { %v286_v4 = vld [vmem:[%s3446_s26 + $0x440] sm:$0xff]  ;;  %283 = vst [vmem:[%s3454_s27 + $0x210] sm:$0xff] %v282_v2  ;;  %285 = vst [vmem:[%s3454_s27 + $0x218] sm:$0xff] %v284_v3  ;;  %v288_v5 = vld [vmem:[%s3446_s26 + $0x448] sm:$0xff] }
  0x37   : > { %287 = vst [vmem:[%s3454_s27 + $0x220] sm:$0xff] %v286_v4  ;;  %v290_v6 = vld [vmem:[%s3446_s26 + $0x460] sm:$0xff]  ;;  %v292_v7 = vld [vmem:[%s3446_s26 + $0x468] sm:$0xff]  ;;  %289 = vst [vmem:[%s3454_s27 + $0x228] sm:$0xff] %v288_v5 }
  0x38   : > { %291 = vst [vmem:[%s3454_s27 + $0x230] sm:$0xff] %v290_v6  ;;  %293 = vst [vmem:[%s3454_s27 + $0x238] sm:$0xff] %v292_v7  ;;  %v294_v8 = vld [vmem:[%s3446_s26 + $0x480] sm:$0xff]  ;;  %v296_v9 = vld [vmem:[%s3446_s26 + $0x488] sm:$0xff] }
  0x39   : > { %v298_v10 = vld [vmem:[%s3446_s26 + $0x4a0] sm:$0xff]  ;;  %295 = vst [vmem:[%s3454_s27 + $0x240] sm:$0xff] %v294_v8  ;;  %297 = vst [vmem:[%s3454_s27 + $0x248] sm:$0xff] %v296_v9  ;;  %v300_v11 = vld [vmem:[%s3446_s26 + $0x4a8] sm:$0xff] }
  0x3a   : > { %299 = vst [vmem:[%s3454_s27 + $0x250] sm:$0xff] %v298_v10  ;;  %v302_v12 = vld [vmem:[%s3446_s26 + $0x4c0] sm:$0xff]  ;;  %v304_v13 = vld [vmem:[%s3446_s26 + $0x4c8] sm:$0xff]  ;;  %301 = vst [vmem:[%s3454_s27 + $0x258] sm:$0xff] %v300_v11 }
  0x3b   : > { %303 = vst [vmem:[%s3454_s27 + $0x260] sm:$0xff] %v302_v12  ;;  %305 = vst [vmem:[%s3454_s27 + $0x268] sm:$0xff] %v304_v13  ;;  %v306_v14 = vld [vmem:[%s3446_s26 + $0x4e0] sm:$0xff]  ;;  %v308_v15 = vld [vmem:[%s3446_s26 + $0x4e8] sm:$0xff] }
  0x3c   : > { %v310_v16 = vld [vmem:[%s3446_s26 + $0x500] sm:$0xff]  ;;  %307 = vst [vmem:[%s3454_s27 + $0x270] sm:$0xff] %v306_v14  ;;  %309 = vst [vmem:[%s3454_s27 + $0x278] sm:$0xff] %v308_v15  ;;  %v312_v17 = vld [vmem:[%s3446_s26 + $0x508] sm:$0xff] }
  0x3d   : > { %311 = vst [vmem:[%s3454_s27 + $0x280] sm:$0xff] %v310_v16  ;;  %v314_v18 = vld [vmem:[%s3446_s26 + $0x520] sm:$0xff]  ;;  %v316_v19 = vld [vmem:[%s3446_s26 + $0x528] sm:$0xff]  ;;  %313 = vst [vmem:[%s3454_s27 + $0x288] sm:$0xff] %v312_v17 }
  0x3e   : > { %315 = vst [vmem:[%s3454_s27 + $0x290] sm:$0xff] %v314_v18  ;;  %317 = vst [vmem:[%s3454_s27 + $0x298] sm:$0xff] %v316_v19  ;;  %v318_v20 = vld [vmem:[%s3446_s26 + $0x540] sm:$0xff]  ;;  %v320_v21 = vld [vmem:[%s3446_s26 + $0x548] sm:$0xff] }
  0x3f   : > { %v322_v22 = vld [vmem:[%s3446_s26 + $0x560] sm:$0xff]  ;;  %319 = vst [vmem:[%s3454_s27 + $0x2a0] sm:$0xff] %v318_v20  ;;  %321 = vst [vmem:[%s3454_s27 + $0x2a8] sm:$0xff] %v320_v21  ;;  %v324_v23 = vld [vmem:[%s3446_s26 + $0x568] sm:$0xff] }
  0x40   : > { %323 = vst [vmem:[%s3454_s27 + $0x2b0] sm:$0xff] %v322_v22  ;;  %v326_v24 = vld [vmem:[%s3446_s26 + $0x580] sm:$0xff]  ;;  %v328_v25 = vld [vmem:[%s3446_s26 + $0x588] sm:$0xff]  ;;  %325 = vst [vmem:[%s3454_s27 + $0x2b8] sm:$0xff] %v324_v23 }
  0x41   : > { %327 = vst [vmem:[%s3454_s27 + $0x2c0] sm:$0xff] %v326_v24  ;;  %329 = vst [vmem:[%s3454_s27 + $0x2c8] sm:$0xff] %v328_v25  ;;  %v330_v26 = vld [vmem:[%s3446_s26 + $0x5a0] sm:$0xff]  ;;  %v332_v27 = vld [vmem:[%s3446_s26 + $0x5a8] sm:$0xff] }
  0x42   : > { %v334_v28 = vld [vmem:[%s3446_s26 + $0x5c0] sm:$0xff]  ;;  %331 = vst [vmem:[%s3454_s27 + $0x2d0] sm:$0xff] %v330_v26  ;;  %333 = vst [vmem:[%s3454_s27 + $0x2d8] sm:$0xff] %v332_v27  ;;  %v336_v29 = vld [vmem:[%s3446_s26 + $0x5c8] sm:$0xff] }
  0x43   : > { %335 = vst [vmem:[%s3454_s27 + $0x2e0] sm:$0xff] %v334_v28  ;;  %v338_v30 = vld [vmem:[%s3446_s26 + $0x5e0] sm:$0xff]  ;;  %v340_v31 = vld [vmem:[%s3446_s26 + $0x5e8] sm:$0xff]  ;;  %337 = vst [vmem:[%s3454_s27 + $0x2e8] sm:$0xff] %v336_v29 }
  0x44   : > { %339 = vst [vmem:[%s3454_s27 + $0x2f0] sm:$0xff] %v338_v30  ;;  %341 = vst [vmem:[%s3454_s27 + $0x2f8] sm:$0xff] %v340_v31  ;;  %v342_v32 = vld [vmem:[%s3446_s26 + $0x600] sm:$0xff]  ;;  %v344_v33 = vld [vmem:[%s3446_s26 + $0x608] sm:$0xff] }
  0x45   : > { %v346_v34 = vld [vmem:[%s3446_s26 + $0x620] sm:$0xff]  ;;  %343 = vst [vmem:[%s3454_s27 + $0x300] sm:$0xff] %v342_v32  ;;  %345 = vst [vmem:[%s3454_s27 + $0x308] sm:$0xff] %v344_v33  ;;  %v348_v35 = vld [vmem:[%s3446_s26 + $0x628] sm:$0xff] }
  0x46   : > { %347 = vst [vmem:[%s3454_s27 + $0x310] sm:$0xff] %v346_v34  ;;  %v350_v36 = vld [vmem:[%s3446_s26 + $0x640] sm:$0xff]  ;;  %v352_v37 = vld [vmem:[%s3446_s26 + $0x648] sm:$0xff]  ;;  %349 = vst [vmem:[%s3454_s27 + $0x318] sm:$0xff] %v348_v35 }
  0x47   : > { %351 = vst [vmem:[%s3454_s27 + $0x320] sm:$0xff] %v350_v36  ;;  %353 = vst [vmem:[%s3454_s27 + $0x328] sm:$0xff] %v352_v37  ;;  %v354_v38 = vld [vmem:[%s3446_s26 + $0x660] sm:$0xff]  ;;  %v356_v39 = vld [vmem:[%s3446_s26 + $0x668] sm:$0xff] }
  0x48   : > { %v358_v40 = vld [vmem:[%s3446_s26 + $0x680] sm:$0xff]  ;;  %355 = vst [vmem:[%s3454_s27 + $0x330] sm:$0xff] %v354_v38  ;;  %357 = vst [vmem:[%s3454_s27 + $0x338] sm:$0xff] %v356_v39  ;;  %v360_v41 = vld [vmem:[%s3446_s26 + $0x688] sm:$0xff] }
  0x49   : > { %359 = vst [vmem:[%s3454_s27 + $0x340] sm:$0xff] %v358_v40  ;;  %v362_v42 = vld [vmem:[%s3446_s26 + $0x6a0] sm:$0xff]  ;;  %v364_v43 = vld [vmem:[%s3446_s26 + $0x6a8] sm:$0xff]  ;;  %361 = vst [vmem:[%s3454_s27 + $0x348] sm:$0xff] %v360_v41 }
  0x4a   : > { %363 = vst [vmem:[%s3454_s27 + $0x350] sm:$0xff] %v362_v42  ;;  %365 = vst [vmem:[%s3454_s27 + $0x358] sm:$0xff] %v364_v43  ;;  %v366_v44 = vld [vmem:[%s3446_s26 + $0x6c0] sm:$0xff]  ;;  %v368_v45 = vld [vmem:[%s3446_s26 + $0x6c8] sm:$0xff] }
  0x4b   : > { %v370_v46 = vld [vmem:[%s3446_s26 + $0x6e0] sm:$0xff]  ;;  %367 = vst [vmem:[%s3454_s27 + $0x360] sm:$0xff] %v366_v44  ;;  %369 = vst [vmem:[%s3454_s27 + $0x368] sm:$0xff] %v368_v45  ;;  %v372_v47 = vld [vmem:[%s3446_s26 + $0x6e8] sm:$0xff] }
  0x4c   : > { %371 = vst [vmem:[%s3454_s27 + $0x370] sm:$0xff] %v370_v46  ;;  %v374_v48 = vld [vmem:[%s3446_s26 + $0x700] sm:$0xff]  ;;  %v376_v49 = vld [vmem:[%s3446_s26 + $0x708] sm:$0xff]  ;;  %373 = vst [vmem:[%s3454_s27 + $0x378] sm:$0xff] %v372_v47 }
  0x4d   : > { %375 = vst [vmem:[%s3454_s27 + $0x380] sm:$0xff] %v374_v48  ;;  %377 = vst [vmem:[%s3454_s27 + $0x388] sm:$0xff] %v376_v49  ;;  %v378_v50 = vld [vmem:[%s3446_s26 + $0x720] sm:$0xff]  ;;  %v380_v51 = vld [vmem:[%s3446_s26 + $0x728] sm:$0xff] }
  0x4e   : > { %v382_v52 = vld [vmem:[%s3446_s26 + $0x740] sm:$0xff]  ;;  %379 = vst [vmem:[%s3454_s27 + $0x390] sm:$0xff] %v378_v50  ;;  %381 = vst [vmem:[%s3454_s27 + $0x398] sm:$0xff] %v380_v51  ;;  %v384_v53 = vld [vmem:[%s3446_s26 + $0x748] sm:$0xff] }
  0x4f   : > { %383 = vst [vmem:[%s3454_s27 + $0x3a0] sm:$0xff] %v382_v52  ;;  %v386_v54 = vld [vmem:[%s3446_s26 + $0x760] sm:$0xff]  ;;  %v388_v55 = vld [vmem:[%s3446_s26 + $0x768] sm:$0xff]  ;;  %385 = vst [vmem:[%s3454_s27 + $0x3a8] sm:$0xff] %v384_v53 }
  0x50   : > { %387 = vst [vmem:[%s3454_s27 + $0x3b0] sm:$0xff] %v386_v54  ;;  %389 = vst [vmem:[%s3454_s27 + $0x3b8] sm:$0xff] %v388_v55  ;;  %v390_v56 = vld [vmem:[%s3446_s26 + $0x780] sm:$0xff]  ;;  %v392_v57 = vld [vmem:[%s3446_s26 + $0x788] sm:$0xff] }
  0x51   : > { %v394_v58 = vld [vmem:[%s3446_s26 + $0x7a0] sm:$0xff]  ;;  %391 = vst [vmem:[%s3454_s27 + $0x3c0] sm:$0xff] %v390_v56  ;;  %393 = vst [vmem:[%s3454_s27 + $0x3c8] sm:$0xff] %v392_v57  ;;  %v396_v59 = vld [vmem:[%s3446_s26 + $0x7a8] sm:$0xff] }
  0x52   : > { %395 = vst [vmem:[%s3454_s27 + $0x3d0] sm:$0xff] %v394_v58  ;;  %v398_v60 = vld [vmem:[%s3446_s26 + $0x7c0] sm:$0xff]  ;;  %v400_v61 = vld [vmem:[%s3446_s26 + $0x7c8] sm:$0xff]  ;;  %397 = vst [vmem:[%s3454_s27 + $0x3d8] sm:$0xff] %v396_v59 }
  0x53   : > { %399 = vst [vmem:[%s3454_s27 + $0x3e0] sm:$0xff] %v398_v60  ;;  %401 = vst [vmem:[%s3454_s27 + $0x3e8] sm:$0xff] %v400_v61  ;;  %v402_v62 = vld [vmem:[%s3446_s26 + $0x7e0] sm:$0xff]  ;;  %v404_v63 = vld [vmem:[%s3446_s26 + $0x7e8] sm:$0xff] }
  0x54   : > { %v406_v0 = vld [vmem:[%s3446_s26 + $0x800] sm:$0xff]  ;;  %403 = vst [vmem:[%s3454_s27 + $0x3f0] sm:$0xff] %v402_v62  ;;  %405 = vst [vmem:[%s3454_s27 + $0x3f8] sm:$0xff] %v404_v63  ;;  %v408_v1 = vld [vmem:[%s3446_s26 + $0x808] sm:$0xff] }
  0x55   : > { %407 = vst [vmem:[%s3454_s27 + $0x400] sm:$0xff] %v406_v0  ;;  %v410_v2 = vld [vmem:[%s3446_s26 + $0x820] sm:$0xff]  ;;  %v412_v3 = vld [vmem:[%s3446_s26 + $0x828] sm:$0xff]  ;;  %409 = vst [vmem:[%s3454_s27 + $0x408] sm:$0xff] %v408_v1 }
  0x56   : > { %411 = vst [vmem:[%s3454_s27 + $0x410] sm:$0xff] %v410_v2  ;;  %413 = vst [vmem:[%s3454_s27 + $0x418] sm:$0xff] %v412_v3  ;;  %v414_v4 = vld [vmem:[%s3446_s26 + $0x840] sm:$0xff]  ;;  %v416_v5 = vld [vmem:[%s3446_s26 + $0x848] sm:$0xff] }
  0x57   : > { %v418_v6 = vld [vmem:[%s3446_s26 + $0x860] sm:$0xff]  ;;  %415 = vst [vmem:[%s3454_s27 + $0x420] sm:$0xff] %v414_v4  ;;  %417 = vst [vmem:[%s3454_s27 + $0x428] sm:$0xff] %v416_v5  ;;  %v420_v7 = vld [vmem:[%s3446_s26 + $0x868] sm:$0xff] }
  0x58   : > { %419 = vst [vmem:[%s3454_s27 + $0x430] sm:$0xff] %v418_v6  ;;  %v422_v8 = vld [vmem:[%s3446_s26 + $0x880] sm:$0xff]  ;;  %v424_v9 = vld [vmem:[%s3446_s26 + $0x888] sm:$0xff]  ;;  %421 = vst [vmem:[%s3454_s27 + $0x438] sm:$0xff] %v420_v7 }
  0x59   : > { %423 = vst [vmem:[%s3454_s27 + $0x440] sm:$0xff] %v422_v8  ;;  %425 = vst [vmem:[%s3454_s27 + $0x448] sm:$0xff] %v424_v9  ;;  %v426_v10 = vld [vmem:[%s3446_s26 + $0x8a0] sm:$0xff]  ;;  %v428_v11 = vld [vmem:[%s3446_s26 + $0x8a8] sm:$0xff] }
  0x5a   : > { %v430_v12 = vld [vmem:[%s3446_s26 + $0x8c0] sm:$0xff]  ;;  %427 = vst [vmem:[%s3454_s27 + $0x450] sm:$0xff] %v426_v10  ;;  %429 = vst [vmem:[%s3454_s27 + $0x458] sm:$0xff] %v428_v11  ;;  %v432_v13 = vld [vmem:[%s3446_s26 + $0x8c8] sm:$0xff] }
  0x5b   : > { %431 = vst [vmem:[%s3454_s27 + $0x460] sm:$0xff] %v430_v12  ;;  %v434_v14 = vld [vmem:[%s3446_s26 + $0x8e0] sm:$0xff]  ;;  %v436_v15 = vld [vmem:[%s3446_s26 + $0x8e8] sm:$0xff]  ;;  %433 = vst [vmem:[%s3454_s27 + $0x468] sm:$0xff] %v432_v13 }
  0x5c   : > { %435 = vst [vmem:[%s3454_s27 + $0x470] sm:$0xff] %v434_v14  ;;  %437 = vst [vmem:[%s3454_s27 + $0x478] sm:$0xff] %v436_v15  ;;  %v438_v16 = vld [vmem:[%s3446_s26 + $0x900] sm:$0xff]  ;;  %v440_v17 = vld [vmem:[%s3446_s26 + $0x908] sm:$0xff] }
  0x5d   : > { %v442_v18 = vld [vmem:[%s3446_s26 + $0x920] sm:$0xff]  ;;  %439 = vst [vmem:[%s3454_s27 + $0x480] sm:$0xff] %v438_v16  ;;  %441 = vst [vmem:[%s3454_s27 + $0x488] sm:$0xff] %v440_v17  ;;  %v444_v19 = vld [vmem:[%s3446_s26 + $0x928] sm:$0xff] }
  0x5e   : > { %443 = vst [vmem:[%s3454_s27 + $0x490] sm:$0xff] %v442_v18  ;;  %v446_v20 = vld [vmem:[%s3446_s26 + $0x940] sm:$0xff]  ;;  %v448_v21 = vld [vmem:[%s3446_s26 + $0x948] sm:$0xff]  ;;  %445 = vst [vmem:[%s3454_s27 + $0x498] sm:$0xff] %v444_v19 }
  0x5f   : > { %447 = vst [vmem:[%s3454_s27 + $0x4a0] sm:$0xff] %v446_v20  ;;  %449 = vst [vmem:[%s3454_s27 + $0x4a8] sm:$0xff] %v448_v21  ;;  %v450_v22 = vld [vmem:[%s3446_s26 + $0x960] sm:$0xff]  ;;  %v452_v23 = vld [vmem:[%s3446_s26 + $0x968] sm:$0xff] }
  0x60   : > { %v454_v24 = vld [vmem:[%s3446_s26 + $0x980] sm:$0xff]  ;;  %451 = vst [vmem:[%s3454_s27 + $0x4b0] sm:$0xff] %v450_v22  ;;  %453 = vst [vmem:[%s3454_s27 + $0x4b8] sm:$0xff] %v452_v23  ;;  %v456_v25 = vld [vmem:[%s3446_s26 + $0x988] sm:$0xff] }
  0x61   : > { %455 = vst [vmem:[%s3454_s27 + $0x4c0] sm:$0xff] %v454_v24  ;;  %v458_v26 = vld [vmem:[%s3446_s26 + $0x9a0] sm:$0xff]  ;;  %v460_v27 = vld [vmem:[%s3446_s26 + $0x9a8] sm:$0xff]  ;;  %457 = vst [vmem:[%s3454_s27 + $0x4c8] sm:$0xff] %v456_v25 }
  0x62   : > { %459 = vst [vmem:[%s3454_s27 + $0x4d0] sm:$0xff] %v458_v26  ;;  %461 = vst [vmem:[%s3454_s27 + $0x4d8] sm:$0xff] %v460_v27  ;;  %v462_v28 = vld [vmem:[%s3446_s26 + $0x9c0] sm:$0xff]  ;;  %v464_v29 = vld [vmem:[%s3446_s26 + $0x9c8] sm:$0xff] }
  0x63   : > { %v466_v30 = vld [vmem:[%s3446_s26 + $0x9e0] sm:$0xff]  ;;  %463 = vst [vmem:[%s3454_s27 + $0x4e0] sm:$0xff] %v462_v28  ;;  %465 = vst [vmem:[%s3454_s27 + $0x4e8] sm:$0xff] %v464_v29  ;;  %v468_v31 = vld [vmem:[%s3446_s26 + $0x9e8] sm:$0xff] }
  0x64   : > { %467 = vst [vmem:[%s3454_s27 + $0x4f0] sm:$0xff] %v466_v30  ;;  %v470_v32 = vld [vmem:[%s3446_s26 + $0xa00] sm:$0xff]  ;;  %v472_v33 = vld [vmem:[%s3446_s26 + $0xa08] sm:$0xff]  ;;  %469 = vst [vmem:[%s3454_s27 + $0x4f8] sm:$0xff] %v468_v31 }
  0x65   : > { %471 = vst [vmem:[%s3454_s27 + $0x500] sm:$0xff] %v470_v32  ;;  %473 = vst [vmem:[%s3454_s27 + $0x508] sm:$0xff] %v472_v33  ;;  %v474_v34 = vld [vmem:[%s3446_s26 + $0xa20] sm:$0xff]  ;;  %v476_v35 = vld [vmem:[%s3446_s26 + $0xa28] sm:$0xff] }
  0x66   : > { %v478_v36 = vld [vmem:[%s3446_s26 + $0xa40] sm:$0xff]  ;;  %475 = vst [vmem:[%s3454_s27 + $0x510] sm:$0xff] %v474_v34  ;;  %477 = vst [vmem:[%s3454_s27 + $0x518] sm:$0xff] %v476_v35  ;;  %v480_v37 = vld [vmem:[%s3446_s26 + $0xa48] sm:$0xff] }
  0x67   : > { %479 = vst [vmem:[%s3454_s27 + $0x520] sm:$0xff] %v478_v36  ;;  %v482_v38 = vld [vmem:[%s3446_s26 + $0xa60] sm:$0xff]  ;;  %v484_v39 = vld [vmem:[%s3446_s26 + $0xa68] sm:$0xff]  ;;  %481 = vst [vmem:[%s3454_s27 + $0x528] sm:$0xff] %v480_v37 }
  0x68   : > { %483 = vst [vmem:[%s3454_s27 + $0x530] sm:$0xff] %v482_v38  ;;  %485 = vst [vmem:[%s3454_s27 + $0x538] sm:$0xff] %v484_v39  ;;  %v486_v40 = vld [vmem:[%s3446_s26 + $0xa80] sm:$0xff]  ;;  %v488_v41 = vld [vmem:[%s3446_s26 + $0xa88] sm:$0xff] }
  0x69   : > { %v490_v42 = vld [vmem:[%s3446_s26 + $0xaa0] sm:$0xff]  ;;  %487 = vst [vmem:[%s3454_s27 + $0x540] sm:$0xff] %v486_v40  ;;  %489 = vst [vmem:[%s3454_s27 + $0x548] sm:$0xff] %v488_v41  ;;  %v492_v43 = vld [vmem:[%s3446_s26 + $0xaa8] sm:$0xff] }
  0x6a   : > { %491 = vst [vmem:[%s3454_s27 + $0x550] sm:$0xff] %v490_v42  ;;  %v494_v44 = vld [vmem:[%s3446_s26 + $0xac0] sm:$0xff]  ;;  %v496_v45 = vld [vmem:[%s3446_s26 + $0xac8] sm:$0xff]  ;;  %493 = vst [vmem:[%s3454_s27 + $0x558] sm:$0xff] %v492_v43 }
  0x6b   : > { %495 = vst [vmem:[%s3454_s27 + $0x560] sm:$0xff] %v494_v44  ;;  %497 = vst [vmem:[%s3454_s27 + $0x568] sm:$0xff] %v496_v45  ;;  %v498_v46 = vld [vmem:[%s3446_s26 + $0xae0] sm:$0xff]  ;;  %v500_v47 = vld [vmem:[%s3446_s26 + $0xae8] sm:$0xff] }
  0x6c   : > { %v502_v48 = vld [vmem:[%s3446_s26 + $0xb00] sm:$0xff]  ;;  %499 = vst [vmem:[%s3454_s27 + $0x570] sm:$0xff] %v498_v46  ;;  %501 = vst [vmem:[%s3454_s27 + $0x578] sm:$0xff] %v500_v47  ;;  %v504_v49 = vld [vmem:[%s3446_s26 + $0xb08] sm:$0xff] }
  0x6d   : > { %503 = vst [vmem:[%s3454_s27 + $0x580] sm:$0xff] %v502_v48  ;;  %v506_v50 = vld [vmem:[%s3446_s26 + $0xb20] sm:$0xff]  ;;  %v508_v51 = vld [vmem:[%s3446_s26 + $0xb28] sm:$0xff]  ;;  %505 = vst [vmem:[%s3454_s27 + $0x588] sm:$0xff] %v504_v49 }
  0x6e   : > { %507 = vst [vmem:[%s3454_s27 + $0x590] sm:$0xff] %v506_v50  ;;  %509 = vst [vmem:[%s3454_s27 + $0x598] sm:$0xff] %v508_v51  ;;  %v510_v52 = vld [vmem:[%s3446_s26 + $0xb40] sm:$0xff]  ;;  %v512_v53 = vld [vmem:[%s3446_s26 + $0xb48] sm:$0xff] }
  0x6f   : > { %v514_v54 = vld [vmem:[%s3446_s26 + $0xb60] sm:$0xff]  ;;  %511 = vst [vmem:[%s3454_s27 + $0x5a0] sm:$0xff] %v510_v52  ;;  %513 = vst [vmem:[%s3454_s27 + $0x5a8] sm:$0xff] %v512_v53  ;;  %v516_v55 = vld [vmem:[%s3446_s26 + $0xb68] sm:$0xff] }
  0x70   : > { %515 = vst [vmem:[%s3454_s27 + $0x5b0] sm:$0xff] %v514_v54  ;;  %v518_v56 = vld [vmem:[%s3446_s26 + $0xb80] sm:$0xff]  ;;  %v520_v57 = vld [vmem:[%s3446_s26 + $0xb88] sm:$0xff]  ;;  %517 = vst [vmem:[%s3454_s27 + $0x5b8] sm:$0xff] %v516_v55 }
  0x71   : > { %519 = vst [vmem:[%s3454_s27 + $0x5c0] sm:$0xff] %v518_v56  ;;  %521 = vst [vmem:[%s3454_s27 + $0x5c8] sm:$0xff] %v520_v57  ;;  %v522_v58 = vld [vmem:[%s3446_s26 + $0xba0] sm:$0xff]  ;;  %v524_v59 = vld [vmem:[%s3446_s26 + $0xba8] sm:$0xff] }
  0x72   : > { %v526_v60 = vld [vmem:[%s3446_s26 + $0xbc0] sm:$0xff]  ;;  %523 = vst [vmem:[%s3454_s27 + $0x5d0] sm:$0xff] %v522_v58  ;;  %525 = vst [vmem:[%s3454_s27 + $0x5d8] sm:$0xff] %v524_v59  ;;  %v528_v61 = vld [vmem:[%s3446_s26 + $0xbc8] sm:$0xff] }
  0x73   : > { %527 = vst [vmem:[%s3454_s27 + $0x5e0] sm:$0xff] %v526_v60  ;;  %v530_v62 = vld [vmem:[%s3446_s26 + $0xbe0] sm:$0xff]  ;;  %v532_v63 = vld [vmem:[%s3446_s26 + $0xbe8] sm:$0xff]  ;;  %529 = vst [vmem:[%s3454_s27 + $0x5e8] sm:$0xff] %v528_v61 }
  0x74   : > { %531 = vst [vmem:[%s3454_s27 + $0x5f0] sm:$0xff] %v530_v62  ;;  %533 = vst [vmem:[%s3454_s27 + $0x5f8] sm:$0xff] %v532_v63  ;;  %v534_v0 = vld [vmem:[%s3446_s26 + $0xc00] sm:$0xff]  ;;  %v536_v1 = vld [vmem:[%s3446_s26 + $0xc08] sm:$0xff] }
  0x75   : > { %v538_v2 = vld [vmem:[%s3446_s26 + $0xc20] sm:$0xff]  ;;  %535 = vst [vmem:[%s3454_s27 + $0x600] sm:$0xff] %v534_v0  ;;  %537 = vst [vmem:[%s3454_s27 + $0x608] sm:$0xff] %v536_v1  ;;  %v540_v3 = vld [vmem:[%s3446_s26 + $0xc28] sm:$0xff] }
  0x76   : > { %539 = vst [vmem:[%s3454_s27 + $0x610] sm:$0xff] %v538_v2  ;;  %v542_v4 = vld [vmem:[%s3446_s26 + $0xc40] sm:$0xff]  ;;  %v544_v5 = vld [vmem:[%s3446_s26 + $0xc48] sm:$0xff]  ;;  %541 = vst [vmem:[%s3454_s27 + $0x618] sm:$0xff] %v540_v3 }
  0x77   : > { %543 = vst [vmem:[%s3454_s27 + $0x620] sm:$0xff] %v542_v4  ;;  %545 = vst [vmem:[%s3454_s27 + $0x628] sm:$0xff] %v544_v5  ;;  %v546_v6 = vld [vmem:[%s3446_s26 + $0xc60] sm:$0xff]  ;;  %v548_v7 = vld [vmem:[%s3446_s26 + $0xc68] sm:$0xff] }
  0x78   : > { %v550_v8 = vld [vmem:[%s3446_s26 + $0xc80] sm:$0xff]  ;;  %547 = vst [vmem:[%s3454_s27 + $0x630] sm:$0xff] %v546_v6  ;;  %549 = vst [vmem:[%s3454_s27 + $0x638] sm:$0xff] %v548_v7  ;;  %v552_v9 = vld [vmem:[%s3446_s26 + $0xc88] sm:$0xff] }
  0x79   : > { %551 = vst [vmem:[%s3454_s27 + $0x640] sm:$0xff] %v550_v8  ;;  %v554_v10 = vld [vmem:[%s3446_s26 + $0xca0] sm:$0xff]  ;;  %v556_v11 = vld [vmem:[%s3446_s26 + $0xca8] sm:$0xff]  ;;  %553 = vst [vmem:[%s3454_s27 + $0x648] sm:$0xff] %v552_v9 }
  0x7a   : > { %555 = vst [vmem:[%s3454_s27 + $0x650] sm:$0xff] %v554_v10  ;;  %557 = vst [vmem:[%s3454_s27 + $0x658] sm:$0xff] %v556_v11  ;;  %v558_v12 = vld [vmem:[%s3446_s26 + $0xcc0] sm:$0xff]  ;;  %v560_v13 = vld [vmem:[%s3446_s26 + $0xcc8] sm:$0xff] }
  0x7b   : > { %v562_v14 = vld [vmem:[%s3446_s26 + $0xce0] sm:$0xff]  ;;  %559 = vst [vmem:[%s3454_s27 + $0x660] sm:$0xff] %v558_v12  ;;  %561 = vst [vmem:[%s3454_s27 + $0x668] sm:$0xff] %v560_v13  ;;  %v564_v15 = vld [vmem:[%s3446_s26 + $0xce8] sm:$0xff] }
  0x7c   : > { %563 = vst [vmem:[%s3454_s27 + $0x670] sm:$0xff] %v562_v14  ;;  %v566_v16 = vld [vmem:[%s3446_s26 + $0xd00] sm:$0xff]  ;;  %v568_v17 = vld [vmem:[%s3446_s26 + $0xd08] sm:$0xff]  ;;  %565 = vst [vmem:[%s3454_s27 + $0x678] sm:$0xff] %v564_v15 }
  0x7d   : > { %567 = vst [vmem:[%s3454_s27 + $0x680] sm:$0xff] %v566_v16  ;;  %569 = vst [vmem:[%s3454_s27 + $0x688] sm:$0xff] %v568_v17  ;;  %v570_v18 = vld [vmem:[%s3446_s26 + $0xd20] sm:$0xff]  ;;  %v572_v19 = vld [vmem:[%s3446_s26 + $0xd28] sm:$0xff] }
  0x7e   : > { %v574_v20 = vld [vmem:[%s3446_s26 + $0xd40] sm:$0xff]  ;;  %571 = vst [vmem:[%s3454_s27 + $0x690] sm:$0xff] %v570_v18  ;;  %573 = vst [vmem:[%s3454_s27 + $0x698] sm:$0xff] %v572_v19  ;;  %v576_v21 = vld [vmem:[%s3446_s26 + $0xd48] sm:$0xff] }
  0x7f   : > { %575 = vst [vmem:[%s3454_s27 + $0x6a0] sm:$0xff] %v574_v20  ;;  %v578_v22 = vld [vmem:[%s3446_s26 + $0xd60] sm:$0xff]  ;;  %v580_v23 = vld [vmem:[%s3446_s26 + $0xd68] sm:$0xff]  ;;  %577 = vst [vmem:[%s3454_s27 + $0x6a8] sm:$0xff] %v576_v21 }
  0x80   : > { %579 = vst [vmem:[%s3454_s27 + $0x6b0] sm:$0xff] %v578_v22  ;;  %581 = vst [vmem:[%s3454_s27 + $0x6b8] sm:$0xff] %v580_v23  ;;  %v582_v24 = vld [vmem:[%s3446_s26 + $0xd80] sm:$0xff]  ;;  %v584_v25 = vld [vmem:[%s3446_s26 + $0xd88] sm:$0xff] }
  0x81   : > { %v586_v26 = vld [vmem:[%s3446_s26 + $0xda0] sm:$0xff]  ;;  %583 = vst [vmem:[%s3454_s27 + $0x6c0] sm:$0xff] %v582_v24  ;;  %585 = vst [vmem:[%s3454_s27 + $0x6c8] sm:$0xff] %v584_v25  ;;  %v588_v27 = vld [vmem:[%s3446_s26 + $0xda8] sm:$0xff] }
  0x82   : > { %587 = vst [vmem:[%s3454_s27 + $0x6d0] sm:$0xff] %v586_v26  ;;  %v590_v28 = vld [vmem:[%s3446_s26 + $0xdc0] sm:$0xff]  ;;  %v592_v29 = vld [vmem:[%s3446_s26 + $0xdc8] sm:$0xff]  ;;  %589 = vst [vmem:[%s3454_s27 + $0x6d8] sm:$0xff] %v588_v27 }
  0x83   : > { %591 = vst [vmem:[%s3454_s27 + $0x6e0] sm:$0xff] %v590_v28  ;;  %593 = vst [vmem:[%s3454_s27 + $0x6e8] sm:$0xff] %v592_v29  ;;  %v594_v30 = vld [vmem:[%s3446_s26 + $0xde0] sm:$0xff]  ;;  %v596_v31 = vld [vmem:[%s3446_s26 + $0xde8] sm:$0xff] }
  0x84   : > { %595 = vst [vmem:[%s3454_s27 + $0x6f0] sm:$0xff] %v594_v30  ;;  %597 = vst [vmem:[%s3454_s27 + $0x6f8] sm:$0xff] %v596_v31 }
  0x85 PF: > { %p2665_p7 = scmp.ge.s32.totalorder %s3383_s14, 1  ;;  %p602_p8 = scmp.lt.s32.totalorder %s3383_s14, 3 }
  0x87   : > { %p603_p9 = pnand %p2665_p7, %p602_p8 }
  0x88   : > { %s609_s28 = sand.u32 (!%p603_p9), 1, %s3375_s12   ;;  %v3103_v32 = vld [vmem:[%s4242_s0 + $0x4] ss:$28 sps:$4 sm:$0xff] (!%p603_p9)  }
  0x89   : > { %606 = sbr.rel (%p603_p9) target bundleno = 602 (0x25a), region = 51  ;;  %2122 = vmatprep.mubr.bf16.mxu0 (!%p603_p9), %v3103_v32  ;;  %2334 = vmatprep.mubr.bf16.mxu1 (!%p603_p9), %v3103_v32 }
  0x8a   : > { %s2977_s29 = smul.u32 (!%p603_p9), 1792, %s609_s28 }
  0x8c   : > { %s3906_s5 = scalar_lea.vmem (!%p603_p9), [#allocation2], %s2977_s29 }
  0x8d   : > { %v3005_v33 = vld [vmem:[%s3906_s5 + $0x4] ss:$16 sps:$4 sm:$0xff] (!%p603_p9)   ;;  %v3007_v34 = vld [vmem:[%s3906_s5 + $0xc] ss:$16 sps:$4 sm:$0xff] (!%p603_p9)   ;;  %v3009_v35 = vld [vmem:[%s3906_s5] ss:$16 sps:$4 sm:$0xff] (!%p603_p9)  }
  0x8e   : > { %2090 = vmatprep.subr.bf16.mxu0 (!%p603_p9), %v3005_v33  ;;  %v3010_v36 = vld [vmem:[%s3906_s5 + $0x8] ss:$16 sps:$4 sm:$0xff] (!%p603_p9)   ;;  %2302 = vmatprep.subr.bf16.mxu1 (!%p603_p9), %v3007_v34  ;;  %v3011_v37 = vld [vmem:[%s3906_s5 + $0x24] ss:$16 sps:$4 sm:$0xff] (!%p603_p9)   ;;  %v3013_v38 = vld [vmem:[%s3906_s5 + $0x2c] ss:$16 sps:$4 sm:$0xff] (!%p603_p9)  }
  0x8f   : > { %2091 = vmatpush1.bf16.msra.mxu0 (!%p603_p9), %v3009_v35  ;;  %2303 = vmatpush1.bf16.msra.mxu1 (!%p603_p9), %v3010_v36  ;;  %v3015_v39 = vld [vmem:[%s3906_s5 + $0x20] ss:$16 sps:$4 sm:$0xff] (!%p603_p9)   ;;  %v3016_v40 = vld [vmem:[%s3906_s5 + $0x28] ss:$16 sps:$4 sm:$0xff] (!%p603_p9)   ;;  %v3017_v41 = vld [vmem:[%s3906_s5 + $0x44] ss:$16 sps:$4 sm:$0xff] (!%p603_p9)  }
  0x90   : > { %2092 = vmatprep.subr.bf16.mxu0 %v3011_v37  ;;  %2304 = vmatprep.subr.bf16.mxu1 %v3013_v38  ;;  %v3019_v42 = vld [vmem:[%s3906_s5 + $0x4c] ss:$16 sps:$4 sm:$0xff]   ;;  %v3021_v43 = vld [vmem:[%s3906_s5 + $0x40] ss:$16 sps:$4 sm:$0xff]   ;;  %v3022_v44 = vld [vmem:[%s3906_s5 + $0x48] ss:$16 sps:$4 sm:$0xff]  }
  0x91   : > { %v3023_v45 = vld [vmem:[%s3906_s5 + $0x64] ss:$16 sps:$4 sm:$0xff]   ;;  %v3025_v46 = vld [vmem:[%s3906_s5 + $0x6c] ss:$16 sps:$4 sm:$0xff]   ;;  %v3027_v47 = vld [vmem:[%s3906_s5 + $0x60] ss:$16 sps:$4 sm:$0xff]  }
  0x92   : > { %v3028_v48 = vld [vmem:[%s3906_s5 + $0x68] ss:$16 sps:$4 sm:$0xff]   ;;  %v3029_v49 = vld [vmem:[%s3906_s5 + $0x84] ss:$16 sps:$4 sm:$0xff]   ;;  %v3031_v50 = vld [vmem:[%s3906_s5 + $0x8c] ss:$16 sps:$4 sm:$0xff]  }
  0x93   : > { %2093 = vmatpush1.bf16.msra.mxu0 %v3015_v39  ;;  %2305 = vmatpush1.bf16.msra.mxu1 %v3016_v40  ;;  %v3033_v51 = vld [vmem:[%s3906_s5 + $0x80] ss:$16 sps:$4 sm:$0xff]   ;;  %v3034_v52 = vld [vmem:[%s3906_s5 + $0x88] ss:$16 sps:$4 sm:$0xff]   ;;  %v3035_v53 = vld [vmem:[%s3906_s5 + $0xa4] ss:$16 sps:$4 sm:$0xff]  }
  0x94   : > { %2094 = vmatprep.subr.bf16.mxu0 %v3017_v41  ;;  %2306 = vmatprep.subr.bf16.mxu1 %v3019_v42  ;;  %v3037_v54 = vld [vmem:[%s3906_s5 + $0xac] ss:$16 sps:$4 sm:$0xff]   ;;  %v3039_v55 = vld [vmem:[%s3906_s5 + $0xa0] ss:$16 sps:$4 sm:$0xff]   ;;  %v3040_v56 = vld [vmem:[%s3906_s5 + $0xa8] ss:$16 sps:$4 sm:$0xff]  }
  0x95   : > { %v3041_v57 = vld [vmem:[%s3906_s5 + $0xc4] ss:$16 sps:$4 sm:$0xff]   ;;  %v3043_v58 = vld [vmem:[%s3906_s5 + $0xcc] ss:$16 sps:$4 sm:$0xff]   ;;  %v3045_v59 = vld [vmem:[%s3906_s5 + $0xc0] ss:$16 sps:$4 sm:$0xff]  }
  0x96   : > { %v3046_v60 = vld [vmem:[%s3906_s5 + $0xc8] ss:$16 sps:$4 sm:$0xff]   ;;  %v3047_v61 = vld [vmem:[%s3906_s5 + $0xe4] ss:$16 sps:$4 sm:$0xff]   ;;  %v3049_v62 = vld [vmem:[%s3906_s5 + $0xec] ss:$16 sps:$4 sm:$0xff]  }
  0x97   : > { %2095 = vmatpush1.bf16.msra.mxu0 %v3021_v43  ;;  %2307 = vmatpush1.bf16.msra.mxu1 %v3022_v44  ;;  %v3051_v63 = vld [vmem:[%s3906_s5 + $0xe0] ss:$16 sps:$4 sm:$0xff]   ;;  %v3052_v0 = vld [vmem:[%s3906_s5 + $0xe8] ss:$16 sps:$4 sm:$0xff]   ;;  %v3053_v1 = vld [vmem:[%s3906_s5 + $0x104] ss:$16 sps:$4 sm:$0xff]  }
  0x98   : > { %2096 = vmatprep.subr.bf16.mxu0 %v3023_v45  ;;  %2308 = vmatprep.subr.bf16.mxu1 %v3025_v46  ;;  %v3055_v2 = vld [vmem:[%s3906_s5 + $0x10c] ss:$16 sps:$4 sm:$0xff]   ;;  %v3057_v3 = vld [vmem:[%s3906_s5 + $0x100] ss:$16 sps:$4 sm:$0xff]   ;;  %v3058_v4 = vld [vmem:[%s3906_s5 + $0x108] ss:$16 sps:$4 sm:$0xff]  }
  0x99   : > { %v3059_v5 = vld [vmem:[%s3906_s5 + $0x124] ss:$16 sps:$4 sm:$0xff]   ;;  %v3061_v6 = vld [vmem:[%s3906_s5 + $0x12c] ss:$16 sps:$4 sm:$0xff]   ;;  %v3063_v7 = vld [vmem:[%s3906_s5 + $0x120] ss:$16 sps:$4 sm:$0xff]  }
  0x9a   : > { %v3064_v8 = vld [vmem:[%s3906_s5 + $0x128] ss:$16 sps:$4 sm:$0xff]   ;;  %v3065_v9 = vld [vmem:[%s3906_s5 + $0x144] ss:$16 sps:$4 sm:$0xff]   ;;  %v3067_v10 = vld [vmem:[%s3906_s5 + $0x14c] ss:$16 sps:$4 sm:$0xff]  }
  0x9b   : > { %2097 = vmatpush1.bf16.msra.mxu0 %v3027_v47  ;;  %2309 = vmatpush1.bf16.msra.mxu1 %v3028_v48  ;;  %v3069_v11 = vld [vmem:[%s3906_s5 + $0x140] ss:$16 sps:$4 sm:$0xff]   ;;  %v3070_v12 = vld [vmem:[%s3906_s5 + $0x148] ss:$16 sps:$4 sm:$0xff]   ;;  %v3071_v13 = vld [vmem:[%s3906_s5 + $0x164] ss:$16 sps:$4 sm:$0xff]  }
  0x9c   : > { %2098 = vmatprep.subr.bf16.mxu0 %v3029_v49  ;;  %2310 = vmatprep.subr.bf16.mxu1 %v3031_v50  ;;  %v3073_v14 = vld [vmem:[%s3906_s5 + $0x16c] ss:$16 sps:$4 sm:$0xff]   ;;  %v3075_v15 = vld [vmem:[%s3906_s5 + $0x160] ss:$16 sps:$4 sm:$0xff]   ;;  %v3076_v16 = vld [vmem:[%s3906_s5 + $0x168] ss:$16 sps:$4 sm:$0xff]  }
  0x9d   : > { %v3077_v17 = vld [vmem:[%s3906_s5 + $0x184] ss:$16 sps:$4 sm:$0xff]   ;;  %v3079_v18 = vld [vmem:[%s3906_s5 + $0x18c] ss:$16 sps:$4 sm:$0xff]   ;;  %v3081_v19 = vld [vmem:[%s3906_s5 + $0x180] ss:$16 sps:$4 sm:$0xff]  }
  0x9e   : > { %v3082_v20 = vld [vmem:[%s3906_s5 + $0x188] ss:$16 sps:$4 sm:$0xff]   ;;  %v3083_v21 = vld [vmem:[%s3906_s5 + $0x1a4] ss:$16 sps:$4 sm:$0xff]   ;;  %v3085_v22 = vld [vmem:[%s3906_s5 + $0x1ac] ss:$16 sps:$4 sm:$0xff]  }
  0x9f   : > { %2099 = vmatpush1.bf16.msra.mxu0 %v3033_v51  ;;  %2311 = vmatpush1.bf16.msra.mxu1 %v3034_v52  ;;  %v3087_v23 = vld [vmem:[%s3906_s5 + $0x1a0] ss:$16 sps:$4 sm:$0xff]   ;;  %v3088_v24 = vld [vmem:[%s3906_s5 + $0x1a8] ss:$16 sps:$4 sm:$0xff]   ;;  %v3089_v25 = vld [vmem:[%s3906_s5 + $0x1c4] ss:$16 sps:$4 sm:$0xff]  }
  0xa0   : > { %2100 = vmatprep.subr.bf16.mxu0 %v3035_v53  ;;  %2312 = vmatprep.subr.bf16.mxu1 %v3037_v54  ;;  %v3091_v26 = vld [vmem:[%s3906_s5 + $0x1cc] ss:$16 sps:$4 sm:$0xff]   ;;  %v3093_v27 = vld [vmem:[%s3906_s5 + $0x1c0] ss:$16 sps:$4 sm:$0xff]   ;;  %v3094_v28 = vld [vmem:[%s3906_s5 + $0x1c8] ss:$16 sps:$4 sm:$0xff]  }
  0xa1   : > { %v3095_v29 = vld [vmem:[%s3906_s5 + $0x1e4] ss:$16 sps:$4 sm:$0xff]   ;;  %v3097_v30 = vld [vmem:[%s3906_s5 + $0x1ec] ss:$16 sps:$4 sm:$0xff]   ;;  %v3099_v31 = vld [vmem:[%s3906_s5 + $0x1e0] ss:$16 sps:$4 sm:$0xff]  }
  0xa2   : > { %v3100_v32 = vld [vmem:[%s3906_s5 + $0x1e8] ss:$16 sps:$4 sm:$0xff]   ;;  %v3106_v33 = vld [vmem:[%s3906_s5 + $0x204] ss:$16 sps:$4 sm:$0xff]   ;;  %v3109_v34 = vld [vmem:[%s3906_s5 + $0x20c] ss:$16 sps:$4 sm:$0xff]  }
  0xa3   : > { %2101 = vmatpush1.bf16.msra.mxu0 %v3039_v55  ;;  %2313 = vmatpush1.bf16.msra.mxu1 %v3040_v56  ;;  %v3101_v35 = vld [vmem:[%s4242_s0] ss:$28 sps:$4 sm:$0xff]   ;;  %v3107_v37 = vld [vmem:[%s3906_s5 + $0x208] ss:$16 sps:$4 sm:$0xff]   ;;  %v3112_v38 = vld [vmem:[%s3906_s5 + $0x224] ss:$16 sps:$4 sm:$0xff]  }
  0xa4   : > { %2102 = vmatprep.subr.bf16.mxu0 %v3041_v57  ;;  %2314 = vmatprep.subr.bf16.mxu1 %v3043_v58  ;;  %v3104_v36 = vld [vmem:[%s3906_s5 + $0x200] ss:$16 sps:$4 sm:$0xff]   ;;  %v3115_v39 = vld [vmem:[%s3906_s5 + $0x22c] ss:$16 sps:$4 sm:$0xff]   ;;  %v3113_v42 = vld [vmem:[%s3906_s5 + $0x228] ss:$16 sps:$4 sm:$0xff]  }
  0xa5   : > { %v3188_v40 = vld [vmem:[%s4242_s0 + $0x3c] ss:$28 sps:$4 sm:$0xff]   ;;  %v3110_v41 = vld [vmem:[%s3906_s5 + $0x220] ss:$16 sps:$4 sm:$0xff]   ;;  %v3118_v43 = vld [vmem:[%s3906_s5 + $0x244] ss:$16 sps:$4 sm:$0xff]  }
  0xa6   : > { %v3121_v44 = vld [vmem:[%s3906_s5 + $0x24c] ss:$16 sps:$4 sm:$0xff]   ;;  %v3196_v45 = vld [vmem:[%s4242_s0 + $0x38] ss:$28 sps:$4 sm:$0xff]   ;;  %v3116_v46 = vld [vmem:[%s3906_s5 + $0x240] ss:$16 sps:$4 sm:$0xff]  }
  0xa7   : > { %2103 = vmatpush1.bf16.msra.mxu0 %v3045_v59  ;;  %2315 = vmatpush1.bf16.msra.mxu1 %v3046_v60  ;;  %v3119_v47 = vld [vmem:[%s3906_s5 + $0x248] ss:$16 sps:$4 sm:$0xff]   ;;  %v3124_v48 = vld [vmem:[%s3906_s5 + $0x264] ss:$16 sps:$4 sm:$0xff]   ;;  %v3127_v49 = vld [vmem:[%s3906_s5 + $0x26c] ss:$16 sps:$4 sm:$0xff]  }
  0xa8   : > { %2104 = vmatprep.subr.bf16.mxu0 %v3047_v61  ;;  %2316 = vmatprep.subr.bf16.mxu1 %v3049_v62  ;;  %v3122_v50 = vld [vmem:[%s3906_s5 + $0x260] ss:$16 sps:$4 sm:$0xff]   ;;  %v3125_v51 = vld [vmem:[%s3906_s5 + $0x268] ss:$16 sps:$4 sm:$0xff]   ;;  %v3130_v52 = vld [vmem:[%s3906_s5 + $0x284] ss:$16 sps:$4 sm:$0xff]  }
  0xa9   : > { %v3133_v53 = vld [vmem:[%s3906_s5 + $0x28c] ss:$16 sps:$4 sm:$0xff]   ;;  %v3128_v54 = vld [vmem:[%s3906_s5 + $0x280] ss:$16 sps:$4 sm:$0xff]   ;;  %v3131_v55 = vld [vmem:[%s3906_s5 + $0x288] ss:$16 sps:$4 sm:$0xff]  }
  0xaa   : > { %v3136_v56 = vld [vmem:[%s3906_s5 + $0x2a4] ss:$16 sps:$4 sm:$0xff]   ;;  %v3139_v57 = vld [vmem:[%s3906_s5 + $0x2ac] ss:$16 sps:$4 sm:$0xff]   ;;  %v3134_v58 = vld [vmem:[%s3906_s5 + $0x2a0] ss:$16 sps:$4 sm:$0xff]  }
  0xab   : > { %2105 = vmatpush1.bf16.msra.mxu0 %v3051_v63  ;;  %2317 = vmatpush1.bf16.msra.mxu1 %v3052_v0  ;;  %v3137_v59 = vld [vmem:[%s3906_s5 + $0x2a8] ss:$16 sps:$4 sm:$0xff]   ;;  %v3142_v60 = vld [vmem:[%s3906_s5 + $0x2c4] ss:$16 sps:$4 sm:$0xff]   ;;  %v3145_v61 = vld [vmem:[%s3906_s5 + $0x2cc] ss:$16 sps:$4 sm:$0xff]  }
  0xac   : > { %2106 = vmatprep.subr.bf16.mxu0 %v3053_v1  ;;  %2318 = vmatprep.subr.bf16.mxu1 %v3055_v2  ;;  %v3205_v62 = vld [vmem:[%s4242_s0 + $0xc] ss:$28 sps:$4 sm:$0xff]   ;;  %v3140_v63 = vld [vmem:[%s3906_s5 + $0x2c0] ss:$16 sps:$4 sm:$0xff]   ;;  %v3148_v1 = vld [vmem:[%s3906_s5 + $0x2e4] ss:$16 sps:$4 sm:$0xff]  }
  0xad   : > { %v3143_v0 = vld [vmem:[%s3906_s5 + $0x2c8] ss:$16 sps:$4 sm:$0xff]   ;;  %v3151_v2 = vld [vmem:[%s3906_s5 + $0x2ec] ss:$16 sps:$4 sm:$0xff]  }
  0xaf   : > { %2107 = vmatpush1.bf16.msra.mxu0 %v3057_v3  ;;  %2319 = vmatpush1.bf16.msra.mxu1 %v3058_v4  ;;  %v3146_v3 = vld [vmem:[%s3906_s5 + $0x2e0] ss:$16 sps:$4 sm:$0xff]   ;;  %v3149_v4 = vld [vmem:[%s3906_s5 + $0x2e8] ss:$16 sps:$4 sm:$0xff]  }
  0xb0   : > { %2108 = vmatprep.subr.bf16.mxu0 %v3059_v5  ;;  %2320 = vmatprep.subr.bf16.mxu1 %v3061_v6  ;;  %v3154_v5 = vld [vmem:[%s3906_s5 + $0x304] ss:$16 sps:$4 sm:$0xff]   ;;  %v3157_v6 = vld [vmem:[%s3906_s5 + $0x30c] ss:$16 sps:$4 sm:$0xff]  }
  0xb3   : > { %2109 = vmatpush1.bf16.msra.mxu0 %v3063_v7  ;;  %2321 = vmatpush1.bf16.msra.mxu1 %v3064_v8  ;;  %v3152_v7 = vld [vmem:[%s3906_s5 + $0x300] ss:$16 sps:$4 sm:$0xff]   ;;  %v3155_v8 = vld [vmem:[%s3906_s5 + $0x308] ss:$16 sps:$4 sm:$0xff]  }
  0xb4   : > { %2110 = vmatprep.subr.bf16.mxu0 %v3065_v9  ;;  %2322 = vmatprep.subr.bf16.mxu1 %v3067_v10  ;;  %v3160_v9 = vld [vmem:[%s3906_s5 + $0x324] ss:$16 sps:$4 sm:$0xff]   ;;  %v3163_v10 = vld [vmem:[%s3906_s5 + $0x32c] ss:$16 sps:$4 sm:$0xff]  }
  0xb7   : > { %2111 = vmatpush1.bf16.msra.mxu0 %v3069_v11  ;;  %2323 = vmatpush1.bf16.msra.mxu1 %v3070_v12  ;;  %v3385_v11 = vmov 0   ;;  %v3158_v12 = vld [vmem:[%s3906_s5 + $0x320] ss:$16 sps:$4 sm:$0xff]  }
  0xb8   : > { %2112 = vmatprep.subr.bf16.mxu0 %v3071_v13  ;;  %2324 = vmatprep.subr.bf16.mxu1 %v3073_v14  ;;  %v3161_v13 = vld [vmem:[%s3906_s5 + $0x328] ss:$16 sps:$4 sm:$0xff]   ;;  %v3166_v14 = vld [vmem:[%s3906_s5 + $0x344] ss:$16 sps:$4 sm:$0xff]  }
  0xb9   : > { %3003 = vset.pattern.permute.xlu0 %v3385_v11  ;;  %3004 = vset.pattern.permute.xlu1 %v3385_v11 }
  0xbb   : > { %2113 = vmatpush1.bf16.msra.mxu0 %v3075_v15  ;;  %2325 = vmatpush1.bf16.msra.mxu1 %v3076_v16  ;;  %v3169_v15 = vld [vmem:[%s3906_s5 + $0x34c] ss:$16 sps:$4 sm:$0xff]   ;;  %v3164_v16 = vld [vmem:[%s3906_s5 + $0x340] ss:$16 sps:$4 sm:$0xff]  }
  0xbc   : > { %2114 = vmatprep.subr.bf16.mxu0 %v3077_v17  ;;  %2326 = vmatprep.subr.bf16.mxu1 %v3079_v18  ;;  %v3167_v17 = vld [vmem:[%s3906_s5 + $0x348] ss:$16 sps:$4 sm:$0xff]   ;;  %v3172_v18 = vld [vmem:[%s3906_s5 + $0x364] ss:$16 sps:$4 sm:$0xff]  }
  0xbf   : > { %2115 = vmatpush1.bf16.msra.mxu0 %v3081_v19  ;;  %2327 = vmatpush1.bf16.msra.mxu1 %v3082_v20  ;;  %v3175_v19 = vld [vmem:[%s3906_s5 + $0x36c] ss:$16 sps:$4 sm:$0xff]   ;;  %v3170_v20 = vld [vmem:[%s3906_s5 + $0x360] ss:$16 sps:$4 sm:$0xff]  }
  0xc0   : > { %2116 = vmatprep.subr.bf16.mxu0 %v3083_v21  ;;  %2328 = vmatprep.subr.bf16.mxu1 %v3085_v22  ;;  %v3173_v21 = vld [vmem:[%s3906_s5 + $0x368] ss:$16 sps:$4 sm:$0xff]   ;;  %v3178_v22 = vld [vmem:[%s3906_s5 + $0x384] ss:$16 sps:$4 sm:$0xff]  }
  0xc3   : > { %2117 = vmatpush1.bf16.msra.mxu0 %v3087_v23  ;;  %2329 = vmatpush1.bf16.msra.mxu1 %v3088_v24  ;;  %v3181_v23 = vld [vmem:[%s3906_s5 + $0x38c] ss:$16 sps:$4 sm:$0xff]   ;;  %v3176_v24 = vld [vmem:[%s3906_s5 + $0x380] ss:$16 sps:$4 sm:$0xff]  }
  0xc4   : > { %2118 = vmatprep.subr.bf16.mxu0 %v3089_v25  ;;  %2330 = vmatprep.subr.bf16.mxu1 %v3091_v26  ;;  %v3179_v25 = vld [vmem:[%s3906_s5 + $0x388] ss:$16 sps:$4 sm:$0xff]   ;;  %v3184_v26 = vld [vmem:[%s3906_s5 + $0x3a4] ss:$16 sps:$4 sm:$0xff]  }
  0xc7   : > { %2119 = vmatpush1.bf16.msra.mxu0 %v3093_v27  ;;  %2331 = vmatpush1.bf16.msra.mxu1 %v3094_v28  ;;  %v3187_v27 = vld [vmem:[%s3906_s5 + $0x3ac] ss:$16 sps:$4 sm:$0xff]   ;;  %v3182_v28 = vld [vmem:[%s3906_s5 + $0x3a0] ss:$16 sps:$4 sm:$0xff]  }
  0xc8   : > { %2120 = vmatprep.subr.bf16.mxu0 %v3095_v29  ;;  %2332 = vmatprep.subr.bf16.mxu1 %v3097_v30  ;;  %v3185_v29 = vld [vmem:[%s3906_s5 + $0x3a8] ss:$16 sps:$4 sm:$0xff]   ;;  %v3192_v30 = vld [vmem:[%s3906_s5 + $0x3c4] ss:$16 sps:$4 sm:$0xff]  }
  0xcb   : > { %2121 = vmatpush1.bf16.msra.mxu0 %v3099_v31  ;;  %2333 = vmatpush1.bf16.msra.mxu1 %v3100_v32  ;;  %v3195_v31 = vld [vmem:[%s3906_s5 + $0x3cc] ss:$16 sps:$4 sm:$0xff]   ;;  %v3190_v32 = vld [vmem:[%s3906_s5 + $0x3c0] ss:$16 sps:$4 sm:$0xff]  }
  0xcc   : > { %2143 = vmatprep.subr.bf16.mxu0 %v3106_v33  ;;  %2355 = vmatprep.subr.bf16.mxu1 %v3109_v34  ;;  %v3193_v33 = vld [vmem:[%s3906_s5 + $0x3c8] ss:$16 sps:$4 sm:$0xff]   ;;  %v3199_v34 = vld [vmem:[%s3906_s5 + $0x3e4] ss:$16 sps:$4 sm:$0xff]  }
  0xce   : > { %2123 = vmatmul.mubr.bf16.vlgmr.msra.gmra.mrb[0].mxu0 %v3101_v35  ;;  %2335 = vmatmul.mubr.bf16.vlgmr.msra.gmra.mrb[0].mxu1 %v3101_v35  ;;  %v3202_v35 = vld [vmem:[%s3906_s5 + $0x3ec] ss:$16 sps:$4 sm:$0xff]  }
  0xcf   : > { %2144 = vmatpush1.bf16.msra.mxu0 %v3104_v36  ;;  %2356 = vmatpush1.bf16.msra.mxu1 %v3107_v37  ;;  %v3197_v36 = vld [vmem:[%s3906_s5 + $0x3e0] ss:$16 sps:$4 sm:$0xff]   ;;  %v3200_v37 = vld [vmem:[%s3906_s5 + $0x3e8] ss:$16 sps:$4 sm:$0xff]  }
  0xd0   : > { %2145 = vmatprep.subr.bf16.mxu0 %v3112_v38  ;;  %2357 = vmatprep.subr.bf16.mxu1 %v3115_v39  ;;  %v3208_v38 = vld [vmem:[%s3906_s5 + $0x404] ss:$16 sps:$4 sm:$0xff]   ;;  %v3211_v39 = vld [vmem:[%s3906_s5 + $0x40c] ss:$16 sps:$4 sm:$0xff]  }
  0xd1   : > { %2132 = vmatprep.mubr.bf16.mxu0 %v3188_v40  ;;  %2344 = vmatprep.mubr.bf16.mxu1 %v3188_v40  ;;  %v3203_v40 = vld [vmem:[%s4242_s0 + $0x8] ss:$28 sps:$4 sm:$0xff]  }
  0xd3   : > { %2146 = vmatpush1.bf16.msra.mxu0 %v3110_v41  ;;  %2358 = vmatpush1.bf16.msra.mxu1 %v3113_v42  ;;  %v3206_v41 = vld [vmem:[%s3906_s5 + $0x400] ss:$16 sps:$4 sm:$0xff]   ;;  %v3209_v42 = vld [vmem:[%s3906_s5 + $0x408] ss:$16 sps:$4 sm:$0xff]  }
  0xd4   : > { %2147 = vmatprep.subr.bf16.mxu0 %v3118_v43  ;;  %2359 = vmatprep.subr.bf16.mxu1 %v3121_v44  ;;  %v3214_v43 = vld [vmem:[%s3906_s5 + $0x424] ss:$16 sps:$4 sm:$0xff]   ;;  %v3217_v44 = vld [vmem:[%s3906_s5 + $0x42c] ss:$16 sps:$4 sm:$0xff]  }
  0xd6   : > { %2133 = vmatmul.mubr.bf16.gmra.mrb[4].mxu0 %v3196_v45  ;;  %2345 = vmatmul.mubr.bf16.gmra.mrb[4].mxu1 %v3196_v45  ;;  %v3290_v45 = vld [vmem:[%s4242_s0 + $0x44] ss:$28 sps:$4 sm:$0xff]  }
  0xd7   : > { %2148 = vmatpush1.bf16.msra.mxu0 %v3116_v46  ;;  %2360 = vmatpush1.bf16.msra.mxu1 %v3119_v47  ;;  %v3212_v46 = vld [vmem:[%s3906_s5 + $0x420] ss:$16 sps:$4 sm:$0xff]   ;;  %v3215_v47 = vld [vmem:[%s3906_s5 + $0x428] ss:$16 sps:$4 sm:$0xff]  }
  0xd8   : > { %2149 = vmatprep.subr.bf16.mxu0 %v3124_v48  ;;  %2361 = vmatprep.subr.bf16.mxu1 %v3127_v49  ;;  %v3220_v48 = vld [vmem:[%s3906_s5 + $0x444] ss:$16 sps:$4 sm:$0xff]   ;;  %v3223_v49 = vld [vmem:[%s3906_s5 + $0x44c] ss:$16 sps:$4 sm:$0xff]  }
  0xd9   : > { %2175 = vmatprep.mubr.bf16.mxu0 %v3205_v62  ;;  %2387 = vmatprep.mubr.bf16.mxu1 %v3205_v62  ;;  %v3238_v62 = vld [vmem:[%s3906_s5 + $0x4a4] ss:$16 sps:$4 sm:$0xff]  }
  0xdb   : > { %2150 = vmatpush1.bf16.msra.mxu0 %v3122_v50  ;;  %2362 = vmatpush1.bf16.msra.mxu1 %v3125_v51  ;;  %v3218_v50 = vld [vmem:[%s3906_s5 + $0x440] ss:$16 sps:$4 sm:$0xff]   ;;  %v3221_v51 = vld [vmem:[%s3906_s5 + $0x448] ss:$16 sps:$4 sm:$0xff]  }
  0xdc   : > { %2151 = vmatprep.subr.bf16.mxu0 %v3130_v52  ;;  %2363 = vmatprep.subr.bf16.mxu1 %v3133_v53  ;;  %v3298_v52 = vld [vmem:[%s4242_s0 + $0x40] ss:$28 sps:$4 sm:$0xff]   ;;  %v3226_v53 = vld [vmem:[%s3906_s5 + $0x464] ss:$16 sps:$4 sm:$0xff]  }
  0xdf   : > { %2152 = vmatpush1.bf16.msra.mxu0 %v3128_v54  ;;  %2364 = vmatpush1.bf16.msra.mxu1 %v3131_v55  ;;  %v3229_v54 = vld [vmem:[%s3906_s5 + $0x46c] ss:$16 sps:$4 sm:$0xff]   ;;  %v3307_v55 = vld [vmem:[%s4242_s0 + $0x14] ss:$28 sps:$4 sm:$0xff]  }
  0xe0   : > { %2153 = vmatprep.subr.bf16.mxu0 %v3136_v56  ;;  %2365 = vmatprep.subr.bf16.mxu1 %v3139_v57  ;;  %v3224_v56 = vld [vmem:[%s3906_s5 + $0x460] ss:$16 sps:$4 sm:$0xff]   ;;  %v3227_v57 = vld [vmem:[%s3906_s5 + $0x468] ss:$16 sps:$4 sm:$0xff]  }
  0xe3   : > { %2154 = vmatpush1.bf16.msra.mxu0 %v3134_v58  ;;  %2366 = vmatpush1.bf16.msra.mxu1 %v3137_v59  ;;  %v3232_v58 = vld [vmem:[%s3906_s5 + $0x484] ss:$16 sps:$4 sm:$0xff]   ;;  %v3235_v59 = vld [vmem:[%s3906_s5 + $0x48c] ss:$16 sps:$4 sm:$0xff]  }
  0xe4   : > { %2155 = vmatprep.subr.bf16.mxu0 %v3142_v60  ;;  %2367 = vmatprep.subr.bf16.mxu1 %v3145_v61  ;;  %v3230_v60 = vld [vmem:[%s3906_s5 + $0x480] ss:$16 sps:$4 sm:$0xff]   ;;  %v3233_v61 = vld [vmem:[%s3906_s5 + $0x488] ss:$16 sps:$4 sm:$0xff]  }
  0xe7   : > { %2156 = vmatpush1.bf16.msra.mxu0 %v3140_v63  ;;  %2368 = vmatpush1.bf16.msra.mxu1 %v3143_v0  ;;  %v3241_v63 = vld [vmem:[%s3906_s5 + $0x4ac] ss:$16 sps:$4 sm:$0xff]   ;;  %v3236_v0 = vld [vmem:[%s3906_s5 + $0x4a0] ss:$16 sps:$4 sm:$0xff]  }
  0xe8   : > { %2157 = vmatprep.subr.bf16.mxu0 %v3148_v1  ;;  %2369 = vmatprep.subr.bf16.mxu1 %v3151_v2  ;;  %v3239_v1 = vld [vmem:[%s3906_s5 + $0x4a8] ss:$16 sps:$4 sm:$0xff]   ;;  %v3244_v2 = vld [vmem:[%s3906_s5 + $0x4c4] ss:$16 sps:$4 sm:$0xff]  }
  0xeb   : > { %2158 = vmatpush1.bf16.msra.mxu0 %v3146_v3  ;;  %2370 = vmatpush1.bf16.msra.mxu1 %v3149_v4  ;;  %v3247_v3 = vld [vmem:[%s3906_s5 + $0x4cc] ss:$16 sps:$4 sm:$0xff]   ;;  %v3242_v4 = vld [vmem:[%s3906_s5 + $0x4c0] ss:$16 sps:$4 sm:$0xff]  }
  0xec   : > { %2159 = vmatprep.subr.bf16.mxu0 %v3154_v5  ;;  %2371 = vmatprep.subr.bf16.mxu1 %v3157_v6  ;;  %v3245_v5 = vld [vmem:[%s3906_s5 + $0x4c8] ss:$16 sps:$4 sm:$0xff]   ;;  %v3250_v6 = vld [vmem:[%s3906_s5 + $0x4e4] ss:$16 sps:$4 sm:$0xff]  }
  0xef   : > { %2160 = vmatpush1.bf16.msra.mxu0 %v3152_v7  ;;  %2372 = vmatpush1.bf16.msra.mxu1 %v3155_v8  ;;  %v3253_v7 = vld [vmem:[%s3906_s5 + $0x4ec] ss:$16 sps:$4 sm:$0xff]   ;;  %v874_v8 = vld [vmem:[%s4244_s2] sm:$0xff] }
  0xf0   : > { %2161 = vmatprep.subr.bf16.mxu0 %v3160_v9  ;;  %2373 = vmatprep.subr.bf16.mxu1 %v3163_v10  ;;  %v3248_v9 = vld [vmem:[%s3906_s5 + $0x4e0] ss:$16 sps:$4 sm:$0xff]   ;;  %v3251_v10 = vld [vmem:[%s3906_s5 + $0x4e8] ss:$16 sps:$4 sm:$0xff]  }
  0xf1   : > { %880 = vperm.xlu0 %3003, %v874_v8   ;;  %v3338_v8 = vld [vmem:[%s3906_s5 + $0x6a0] ss:$16 sps:$4 sm:$0xff]  }
  0xf3   : > { %2162 = vmatpush1.bf16.msra.mxu0 %v3158_v12  ;;  %2374 = vmatpush1.bf16.msra.mxu1 %v3161_v13  ;;  %v876_v12 = vld [vmem:[%s4244_s2 + $0x10] sm:$0xff] }
  0xf4   : > { %2163 = vmatprep.subr.bf16.mxu0 %v3166_v14  ;;  %2375 = vmatprep.subr.bf16.mxu1 %v3169_v15  ;;  %v3256_v13 = vld [vmem:[%s3906_s5 + $0x504] ss:$16 sps:$4 sm:$0xff]   ;;  %v3259_v14 = vld [vmem:[%s3906_s5 + $0x50c] ss:$16 sps:$4 sm:$0xff]  }
  0xf5   : > { %890 = vperm.xlu1 %3004, %v876_v12   ;;  %v875_v15 = vld [vmem:[%s4244_s2 + $0x8] sm:$0xff] }
  0xf6   : > { %885 = vperm.xlu0 %3003, %v875_v15   ;;  %v3352_v12 = vld [vmem:[%s3906_s5 + $0x6cc] ss:$16 sps:$4 sm:$0xff]   ;;  %v3355_v15 = vld [vmem:[%s3906_s5 + $0x6e4] ss:$16 sps:$4 sm:$0xff]  }
  0xf7   : > { %2164 = vmatpush1.bf16.msra.mxu0 %v3164_v16  ;;  %2376 = vmatpush1.bf16.msra.mxu1 %v3167_v17  ;;  %v877_v16 = vld [vmem:[%s4244_s2 + $0x18] sm:$0xff]  ;;  %v3254_v17 = vld [vmem:[%s3906_s5 + $0x500] ss:$16 sps:$4 sm:$0xff]  }
  0xf8   : > { %2165 = vmatprep.subr.bf16.mxu0 %v3172_v18  ;;  %2377 = vmatprep.subr.bf16.mxu1 %v3175_v19  ;;  %v3257_v18 = vld [vmem:[%s3906_s5 + $0x508] ss:$16 sps:$4 sm:$0xff]   ;;  %v3262_v19 = vld [vmem:[%s3906_s5 + $0x524] ss:$16 sps:$4 sm:$0xff]  }
  0xf9   : > { %895 = vperm.xlu1 %3004, %v877_v16   ;;  %v3358_v16 = vld [vmem:[%s3906_s5 + $0x6ec] ss:$16 sps:$4 sm:$0xff]  }
  0xfb   : > { %2166 = vmatpush1.bf16.msra.mxu0 %v3170_v20  ;;  %2378 = vmatpush1.bf16.msra.mxu1 %v3173_v21  ;;  %v3265_v20 = vld [vmem:[%s3906_s5 + $0x52c] ss:$16 sps:$4 sm:$0xff]   ;;  %v3260_v21 = vld [vmem:[%s3906_s5 + $0x520] ss:$16 sps:$4 sm:$0xff]  }
  0xfc   : > { %2167 = vmatprep.subr.bf16.mxu0 %v3178_v22  ;;  %2379 = vmatprep.subr.bf16.mxu1 %v3181_v23  ;;  %v3263_v22 = vld [vmem:[%s3906_s5 + $0x528] ss:$16 sps:$4 sm:$0xff]   ;;  %v3268_v23 = vld [vmem:[%s3906_s5 + $0x544] ss:$16 sps:$4 sm:$0xff]  }
  0xff   : > { %2168 = vmatpush1.bf16.msra.mxu0 %v3176_v24  ;;  %2380 = vmatpush1.bf16.msra.mxu1 %v3179_v25  ;;  %v3271_v24 = vld [vmem:[%s3906_s5 + $0x54c] ss:$16 sps:$4 sm:$0xff]   ;;  %v3266_v25 = vld [vmem:[%s3906_s5 + $0x540] ss:$16 sps:$4 sm:$0xff]  }
 0x100   : > { %2169 = vmatprep.subr.bf16.mxu0 %v3184_v26  ;;  %2381 = vmatprep.subr.bf16.mxu1 %v3187_v27  ;;  %v3269_v26 = vld [vmem:[%s3906_s5 + $0x548] ss:$16 sps:$4 sm:$0xff]   ;;  %v3274_v27 = vld [vmem:[%s3906_s5 + $0x564] ss:$16 sps:$4 sm:$0xff]  }
 0x103   : > { %2170 = vmatpush1.bf16.msra.mxu0 %v3182_v28  ;;  %2382 = vmatpush1.bf16.msra.mxu1 %v3185_v29  ;;  %v3277_v28 = vld [vmem:[%s3906_s5 + $0x56c] ss:$16 sps:$4 sm:$0xff]   ;;  %v3272_v29 = vld [vmem:[%s3906_s5 + $0x560] ss:$16 sps:$4 sm:$0xff]  }
 0x104   : > { %2171 = vmatprep.subr.bf16.mxu0 %v3192_v30  ;;  %2383 = vmatprep.subr.bf16.mxu1 %v3195_v31  ;;  %v3275_v30 = vld [vmem:[%s3906_s5 + $0x568] ss:$16 sps:$4 sm:$0xff]   ;;  %v3280_v31 = vld [vmem:[%s3906_s5 + $0x584] ss:$16 sps:$4 sm:$0xff]  }
 0x107   : > { %2172 = vmatpush1.bf16.msra.mxu0 %v3190_v32  ;;  %2384 = vmatpush1.bf16.msra.mxu1 %v3193_v33  ;;  %v3283_v32 = vld [vmem:[%s3906_s5 + $0x58c] ss:$16 sps:$4 sm:$0xff]   ;;  %v3278_v33 = vld [vmem:[%s3906_s5 + $0x580] ss:$16 sps:$4 sm:$0xff]  }
 0x108   : > { %2173 = vmatprep.subr.bf16.mxu0 %v3199_v34  ;;  %2385 = vmatprep.subr.bf16.mxu1 %v3202_v35  ;;  %v3281_v34 = vld [vmem:[%s3906_s5 + $0x588] ss:$16 sps:$4 sm:$0xff]   ;;  %v3286_v35 = vld [vmem:[%s3906_s5 + $0x5a4] ss:$16 sps:$4 sm:$0xff]  }
 0x10b   : > { %2174 = vmatpush1.bf16.msra.mxu0 %v3197_v36  ;;  %2386 = vmatpush1.bf16.msra.mxu1 %v3200_v37  ;;  %v3289_v36 = vld [vmem:[%s3906_s5 + $0x5ac] ss:$16 sps:$4 sm:$0xff]   ;;  %v3284_v37 = vld [vmem:[%s3906_s5 + $0x5a0] ss:$16 sps:$4 sm:$0xff]  }
 0x10c   : > { %2196 = vmatprep.subr.bf16.mxu0 %v3208_v38  ;;  %2408 = vmatprep.subr.bf16.mxu1 %v3211_v39  ;;  %v3287_v38 = vld [vmem:[%s3906_s5 + $0x5a8] ss:$16 sps:$4 sm:$0xff]   ;;  %v3294_v39 = vld [vmem:[%s3906_s5 + $0x5c4] ss:$16 sps:$4 sm:$0xff]  }
 0x10e   : > { %2176 = vmatmul.mubr.bf16.vlgmr.msra.gmra.mrb[0].mxu0 %v3203_v40  ;;  %2388 = vmatmul.mubr.bf16.vlgmr.msra.gmra.mrb[0].mxu1 %v3203_v40  ;;  %v3297_v40 = vld [vmem:[%s3906_s5 + $0x5cc] ss:$16 sps:$4 sm:$0xff]  }
 0x10f   : > { %2197 = vmatpush1.bf16.msra.mxu0 %v3206_v41  ;;  %2409 = vmatpush1.bf16.msra.mxu1 %v3209_v42  ;;  %v3292_v41 = vld [vmem:[%s3906_s5 + $0x5c0] ss:$16 sps:$4 sm:$0xff]   ;;  %v3295_v42 = vld [vmem:[%s3906_s5 + $0x5c8] ss:$16 sps:$4 sm:$0xff]  }
 0x110   : > { %2198 = vmatprep.subr.bf16.mxu0 %v3214_v43  ;;  %2410 = vmatprep.subr.bf16.mxu1 %v3217_v44  ;;  %v3301_v43 = vld [vmem:[%s3906_s5 + $0x5e4] ss:$16 sps:$4 sm:$0xff]   ;;  %v3304_v44 = vld [vmem:[%s3906_s5 + $0x5ec] ss:$16 sps:$4 sm:$0xff]  }
 0x111   : > { %2185 = vmatprep.mubr.bf16.mxu0 %v3290_v45  ;;  %2397 = vmatprep.mubr.bf16.mxu1 %v3290_v45  ;;  %v3299_v45 = vld [vmem:[%s3906_s5 + $0x5e0] ss:$16 sps:$4 sm:$0xff]  }
 0x113   : > { %2199 = vmatpush1.bf16.msra.mxu0 %v3212_v46  ;;  %2411 = vmatpush1.bf16.msra.mxu1 %v3215_v47  ;;  %v3302_v46 = vld [vmem:[%s3906_s5 + $0x5e8] ss:$16 sps:$4 sm:$0xff]   ;;  %v3310_v47 = vld [vmem:[%s3906_s5 + $0x604] ss:$16 sps:$4 sm:$0xff]  }
 0x114   : > { %2200 = vmatprep.subr.bf16.mxu0 %v3220_v48  ;;  %2412 = vmatprep.subr.bf16.mxu1 %v3223_v49  ;;  %v3313_v48 = vld [vmem:[%s3906_s5 + $0x60c] ss:$16 sps:$4 sm:$0xff]  }
 0x115   : > { %v3305_v49 = vld [vmem:[%s4242_s0 + $0x10] ss:$28 sps:$4 sm:$0xff]  }
 0x116   : > { %2186 = vmatmul.mubr.bf16.gmra.mrb[4].mxu0 %v3298_v52  ;;  %2398 = vmatmul.mubr.bf16.gmra.mrb[4].mxu1 %v3298_v52  ;;  %v3316_v52 = vld [vmem:[%s3906_s5 + $0x624] ss:$16 sps:$4 sm:$0xff]  }
 0x117   : > { %2201 = vmatpush1.bf16.msra.mxu0 %v3218_v50  ;;  %2413 = vmatpush1.bf16.msra.mxu1 %v3221_v51  ;;  %v3308_v50 = vld [vmem:[%s3906_s5 + $0x600] ss:$16 sps:$4 sm:$0xff]   ;;  %v3311_v51 = vld [vmem:[%s3906_s5 + $0x608] ss:$16 sps:$4 sm:$0xff]  }
 0x118   : > { %2202 = vmatprep.subr.bf16.mxu0 %v3226_v53  ;;  %2414 = vmatprep.subr.bf16.mxu1 %v3229_v54  ;;  %v3319_v53 = vld [vmem:[%s3906_s5 + $0x62c] ss:$16 sps:$4 sm:$0xff]  }
 0x119   : > { %2228 = vmatprep.mubr.bf16.mxu0 %v3307_v55  ;;  %2440 = vmatprep.mubr.bf16.mxu1 %v3307_v55  ;;  %v3344_v54 = vld [vmem:[%s4242_s0 + $0x4c] ss:$28 sps:$4 sm:$0xff]   ;;  %v3314_v55 = vld [vmem:[%s3906_s5 + $0x620] ss:$16 sps:$4 sm:$0xff]  }
 0x11b   : > { %2203 = vmatpush1.bf16.msra.mxu0 %v3224_v56  ;;  %2415 = vmatpush1.bf16.msra.mxu1 %v3227_v57  ;;  %v3317_v56 = vld [vmem:[%s3906_s5 + $0x628] ss:$16 sps:$4 sm:$0xff]   ;;  %v3322_v57 = vld [vmem:[%s3906_s5 + $0x644] ss:$16 sps:$4 sm:$0xff]  }
 0x11c   : > { %2204 = vmatprep.subr.bf16.mxu0 %v3232_v58  ;;  %2416 = vmatprep.subr.bf16.mxu1 %v3235_v59  ;;  %v3325_v58 = vld [vmem:[%s3906_s5 + $0x64c] ss:$16 sps:$4 sm:$0xff]   ;;  %v3346_v59 = vld [vmem:[%s4242_s0 + $0x48] ss:$28 sps:$4 sm:$0xff]  }
 0x11f   : > { %2205 = vmatpush1.bf16.msra.mxu0 %v3230_v60  ;;  %2417 = vmatpush1.bf16.msra.mxu1 %v3233_v61  ;;  %v3320_v60 = vld [vmem:[%s3906_s5 + $0x640] ss:$16 sps:$4 sm:$0xff]   ;;  %v3323_v61 = vld [vmem:[%s3906_s5 + $0x648] ss:$16 sps:$4 sm:$0xff]  }
 0x120   : > { %2206 = vmatprep.subr.bf16.mxu0 %v3238_v62  ;;  %2418 = vmatprep.subr.bf16.mxu1 %v3241_v63  ;;  %v3328_v62 = vld [vmem:[%s3906_s5 + $0x664] ss:$16 sps:$4 sm:$0xff]   ;;  %v3331_v63 = vld [vmem:[%s3906_s5 + $0x66c] ss:$16 sps:$4 sm:$0xff]  }
 0x123   : > { %2207 = vmatpush1.bf16.msra.mxu0 %v3236_v0  ;;  %2419 = vmatpush1.bf16.msra.mxu1 %v3239_v1  ;;  %v3326_v0 = vld [vmem:[%s3906_s5 + $0x660] ss:$16 sps:$4 sm:$0xff]   ;;  %v3329_v1 = vld [vmem:[%s3906_s5 + $0x668] ss:$16 sps:$4 sm:$0xff]  }
 0x124   : > { %2208 = vmatprep.subr.bf16.mxu0 %v3244_v2  ;;  %2420 = vmatprep.subr.bf16.mxu1 %v3247_v3  ;;  %v3334_v2 = vld [vmem:[%s3906_s5 + $0x684] ss:$16 sps:$4 sm:$0xff]   ;;  %v3337_v3 = vld [vmem:[%s3906_s5 + $0x68c] ss:$16 sps:$4 sm:$0xff]  }
 0x127   : > { %2209 = vmatpush1.bf16.msra.mxu0 %v3242_v4  ;;  %2421 = vmatpush1.bf16.msra.mxu1 %v3245_v5  ;;  %v3332_v4 = vld [vmem:[%s3906_s5 + $0x680] ss:$16 sps:$4 sm:$0xff]   ;;  %v3335_v5 = vld [vmem:[%s3906_s5 + $0x688] ss:$16 sps:$4 sm:$0xff]  }
 0x128   : > { %2210 = vmatprep.subr.bf16.mxu0 %v3250_v6  ;;  %2422 = vmatprep.subr.bf16.mxu1 %v3253_v7  ;;  %v3340_v6 = vld [vmem:[%s3906_s5 + $0x6a4] ss:$16 sps:$4 sm:$0xff]   ;;  %v3343_v7 = vld [vmem:[%s3906_s5 + $0x6ac] ss:$16 sps:$4 sm:$0xff]  }
 0x12b   : > { %2211 = vmatpush1.bf16.msra.mxu0 %v3248_v9  ;;  %2423 = vmatpush1.bf16.msra.mxu1 %v3251_v10  ;;  %v3341_v9 = vld [vmem:[%s3906_s5 + $0x6a8] ss:$16 sps:$4 sm:$0xff]   ;;  %v3349_v10 = vld [vmem:[%s3906_s5 + $0x6c4] ss:$16 sps:$4 sm:$0xff]  }
 0x12c   : > { %2212 = vmatprep.subr.bf16.mxu0 %v3256_v13  ;;  %2424 = vmatprep.subr.bf16.mxu1 %v3259_v14  ;;  %v3347_v13 = vld [vmem:[%s3906_s5 + $0x6c0] ss:$16 sps:$4 sm:$0xff]   ;;  %v3350_v14 = vld [vmem:[%s3906_s5 + $0x6c8] ss:$16 sps:$4 sm:$0xff]  }
 0x12f   : > { %2213 = vmatpush1.bf16.msra.mxu0 %v3254_v17  ;;  %2425 = vmatpush1.bf16.msra.mxu1 %v3257_v18  ;;  %v3353_v17 = vld [vmem:[%s3906_s5 + $0x6e0] ss:$16 sps:$4 sm:$0xff]   ;;  %v3356_v18 = vld [vmem:[%s3906_s5 + $0x6e8] ss:$16 sps:$4 sm:$0xff]   ;;  %s2666_s5 = sshll.u32 %s609_s28, 7  ;;  %s2911_s28 = sshll.u32 (%p3436_p5), %s2659_s15, 5 }
 0x130   : > { %2214 = vmatprep.subr.bf16.mxu0 %v3262_v19  ;;  %2426 = vmatprep.subr.bf16.mxu1 %v3265_v20  ;;  %v3359_v19 = vld [vmem:[%s4242_s0 + $0x18] ss:$28 sps:$4 sm:$0xff]   ;;  %v3360_v20 = vld [vmem:[%s4242_s0 + $0x50] ss:$28 sps:$4 sm:$0xff]   ;;  %s4191_s12 = scalar_lea.vmem [#allocation3], %s2666_s5  ;;  %s2555_s20 = scalar_lea.vmem (%p3436_p5), %s4245_s3, %s2911_s28 }
 0x133   : > { %2215 = vmatpush1.bf16.msra.mxu0 %v3260_v21  ;;  %2427 = vmatpush1.bf16.msra.mxu1 %v3263_v22 }
 0x134   : > { %2216 = vmatprep.subr.bf16.mxu0 %v3268_v23  ;;  %2428 = vmatprep.subr.bf16.mxu1 %v3271_v24 }
 0x137   : > { %2217 = vmatpush1.bf16.msra.mxu0 %v3266_v25  ;;  %2429 = vmatpush1.bf16.msra.mxu1 %v3269_v26 }
 0x138   : > { %2218 = vmatprep.subr.bf16.mxu0 %v3274_v27  ;;  %2430 = vmatprep.subr.bf16.mxu1 %v3277_v28 }
 0x13b   : > { %2219 = vmatpush1.bf16.msra.mxu0 %v3272_v29  ;;  %2431 = vmatpush1.bf16.msra.mxu1 %v3275_v30 }
 0x13c   : > { %2220 = vmatprep.subr.bf16.mxu0 %v3280_v31  ;;  %2432 = vmatprep.subr.bf16.mxu1 %v3283_v32 }
 0x13f   : > { %2221 = vmatpush1.bf16.msra.mxu0 %v3278_v33  ;;  %2433 = vmatpush1.bf16.msra.mxu1 %v3281_v34 }
 0x140   : > { %2222 = vmatprep.subr.bf16.mxu0 %v3286_v35  ;;  %2434 = vmatprep.subr.bf16.mxu1 %v3289_v36 }
 0x143   : > { %2223 = vmatpush1.bf16.msra.mxu0 %v3284_v37  ;;  %2435 = vmatpush1.bf16.msra.mxu1 %v3287_v38 }
 0x144   : > { %2224 = vmatprep.subr.bf16.mxu0 %v3294_v39  ;;  %2436 = vmatprep.subr.bf16.mxu1 %v3297_v40 }
 0x147   : > { %2225 = vmatpush1.bf16.msra.mxu0 %v3292_v41  ;;  %2437 = vmatpush1.bf16.msra.mxu1 %v3295_v42 }
 0x148   : > { %2226 = vmatprep.subr.bf16.mxu0 %v3301_v43  ;;  %2438 = vmatprep.subr.bf16.mxu1 %v3304_v44 }
 0x14b   : > { %2227 = vmatpush1.bf16.msra.mxu0 %v3299_v45  ;;  %2439 = vmatpush1.bf16.msra.mxu1 %v3302_v46 }
 0x14c   : > { %2249 = vmatprep.subr.bf16.mxu0 %v3310_v47  ;;  %2461 = vmatprep.subr.bf16.mxu1 %v3313_v48 }
 0x14e   : > { %2229 = vmatmul.mubr.bf16.vlgmr.msra.gmra.mrb[0].mxu0 %v3305_v49  ;;  %2441 = vmatmul.mubr.bf16.vlgmr.msra.gmra.mrb[0].mxu1 %v3305_v49 }
 0x14f   : > { %2250 = vmatpush1.bf16.msra.mxu0 %v3308_v50  ;;  %2462 = vmatpush1.bf16.msra.mxu1 %v3311_v51 }
 0x150   : > { %2251 = vmatprep.subr.bf16.mxu0 %v3316_v52  ;;  %2463 = vmatprep.subr.bf16.mxu1 %v3319_v53 }
 0x151   : > { %2238 = vmatprep.mubr.bf16.mxu0 %v3344_v54  ;;  %2450 = vmatprep.mubr.bf16.mxu1 %v3344_v54 }
 0x153   : > { %2252 = vmatpush1.bf16.msra.mxu0 %v3314_v55  ;;  %2464 = vmatpush1.bf16.msra.mxu1 %v3317_v56 }
 0x154   : > { %2253 = vmatprep.subr.bf16.mxu0 %v3322_v57  ;;  %2465 = vmatprep.subr.bf16.mxu1 %v3325_v58 }
 0x156   : > { %2239 = vmatmul.mubr.bf16.gmra.mrb[4].mxu0 %v3346_v59  ;;  %2451 = vmatmul.mubr.bf16.gmra.mrb[4].mxu1 %v3346_v59 }
 0x157   : > { %2254 = vmatpush1.bf16.msra.mxu0 %v3320_v60  ;;  %2466 = vmatpush1.bf16.msra.mxu1 %v3323_v61 }
 0x158   : > { %2255 = vmatprep.subr.bf16.mxu0 %v3328_v62  ;;  %2467 = vmatprep.subr.bf16.mxu1 %v3331_v63 }
 0x159   : > { %2281 = vmatprep.mubr.bf16.mxu0 %v3385_v11  ;;  %2493 = vmatprep.mubr.bf16.mxu1 %v3385_v11 }
 0x15b   : > { %2256 = vmatpush1.bf16.msra.mxu0 %v3326_v0  ;;  %2468 = vmatpush1.bf16.msra.mxu1 %v3329_v1 }
 0x15c   : > { %2257 = vmatprep.subr.bf16.mxu0 %v3334_v2  ;;  %2469 = vmatprep.subr.bf16.mxu1 %v3337_v3 }
 0x15f   : > { %2258 = vmatpush1.bf16.msra.mxu0 %v3332_v4  ;;  %2470 = vmatpush1.bf16.msra.mxu1 %v3335_v5 }
 0x160   : > { %2259 = vmatprep.subr.bf16.mxu0 %v3340_v6  ;;  %2471 = vmatprep.subr.bf16.mxu1 %v3343_v7 }
 0x163   : > { %2260 = vmatpush1.bf16.msra.mxu0 %v3338_v8  ;;  %2472 = vmatpush1.bf16.msra.mxu1 %v3341_v9 }
 0x164   : > { %2261 = vmatprep.subr.bf16.mxu0 %v3349_v10  ;;  %2473 = vmatprep.subr.bf16.mxu1 %v3352_v12 }
 0x167   : > { %2262 = vmatpush1.bf16.msra.mxu0 %v3347_v13  ;;  %2474 = vmatpush1.bf16.msra.mxu1 %v3350_v14 }
 0x168   : > { %2263 = vmatprep.subr.bf16.mxu0 %v3355_v15  ;;  %2475 = vmatprep.subr.bf16.mxu1 %v3358_v16 }
 0x16b   : > { %2264 = vmatpush1.bf16.msra.mxu0 %v3353_v17  ;;  %2476 = vmatpush1.bf16.msra.mxu1 %v3356_v18 }
 0x16e   : > { %2282 = vmatmul.mubr.bf16.vlgmr.msra.gmra.mrb[0].mxu0 %v3359_v19  ;;  %2494 = vmatmul.mubr.bf16.vlgmr.msra.gmra.mrb[0].mxu1 %v3359_v19 }
 0x16f   : > { %2291 = vmatprep.mubr.bf16.mxu0 %v3385_v11  ;;  %2503 = vmatprep.mubr.bf16.mxu1 %v3385_v11 }
 0x170   : > { %v881_v21 = vpop.permute.xlu0 %880 }
 0x174   : > { %v891_v23 = vpop.permute.xlu1 %890 }
 0x175   : > { %v886_v22 = vpop.permute.xlu0 %885 }
 0x176   : > { %2292 = vmatmul.mubr.bf16.gmra.mrb[4].mxu0 %v3360_v20  ;;  %2504 = vmatmul.mubr.bf16.gmra.mrb[4].mxu1 %v3360_v20 }
 0x178   : > { %v896_v47 = vpop.permute.xlu1 %895 }
 0x241   : > { %v2283_v24 = vpop.f32.mrb[0].mxu0  ;;  %v2495_v25 = vpop.f32.mrb[0].mxu1 }
 0x242   : > { %v2912_v26 = vadd.f32 %v2283_v24, %v881_v21  ;;  %v2920_v27 = vadd.f32 %v2495_v25, %v881_v21  ;;  %v2285_v28 = vpop.f32.mrb[1].mxu0  ;;  %v2497_v29 = vpop.f32.mrb[1].mxu1 }
 0x243   : > { %v2913_v30 = vadd.f32 %v2285_v28, %v881_v21  ;;  %v2921_v31 = vadd.f32 %v2497_v29, %v881_v21  ;;  %v2287_v11 = vpop.f32.mrb[2].mxu0  ;;  %v2499_v32 = vpop.f32.mrb[2].mxu1 }
 0x244   : > { %v2514_v33 = vmax.f32 %v2912_v26, 0.0  ;;  %v2516_v34 = vmax.f32 %v2920_v27, 0.0  ;;  %v2914_v35 = vadd.f32 %v2287_v11, %v886_v22  ;;  %v2922_v36 = vadd.f32 %v2499_v32, %v886_v22  ;;  %v2289_v37 = vpop.f32.mrb[3].mxu0  ;;  %v2501_v38 = vpop.f32.mrb[3].mxu1 }
 0x245   : > { %v2515_v39 = vmax.f32 %v2913_v30, 0.0  ;;  %v2517_v40 = vmax.f32 %v2921_v31, 0.0  ;;  %v2915_v41 = vadd.f32 %v2289_v37, %v886_v22  ;;  %v2923_v42 = vadd.f32 %v2501_v38, %v886_v22 }
 0x246   : > { %2530 = vst [vmem:[%s4191_s12] sm:$0xff] %v2514_v33  ;;  %2532 = vst [vmem:[%s4191_s12 + $0x10] sm:$0xff] %v2516_v34  ;;  %v2518_v43 = vmax.f32 %v2914_v35, 0.0  ;;  %v2520_v44 = vmax.f32 %v2922_v36, 0.0 }
 0x247   : > { %2531 = vst [vmem:[%s4191_s12 + $0x8] sm:$0xff] %v2515_v39  ;;  %2533 = vst [vmem:[%s4191_s12 + $0x18] sm:$0xff] %v2517_v40  ;;  %v2519_v45 = vmax.f32 %v2915_v41, 0.0  ;;  %v2521_v46 = vmax.f32 %v2923_v42, 0.0 }
 0x248   : > { %2534 = vst [vmem:[%s4191_s12 + $0x20] sm:$0xff] %v2518_v43  ;;  %2536 = vst [vmem:[%s4191_s12 + $0x30] sm:$0xff] %v2520_v44 }
 0x249   : > { %2535 = vst [vmem:[%s4191_s12 + $0x28] sm:$0xff] %v2519_v45  ;;  %2537 = vst [vmem:[%s4191_s12 + $0x38] sm:$0xff] %v2521_v46  ;;  %v2293_v48 = vpop.f32.mrb[4].mxu0  ;;  %v2505_v49 = vpop.f32.mrb[4].mxu1 }
 0x24a   : > { %v2916_v50 = vadd.f32 %v2293_v48, %v891_v23  ;;  %v2924_v51 = vadd.f32 %v2505_v49, %v891_v23  ;;  %v2295_v52 = vpop.f32.mrb[5].mxu0  ;;  %v2507_v53 = vpop.f32.mrb[5].mxu1 }
 0x24b   : > { %v2917_v54 = vadd.f32 %v2295_v52, %v891_v23  ;;  %v2925_v55 = vadd.f32 %v2507_v53, %v891_v23  ;;  %v2297_v56 = vpop.f32.mrb[6].mxu0  ;;  %v2509_v57 = vpop.f32.mrb[6].mxu1  ;;  %2552 = sbr.rel (!%p3436_p5) target bundleno = 602 (0x25a), region = 59 }
 0x24c   : > { %v2522_v58 = vmax.f32 %v2916_v50, 0.0  ;;  %v2524_v59 = vmax.f32 %v2924_v51, 0.0  ;;  %v2918_v60 = vadd.f32 %v2297_v56, %v896_v47  ;;  %v2926_v61 = vadd.f32 %v2509_v57, %v896_v47  ;;  %v2299_v62 = vpop.f32.mrb[7].mxu0  ;;  %v2511_v63 = vpop.f32.mrb[7].mxu1 }
 0x24d   : > { %v2523_v0 = vmax.f32 %v2917_v54, 0.0  ;;  %v2525_v1 = vmax.f32 %v2925_v55, 0.0  ;;  %v2919_v2 = vadd.f32 %v2299_v62, %v896_v47  ;;  %v2927_v3 = vadd.f32 %v2511_v63, %v896_v47  ;;  %v2568_v8 = vld [vmem:[%s4191_s12] sm:$0xff] (%p3436_p5)  ;;  %v2572_v10 = vld [vmem:[%s4191_s12 + $0x10] sm:$0xff] (%p3436_p5) }
 0x24e   : > { %2538 = vst [vmem:[%s4191_s12 + $0x40] sm:$0xff] %v2522_v58  ;;  %2540 = vst [vmem:[%s4191_s12 + $0x50] sm:$0xff] %v2524_v59  ;;  %v2526_v4 = vmax.f32 %v2918_v60, 0.0  ;;  %v2528_v5 = vmax.f32 %v2926_v61, 0.0  ;;  %v2570_v9 = vld [vmem:[%s4191_s12 + $0x8] sm:$0xff] (%p3436_p5)  ;;  %v2574_v12 = vld [vmem:[%s4191_s12 + $0x18] sm:$0xff] (%p3436_p5) }
 0x24f   : > { %2539 = vst [vmem:[%s4191_s12 + $0x48] sm:$0xff] %v2523_v0  ;;  %2541 = vst [vmem:[%s4191_s12 + $0x58] sm:$0xff] %v2525_v1  ;;  %v2527_v6 = vmax.f32 %v2919_v2, 0.0  ;;  %v2529_v7 = vmax.f32 %v2927_v3, 0.0  ;;  %v2576_v13 = vld [vmem:[%s4191_s12 + $0x20] sm:$0xff] (%p3436_p5)  ;;  %v2580_v15 = vld [vmem:[%s4191_s12 + $0x30] sm:$0xff] (%p3436_p5) }
 0x250   : > { %2542 = vst [vmem:[%s4191_s12 + $0x60] sm:$0xff] %v2526_v4  ;;  %2544 = vst [vmem:[%s4191_s12 + $0x70] sm:$0xff] %v2528_v5  ;;  %v2578_v14 = vld [vmem:[%s4191_s12 + $0x28] sm:$0xff] (%p3436_p5)  ;;  %v2582_v16 = vld [vmem:[%s4191_s12 + $0x38] sm:$0xff] (%p3436_p5) }
 0x251   : > { %2543 = vst [vmem:[%s4191_s12 + $0x68] sm:$0xff] %v2527_v6  ;;  %2545 = vst [vmem:[%s4191_s12 + $0x78] sm:$0xff] %v2529_v7 }
 0x252   : > { %2569 = vst [vmem:[%s2555_s20] sm:$0xff] %v2568_v8  ;;  %2571 = vst [vmem:[%s2555_s20 + $0x8] sm:$0xff] %v2570_v9 }
 0x253   : > { %2573 = vst [vmem:[%s2555_s20 + $0x10] sm:$0xff] %v2572_v10  ;;  %2575 = vst [vmem:[%s2555_s20 + $0x18] sm:$0xff] %v2574_v12 }
 0x254   : > { %2577 = vst [vmem:[%s2555_s20 + $0x40] sm:$0xff] %v2576_v13  ;;  %2579 = vst [vmem:[%s2555_s20 + $0x48] sm:$0xff] %v2578_v14 }
 0x255   : > { %v2584_v17 = vld [vmem:[%s4191_s12 + $0x40] sm:$0xff]  ;;  %2581 = vst [vmem:[%s2555_s20 + $0x50] sm:$0xff] %v2580_v15  ;;  %2583 = vst [vmem:[%s2555_s20 + $0x58] sm:$0xff] %v2582_v16  ;;  %v2588_v19 = vld [vmem:[%s4191_s12 + $0x50] sm:$0xff] }
 0x256   : > { %2585 = vst [vmem:[%s2555_s20 + $0x80] sm:$0xff] %v2584_v17  ;;  %v2586_v18 = vld [vmem:[%s4191_s12 + $0x48] sm:$0xff]  ;;  %v2590_v20 = vld [vmem:[%s4191_s12 + $0x58] sm:$0xff]  ;;  %2589 = vst [vmem:[%s2555_s20 + $0x90] sm:$0xff] %v2588_v19 }
 0x257   : > { %2587 = vst [vmem:[%s2555_s20 + $0x88] sm:$0xff] %v2586_v18  ;;  %2591 = vst [vmem:[%s2555_s20 + $0x98] sm:$0xff] %v2590_v20  ;;  %v2592_v21 = vld [vmem:[%s4191_s12 + $0x60] sm:$0xff]  ;;  %v2596_v23 = vld [vmem:[%s4191_s12 + $0x70] sm:$0xff] }
 0x258   : > { %v2594_v22 = vld [vmem:[%s4191_s12 + $0x68] sm:$0xff]  ;;  %2593 = vst [vmem:[%s2555_s20 + $0xc0] sm:$0xff] %v2592_v21  ;;  %2597 = vst [vmem:[%s2555_s20 + $0xd0] sm:$0xff] %v2596_v23  ;;  %v2598_v24 = vld [vmem:[%s4191_s12 + $0x78] sm:$0xff] }
 0x259   : > { %2595 = vst [vmem:[%s2555_s20 + $0xc8] sm:$0xff] %v2594_v22  ;;  %2599 = vst [vmem:[%s2555_s20 + $0xd8] sm:$0xff] %v2598_v24 }
 0x25a PF: > { %p10_p10 = scmp.ge.s32.totalorder %s3423_s16, 4   ;;  %s4247_s12 = smov %s3379_s13 }
 0x25b   : > { %s4248_s13 = smov %s3434_s19  ;;  %s4249_s14 = smov %s3423_s16 }
 0x25c   :  { %12 = sbr.rel (!%p10_p10) target bundleno = 2 (0x2), region = 113 }

// kernel: cnn_age_forward.5
= control target key start
LH: loop header
LB: loop body
LE: loop exit
PB: predicated region body
PF: predicated region fallthrough
CT: control target
= control target key end

     0   :  { %v267_v36 = vlaneseq  ;;  %v2597_v37 = vmov 1966171168   ;;  %vm1933_vm0 = vcmask 1041408   ;;  %vm1953_vm1 = vcmask 1024   ;;  %s3419_s1 = inlined_call_operand.vmem [shape: bf16[1920,256], index: 1, kind: input, shape index: {}]   ;;  %s3420_s0 = inlined_call_operand.vmem [shape: bf16[2,1920], index: 0, kind: input, shape index: {}]   ;;  %s3421_s4 = inlined_call_operand.<no memory space> [shape: f32[1,1], index: 4, kind: input, shape index: {}]   ;;  %s3422_s2 = inlined_call_operand.vmem [shape: f32[1,256], index: 2, kind: input, shape index: {}]   ;;  %s3423_s3 = inlined_call_operand.vmem [shape: f32[1,256], index: 3, kind: input, shape index: {}]   ;;  %s3424_s5 = inlined_call_operand.vmem [shape: f32[2,1], index: 5, kind: output, shape index: {}]  }
   0x1   :  { %v2231_v0 = vld [vmem:[%s3419_s1 + $0x4] ss:$8 sps:$4 sm:$0xff]   ;;  %v2235_v2 = vld [vmem:[%s3419_s1] ss:$8 sps:$4 sm:$0xff]   ;;  %v2237_v4 = vld [vmem:[%s3419_s1 + $0x14] ss:$8 sps:$4 sm:$0xff]   ;;  %v281_v38 = vunpack.c.l.s4 %v2597_v37 }
   0x2   :  { %v2233_v1 = vld [vmem:[%s3419_s1 + $0x404] ss:$8 sps:$4 sm:$0xff]   ;;  %1591 = vmatprep.subr.bf16.mxu1 %v2231_v0  ;;  %v2236_v3 = vld [vmem:[%s3419_s1 + $0x400] ss:$8 sps:$4 sm:$0xff]   ;;  %v2239_v5 = vld [vmem:[%s3419_s1 + $0x414] ss:$8 sps:$4 sm:$0xff]  }
   0x3   :  { %1755 = vmatprep.subr.bf16.mxu0 %v2233_v1  ;;  %1592 = vmatpush1.bf16.msra.mxu1 %v2235_v2  ;;  %v2241_v6 = vld [vmem:[%s3419_s1 + $0x10] ss:$8 sps:$4 sm:$0xff]   ;;  %v2243_v8 = vld [vmem:[%s3419_s1 + $0x24] ss:$8 sps:$4 sm:$0xff]   ;;  %v2247_v10 = vld [vmem:[%s3419_s1 + $0x20] ss:$8 sps:$4 sm:$0xff]   ;;  %v282_v43 = vunpack.c.0.s8 %v281_v38 }
   0x4   :  { %1756 = vmatpush1.bf16.msra.mxu0 %v2236_v3  ;;  %1593 = vmatprep.subr.bf16.mxu1 %v2237_v4  ;;  %v2242_v7 = vld [vmem:[%s3419_s1 + $0x410] ss:$8 sps:$4 sm:$0xff]   ;;  %v2245_v9 = vld [vmem:[%s3419_s1 + $0x424] ss:$8 sps:$4 sm:$0xff]   ;;  %v2248_v11 = vld [vmem:[%s3419_s1 + $0x420] ss:$8 sps:$4 sm:$0xff]  }
   0x5   :  { %1757 = vmatprep.subr.bf16.mxu0 %v2239_v5  ;;  %v2249_v12 = vld [vmem:[%s3419_s1 + $0x34] ss:$8 sps:$4 sm:$0xff]   ;;  %v2253_v14 = vld [vmem:[%s3419_s1 + $0x30] ss:$8 sps:$4 sm:$0xff]   ;;  %v2255_v16 = vld [vmem:[%s3419_s1 + $0x44] ss:$8 sps:$4 sm:$0xff]  }
   0x6   :  { %v2251_v13 = vld [vmem:[%s3419_s1 + $0x434] ss:$8 sps:$4 sm:$0xff]   ;;  %v2254_v15 = vld [vmem:[%s3419_s1 + $0x430] ss:$8 sps:$4 sm:$0xff]   ;;  %v2257_v17 = vld [vmem:[%s3419_s1 + $0x444] ss:$8 sps:$4 sm:$0xff]  }
   0x7   :  { %1594 = vmatpush1.bf16.msra.mxu1 %v2241_v6  ;;  %v2259_v18 = vld [vmem:[%s3419_s1 + $0x40] ss:$8 sps:$4 sm:$0xff]   ;;  %v2261_v20 = vld [vmem:[%s3419_s1 + $0x54] ss:$8 sps:$4 sm:$0xff]   ;;  %v2265_v22 = vld [vmem:[%s3419_s1 + $0x50] ss:$8 sps:$4 sm:$0xff]  }
   0x8   :  { %1758 = vmatpush1.bf16.msra.mxu0 %v2242_v7  ;;  %1595 = vmatprep.subr.bf16.mxu1 %v2243_v8  ;;  %v2260_v19 = vld [vmem:[%s3419_s1 + $0x440] ss:$8 sps:$4 sm:$0xff]   ;;  %v2263_v21 = vld [vmem:[%s3419_s1 + $0x454] ss:$8 sps:$4 sm:$0xff]   ;;  %v2266_v23 = vld [vmem:[%s3419_s1 + $0x450] ss:$8 sps:$4 sm:$0xff]  }
   0x9   :  { %1759 = vmatprep.subr.bf16.mxu0 %v2245_v9  ;;  %v2267_v24 = vld [vmem:[%s3419_s1 + $0x64] ss:$8 sps:$4 sm:$0xff]   ;;  %v2271_v26 = vld [vmem:[%s3419_s1 + $0x60] ss:$8 sps:$4 sm:$0xff]   ;;  %v2273_v28 = vld [vmem:[%s3419_s1 + $0x74] ss:$8 sps:$4 sm:$0xff]  }
   0xa   :  { %v2269_v25 = vld [vmem:[%s3419_s1 + $0x464] ss:$8 sps:$4 sm:$0xff]   ;;  %v2272_v27 = vld [vmem:[%s3419_s1 + $0x460] ss:$8 sps:$4 sm:$0xff]   ;;  %v2275_v29 = vld [vmem:[%s3419_s1 + $0x474] ss:$8 sps:$4 sm:$0xff]  }
   0xb   :  { %1596 = vmatpush1.bf16.msra.mxu1 %v2247_v10  ;;  %v2277_v30 = vld [vmem:[%s3419_s1 + $0x70] ss:$8 sps:$4 sm:$0xff]   ;;  %v2279_v32 = vld [vmem:[%s3419_s1 + $0x84] ss:$8 sps:$4 sm:$0xff]   ;;  %v2283_v34 = vld [vmem:[%s3419_s1 + $0x80] ss:$8 sps:$4 sm:$0xff]  }
   0xc   :  { %1760 = vmatpush1.bf16.msra.mxu0 %v2248_v11  ;;  %1597 = vmatprep.subr.bf16.mxu1 %v2249_v12  ;;  %v2278_v31 = vld [vmem:[%s3419_s1 + $0x470] ss:$8 sps:$4 sm:$0xff]   ;;  %v2281_v33 = vld [vmem:[%s3419_s1 + $0x484] ss:$8 sps:$4 sm:$0xff]   ;;  %v2284_v35 = vld [vmem:[%s3419_s1 + $0x480] ss:$8 sps:$4 sm:$0xff]  }
   0xd   :  { %1761 = vmatprep.subr.bf16.mxu0 %v2251_v13  ;;  %v2285_v39 = vld [vmem:[%s3419_s1 + $0x94] ss:$8 sps:$4 sm:$0xff]   ;;  %v2289_v41 = vld [vmem:[%s3419_s1 + $0x90] ss:$8 sps:$4 sm:$0xff]   ;;  %v2746_v42 = vshrl.u32 %v267_v36, 7  ;;  %v23_v52 = vld [vmem:[%s3420_s0] sm:$0xff] }
   0xe   :  { %v2287_v40 = vld [vmem:[%s3419_s1 + $0x494] ss:$8 sps:$4 sm:$0xff]   ;;  %v2290_v44 = vld [vmem:[%s3419_s1 + $0x490] ss:$8 sps:$4 sm:$0xff]   ;;  %v2291_v45 = vld [vmem:[%s3419_s1 + $0xa4] ss:$8 sps:$4 sm:$0xff]   ;;  %v279_v12 = vcombine.high %v23_v52, %v23_v52 }
   0xf   :  { %1598 = vmatpush1.bf16.msra.mxu1 %v2253_v14  ;;  %v2293_v46 = vld [vmem:[%s3419_s1 + $0x4a4] ss:$8 sps:$4 sm:$0xff]   ;;  %v2295_v47 = vld [vmem:[%s3419_s1 + $0xa0] ss:$8 sps:$4 sm:$0xff]   ;;  %v2764_v49 = vsub.s32 %v282_v43, %v2746_v42  ;;  %v2297_v50 = vld [vmem:[%s3419_s1 + $0xb4] ss:$8 sps:$4 sm:$0xff]  }
  0x10   :  { %1762 = vmatpush1.bf16.msra.mxu0 %v2254_v15  ;;  %1599 = vmatprep.subr.bf16.mxu1 %v2255_v16  ;;  %v2296_v48 = vld [vmem:[%s3419_s1 + $0x4a0] ss:$8 sps:$4 sm:$0xff]   ;;  %v2299_v51 = vld [vmem:[%s3419_s1 + $0x4b4] ss:$8 sps:$4 sm:$0xff]   ;;  %v2301_v53 = vld [vmem:[%s3419_s1 + $0xb0] ss:$8 sps:$4 sm:$0xff]  }
  0x11   :  { %1763 = vmatprep.subr.bf16.mxu0 %v2257_v17  ;;  %v286_v54 = vrot.slane %v23_v52, %v2764_v49  ;;  %v2302_v55 = vld [vmem:[%s3419_s1 + $0x4b0] ss:$8 sps:$4 sm:$0xff]   ;;  %v24_v56 = vld [vmem:[%s3420_s0 + $0x8] sm:$0x7f]  ;;  %v2309_v1 = vld [vmem:[%s3419_s1 + $0xd4] ss:$8 sps:$4 sm:$0xff]  }
  0x12   :  { %v2303_v57 = vld [vmem:[%s3419_s1 + $0xc4] ss:$8 sps:$4 sm:$0xff]   ;;  %v335_v60 = vrot.slane %v24_v56, %v2764_v49  ;;  %v2307_v63 = vld [vmem:[%s3419_s1 + $0xc0] ss:$8 sps:$4 sm:$0xff]   ;;  %v2311_v2 = vld [vmem:[%s3419_s1 + $0x4d4] ss:$8 sps:$4 sm:$0xff]   ;;  %v328_v13 = vcombine.high %v24_v56, %v24_v56 }
  0x13   :  { %1600 = vmatpush1.bf16.msra.mxu1 %v2259_v18  ;;  %v2305_v58 = vld [vmem:[%s3419_s1 + $0x4c4] ss:$8 sps:$4 sm:$0xff]   ;;  %v294_v59 = vcombine.high %v286_v54, %v286_v54  ;;  %v2308_v0 = vld [vmem:[%s3419_s1 + $0x4c0] ss:$8 sps:$4 sm:$0xff]   ;;  %v2313_v4 = vld [vmem:[%s3419_s1 + $0xd0] ss:$8 sps:$4 sm:$0xff]   ;;  %v293_v18 = vrot.slane %v279_v12, %v2764_v49 }
  0x14   :  { %1764 = vmatpush1.bf16.msra.mxu0 %v2260_v19  ;;  %1601 = vmatprep.subr.bf16.mxu1 %v2261_v20  ;;  %v343_v62 = vcombine.high %v335_v60, %v335_v60  ;;  %v2314_v5 = vld [vmem:[%s3419_s1 + $0x4d0] ss:$8 sps:$4 sm:$0xff]   ;;  %v2315_v6 = vld [vmem:[%s3419_s1 + $0xe4] ss:$8 sps:$4 sm:$0xff]   ;;  %v2319_v8 = vld [vmem:[%s3419_s1 + $0xe0] ss:$8 sps:$4 sm:$0xff]   ;;  %v342_v19 = vrot.slane %v328_v13, %v2764_v49  ;;  %v2848_v20 = vrot.slane %v286_v54, %v2764_v49 }
  0x15   :  { %1765 = vmatprep.subr.bf16.mxu0 %v2263_v21  ;;  %v2793_v61 = vrot.slane %v294_v59, %v2764_v49  ;;  %v2317_v7 = vld [vmem:[%s3419_s1 + $0x4e4] ss:$8 sps:$4 sm:$0xff]   ;;  %v2320_v9 = vld [vmem:[%s3419_s1 + $0x4e0] ss:$8 sps:$4 sm:$0xff]   ;;  %v2321_v10 = vld [vmem:[%s3419_s1 + $0xf4] ss:$8 sps:$4 sm:$0xff]   ;;  %v2851_v21 = vrot.slane %v335_v60, %v2764_v49 }
  0x16   :  { %v365_v3 = vrot.slane %v343_v62, %v2764_v49  ;;  %v2323_v11 = vld [vmem:[%s3419_s1 + $0x4f4] ss:$8 sps:$4 sm:$0xff]   ;;  %v2325_v14 = vld [vmem:[%s3419_s1 + $0xf0] ss:$8 sps:$4 sm:$0xff]   ;;  %v2330_v16 = vld [vmem:[%s3419_s1 + $0x104] ss:$8 sps:$4 sm:$0xff]  }
  0x17   :  { %1602 = vmatpush1.bf16.msra.mxu1 %v2265_v22  ;;  %1623 = vmatprep.mubr.bf16.mxu1 %v2793_v61  ;;  %v2326_v15 = vld [vmem:[%s3419_s1 + $0x4f0] ss:$8 sps:$4 sm:$0xff]   ;;  %v2334_v17 = vld [vmem:[%s3419_s1 + $0x504] ss:$8 sps:$4 sm:$0xff]   ;;  %v295_v22 = vcombine.high %v293_v18, %v293_v18  ;;  %v2341_v38 = vld [vmem:[%s3419_s1 + $0x120] ss:$8 sps:$4 sm:$0xff]  }
  0x18   :  { %1766 = vmatpush1.bf16.msra.mxu0 %v2266_v23  ;;  %1603 = vmatprep.subr.bf16.mxu1 %v2267_v24  ;;  %v344_v23 = vcombine.high %v342_v19, %v342_v19  ;;  %v2328_v24 = vld [vmem:[%s3419_s1 + $0x100] ss:$8 sps:$4 sm:$0xff]   ;;  %v2343_v36 = vld [vmem:[%s3419_s1 + $0x124] ss:$8 sps:$4 sm:$0xff]   ;;  %v2347_v43 = vld [vmem:[%s3419_s1 + $0x130] ss:$8 sps:$4 sm:$0xff]  }
  0x19   :  { %1767 = vmatprep.subr.bf16.mxu0 %v2269_v25  ;;  %1787 = vmatprep.mubr.bf16.mxu0 %v365_v3  ;;  %v2332_v25 = vld [vmem:[%s3419_s1 + $0x500] ss:$8 sps:$4 sm:$0xff]   ;;  %v2346_v37 = vld [vmem:[%s3419_s1 + $0x524] ss:$8 sps:$4 sm:$0xff]   ;;  %v2362_v52 = vld [vmem:[%s3419_s1 + $0x550] ss:$8 sps:$4 sm:$0xff]  }
  0x1a   :  { %v2370_v54 = vld [vmem:[%s3419_s1 + $0x564] ss:$8 sps:$4 sm:$0xff]   ;;  %v2368_v56 = vld [vmem:[%s3419_s1 + $0x560] ss:$8 sps:$4 sm:$0xff]   ;;  %v2371_v59 = vld [vmem:[%s3419_s1 + $0x170] ss:$8 sps:$4 sm:$0xff]  }
  0x1b   :  { %1604 = vmatpush1.bf16.msra.mxu1 %v2271_v26  ;;  %v2337_v26 = vld [vmem:[%s3419_s1 + $0x114] ss:$8 sps:$4 sm:$0xff]   ;;  %v2374_v60 = vld [vmem:[%s3419_s1 + $0x570] ss:$8 sps:$4 sm:$0xff]   ;;  %v2382_v62 = vld [vmem:[%s3419_s1 + $0x584] ss:$8 sps:$4 sm:$0xff]  }
  0x1c   :  { %1768 = vmatpush1.bf16.msra.mxu0 %v2272_v27  ;;  %1605 = vmatprep.subr.bf16.mxu1 %v2273_v28  ;;  %v2340_v27 = vld [vmem:[%s3419_s1 + $0x514] ss:$8 sps:$4 sm:$0xff]   ;;  %v2866_v28 = vrot.slane %v295_v22, %v2764_v49  ;;  %v2398_v12 = vld [vmem:[%s3419_s1 + $0x5b0] ss:$8 sps:$4 sm:$0xff]   ;;  %v2403_v13 = vld [vmem:[%s3419_s1 + $0x1c4] ss:$8 sps:$4 sm:$0xff]  }
  0x1d   :  { %1769 = vmatprep.subr.bf16.mxu0 %v2275_v29  ;;  %v2869_v29 = vrot.slane %v344_v23, %v2764_v49  ;;  %v2410_v22 = vld [vmem:[%s3419_s1 + $0x5d0] ss:$8 sps:$4 sm:$0xff]   ;;  %v2415_v23 = vld [vmem:[%s3419_s1 + $0x1e4] ss:$8 sps:$4 sm:$0xff]  }
  0x1f   :  { %1606 = vmatpush1.bf16.msra.mxu1 %v2277_v30  ;;  %v2872_v30 = vrot.slane %v293_v18, %v2764_v49  ;;  %v2412_v18 = vld [vmem:[%s3419_s1 + $0x5d4] ss:$8 sps:$4 sm:$0xff]  }
  0x20   :  { %1770 = vmatpush1.bf16.msra.mxu0 %v2278_v31  ;;  %1607 = vmatprep.subr.bf16.mxu1 %v2279_v32  ;;  %v326_v31 = vcombine.high %v2793_v61, %v2793_v61  ;;  %v375_v32 = vcombine.high %v365_v3, %v365_v3  ;;  %v2379_v61 = vld [vmem:[%s3419_s1 + $0x184] ss:$8 sps:$4 sm:$0xff]   ;;  %v2383_v3 = vld [vmem:[%s3419_s1 + $0x190] ss:$8 sps:$4 sm:$0xff]  }
  0x21   :  { %1771 = vmatprep.subr.bf16.mxu0 %v2281_v33  ;;  %v2877_v33 = vrot.slane %v342_v19, %v2764_v49  ;;  %v2361_v49 = vld [vmem:[%s3419_s1 + $0x154] ss:$8 sps:$4 sm:$0xff]   ;;  %v2407_v19 = vld [vmem:[%s3419_s1 + $0x1d0] ss:$8 sps:$4 sm:$0xff]  }
  0x23   :  { %1608 = vmatpush1.bf16.msra.mxu1 %v2283_v34  ;;  %v2335_v34 = vld [vmem:[%s3419_s1 + $0x110] ss:$8 sps:$4 sm:$0xff]  }
  0x24   :  { %1772 = vmatpush1.bf16.msra.mxu0 %v2284_v35  ;;  %1609 = vmatprep.subr.bf16.mxu1 %v2285_v39  ;;  %v2338_v35 = vld [vmem:[%s3419_s1 + $0x510] ss:$8 sps:$4 sm:$0xff]   ;;  %v2344_v39 = vld [vmem:[%s3419_s1 + $0x520] ss:$8 sps:$4 sm:$0xff]  }
  0x25   :  { %1773 = vmatprep.subr.bf16.mxu0 %v2287_v40  ;;  %v2349_v40 = vld [vmem:[%s3419_s1 + $0x134] ss:$8 sps:$4 sm:$0xff]  }
  0x27   :  { %1610 = vmatpush1.bf16.msra.mxu1 %v2289_v41  ;;  %v2352_v41 = vld [vmem:[%s3419_s1 + $0x534] ss:$8 sps:$4 sm:$0xff]  }
  0x28   :  { %1774 = vmatpush1.bf16.msra.mxu0 %v2290_v44  ;;  %1611 = vmatprep.subr.bf16.mxu1 %v2291_v45  ;;  %v2350_v44 = vld [vmem:[%s3419_s1 + $0x530] ss:$8 sps:$4 sm:$0xff]   ;;  %v2355_v45 = vld [vmem:[%s3419_s1 + $0x144] ss:$8 sps:$4 sm:$0xff]  }
  0x29   :  { %1775 = vmatprep.subr.bf16.mxu0 %v2293_v46  ;;  %v2358_v46 = vld [vmem:[%s3419_s1 + $0x544] ss:$8 sps:$4 sm:$0xff]  }
  0x2b   :  { %1612 = vmatpush1.bf16.msra.mxu1 %v2295_v47  ;;  %v2353_v47 = vld [vmem:[%s3419_s1 + $0x140] ss:$8 sps:$4 sm:$0xff]  }
  0x2c   :  { %1776 = vmatpush1.bf16.msra.mxu0 %v2296_v48  ;;  %1613 = vmatprep.subr.bf16.mxu1 %v2297_v50  ;;  %v2356_v48 = vld [vmem:[%s3419_s1 + $0x540] ss:$8 sps:$4 sm:$0xff]   ;;  %v2364_v50 = vld [vmem:[%s3419_s1 + $0x554] ss:$8 sps:$4 sm:$0xff]  }
  0x2d   :  { %1777 = vmatprep.subr.bf16.mxu0 %v2299_v51  ;;  %v2359_v51 = vld [vmem:[%s3419_s1 + $0x150] ss:$8 sps:$4 sm:$0xff]  }
  0x2f   :  { %1614 = vmatpush1.bf16.msra.mxu1 %v2301_v53  ;;  %v2367_v53 = vld [vmem:[%s3419_s1 + $0x164] ss:$8 sps:$4 sm:$0xff]  }
  0x30   :  { %1778 = vmatpush1.bf16.msra.mxu0 %v2302_v55  ;;  %1615 = vmatprep.subr.bf16.mxu1 %v2303_v57  ;;  %v2365_v55 = vld [vmem:[%s3419_s1 + $0x160] ss:$8 sps:$4 sm:$0xff]   ;;  %v2373_v57 = vld [vmem:[%s3419_s1 + $0x174] ss:$8 sps:$4 sm:$0xff]  }
  0x31   :  { %1779 = vmatprep.subr.bf16.mxu0 %v2305_v58  ;;  %v2376_v58 = vld [vmem:[%s3419_s1 + $0x574] ss:$8 sps:$4 sm:$0xff]  }
  0x33   :  { %1616 = vmatpush1.bf16.msra.mxu1 %v2307_v63  ;;  %v2377_v63 = vld [vmem:[%s3419_s1 + $0x180] ss:$8 sps:$4 sm:$0xff]  }
  0x34   :  { %1780 = vmatpush1.bf16.msra.mxu0 %v2308_v0  ;;  %1617 = vmatprep.subr.bf16.mxu1 %v2309_v1  ;;  %v2380_v0 = vld [vmem:[%s3419_s1 + $0x580] ss:$8 sps:$4 sm:$0xff]   ;;  %v2385_v1 = vld [vmem:[%s3419_s1 + $0x194] ss:$8 sps:$4 sm:$0xff]  }
  0x35   :  { %1781 = vmatprep.subr.bf16.mxu0 %v2311_v2  ;;  %v2388_v2 = vld [vmem:[%s3419_s1 + $0x594] ss:$8 sps:$4 sm:$0xff]  }
  0x37   :  { %1618 = vmatpush1.bf16.msra.mxu1 %v2313_v4  ;;  %v2386_v4 = vld [vmem:[%s3419_s1 + $0x590] ss:$8 sps:$4 sm:$0xff]  }
  0x38   :  { %1782 = vmatpush1.bf16.msra.mxu0 %v2314_v5  ;;  %1619 = vmatprep.subr.bf16.mxu1 %v2315_v6  ;;  %v2391_v5 = vld [vmem:[%s3419_s1 + $0x1a4] ss:$8 sps:$4 sm:$0xff]  }
  0x39   :  { %1783 = vmatprep.subr.bf16.mxu0 %v2317_v7  ;;  %v2394_v6 = vld [vmem:[%s3419_s1 + $0x5a4] ss:$8 sps:$4 sm:$0xff]   ;;  %v2389_v7 = vld [vmem:[%s3419_s1 + $0x1a0] ss:$8 sps:$4 sm:$0xff]  }
  0x3b   :  { %1620 = vmatpush1.bf16.msra.mxu1 %v2319_v8  ;;  %v2392_v8 = vld [vmem:[%s3419_s1 + $0x5a0] ss:$8 sps:$4 sm:$0xff]  }
  0x3c   :  { %1784 = vmatpush1.bf16.msra.mxu0 %v2320_v9  ;;  %1621 = vmatprep.subr.bf16.mxu1 %v2321_v10  ;;  %v2397_v9 = vld [vmem:[%s3419_s1 + $0x1b4] ss:$8 sps:$4 sm:$0xff]  }
  0x3d   :  { %1785 = vmatprep.subr.bf16.mxu0 %v2323_v11  ;;  %v2400_v10 = vld [vmem:[%s3419_s1 + $0x5b4] ss:$8 sps:$4 sm:$0xff]   ;;  %v2395_v11 = vld [vmem:[%s3419_s1 + $0x1b0] ss:$8 sps:$4 sm:$0xff]  }
  0x3f   :  { %1622 = vmatpush1.bf16.msra.mxu1 %v2325_v14  ;;  %v2406_v14 = vld [vmem:[%s3419_s1 + $0x5c4] ss:$8 sps:$4 sm:$0xff]  }
  0x40   :  { %1786 = vmatpush1.bf16.msra.mxu0 %v2326_v15  ;;  %1632 = vmatprep.subr.bf16.mxu1 %v2330_v16  ;;  %v2401_v15 = vld [vmem:[%s3419_s1 + $0x1c0] ss:$8 sps:$4 sm:$0xff]  }
  0x41   :  { %1796 = vmatprep.subr.bf16.mxu0 %v2334_v17  ;;  %v2404_v16 = vld [vmem:[%s3419_s1 + $0x5c0] ss:$8 sps:$4 sm:$0xff]   ;;  %v2409_v17 = vld [vmem:[%s3419_s1 + $0x1d4] ss:$8 sps:$4 sm:$0xff]  }
  0x42   :  { %1624 = vmatmul.mubr.bf16.vlgmr.msra.gmra.mrb[0].mxu1 %v2848_v20 }
  0x43   :  { %1788 = vmatmul.mubr.bf16.vlgmr.msra.gmra.mrb[0].mxu0 %v2851_v21  ;;  %1633 = vmatpush1.bf16.msra.mxu1 %v2328_v24  ;;  %v2418_v24 = vld [vmem:[%s3419_s1 + $0x5e4] ss:$8 sps:$4 sm:$0xff]  }
  0x44   :  { %1797 = vmatpush1.bf16.msra.mxu0 %v2332_v25  ;;  %1634 = vmatprep.subr.bf16.mxu1 %v2337_v26  ;;  %v2413_v25 = vld [vmem:[%s3419_s1 + $0x1e0] ss:$8 sps:$4 sm:$0xff]  }
  0x45   :  { %1798 = vmatprep.subr.bf16.mxu0 %v2340_v27  ;;  %1664 = vmatprep.mubr.bf16.mxu1 %v326_v31  ;;  %v2416_v26 = vld [vmem:[%s3419_s1 + $0x5e0] ss:$8 sps:$4 sm:$0xff]   ;;  %v2421_v27 = vld [vmem:[%s3419_s1 + $0x1f4] ss:$8 sps:$4 sm:$0xff]  }
  0x46   :  { %1828 = vmatprep.mubr.bf16.mxu0 %v375_v32  ;;  %v2424_v31 = vld [vmem:[%s3419_s1 + $0x5f4] ss:$8 sps:$4 sm:$0xff]   ;;  %v2419_v32 = vld [vmem:[%s3419_s1 + $0x1f0] ss:$8 sps:$4 sm:$0xff]  }
  0x47   :  { %1635 = vmatpush1.bf16.msra.mxu1 %v2335_v34  ;;  %v2422_v34 = vld [vmem:[%s3419_s1 + $0x5f0] ss:$8 sps:$4 sm:$0xff]  }
  0x48   :  { %1799 = vmatpush1.bf16.msra.mxu0 %v2338_v35  ;;  %1636 = vmatprep.subr.bf16.mxu1 %v2343_v36  ;;  %v2427_v35 = vld [vmem:[%s3419_s1 + $0x204] ss:$8 sps:$4 sm:$0xff]  }
  0x49   :  { %1800 = vmatprep.subr.bf16.mxu0 %v2346_v37  ;;  %v2430_v36 = vld [vmem:[%s3419_s1 + $0x604] ss:$8 sps:$4 sm:$0xff]   ;;  %v324_v37 = vcombine.high %v2848_v20, %v2848_v20  ;;  %v2436_v20 = vld [vmem:[%s3419_s1 + $0x614] ss:$8 sps:$4 sm:$0xff]  }
  0x4b   :  { %1637 = vmatpush1.bf16.msra.mxu1 %v2341_v38  ;;  %v373_v38 = vcombine.high %v2851_v21, %v2851_v21  ;;  %v2431_v21 = vld [vmem:[%s3419_s1 + $0x210] ss:$8 sps:$4 sm:$0xff]  }
  0x4c   :  { %1801 = vmatpush1.bf16.msra.mxu0 %v2344_v39  ;;  %1638 = vmatprep.subr.bf16.mxu1 %v2349_v40  ;;  %v2425_v39 = vld [vmem:[%s3419_s1 + $0x200] ss:$8 sps:$4 sm:$0xff]  }
  0x4d   :  { %1802 = vmatprep.subr.bf16.mxu0 %v2352_v41  ;;  %v2428_v40 = vld [vmem:[%s3419_s1 + $0x600] ss:$8 sps:$4 sm:$0xff]   ;;  %v2433_v41 = vld [vmem:[%s3419_s1 + $0x214] ss:$8 sps:$4 sm:$0xff]  }
  0x4f   :  { %1639 = vmatpush1.bf16.msra.mxu1 %v2347_v43  ;;  %v2434_v43 = vld [vmem:[%s3419_s1 + $0x610] ss:$8 sps:$4 sm:$0xff]  }
  0x50   :  { %1803 = vmatpush1.bf16.msra.mxu0 %v2350_v44  ;;  %1640 = vmatprep.subr.bf16.mxu1 %v2355_v45  ;;  %v2439_v44 = vld [vmem:[%s3419_s1 + $0x224] ss:$8 sps:$4 sm:$0xff]  }
  0x51   :  { %1804 = vmatprep.subr.bf16.mxu0 %v2358_v46  ;;  %v2442_v45 = vld [vmem:[%s3419_s1 + $0x624] ss:$8 sps:$4 sm:$0xff]   ;;  %v2437_v46 = vld [vmem:[%s3419_s1 + $0x220] ss:$8 sps:$4 sm:$0xff]  }
  0x53   :  { %1641 = vmatpush1.bf16.msra.mxu1 %v2353_v47  ;;  %v2440_v47 = vld [vmem:[%s3419_s1 + $0x620] ss:$8 sps:$4 sm:$0xff]  }
  0x54   :  { %1805 = vmatpush1.bf16.msra.mxu0 %v2356_v48  ;;  %1642 = vmatprep.subr.bf16.mxu1 %v2361_v49  ;;  %v2445_v48 = vld [vmem:[%s3419_s1 + $0x234] ss:$8 sps:$4 sm:$0xff]   ;;  %v2443_v49 = vld [vmem:[%s3419_s1 + $0x230] ss:$8 sps:$4 sm:$0xff]  }
  0x55   :  { %1806 = vmatprep.subr.bf16.mxu0 %v2364_v50  ;;  %v2446_v50 = vld [vmem:[%s3419_s1 + $0x630] ss:$8 sps:$4 sm:$0xff]  }
  0x57   :  { %1643 = vmatpush1.bf16.msra.mxu1 %v2359_v51  ;;  %v2451_v51 = vld [vmem:[%s3419_s1 + $0x244] ss:$8 sps:$4 sm:$0xff]  }
  0x58   :  { %1807 = vmatpush1.bf16.msra.mxu0 %v2362_v52  ;;  %1644 = vmatprep.subr.bf16.mxu1 %v2367_v53  ;;  %v2454_v52 = vld [vmem:[%s3419_s1 + $0x644] ss:$8 sps:$4 sm:$0xff]   ;;  %v2449_v53 = vld [vmem:[%s3419_s1 + $0x240] ss:$8 sps:$4 sm:$0xff]  }
  0x59   :  { %1808 = vmatprep.subr.bf16.mxu0 %v2370_v54  ;;  %v2452_v54 = vld [vmem:[%s3419_s1 + $0x640] ss:$8 sps:$4 sm:$0xff]  }
  0x5b   :  { %1645 = vmatpush1.bf16.msra.mxu1 %v2365_v55  ;;  %v2457_v55 = vld [vmem:[%s3419_s1 + $0x254] ss:$8 sps:$4 sm:$0xff]  }
  0x5c   :  { %1809 = vmatpush1.bf16.msra.mxu0 %v2368_v56  ;;  %1646 = vmatprep.subr.bf16.mxu1 %v2373_v57  ;;  %v2460_v56 = vld [vmem:[%s3419_s1 + $0x654] ss:$8 sps:$4 sm:$0xff]   ;;  %v2455_v57 = vld [vmem:[%s3419_s1 + $0x250] ss:$8 sps:$4 sm:$0xff]  }
  0x5d   :  { %1810 = vmatprep.subr.bf16.mxu0 %v2376_v58  ;;  %v2458_v58 = vld [vmem:[%s3419_s1 + $0x650] ss:$8 sps:$4 sm:$0xff]  }
  0x5f   :  { %1647 = vmatpush1.bf16.msra.mxu1 %v2371_v59  ;;  %v2463_v59 = vld [vmem:[%s3419_s1 + $0x264] ss:$8 sps:$4 sm:$0xff]  }
  0x60   :  { %1811 = vmatpush1.bf16.msra.mxu0 %v2374_v60  ;;  %1648 = vmatprep.subr.bf16.mxu1 %v2379_v61  ;;  %v2466_v60 = vld [vmem:[%s3419_s1 + $0x664] ss:$8 sps:$4 sm:$0xff]   ;;  %v2461_v61 = vld [vmem:[%s3419_s1 + $0x260] ss:$8 sps:$4 sm:$0xff]  }
  0x61   :  { %1812 = vmatprep.subr.bf16.mxu0 %v2382_v62  ;;  %v2464_v62 = vld [vmem:[%s3419_s1 + $0x660] ss:$8 sps:$4 sm:$0xff]  }
  0x63   :  { %1649 = vmatpush1.bf16.msra.mxu1 %v2377_v63  ;;  %v2469_v63 = vld [vmem:[%s3419_s1 + $0x274] ss:$8 sps:$4 sm:$0xff]  }
  0x64   :  { %1813 = vmatpush1.bf16.msra.mxu0 %v2380_v0  ;;  %1650 = vmatprep.subr.bf16.mxu1 %v2385_v1  ;;  %v2472_v0 = vld [vmem:[%s3419_s1 + $0x674] ss:$8 sps:$4 sm:$0xff]   ;;  %v2467_v1 = vld [vmem:[%s3419_s1 + $0x270] ss:$8 sps:$4 sm:$0xff]  }
  0x65   :  { %1814 = vmatprep.subr.bf16.mxu0 %v2388_v2  ;;  %v2470_v2 = vld [vmem:[%s3419_s1 + $0x670] ss:$8 sps:$4 sm:$0xff]  }
  0x67   :  { %1651 = vmatpush1.bf16.msra.mxu1 %v2383_v3  ;;  %v2475_v3 = vld [vmem:[%s3419_s1 + $0x284] ss:$8 sps:$4 sm:$0xff]  }
  0x68   :  { %1815 = vmatpush1.bf16.msra.mxu0 %v2386_v4  ;;  %1652 = vmatprep.subr.bf16.mxu1 %v2391_v5  ;;  %v2478_v4 = vld [vmem:[%s3419_s1 + $0x684] ss:$8 sps:$4 sm:$0xff]   ;;  %v2473_v5 = vld [vmem:[%s3419_s1 + $0x280] ss:$8 sps:$4 sm:$0xff]  }
  0x69   :  { %1816 = vmatprep.subr.bf16.mxu0 %v2394_v6  ;;  %v2476_v6 = vld [vmem:[%s3419_s1 + $0x680] ss:$8 sps:$4 sm:$0xff]  }
  0x6b   :  { %1653 = vmatpush1.bf16.msra.mxu1 %v2389_v7  ;;  %v2481_v7 = vld [vmem:[%s3419_s1 + $0x294] ss:$8 sps:$4 sm:$0xff]  }
  0x6c   :  { %1817 = vmatpush1.bf16.msra.mxu0 %v2392_v8  ;;  %1654 = vmatprep.subr.bf16.mxu1 %v2397_v9  ;;  %v2484_v8 = vld [vmem:[%s3419_s1 + $0x694] ss:$8 sps:$4 sm:$0xff]   ;;  %v2479_v9 = vld [vmem:[%s3419_s1 + $0x290] ss:$8 sps:$4 sm:$0xff]  }
  0x6d   :  { %1818 = vmatprep.subr.bf16.mxu0 %v2400_v10  ;;  %v2482_v10 = vld [vmem:[%s3419_s1 + $0x690] ss:$8 sps:$4 sm:$0xff]  }
  0x6f   :  { %1655 = vmatpush1.bf16.msra.mxu1 %v2395_v11  ;;  %v2487_v11 = vld [vmem:[%s3419_s1 + $0x2a4] ss:$8 sps:$4 sm:$0xff]  }
  0x70   :  { %1819 = vmatpush1.bf16.msra.mxu0 %v2398_v12  ;;  %1656 = vmatprep.subr.bf16.mxu1 %v2403_v13  ;;  %v2490_v12 = vld [vmem:[%s3419_s1 + $0x6a4] ss:$8 sps:$4 sm:$0xff]   ;;  %v2485_v13 = vld [vmem:[%s3419_s1 + $0x2a0] ss:$8 sps:$4 sm:$0xff]  }
  0x71   :  { %1820 = vmatprep.subr.bf16.mxu0 %v2406_v14  ;;  %v2488_v14 = vld [vmem:[%s3419_s1 + $0x6a0] ss:$8 sps:$4 sm:$0xff]  }
  0x73   :  { %1657 = vmatpush1.bf16.msra.mxu1 %v2401_v15  ;;  %v2493_v15 = vld [vmem:[%s3419_s1 + $0x2b4] ss:$8 sps:$4 sm:$0xff]  }
  0x74   :  { %1821 = vmatpush1.bf16.msra.mxu0 %v2404_v16  ;;  %1658 = vmatprep.subr.bf16.mxu1 %v2409_v17  ;;  %v2496_v16 = vld [vmem:[%s3419_s1 + $0x6b4] ss:$8 sps:$4 sm:$0xff]   ;;  %v2491_v17 = vld [vmem:[%s3419_s1 + $0x2b0] ss:$8 sps:$4 sm:$0xff]  }
  0x75   :  { %1822 = vmatprep.subr.bf16.mxu0 %v2412_v18  ;;  %v2494_v18 = vld [vmem:[%s3419_s1 + $0x6b0] ss:$8 sps:$4 sm:$0xff]  }
  0x77   :  { %1659 = vmatpush1.bf16.msra.mxu1 %v2407_v19  ;;  %v2499_v19 = vld [vmem:[%s3419_s1 + $0x2c4] ss:$8 sps:$4 sm:$0xff]  }
  0x78   :  { %1823 = vmatpush1.bf16.msra.mxu0 %v2410_v22  ;;  %1660 = vmatprep.subr.bf16.mxu1 %v2415_v23  ;;  %v2502_v22 = vld [vmem:[%s3419_s1 + $0x6c4] ss:$8 sps:$4 sm:$0xff]   ;;  %v2497_v23 = vld [vmem:[%s3419_s1 + $0x2c0] ss:$8 sps:$4 sm:$0xff]  }
  0x79   :  { %1824 = vmatprep.subr.bf16.mxu0 %v2418_v24  ;;  %v2500_v24 = vld [vmem:[%s3419_s1 + $0x6c0] ss:$8 sps:$4 sm:$0xff]  }
  0x7b   :  { %1661 = vmatpush1.bf16.msra.mxu1 %v2413_v25  ;;  %v2505_v25 = vld [vmem:[%s3419_s1 + $0x2d4] ss:$8 sps:$4 sm:$0xff]  }
  0x7c   :  { %1825 = vmatpush1.bf16.msra.mxu0 %v2416_v26  ;;  %1662 = vmatprep.subr.bf16.mxu1 %v2421_v27  ;;  %v2508_v26 = vld [vmem:[%s3419_s1 + $0x6d4] ss:$8 sps:$4 sm:$0xff]   ;;  %v2503_v27 = vld [vmem:[%s3419_s1 + $0x2d0] ss:$8 sps:$4 sm:$0xff]  }
  0x7d   :  { %1826 = vmatprep.subr.bf16.mxu0 %v2424_v31  ;;  %v2506_v31 = vld [vmem:[%s3419_s1 + $0x6d0] ss:$8 sps:$4 sm:$0xff]  }
  0x7f   :  { %1663 = vmatpush1.bf16.msra.mxu1 %v2419_v32  ;;  %v2511_v32 = vld [vmem:[%s3419_s1 + $0x2e4] ss:$8 sps:$4 sm:$0xff]  }
  0x80   :  { %1827 = vmatpush1.bf16.msra.mxu0 %v2422_v34  ;;  %1673 = vmatprep.subr.bf16.mxu1 %v2427_v35  ;;  %v2514_v34 = vld [vmem:[%s3419_s1 + $0x6e4] ss:$8 sps:$4 sm:$0xff]   ;;  %v2509_v35 = vld [vmem:[%s3419_s1 + $0x2e0] ss:$8 sps:$4 sm:$0xff]  }
  0x81   :  { %1837 = vmatprep.subr.bf16.mxu0 %v2430_v36  ;;  %v2512_v36 = vld [vmem:[%s3419_s1 + $0x6e0] ss:$8 sps:$4 sm:$0xff]  }
  0x82   :  { %1665 = vmatmul.mubr.bf16.vlgmr.msra.gmra.mrb[0].mxu1 %v324_v37  ;;  %v2517_v37 = vld [vmem:[%s3419_s1 + $0x2f4] ss:$8 sps:$4 sm:$0xff]  }
  0x83   :  { %1829 = vmatmul.mubr.bf16.vlgmr.msra.gmra.mrb[0].mxu0 %v373_v38  ;;  %1674 = vmatpush1.bf16.msra.mxu1 %v2425_v39  ;;  %v2520_v38 = vld [vmem:[%s3419_s1 + $0x6f4] ss:$8 sps:$4 sm:$0xff]   ;;  %v2515_v39 = vld [vmem:[%s3419_s1 + $0x2f0] ss:$8 sps:$4 sm:$0xff]  }
  0x84   :  { %1838 = vmatpush1.bf16.msra.mxu0 %v2428_v40  ;;  %1675 = vmatprep.subr.bf16.mxu1 %v2433_v41  ;;  %v2518_v40 = vld [vmem:[%s3419_s1 + $0x6f0] ss:$8 sps:$4 sm:$0xff]   ;;  %v2523_v41 = vld [vmem:[%s3419_s1 + $0x304] ss:$8 sps:$4 sm:$0xff]  }
  0x85   :  { %1839 = vmatprep.subr.bf16.mxu0 %v2436_v20  ;;  %1705 = vmatprep.mubr.bf16.mxu1 %v2866_v28  ;;  %v2526_v20 = vld [vmem:[%s3419_s1 + $0x704] ss:$8 sps:$4 sm:$0xff]  }
  0x86   :  { %1869 = vmatprep.mubr.bf16.mxu0 %v2869_v29  ;;  %v2448_v29 = vld [vmem:[%s3419_s1 + $0x634] ss:$8 sps:$4 sm:$0xff]  }
  0x87   :  { %1676 = vmatpush1.bf16.msra.mxu1 %v2431_v21  ;;  %v2521_v21 = vld [vmem:[%s3419_s1 + $0x300] ss:$8 sps:$4 sm:$0xff]  }
  0x88   :  { %1840 = vmatpush1.bf16.msra.mxu0 %v2434_v43  ;;  %1677 = vmatprep.subr.bf16.mxu1 %v2439_v44  ;;  %v2524_v43 = vld [vmem:[%s3419_s1 + $0x700] ss:$8 sps:$4 sm:$0xff]   ;;  %v2529_v44 = vld [vmem:[%s3419_s1 + $0x314] ss:$8 sps:$4 sm:$0xff]  }
  0x89   :  { %1841 = vmatprep.subr.bf16.mxu0 %v2442_v45  ;;  %v2532_v45 = vld [vmem:[%s3419_s1 + $0x714] ss:$8 sps:$4 sm:$0xff]  }
  0x8b   :  { %1678 = vmatpush1.bf16.msra.mxu1 %v2437_v46  ;;  %v327_v46 = vcombine.high %v2866_v28, %v2866_v28  ;;  %v2535_v28 = vld [vmem:[%s3419_s1 + $0x324] ss:$8 sps:$4 sm:$0xff]  }
  0x8c   :  { %1842 = vmatpush1.bf16.msra.mxu0 %v2440_v47  ;;  %1679 = vmatprep.subr.bf16.mxu1 %v2445_v48  ;;  %v2527_v47 = vld [vmem:[%s3419_s1 + $0x310] ss:$8 sps:$4 sm:$0xff]  }
  0x8d   :  { %1843 = vmatprep.subr.bf16.mxu0 %v2448_v29  ;;  %v2530_v48 = vld [vmem:[%s3419_s1 + $0x710] ss:$8 sps:$4 sm:$0xff]   ;;  %v2538_v29 = vld [vmem:[%s3419_s1 + $0x724] ss:$8 sps:$4 sm:$0xff]  }
  0x8f   :  { %1680 = vmatpush1.bf16.msra.mxu1 %v2443_v49  ;;  %v2598_v49 = vmov 0  }
  0x90   :  { %1844 = vmatpush1.bf16.msra.mxu0 %v2446_v50  ;;  %1681 = vmatprep.subr.bf16.mxu1 %v2451_v51  ;;  %v2533_v50 = vld [vmem:[%s3419_s1 + $0x320] ss:$8 sps:$4 sm:$0xff]  }
  0x91   :  { %1845 = vmatprep.subr.bf16.mxu0 %v2454_v52  ;;  %v2536_v51 = vld [vmem:[%s3419_s1 + $0x720] ss:$8 sps:$4 sm:$0xff]   ;;  %v2541_v52 = vld [vmem:[%s3419_s1 + $0x334] ss:$8 sps:$4 sm:$0xff]  }
  0x93   :  { %1682 = vmatpush1.bf16.msra.mxu1 %v2449_v53  ;;  %v2544_v53 = vld [vmem:[%s3419_s1 + $0x734] ss:$8 sps:$4 sm:$0xff]  }
  0x94   :  { %1846 = vmatpush1.bf16.msra.mxu0 %v2452_v54  ;;  %1683 = vmatprep.subr.bf16.mxu1 %v2457_v55  ;;  %v2539_v54 = vld [vmem:[%s3419_s1 + $0x330] ss:$8 sps:$4 sm:$0xff]  }
  0x95   :  { %1847 = vmatprep.subr.bf16.mxu0 %v2460_v56  ;;  %v2542_v55 = vld [vmem:[%s3419_s1 + $0x730] ss:$8 sps:$4 sm:$0xff]   ;;  %v2547_v56 = vld [vmem:[%s3419_s1 + $0x344] ss:$8 sps:$4 sm:$0xff]  }
  0x97   :  { %1684 = vmatpush1.bf16.msra.mxu1 %v2455_v57  ;;  %v2550_v57 = vld [vmem:[%s3419_s1 + $0x744] ss:$8 sps:$4 sm:$0xff]  }
  0x98   :  { %1848 = vmatpush1.bf16.msra.mxu0 %v2458_v58  ;;  %1685 = vmatprep.subr.bf16.mxu1 %v2463_v59  ;;  %v2545_v58 = vld [vmem:[%s3419_s1 + $0x340] ss:$8 sps:$4 sm:$0xff]  }
  0x99   :  { %1849 = vmatprep.subr.bf16.mxu0 %v2466_v60  ;;  %v2548_v59 = vld [vmem:[%s3419_s1 + $0x740] ss:$8 sps:$4 sm:$0xff]   ;;  %v2553_v60 = vld [vmem:[%s3419_s1 + $0x354] ss:$8 sps:$4 sm:$0xff]  }
  0x9b   :  { %1686 = vmatpush1.bf16.msra.mxu1 %v2461_v61  ;;  %v2556_v61 = vld [vmem:[%s3419_s1 + $0x754] ss:$8 sps:$4 sm:$0xff]  }
  0x9c   :  { %1850 = vmatpush1.bf16.msra.mxu0 %v2464_v62  ;;  %1687 = vmatprep.subr.bf16.mxu1 %v2469_v63  ;;  %v2551_v62 = vld [vmem:[%s3419_s1 + $0x350] ss:$8 sps:$4 sm:$0xff]  }
  0x9d   :  { %1851 = vmatprep.subr.bf16.mxu0 %v2472_v0  ;;  %v2554_v63 = vld [vmem:[%s3419_s1 + $0x750] ss:$8 sps:$4 sm:$0xff]   ;;  %v2559_v0 = vld [vmem:[%s3419_s1 + $0x364] ss:$8 sps:$4 sm:$0xff]  }
  0x9f   :  { %1688 = vmatpush1.bf16.msra.mxu1 %v2467_v1  ;;  %v2562_v1 = vld [vmem:[%s3419_s1 + $0x764] ss:$8 sps:$4 sm:$0xff]  }
  0xa0   :  { %1852 = vmatpush1.bf16.msra.mxu0 %v2470_v2  ;;  %1689 = vmatprep.subr.bf16.mxu1 %v2475_v3  ;;  %v2557_v2 = vld [vmem:[%s3419_s1 + $0x360] ss:$8 sps:$4 sm:$0xff]  }
  0xa1   :  { %1853 = vmatprep.subr.bf16.mxu0 %v2478_v4  ;;  %v2560_v3 = vld [vmem:[%s3419_s1 + $0x760] ss:$8 sps:$4 sm:$0xff]   ;;  %v2565_v4 = vld [vmem:[%s3419_s1 + $0x374] ss:$8 sps:$4 sm:$0xff]  }
  0xa3   :  { %1690 = vmatpush1.bf16.msra.mxu1 %v2473_v5  ;;  %v2568_v5 = vld [vmem:[%s3419_s1 + $0x774] ss:$8 sps:$4 sm:$0xff]  }
  0xa4   :  { %1854 = vmatpush1.bf16.msra.mxu0 %v2476_v6  ;;  %1691 = vmatprep.subr.bf16.mxu1 %v2481_v7  ;;  %v2563_v6 = vld [vmem:[%s3419_s1 + $0x370] ss:$8 sps:$4 sm:$0xff]  }
  0xa5   :  { %1855 = vmatprep.subr.bf16.mxu0 %v2484_v8  ;;  %v2566_v7 = vld [vmem:[%s3419_s1 + $0x770] ss:$8 sps:$4 sm:$0xff]   ;;  %v2571_v8 = vld [vmem:[%s3419_s1 + $0x384] ss:$8 sps:$4 sm:$0xff]  }
  0xa7   :  { %1692 = vmatpush1.bf16.msra.mxu1 %v2479_v9  ;;  %v374_v9 = vcombine.high %v2877_v33, %v2877_v33 }
  0xa8   :  { %1856 = vmatpush1.bf16.msra.mxu0 %v2482_v10  ;;  %1693 = vmatprep.subr.bf16.mxu1 %v2487_v11  ;;  %v2569_v10 = vld [vmem:[%s3419_s1 + $0x380] ss:$8 sps:$4 sm:$0xff]   ;;  %v2574_v11 = vld [vmem:[%s3419_s1 + $0x394] ss:$8 sps:$4 sm:$0xff]  }
  0xa9   :  { %1857 = vmatprep.subr.bf16.mxu0 %v2490_v12  ;;  %v2572_v12 = vld [vmem:[%s3419_s1 + $0x390] ss:$8 sps:$4 sm:$0xff]  }
  0xab   :  { %1694 = vmatpush1.bf16.msra.mxu1 %v2485_v13  ;;  %v2575_v13 = vld [vmem:[%s3419_s1 + $0x3a0] ss:$8 sps:$4 sm:$0xff]  }
  0xac   :  { %1858 = vmatpush1.bf16.msra.mxu0 %v2488_v14  ;;  %1695 = vmatprep.subr.bf16.mxu1 %v2493_v15  ;;  %v2580_v14 = vld [vmem:[%s3419_s1 + $0x3b4] ss:$8 sps:$4 sm:$0xff]   ;;  %v2578_v15 = vld [vmem:[%s3419_s1 + $0x3b0] ss:$8 sps:$4 sm:$0xff]  }
  0xad   :  { %1859 = vmatprep.subr.bf16.mxu0 %v2496_v16  ;;  %v2583_v16 = vld [vmem:[%s3419_s1 + $0x3c4] ss:$8 sps:$4 sm:$0xff]  }
  0xaf   :  { %1696 = vmatpush1.bf16.msra.mxu1 %v2491_v17  ;;  %v2581_v17 = vld [vmem:[%s3419_s1 + $0x3c0] ss:$8 sps:$4 sm:$0xff]  }
  0xb0   :  { %1860 = vmatpush1.bf16.msra.mxu0 %v2494_v18  ;;  %1697 = vmatprep.subr.bf16.mxu1 %v2499_v19  ;;  %v2586_v18 = vld [vmem:[%s3419_s1 + $0x3d4] ss:$8 sps:$4 sm:$0xff]   ;;  %v2584_v19 = vld [vmem:[%s3419_s1 + $0x3d0] ss:$8 sps:$4 sm:$0xff]  }
  0xb1   :  { %1861 = vmatprep.subr.bf16.mxu0 %v2502_v22  ;;  %v2589_v22 = vld [vmem:[%s3419_s1 + $0x3e4] ss:$8 sps:$4 sm:$0xff]  }
  0xb3   :  { %1698 = vmatpush1.bf16.msra.mxu1 %v2497_v23  ;;  %v2587_v23 = vld [vmem:[%s3419_s1 + $0x3e0] ss:$8 sps:$4 sm:$0xff]  }
  0xb4   :  { %1862 = vmatpush1.bf16.msra.mxu0 %v2500_v24  ;;  %1699 = vmatprep.subr.bf16.mxu1 %v2505_v25  ;;  %v2592_v24 = vld [vmem:[%s3419_s1 + $0x3f4] ss:$8 sps:$4 sm:$0xff]   ;;  %v2590_v25 = vld [vmem:[%s3419_s1 + $0x3f0] ss:$8 sps:$4 sm:$0xff]  }
  0xb5   :  { %1863 = vmatprep.subr.bf16.mxu0 %v2508_v26  ;;  %v325_v26 = vcombine.high %v2872_v30, %v2872_v30 }
  0xb7   :  { %1700 = vmatpush1.bf16.msra.mxu1 %v2503_v27  ;;  %v10_v27 = vstv %s3421_s4 }
  0xb8   :  { %1864 = vmatpush1.bf16.msra.mxu0 %v2506_v31  ;;  %1701 = vmatprep.subr.bf16.mxu1 %v2511_v32  ;;  %11 = vst [vmem:[#allocation2] sm:$0x1] %v10_v27 }
  0xb9   :  { %1865 = vmatprep.subr.bf16.mxu0 %v2514_v34 }
  0xbb   :  { %1702 = vmatpush1.bf16.msra.mxu1 %v2509_v35 }
  0xbc   :  { %1866 = vmatpush1.bf16.msra.mxu0 %v2512_v36  ;;  %1703 = vmatprep.subr.bf16.mxu1 %v2517_v37  ;;  %v269_v36 = vsub.s32 0, %v2746_v42  ;;  %v265_v37 = vld [vmem:[%s3422_s2] sm:$0x3] }
  0xbd   :  { %1867 = vmatprep.subr.bf16.mxu0 %v2520_v38  ;;  %v273_v38 = vsub.s32 1, %v2746_v42 }
  0xbf   :  { %1704 = vmatpush1.bf16.msra.mxu1 %v2515_v39  ;;  %v274_v39 = vrot.slane %v265_v37, %v273_v38 }
  0xc0   :  { %1868 = vmatpush1.bf16.msra.mxu0 %v2518_v40  ;;  %1714 = vmatprep.subr.bf16.mxu1 %v2523_v41  ;;  %v1919_v40 = vld [vmem:[%s3423_s3] sm:$0x3] }
  0xc1   :  { %1878 = vmatprep.subr.bf16.mxu0 %v2526_v20 }
  0xc2   :  { %1706 = vmatmul.mubr.bf16.vlgmr.msra.gmra.mrb[0].mxu1 %v2872_v30  ;;  %v270_v30 = vrot.slane %v265_v37, %v269_v36 }
  0xc3   :  { %1870 = vmatmul.mubr.bf16.vlgmr.msra.gmra.mrb[0].mxu0 %v2877_v33  ;;  %1715 = vmatpush1.bf16.msra.mxu1 %v2521_v21  ;;  %v2577_v33 = vld [vmem:[%s3419_s1 + $0x3a4] ss:$8 sps:$4 sm:$0xff]  }
  0xc4   :  { %1879 = vmatpush1.bf16.msra.mxu0 %v2524_v43  ;;  %1716 = vmatprep.subr.bf16.mxu1 %v2529_v44  ;;  %v1924_v43 = vrot.slane %v1919_v40, %v269_v36 }
  0xc5   :  { %1880 = vmatprep.subr.bf16.mxu0 %v2532_v45  ;;  %1910 = vmatprep.mubr.bf16.mxu0 %v2598_v49 }
  0xc6   :  { %1746 = vmatprep.mubr.bf16.mxu1 %v327_v46  ;;  %v1928_v46 = vrot.slane %v1919_v40, %v273_v38 }
  0xc7   :  { %1717 = vmatpush1.bf16.msra.mxu1 %v2527_v47 }
  0xc8   :  { %1881 = vmatpush1.bf16.msra.mxu0 %v2530_v48  ;;  %1718 = vmatprep.subr.bf16.mxu1 %v2535_v28 }
  0xc9   :  { %1882 = vmatprep.subr.bf16.mxu0 %v2538_v29 }
  0xcb   :  { %1719 = vmatpush1.bf16.msra.mxu1 %v2533_v50 }
  0xcc   :  { %1883 = vmatpush1.bf16.msra.mxu0 %v2536_v51  ;;  %1720 = vmatprep.subr.bf16.mxu1 %v2541_v52  ;;  %v2199_v52 = vld [vmem:[#allocation2] ss:$0 sm:$0xff] }
  0xcd   :  { %1884 = vmatprep.subr.bf16.mxu0 %v2544_v53 }
  0xcf   :  { %1721 = vmatpush1.bf16.msra.mxu1 %v2539_v54 }
  0xd0   :  { %1885 = vmatpush1.bf16.msra.mxu0 %v2542_v55  ;;  %1722 = vmatprep.subr.bf16.mxu1 %v2547_v56 }
  0xd1   :  { %1886 = vmatprep.subr.bf16.mxu0 %v2550_v57 }
  0xd3   :  { %1723 = vmatpush1.bf16.msra.mxu1 %v2545_v58 }
  0xd4   :  { %1887 = vmatpush1.bf16.msra.mxu0 %v2548_v59  ;;  %1724 = vmatprep.subr.bf16.mxu1 %v2553_v60 }
  0xd5   :  { %1888 = vmatprep.subr.bf16.mxu0 %v2556_v61 }
  0xd7   :  { %1725 = vmatpush1.bf16.msra.mxu1 %v2551_v62 }
  0xd8   :  { %1889 = vmatpush1.bf16.msra.mxu0 %v2554_v63  ;;  %1726 = vmatprep.subr.bf16.mxu1 %v2559_v0 }
  0xd9   :  { %1890 = vmatprep.subr.bf16.mxu0 %v2562_v1 }
  0xdb   :  { %1727 = vmatpush1.bf16.msra.mxu1 %v2557_v2 }
  0xdc   :  { %1891 = vmatpush1.bf16.msra.mxu0 %v2560_v3  ;;  %1728 = vmatprep.subr.bf16.mxu1 %v2565_v4 }
  0xdd   :  { %1892 = vmatprep.subr.bf16.mxu0 %v2568_v5 }
  0xdf   :  { %1729 = vmatpush1.bf16.msra.mxu1 %v2563_v6 }
  0xe0   :  { %1893 = vmatpush1.bf16.msra.mxu0 %v2566_v7  ;;  %1730 = vmatprep.subr.bf16.mxu1 %v2571_v8 }
  0xe3   :  { %1911 = vmatmul.mubr.bf16.vlgmr.msra.gmra.mrb[0].mxu0 %v374_v9  ;;  %1731 = vmatpush1.bf16.msra.mxu1 %v2569_v10 }
  0xe4   :  { %1732 = vmatprep.subr.bf16.mxu1 %v2574_v11 }
  0xe7   :  { %1733 = vmatpush1.bf16.msra.mxu1 %v2572_v12 }
  0xe8   :  { %1734 = vmatprep.subr.bf16.mxu1 %v2577_v33 }
  0xeb   :  { %1735 = vmatpush1.bf16.msra.mxu1 %v2575_v13 }
  0xec   :  { %1736 = vmatprep.subr.bf16.mxu1 %v2580_v14 }
  0xef   :  { %1737 = vmatpush1.bf16.msra.mxu1 %v2578_v15 }
  0xf0   :  { %1738 = vmatprep.subr.bf16.mxu1 %v2583_v16 }
  0xf3   :  { %1739 = vmatpush1.bf16.msra.mxu1 %v2581_v17 }
  0xf4   :  { %1740 = vmatprep.subr.bf16.mxu1 %v2586_v18 }
  0xf7   :  { %1741 = vmatpush1.bf16.msra.mxu1 %v2584_v19 }
  0xf8   :  { %1742 = vmatprep.subr.bf16.mxu1 %v2589_v22 }
  0xfb   :  { %1743 = vmatpush1.bf16.msra.mxu1 %v2587_v23 }
  0xfc   :  { %1744 = vmatprep.subr.bf16.mxu1 %v2592_v24 }
  0xff   :  { %1745 = vmatpush1.bf16.msra.mxu1 %v2590_v25 }
 0x102   :  { %1747 = vmatmul.mubr.bf16.vlgmr.msra.gmra.mrb[0].mxu1 %v325_v26 }
 0x1b6   :  { %v1912_v31 = vpop.f32.mrb[0].mxu0 }
 0x1b7   :  { %v1914_v32 = vpop.f32.mrb[1].mxu0 }
 0x1b8   :  { %v1916_v34 = vpop.f32.mrb[2].mxu0 }
 0x1b9   :  { %v1917_v35 = vpop.f32.mrb[3].mxu0 }
 0x1d5   :  { %v1748_v41 = vpop.f32.mrb[0].mxu1 }
 0x1d6   :  { %v2201_v20 = vadd.f32 %v1748_v41, %v270_v30  ;;  %v1750_v21 = vpop.f32.mrb[1].mxu1 }
 0x1d7   :  { %v2203_v44 = vadd.f32 %v1750_v21, %v274_v39  ;;  %v1752_v45 = vpop.f32.mrb[2].mxu1 }
 0x1d8   :  { %v2202_v47 = vadd.f32 %v2201_v20, %v1912_v31  ;;  %v1753_v48 = vpop.f32.mrb[3].mxu1 }
 0x1d9   :  { %v2204_v28 = vadd.f32 %v2203_v44, %v1914_v32 }
 0x1da   :  { %v1931_v29 = vmul.f32 %v2202_v47, %v1924_v43 }
 0x1db   :  { %v1932_v49 = vmul.f32 %v2204_v28, %v1928_v46 }
 0x1dc   :  { %v1934_v42 = vsel %vm1933_vm0, %v1931_v29, 0.0 }
 0x1dd   :  { %v1935_v50 = vsel %vm1933_vm0, %v1932_v49, 0.0 }
 0x1de   :  { %v1936_v51 = vadd.f32 %v1935_v50, %v1934_v42 }
 0x1e0   :  { %1937 = vadd.xlane.f32.xlu0 %v1936_v51 }
 0x26d   :  { %v1938_v53 = vpop.xlane.xlu0 %1937 }
 0x26e   :  { %v1946_v54 = vadd.f32 %v2199_v52, %v1938_v53 }
 0x270   :  { %v2200_v55 = vmul.f32 -1.442695, %v1946_v54 }
 0x272   :  { %2593 = vpow2.f32 %v2200_v55 }
 0x27c   :  { %v2594_v56 = vpop.eup %2593 }
 0x27d   :  { %v1950_v57 = vadd.f32 1.0, %v2594_v56 }
 0x27f   :  { %2595 = vrcp.f32 %v1950_v57 }
 0x289   :  { %v2596_v58 = vpop.eup %2595 }
 0x28a   :  { %1954 = vst.msk [vmem:[%s3424_s5] sm:$0x3] %vm1953_vm1, %v2596_v58 }

</bundles_post_ra>
